<compile_context>
chip_gen: v5e
topology: v5e:2x2
jax: 0.10.0
libtpu: 0.0.40
codegen_flags: <defaults>
</compile_context>

<pallas_src>
import functools

import jax
import jax.numpy as jnp
from jax.experimental import pallas as pl
from jax.experimental.pallas import tpu as pltpu


def _round_up(n, m):
    return ((n + m - 1) // m) * m


# ----------------------------- Pallas kernel ---------------------------------
def _vae_fwd_kernel(
    latent_dim,               # static (bound via functools.partial)
    x_ref, eps_ref,
    w1_ref, b1_ref,           # encoder.fc1             : (D_in, H)   bf16, (1, H)    f32
    wmulv_ref, bmulv_ref,     # fused fc_mu|fc_logvar   : (H, MLV)    bf16, (1, MLV)  f32
    wd1_ref, bd1_ref,         # decoder.fc1             : (L, H)      bf16, (1, H)    f32
    wd2_ref, bd2_ref,         # decoder.fc2             : (H, D_in)   bf16, (1, D_in) f32
    xhat_ref, mulv_ref,
):
    L = latent_dim

    # ---- Encoder fc1 + ReLU (in-kernel bf16 cast of x; f32 MXU accumulation) ----
    x = x_ref[...].astype(jnp.bfloat16)
    h = jnp.dot(x, w1_ref[...], preferred_element_type=jnp.float32) + b1_ref[...]
    h = jnp.maximum(h, 0.0).astype(jnp.bfloat16)

    # ---- Fused fc_mu | fc_logvar, padded to a lane-dense 128-wide output ----
    mulv = jnp.dot(h, wmulv_ref[...], preferred_element_type=jnp.float32) + bmulv_ref[...]
    mu = mulv[:, :L]
    logvar = mulv[:, L:2 * L]

    # ---- Reparameterize (f32 elementwise): z = mu + eps * exp(0.5 * logvar) ----
    z = mu + eps_ref[...] * jnp.exp(0.5 * logvar)

    # ---- Decoder ----
    h2 = jnp.dot(z.astype(jnp.bfloat16), wd1_ref[...],
                 preferred_element_type=jnp.float32) + bd1_ref[...]
    h2 = jnp.maximum(h2, 0.0).astype(jnp.bfloat16)
    logits = jnp.dot(h2, wd2_ref[...], preferred_element_type=jnp.float32) + bd2_ref[...]

    # sigmoid(x) = 0.5 * tanh(0.5 * x) + 0.5  -> one EUP transcendental, in [0, 1]
    xhat_ref[...] = (0.5 * jnp.tanh(0.5 * logits) + 0.5).astype(xhat_ref.dtype)
    mulv_ref[...] = mulv                        # (tile_b, 128) lane-dense store


# ------------------------------ Wrapper ---------------------------------------
@functools.partial(jax.jit, static_argnames=("tile_b",))
def vae_forward(x, eps, kp, *, tile_b=128):
    """x: (B, D_in) f32, eps: (B, L) f32, kp: kernel-ready params.

    Returns (x_hat bf16 (B, D_in), mulv f32 (B, MLV)) where mulv[:, :L] = mu and
    mulv[:, L:2L] = logvar (remaining columns are zero padding).

    tile_b: 128 (default) keeps the grid length >= 2 at B >= 256 so both v7x
    TensorCores are used; on single-TC v5e/v6e pass 256-512 for fewer grid steps.
    """
    B, D_in = x.shape
    L = eps.shape[1]
    H = kp["w1"].shape[1]
    MLV = kp["wmulv"].shape[1]                   # padded fused width (multiple of 128)

    tile_b = min(tile_b, _round_up(B, 8))
    Bp = _round_up(B, tile_b)
    if Bp != B:
        x = jnp.pad(x, ((0, Bp - B), (0, 0)))
        eps = jnp.pad(eps, ((0, Bp - B), (0, 0)))

    grid = (Bp // tile_b,)
    row = lambda i: (i, 0)                       # batch-tiled operands
    res = lambda i: (0, 0)                       # weights/biases: VMEM-resident
    # NOTE: weight specs could use pipeline_mode=pl.Buffered(1) to drop the dead
    # second buffer (~1.3 MiB) for extra v7x VMEM headroom; footprint already fits.

    x_hat, mulv = pl.pallas_call(
        functools.partial(_vae_fwd_kernel, L),
        out_shape=(
            jax.ShapeDtypeStruct((Bp, D_in), jnp.bfloat16),   # x_hat (bf16 writeback)
            jax.ShapeDtypeStruct((Bp, MLV), jnp.float32),     # mu | logvar | pad
        ),
        grid=grid,
        in_specs=[
            pl.BlockSpec((tile_b, D_in), row),                # x (f32, cast in kernel)
            pl.BlockSpec((tile_b, L), row),                   # eps
            pl.BlockSpec((D_in, H), res), pl.BlockSpec((1, H), res),        # fc1
            pl.BlockSpec((H, MLV), res), pl.BlockSpec((1, MLV), res),       # mu|logvar
            pl.BlockSpec((L, H), res), pl.BlockSpec((1, H), res),           # dec fc1
            pl.BlockSpec((H, D_in), res), pl.BlockSpec((1, D_in), res),     # dec fc2
        ],
        out_specs=(
            pl.BlockSpec((tile_b, D_in), row),
            pl.BlockSpec((tile_b, MLV), row),
        ),
        compiler_params=pltpu.CompilerParams(
            dimension_semantics=("parallel",),    # megacore / v7x 2-TC sharding
            vmem_limit_bytes=16 << 20,            # footprint is only a few MiB
        ),
    )(x, eps, kp["w1"], kp["b1"], kp["wmulv"], kp["bmulv"],
      kp["wd1"], kp["bd1"], kp["wd2"], kp["bd2"])

    return x_hat[:B], mulv[:B]


# -------------------------- Parameter construction ----------------------------
def init_vae_params(key, input_dim, hidden_dim, latent_dim):
    """PyTorch-style (uniform +/- 1/sqrt(fan_in)) init; weights stored as (in, out)."""
    def linear(k, fan_in, fan_out):
        kw, kb = jax.random.split(k)
        bound = 1.0 / float(fan_in) ** 0.5
        w = jax.random.uniform(kw, (fan_in, fan_out), jnp.float32, -bound, bound)
        b = jax.random.uniform(kb, (1, fan_out), jnp.float32, -bound, bound)
        return w, b

    k1, k2, k3, k4, k5 = jax.random.split(key, 5)
    w1, b1 = linear(k1, input_dim, hidden_dim)        # encoder.fc1
    wmu, bmu = linear(k2, hidden_dim, latent_dim)     # encoder.fc_mu
    wlv, blv = linear(k3, hidden_dim, latent_dim)     # encoder.fc_logvar
    wd1, bd1 = linear(k4, latent_dim, hidden_dim)     # decoder.fc1
    wd2, bd2 = linear(k5, hidden_dim, input_dim)      # decoder.fc2
    return dict(w1=w1, b1=b1, wmu=wmu, bmu=bmu, wlv=wlv, blv=blv,
                wd1=wd1, bd1=bd1, wd2=wd2, bd2=bd2)


def prepare_kernel_params(p):
    """Kernel-ready params: bf16 weights, f32 biases, fc_mu|fc_logvar fused and
    zero-padded to a 128-lane-aligned width (padded columns produce zeros)."""
    wmu, wlv, bmu, blv = p["wmu"], p["wlv"], p["bmu"], p["blv"]
    H, L = wmu.shape
    MLV = _round_up(2 * L, 128)
    wmulv = jnp.zeros((H, MLV), jnp.float32)
    wmulv = wmulv.at[:, :L].set(wmu).at[:, L:2 * L].set(wlv)
    bmulv = jnp.zeros((1, MLV), jnp.float32)
    bmulv = bmulv.at[:, :L].set(bmu).at[:, L:2 * L].set(blv)
    return dict(
        w1=p["w1"].astype(jnp.bfloat16), b1=p["b1"],
        wmulv=wmulv.astype(jnp.bfloat16), bmulv=bmulv,
        wd1=p["wd1"].astype(jnp.bfloat16), bd1=p["bd1"],
        wd2=p["wd2"].astype(jnp.bfloat16), bd2=p["bd2"],
    )


# Pure-JAX reference matching the kernel's bf16-rounded matmul operands.
def vae_forward_ref(x, eps, kp):
    hi = jax.lax.Precision.HIGHEST
    f32 = lambda a: a.astype(jnp.float32)
    L = eps.shape[1]
    xb = f32(x.astype(jnp.bfloat16))
    h = jnp.maximum(jnp.dot(xb, f32(kp["w1"]), precision=hi) + kp["b1"], 0.0)
    hb = f32(h.astype(jnp.bfloat16))
    mulv = jnp.dot(hb, f32(kp["wmulv"]), precision=hi) + kp["bmulv"]
    mu, logvar = mulv[:, :L], mulv[:, L:2 * L]
    z = mu + eps * jnp.exp(0.5 * logvar)
    zb = f32(z.astype(jnp.bfloat16))
    h2 = jnp.maximum(jnp.dot(zb, f32(kp["wd1"]), precision=hi) + kp["bd1"], 0.0)
    h2b = f32(h2.astype(jnp.bfloat16))
    x_hat = jax.nn.sigmoid(jnp.dot(h2b, f32(kp["wd2"]), precision=hi) + kp["bd2"])
    return x_hat, mu, logvar


if __name__ == "__main__":
    # Module-implied feature shapes (nn.Linear defaults); batch large enough to
    # give 2 batch tiles of 128 (keeps both v7x TensorCores busy).
    INPUT_DIM, HIDDEN_DIM, LATENT_DIM = 784, 400, 20
    BATCH = 256

    key = jax.random.PRNGKey(0)
    kx, keps, kparam = jax.random.split(key, 3)

    x = jax.random.uniform(kx, (BATCH, INPUT_DIM), jnp.float32)      # MNIST-like pixels
    # eps = torch.randn_like(std): sampled outside the kernel, deterministic here.
    eps = jax.random.normal(keps, (BATCH, LATENT_DIM), jnp.float32)

    params_f32 = init_vae_params(kparam, INPUT_DIM, HIDDEN_DIM, LATENT_DIM)
    kparams = prepare_kernel_params(params_f32)

    x_hat, mulv = vae_forward(x, eps, kparams)
    jax.block_until_ready((x_hat, mulv))

    # Consumer-side lazy slices of the fused mu|logvar slab.
    mu = mulv[:, :LATENT_DIM]
    logvar = mulv[:, LATENT_DIM:2 * LATENT_DIM]

    # Correctness check against a pure-JAX reference using the same bf16 weights.
    x_hat_r, mu_r, logvar_r = vae_forward_ref(x, eps, kparams)
    assert x_hat.shape == (BATCH, INPUT_DIM) and x_hat.dtype == jnp.bfloat16
    assert mu.shape == (BATCH, LATENT_DIM) and logvar.shape == (BATCH, LATENT_DIM)
    assert jnp.allclose(mu, mu_r, atol=2e-3, rtol=2e-2), \
        float(jnp.max(jnp.abs(mu - mu_r)))
    assert jnp.allclose(logvar, logvar_r, atol=2e-3, rtol=2e-2), \
        float(jnp.max(jnp.abs(logvar - logvar_r)))
    # x_hat is stored in bf16 (and uses hardware tanh) -> slightly looser tolerance.
    xh = x_hat.astype(jnp.float32)
    assert jnp.allclose(xh, x_hat_r, atol=8e-3, rtol=5e-2), \
        float(jnp.max(jnp.abs(xh - x_hat_r)))
    # x_hat stays in [0, 1] (tanh form, no approx reciprocal overshoot).
    assert float(jnp.min(xh)) >= 0.0 and float(jnp.max(xh)) <= 1.0

    print("KERNEL_OK")
</pallas_src>

<mosaic_0001>
module attributes {stable_mosaic.version = 11 : i64} {
  func.func @_vae_fwd_kernel(%arg0: i32, %arg1: memref<128x784xf32, #tpu.memory_space<vmem>>, %arg2: memref<128x20xf32, #tpu.memory_space<vmem>>, %arg3: memref<784x400xbf16, #tpu.memory_space<vmem>>, %arg4: memref<1x400xf32, #tpu.memory_space<vmem>>, %arg5: memref<400x128xbf16, #tpu.memory_space<vmem>>, %arg6: memref<1x128xf32, #tpu.memory_space<vmem>>, %arg7: memref<20x400xbf16, #tpu.memory_space<vmem>>, %arg8: memref<1x400xf32, #tpu.memory_space<vmem>>, %arg9: memref<400x784xbf16, #tpu.memory_space<vmem>>, %arg10: memref<1x784xf32, #tpu.memory_space<vmem>>, %arg11: memref<128x784xbf16, #tpu.memory_space<vmem>>, %arg12: memref<128x128xf32, #tpu.memory_space<vmem>>) attributes {dimension_semantics = [#tpu.dimension_semantics<parallel>], iteration_bounds = array<i64: 2>, scalar_prefetch = 0 : i64, scratch_operands = 0 : i64, tpu.core_type = #tpu.core_type<tc>, window_params = [{transform_indices = @transform_0, window_bounds = array<i64: 128, 784>}, {transform_indices = @transform_1, window_bounds = array<i64: 128, 20>}, {pipeline_mode = #tpu.pipeline_mode<synchronous>, transform_indices = @transform_2, window_bounds = array<i64: 784, 400>}, {pipeline_mode = #tpu.pipeline_mode<synchronous>, transform_indices = @transform_3, window_bounds = array<i64: 1, 400>}, {pipeline_mode = #tpu.pipeline_mode<synchronous>, transform_indices = @transform_4, window_bounds = array<i64: 400, 128>}, {pipeline_mode = #tpu.pipeline_mode<synchronous>, transform_indices = @transform_5, window_bounds = array<i64: 1, 128>}, {pipeline_mode = #tpu.pipeline_mode<synchronous>, transform_indices = @transform_6, window_bounds = array<i64: 20, 400>}, {pipeline_mode = #tpu.pipeline_mode<synchronous>, transform_indices = @transform_7, window_bounds = array<i64: 1, 400>}, {pipeline_mode = #tpu.pipeline_mode<synchronous>, transform_indices = @transform_8, window_bounds = array<i64: 400, 784>}, {pipeline_mode = #tpu.pipeline_mode<synchronous>, transform_indices = @transform_9, window_bounds = array<i64: 1, 784>}, {transform_indices = @transform_10, window_bounds = array<i64: 128, 784>}, {transform_indices = @transform_11, window_bounds = array<i64: 128, 128>}]} {
    %c0 = arith.constant 0 : index
    %c0_0 = arith.constant 0 : index
    %0 = vector.load %arg1[%c0, %c0_0] : memref<128x784xf32, #tpu.memory_space<vmem>>, vector<128x784xf32>
    %1 = arith.truncf %0 : vector<128x784xf32> to vector<128x784xbf16>
    %c0_1 = arith.constant 0 : index
    %c0_2 = arith.constant 0 : index
    %2 = vector.load %arg3[%c0_1, %c0_2] : memref<784x400xbf16, #tpu.memory_space<vmem>>, vector<784x400xbf16>
    %cst = arith.constant dense<0.000000e+00> : vector<128x400xf32>
    %3 = tpu.matmul %1, %2, %cst {dimension_numbers = #tpu.dot_dimension_numbers<[1], [0], [0], [1], [0, 0, 1, 1], [], []>} : vector<128x784xbf16>, vector<784x400xbf16>, vector<128x400xf32> -> vector<128x400xf32>
    %c0_3 = arith.constant 0 : index
    %c0_4 = arith.constant 0 : index
    %4 = vector.load %arg4[%c0_3, %c0_4] : memref<1x400xf32, #tpu.memory_space<vmem>>, vector<1x400xf32>
    %5 = vector.broadcast %4 : vector<1x400xf32> to vector<128x400xf32>
    %6 = arith.addf %3, %5 : vector<128x400xf32>
    %cst_5 = arith.constant 0.000000e+00 : f32
    %7 = vector.broadcast %cst_5 : f32 to vector<128x400xf32>
    %8 = arith.maximumf %6, %7 : vector<128x400xf32>
    %9 = arith.truncf %8 : vector<128x400xf32> to vector<128x400xbf16>
    %c0_6 = arith.constant 0 : index
    %c0_7 = arith.constant 0 : index
    %10 = vector.load %arg5[%c0_6, %c0_7] : memref<400x128xbf16, #tpu.memory_space<vmem>>, vector<400x128xbf16>
    %cst_8 = arith.constant dense<0.000000e+00> : vector<128x128xf32>
    %11 = tpu.matmul %9, %10, %cst_8 {dimension_numbers = #tpu.dot_dimension_numbers<[1], [0], [0], [1], [0, 0, 1, 1], [], []>} : vector<128x400xbf16>, vector<400x128xbf16>, vector<128x128xf32> -> vector<128x128xf32>
    %c0_9 = arith.constant 0 : index
    %c0_10 = arith.constant 0 : index
    %12 = vector.load %arg6[%c0_9, %c0_10] : memref<1x128xf32, #tpu.memory_space<vmem>>, vector<1x128xf32>
    %13 = vector.broadcast %12 : vector<1x128xf32> to vector<128x128xf32>
    %14 = arith.addf %11, %13 : vector<128x128xf32>
    %15 = vector.extract_strided_slice %14 {offsets = [0, 0], sizes = [128, 20], strides = [1, 1]} : vector<128x128xf32> to vector<128x20xf32>
    %16 = vector.extract_strided_slice %14 {offsets = [0, 20], sizes = [128, 20], strides = [1, 1]} : vector<128x128xf32> to vector<128x20xf32>
    %c0_11 = arith.constant 0 : index
    %c0_12 = arith.constant 0 : index
    %17 = vector.load %arg2[%c0_11, %c0_12] : memref<128x20xf32, #tpu.memory_space<vmem>>, vector<128x20xf32>
    %cst_13 = arith.constant 5.000000e-01 : f32
    %18 = vector.broadcast %cst_13 : f32 to vector<128x20xf32>
    %19 = arith.mulf %18, %16 : vector<128x20xf32>
    %20 = math.exp %19 : vector<128x20xf32>
    %21 = arith.mulf %17, %20 : vector<128x20xf32>
    %22 = arith.addf %15, %21 : vector<128x20xf32>
    %23 = arith.truncf %22 : vector<128x20xf32> to vector<128x20xbf16>
    %c0_14 = arith.constant 0 : index
    %c0_15 = arith.constant 0 : index
    %24 = vector.load %arg7[%c0_14, %c0_15] : memref<20x400xbf16, #tpu.memory_space<vmem>>, vector<20x400xbf16>
    %cst_16 = arith.constant dense<0.000000e+00> : vector<128x400xf32>
    %25 = tpu.matmul %23, %24, %cst_16 {dimension_numbers = #tpu.dot_dimension_numbers<[1], [0], [0], [1], [0, 0, 1, 1], [], []>} : vector<128x20xbf16>, vector<20x400xbf16>, vector<128x400xf32> -> vector<128x400xf32>
    %c0_17 = arith.constant 0 : index
    %c0_18 = arith.constant 0 : index
    %26 = vector.load %arg8[%c0_17, %c0_18] : memref<1x400xf32, #tpu.memory_space<vmem>>, vector<1x400xf32>
    %27 = vector.broadcast %26 : vector<1x400xf32> to vector<128x400xf32>
    %28 = arith.addf %25, %27 : vector<128x400xf32>
    %cst_19 = arith.constant 0.000000e+00 : f32
    %29 = vector.broadcast %cst_19 : f32 to vector<128x400xf32>
    %30 = arith.maximumf %28, %29 : vector<128x400xf32>
    %31 = arith.truncf %30 : vector<128x400xf32> to vector<128x400xbf16>
    %c0_20 = arith.constant 0 : index
    %c0_21 = arith.constant 0 : index
    %32 = vector.load %arg9[%c0_20, %c0_21] : memref<400x784xbf16, #tpu.memory_space<vmem>>, vector<400x784xbf16>
    %cst_22 = arith.constant dense<0.000000e+00> : vector<128x784xf32>
    %33 = tpu.matmul %31, %32, %cst_22 {dimension_numbers = #tpu.dot_dimension_numbers<[1], [0], [0], [1], [0, 0, 1, 1], [], []>} : vector<128x400xbf16>, vector<400x784xbf16>, vector<128x784xf32> -> vector<128x784xf32>
    %c0_23 = arith.constant 0 : index
    %c0_24 = arith.constant 0 : index
    %34 = vector.load %arg10[%c0_23, %c0_24] : memref<1x784xf32, #tpu.memory_space<vmem>>, vector<1x784xf32>
    %35 = vector.broadcast %34 : vector<1x784xf32> to vector<128x784xf32>
    %36 = arith.addf %33, %35 : vector<128x784xf32>
    %cst_25 = arith.constant 5.000000e-01 : f32
    %37 = vector.broadcast %cst_25 : f32 to vector<128x784xf32>
    %38 = arith.mulf %37, %36 : vector<128x784xf32>
    %39 = math.tanh %38 : vector<128x784xf32>
    %cst_26 = arith.constant 5.000000e-01 : f32
    %40 = vector.broadcast %cst_26 : f32 to vector<128x784xf32>
    %41 = arith.mulf %40, %39 : vector<128x784xf32>
    %cst_27 = arith.constant 5.000000e-01 : f32
    %42 = vector.broadcast %cst_27 : f32 to vector<128x784xf32>
    %43 = arith.addf %41, %42 : vector<128x784xf32>
    %44 = arith.truncf %43 : vector<128x784xf32> to vector<128x784xbf16>
    %c0_28 = arith.constant 0 : index
    %c0_29 = arith.constant 0 : index
    %45 = vector.load %arg11[%c0_28, %c0_29] : memref<128x784xbf16, #tpu.memory_space<vmem>>, vector<128x784xbf16>
    tpu.vector_store %arg11[%c0_28, %c0_29], %44 {strides = array<i32>} : memref<128x784xbf16, #tpu.memory_space<vmem>>, vector<128x784xbf16>,
    %c0_30 = arith.constant 0 : index
    %c0_31 = arith.constant 0 : index
    %46 = vector.load %arg12[%c0_30, %c0_31] : memref<128x128xf32, #tpu.memory_space<vmem>>, vector<128x128xf32>
    tpu.vector_store %arg12[%c0_30, %c0_31], %14 {strides = array<i32>} : memref<128x128xf32, #tpu.memory_space<vmem>>, vector<128x128xf32>,
    return
  }
  func.func @transform_0(%arg0: i32) -> (i32, i32) {
    %c0_i32 = arith.constant 0 : i32
    %c0_i32_0 = arith.constant 0 : i32
    return %arg0, %c0_i32 : i32, i32
  }
  func.func @transform_1(%arg0: i32) -> (i32, i32) {
    %c0_i32 = arith.constant 0 : i32
    %c0_i32_0 = arith.constant 0 : i32
    return %arg0, %c0_i32 : i32, i32
  }
  func.func @transform_2(%arg0: i32) -> (i32, i32) {
    %c0_i32 = arith.constant 0 : i32
    %c0_i32_0 = arith.constant 0 : i32
    %c0_i32_1 = arith.constant 0 : i32
    return %c0_i32, %c0_i32_0 : i32, i32
  }
  func.func @transform_3(%arg0: i32) -> (i32, i32) {
    %c0_i32 = arith.constant 0 : i32
    %c0_i32_0 = arith.constant 0 : i32
    %c0_i32_1 = arith.constant 0 : i32
    return %c0_i32, %c0_i32_0 : i32, i32
  }
  func.func @transform_4(%arg0: i32) -> (i32, i32) {
    %c0_i32 = arith.constant 0 : i32
    %c0_i32_0 = arith.constant 0 : i32
    %c0_i32_1 = arith.constant 0 : i32
    return %c0_i32, %c0_i32_0 : i32, i32
  }
  func.func @transform_5(%arg0: i32) -> (i32, i32) {
    %c0_i32 = arith.constant 0 : i32
    %c0_i32_0 = arith.constant 0 : i32
    %c0_i32_1 = arith.constant 0 : i32
    return %c0_i32, %c0_i32_0 : i32, i32
  }
  func.func @transform_6(%arg0: i32) -> (i32, i32) {
    %c0_i32 = arith.constant 0 : i32
    %c0_i32_0 = arith.constant 0 : i32
    %c0_i32_1 = arith.constant 0 : i32
    return %c0_i32, %c0_i32_0 : i32, i32
  }
  func.func @transform_7(%arg0: i32) -> (i32, i32) {
    %c0_i32 = arith.constant 0 : i32
    %c0_i32_0 = arith.constant 0 : i32
    %c0_i32_1 = arith.constant 0 : i32
    return %c0_i32, %c0_i32_0 : i32, i32
  }
  func.func @transform_8(%arg0: i32) -> (i32, i32) {
    %c0_i32 = arith.constant 0 : i32
    %c0_i32_0 = arith.constant 0 : i32
    %c0_i32_1 = arith.constant 0 : i32
    return %c0_i32, %c0_i32_0 : i32, i32
  }
  func.func @transform_9(%arg0: i32) -> (i32, i32) {
    %c0_i32 = arith.constant 0 : i32
    %c0_i32_0 = arith.constant 0 : i32
    %c0_i32_1 = arith.constant 0 : i32
    return %c0_i32, %c0_i32_0 : i32, i32
  }
  func.func @transform_10(%arg0: i32) -> (i32, i32) {
    %c0_i32 = arith.constant 0 : i32
    %c0_i32_0 = arith.constant 0 : i32
    return %arg0, %c0_i32 : i32, i32
  }
  func.func @transform_11(%arg0: i32) -> (i32, i32) {
    %c0_i32 = arith.constant 0 : i32
    %c0_i32_0 = arith.constant 0 : i32
    return %arg0, %c0_i32 : i32, i32
  }
}

</mosaic_0001>

<bundles_post_ra>
// kernel: vae_forward.1
= control target key start
LH: loop header
LB: loop body
LE: loop exit
PB: predicated region body
PF: predicated region fallthrough
CT: control target
= control target key end

     0   :  { %s14416_s0 = inlined_call_operand.vmem [shape: f32[256,784], index: 0, kind: input, shape index: {}]   ;;  %s14417_s1 = inlined_call_operand.vmem [shape: f32[256,20], index: 1, kind: input, shape index: {}]   ;;  %s14418_s2 = inlined_call_operand.vmem [shape: bf16[784,400], index: 2, kind: input, shape index: {}]   ;;  %s14419_s3 = inlined_call_operand.vmem [shape: f32[1,400], index: 3, kind: input, shape index: {}]   ;;  %s14420_s4 = inlined_call_operand.vmem [shape: bf16[400,128], index: 4, kind: input, shape index: {}]   ;;  %s14421_s5 = inlined_call_operand.vmem [shape: f32[1,128], index: 5, kind: input, shape index: {}]   ;;  %s14422_s6 = inlined_call_operand.vmem [shape: bf16[20,400], index: 6, kind: input, shape index: {}]   ;;  %s14423_s7 = inlined_call_operand.vmem [shape: f32[1,400], index: 7, kind: input, shape index: {}]   ;;  %s14424_s8 = inlined_call_operand.vmem [shape: bf16[400,784], index: 8, kind: input, shape index: {}]   ;;  %s14425_s9 = inlined_call_operand.vmem [shape: f32[1,784], index: 9, kind: input, shape index: {}]   ;;  %s14426_s10 = inlined_call_operand.vmem [shape: bf16[256,784], index: 10, kind: output, shape index: {0}]   ;;  %s14427_s11 = inlined_call_operand.hbm [shape: f32[256,128], index: 11, kind: output, shape index: {1}]  }
   0x1   :  { %14514 = sst [smem:[#allocation51_spill]] %s14416_s0 }
   0x2   :  { %14515 = sst [smem:[#allocation52_spill]] %s14418_s2 }
   0x3   :  { %17 = vsyncpa [#allocation3], 0 }
   0x4   :  { %19 = vsyncpa [#allocation3 + $0x1], 0  ;;  %s10054_s17 = smov 0   ;;  %s10056_s18 = smov 0  }
   0x5   :  { %s10058_s19 = smov 0   ;;  %s10060_s20 = smov 0  }
   0x6 LB: > { %14516 = sst [smem:[#allocation5_spill]] %s9985_s19  ;;  %s10075_s21 = sadd.s32 4294967295, %s9989_s20   ;;  %s9989_s20 = sphi %s10060_s20, %s14670_s20   ;;  %s9985_s19 = sphi %s10058_s19, %s14667_s19   ;;  %s9981_s18 = sphi %s10056_s18, %s14669_s18   ;;  %s9977_s17 = sphi %s10054_s17, %s14668_s17  }
   0x7   : > { %s7476_s22 = sadd.s32 4294967294, %s9989_s20   ;;  %s10079_s23 = sadd.s32 1, %s9989_s20  }
   0x8   : > { %s278_s24 = sadd.s32 1, %s9985_s19  ;;  %s275_s25 = ssub.s32 %s9989_s20, %s10079_s23 }
   0x9   : > { %p288_p0 = scmp.ne.s32.totalorder %s9985_s19, %s9981_s18  ;;  %p276_p1 = scmp.eq.s32.totalorder %s275_s25, 0 }
   0xa   : > { %p289_p2 = scmp.eq.s32.totalorder %s10075_s21, 1  ;;  %p294_p3 = scmp.ne.s32.totalorder %s9981_s18, %s9977_s17 }
   0xb   : > { %p295_p4 = scmp.eq.s32.totalorder %s7476_s22, 1  ;;  %p7479_p7 = scmp.ge.s32.totalorder %s9989_s20, 1 }
   0xc   : > { %s10090_s26 = scalar_select %p276_p1, %s9985_s19, %s278_s24  }
   0xd   : > { %p10092_p5 = por %p289_p2, %p288_p0  ;;  %p10096_p6 = por %p295_p4, %p294_p3 }
   0xe   : > { %14517 = sst [smem:[#allocation6_spill]] %s10090_s26  ;;  %p356_p8 = scmp.lt.s32.totalorder %s9989_s20, 3 }
  0x10   : > { %p357_p9 = pnand %p7479_p7, %p356_p8 }
  0x12   : > { %360 = sbr.rel (%p357_p9) target bundleno = 2445 (0x98d), region = 60 }
  0x17   : > { %s14520_s2 = sld [smem:[#allocation52_spill]]  ;;  %s7481_s26 = sshll.u32 %s10075_s21, 4  ;;  %vm1784_vm0 = vcmask 130048   ;;  %vm3940_vm1 = vcmask 1041408   ;;  %vm3915_vm2 = vcmask 162816  }
  0x18   : > { %p409_p10 = scmp.lt.s32.totalorder %s7481_s26, 31  ;;  %s14521_s0 = sld [smem:[#allocation51_spill]] }
  0x19   : > { %s14499_s19 = sand.u32 1, %s9981_s18   ;;  %s14500_s13 = smov 108  }
  0x1a   : > { %s14672_s26 = smov (!%p409_p10, %s7481_s26), 31  ;;  %s7480_s29 = sshll.u32 %s14499_s19, 7 }
  0x1b   : > { %s9621_s25 = smul.u32 56, %s14672_s26  ;;  %s12329_s12 = scalar_lea.vmem [#allocation2], %s7480_s29 }
  0x1c   : > { %s7484_s24 = sshll.u32 %s14672_s26, 3  ;;  %s9622_s16 = smul.u32 28, %s14672_s26 }
  0x1d   : > { %v7601_v0 = vld [vmem:[%s14520_s2 + $0xe0] sm:$0xf]  ;;  %v9250_v1 = vld [vmem:[%s14520_s2 + $0xec] sm:$0xf0]  ;;  %s12475_s19 = scalar_lea.vmem %s14417_s1, %s7484_s24  ;;  %s9620_s26 = sshll.u32 %s10075_s21, 7 }
  0x1e   : > { %v7729_v2 = vld [vmem:[%s14520_s2 + $0x1e0] sm:$0xf]  ;;  %v7602_v3 = vor.u32 %v9250_v1, %v7601_v0  ;;  %v9282_v4 = vld [vmem:[%s14520_s2 + $0x1ec] sm:$0xf0]  ;;  %s10316_s30 = scalar_lea.vmem %s14521_s0, %s9621_s25  ;;  %s14665_s21 = sand.u32 1, %s9981_s18  }
  0x1f   : > { %v7857_v5 = vld [vmem:[%s14520_s2 + $0x2e0] sm:$0xf]  ;;  %v9314_v6 = vld [vmem:[%s14520_s2 + $0x2ec] sm:$0xf0]  ;;  %v7730_v7 = vor.u32 %v9282_v4, %v7729_v2  ;;  %s7357_s29 = scalar_lea.sflag [#allocation3], %s14665_s21  ;;  %s9947_s0 = scalar_lea.hbm %s14427_s11, 256 }
  0x20   : > { %v7858_v8 = vor.u32 %v9314_v6, %v7857_v5  ;;  %v7985_v9 = vld [vmem:[%s14520_s2 + $0x3e0] sm:$0xf]  ;;  %v9346_v10 = vld [vmem:[%s14520_s2 + $0x3ec] sm:$0xf0]  ;;  %1809 = vmatpush.bf16.msra.mxu0 %v7602_v3 }
  0x21   : > { %v7585_v11 = vld [vmem:[%s14520_s2 + $0xc0] sm:$0xf]  ;;  %v7986_v12 = vor.u32 %v9346_v10, %v7985_v9  ;;  %v9246_v13 = vld [vmem:[%s14520_s2 + $0xcc] sm:$0xf0]  ;;  %1858 = vmatpush.bf16.msra.mxu1 %v7730_v7 }
  0x22   : > { %v7713_v14 = vld [vmem:[%s14520_s2 + $0x1c0] sm:$0xf]  ;;  %v9278_v15 = vld [vmem:[%s14520_s2 + $0x1cc] sm:$0xf0]  ;;  %1907 = vmatpush.bf16.msra.mxu2 %v7858_v8  ;;  %v7586_v16 = vor.u32 %v9246_v13, %v7585_v11 }
  0x23   : > { %v7714_v17 = vor.u32 %v9278_v15, %v7713_v14  ;;  %v7841_v18 = vld [vmem:[%s14520_s2 + $0x2c0] sm:$0xf]  ;;  %v9310_v19 = vld [vmem:[%s14520_s2 + $0x2cc] sm:$0xf0]  ;;  %1956 = vmatpush.bf16.msra.mxu3 %v7986_v12 }
  0x24   : > { %v7969_v20 = vld [vmem:[%s14520_s2 + $0x3c0] sm:$0xf]  ;;  %v7842_v21 = vor.u32 %v9310_v19, %v7841_v18  ;;  %v9342_v22 = vld [vmem:[%s14520_s2 + $0x3cc] sm:$0xf0]  ;;  %1810 = vmatpush.bf16.msra.mxu0 %v7586_v16 }
  0x25   : > { %v7569_v23 = vld [vmem:[%s14520_s2 + $0xa0] sm:$0xf]  ;;  %v9242_v24 = vld [vmem:[%s14520_s2 + $0xac] sm:$0xf0]  ;;  %v7970_v25 = vor.u32 %v9342_v22, %v7969_v20  ;;  %1859 = vmatpush.bf16.msra.mxu1 %v7714_v17 }
  0x26   : > { %v7697_v26 = vld [vmem:[%s14520_s2 + $0x1a0] sm:$0xf]  ;;  %v9274_v27 = vld [vmem:[%s14520_s2 + $0x1ac] sm:$0xf0]  ;;  %v7570_v29 = vor.u32 %v9242_v24, %v7569_v23  ;;  %1908 = vmatpush.bf16.msra.mxu2 %v7842_v21 }
  0x27   : > { %v7825_v28 = vld [vmem:[%s14520_s2 + $0x2a0] sm:$0xf]  ;;  %v9306_v30 = vld [vmem:[%s14520_s2 + $0x2ac] sm:$0xf0]  ;;  %v7698_v33 = vor.u32 %v9274_v27, %v7697_v26  ;;  %1957 = vmatpush.bf16.msra.mxu3 %v7970_v25 }
  0x28   : > { %v7953_v31 = vld [vmem:[%s14520_s2 + $0x3a0] sm:$0xf]  ;;  %v9338_v32 = vld [vmem:[%s14520_s2 + $0x3ac] sm:$0xf0]  ;;  %v7826_v34 = vor.u32 %v9306_v30, %v7825_v28  ;;  %1811 = vmatpush.bf16.msra.mxu0 %v7570_v29 }
  0x29   : > { %v7553_v35 = vld [vmem:[%s14520_s2 + $0x80] sm:$0xf]  ;;  %v9238_v36 = vld [vmem:[%s14520_s2 + $0x8c] sm:$0xf0]  ;;  %v7954_v38 = vor.u32 %v9338_v32, %v7953_v31  ;;  %1860 = vmatpush.bf16.msra.mxu1 %v7698_v33  ;;  %v9248_v32 = vld [vmem:[%s14520_s2 + $0xe4] sm:$0xf] }
  0x2a   : > { %v7681_v37 = vld [vmem:[%s14520_s2 + $0x180] sm:$0xf]  ;;  %v9270_v39 = vld [vmem:[%s14520_s2 + $0x18c] sm:$0xf0]  ;;  %v7554_v44 = vor.u32 %v9238_v36, %v7553_v35  ;;  %1909 = vmatpush.bf16.msra.mxu2 %v7826_v34  ;;  %v7603_v33 = vld [vmem:[%s14520_s2 + $0xf0] sm:$0xf0] }
  0x2b   : > { %v7809_v40 = vld [vmem:[%s14520_s2 + $0x280] sm:$0xf]  ;;  %v9302_v41 = vld [vmem:[%s14520_s2 + $0x28c] sm:$0xf0]  ;;  %v7682_v45 = vor.u32 %v9270_v39, %v7681_v37  ;;  %1958 = vmatpush.bf16.msra.mxu3 %v7954_v38 }
  0x2c   : > { %v7937_v42 = vld [vmem:[%s14520_s2 + $0x380] sm:$0xf]  ;;  %v9334_v43 = vld [vmem:[%s14520_s2 + $0x38c] sm:$0xf0]  ;;  %v7810_v46 = vor.u32 %v9302_v41, %v7809_v40  ;;  %1812 = vmatpush.bf16.msra.mxu0 %v7554_v44  ;;  %v437_v41 = vld [vmem:[%s10316_s30 + $0x38] sm:$0xff] }
  0x2d   : > { %v7537_v47 = vld [vmem:[%s14520_s2 + $0x60] sm:$0xf]  ;;  %v9234_v48 = vld [vmem:[%s14520_s2 + $0x6c] sm:$0xf0]  ;;  %v7938_v50 = vor.u32 %v9334_v43, %v7937_v42  ;;  %1861 = vmatpush.bf16.msra.mxu1 %v7682_v45  ;;  %v431_v42 = vld [vmem:[%s10316_s30 + $0x8] sm:$0xff] }
  0x2e   : > { %v7665_v49 = vld [vmem:[%s14520_s2 + $0x160] sm:$0xf]  ;;  %v9266_v51 = vld [vmem:[%s14520_s2 + $0x16c] sm:$0xf0]  ;;  %v7538_v56 = vor.u32 %v9234_v48, %v7537_v47  ;;  %1910 = vmatpush.bf16.msra.mxu2 %v7810_v46  ;;  %v9244_v44 = vld [vmem:[%s14520_s2 + $0xc4] sm:$0xf] }
  0x2f   : > { %v7793_v52 = vld [vmem:[%s14520_s2 + $0x260] sm:$0xf]  ;;  %v9298_v53 = vld [vmem:[%s14520_s2 + $0x26c] sm:$0xf0]  ;;  %v7666_v57 = vor.u32 %v9266_v51, %v7665_v49  ;;  %1959 = vmatpush.bf16.msra.mxu3 %v7938_v50  ;;  %v439_v48 = vld [vmem:[%s10316_s30 + $0x48] sm:$0xff]  ;;  %v7606_v49 = vor.u32 %v9248_v32, %v7603_v33 }
  0x30   : > { %v7921_v54 = vld [vmem:[%s14520_s2 + $0x360] sm:$0xf]  ;;  %v9330_v55 = vld [vmem:[%s14520_s2 + $0x36c] sm:$0xf0]  ;;  %v7794_v58 = vor.u32 %v9298_v53, %v7793_v52  ;;  %1813 = vmatpush.bf16.msra.mxu0 %v7538_v56  ;;  %v433_v52 = vld [vmem:[%s10316_s30 + $0x18] sm:$0xff] }
  0x31   : > { %v7521_v59 = vld [vmem:[%s14520_s2 + $0x40] sm:$0xf]  ;;  %v9230_v60 = vld [vmem:[%s14520_s2 + $0x4c] sm:$0xf0]  ;;  %v7922_v62 = vor.u32 %v9330_v55, %v7921_v54  ;;  %1862 = vmatpush.bf16.msra.mxu1 %v7666_v57  ;;  %v7587_v54 = vld [vmem:[%s14520_s2 + $0xd0] sm:$0xf0] }
  0x32   : > { %v7649_v61 = vld [vmem:[%s14520_s2 + $0x140] sm:$0xf]  ;;  %v9262_v63 = vld [vmem:[%s14520_s2 + $0x14c] sm:$0xf0]  ;;  %v7522_v4 = vor.u32 %v9230_v60, %v7521_v59  ;;  %1911 = vmatpush.bf16.msra.mxu2 %v7794_v58  ;;  %v7590_v60 = vor.u32 %v9244_v44, %v7587_v54  ;;  %v465_v32 = vld [vmem:[%s10316_s30 + $0x118] sm:$0xff] }
  0x33   : > { %v7777_v0 = vld [vmem:[%s14520_s2 + $0x240] sm:$0xf]  ;;  %v9294_v1 = vld [vmem:[%s14520_s2 + $0x24c] sm:$0xf0]  ;;  %v7650_v6 = vor.u32 %v9262_v63, %v7649_v61  ;;  %1960 = vmatpush.bf16.msra.mxu3 %v7922_v62  ;;  %v459_v33 = vld [vmem:[%s10316_s30 + $0xe8] sm:$0xff] }
  0x34   : > { %v7905_v2 = vld [vmem:[%s14520_s2 + $0x340] sm:$0xf]  ;;  %v9326_v3 = vld [vmem:[%s14520_s2 + $0x34c] sm:$0xf0]  ;;  %v7778_v7 = vor.u32 %v9294_v1, %v7777_v0  ;;  %1814 = vmatpush.bf16.msra.mxu0 %v7522_v4  ;;  %v7571_v4 = vld [vmem:[%s14520_s2 + $0xb0] sm:$0xf0] }
  0x35   : > { %v7505_v5 = vld [vmem:[%s14520_s2 + $0x20] sm:$0xf]  ;;  %v9226_v8 = vld [vmem:[%s14520_s2 + $0x2c] sm:$0xf0]  ;;  %v7906_v11 = vor.u32 %v9326_v3, %v7905_v2  ;;  %1863 = vmatpush.bf16.msra.mxu1 %v7650_v6  ;;  %v9240_v3 = vld [vmem:[%s14520_s2 + $0xa4] sm:$0xf] }
  0x36   : > { %v7633_v9 = vld [vmem:[%s14520_s2 + $0x120] sm:$0xf]  ;;  %v9258_v10 = vld [vmem:[%s14520_s2 + $0x12c] sm:$0xf0]  ;;  %v7506_v16 = vor.u32 %v9226_v8, %v7505_v5  ;;  %1912 = vmatpush.bf16.msra.mxu2 %v7778_v7  ;;  %v7574_v7 = vor.u32 %v9240_v3, %v7571_v4 }
  0x37   : > { %v7761_v12 = vld [vmem:[%s14520_s2 + $0x220] sm:$0xf]  ;;  %v9290_v13 = vld [vmem:[%s14520_s2 + $0x22c] sm:$0xf0]  ;;  %v7634_v20 = vor.u32 %v9258_v10, %v7633_v9  ;;  %1961 = vmatpush.bf16.msra.mxu3 %v7906_v11  ;;  %v451_v11 = vld [vmem:[%s10316_s30 + $0xa8] sm:$0xff] }
  0x38   : > { %v7889_v14 = vld [vmem:[%s14520_s2 + $0x320] sm:$0xf]  ;;  %v9322_v15 = vld [vmem:[%s14520_s2 + $0x32c] sm:$0xf0]  ;;  %v7762_v21 = vor.u32 %v9290_v13, %v7761_v12  ;;  %1815 = vmatpush.bf16.msra.mxu0 %v7506_v16  ;;  %v445_v12 = vld [vmem:[%s10316_s30 + $0x78] sm:$0xff] }
  0x39   : > { %v7489_v17 = vld [vmem:[%s14520_s2] sm:$0xf]  ;;  %v9222_v18 = vld [vmem:[%s14520_s2 + $0xc] sm:$0xf0]  ;;  %v7890_v24 = vor.u32 %v9322_v15, %v7889_v14  ;;  %1864 = vmatpush.bf16.msra.mxu1 %v7634_v20  ;;  %v453_v15 = vld [vmem:[%s10316_s30 + $0xb8] sm:$0xff] }
  0x3a   : > { %v7617_v19 = vld [vmem:[%s14520_s2 + $0x100] sm:$0xf]  ;;  %v9254_v22 = vld [vmem:[%s14520_s2 + $0x10c] sm:$0xf0]  ;;  %v7490_v30 = vor.u32 %v9222_v18, %v7489_v17  ;;  %1913 = vmatpush.bf16.msra.mxu2 %v7762_v21  ;;  %v447_v16 = vld [vmem:[%s10316_s30 + $0x88] sm:$0xff] }
  0x3b   : > { %v7745_v23 = vld [vmem:[%s14520_s2 + $0x200] sm:$0xf]  ;;  %v9286_v25 = vld [vmem:[%s14520_s2 + $0x20c] sm:$0xf0]  ;;  %v7618_v34 = vor.u32 %v9254_v22, %v7617_v19  ;;  %1962 = vmatpush.bf16.msra.mxu3 %v7890_v24  ;;  %v9236_v24 = vld [vmem:[%s14520_s2 + $0x84] sm:$0xf] }
  0x3c   : > { %v7873_v26 = vld [vmem:[%s14520_s2 + $0x300] sm:$0xf]  ;;  %v9318_v27 = vld [vmem:[%s14520_s2 + $0x30c] sm:$0xf0]  ;;  %v7746_v35 = vor.u32 %v9286_v25, %v7745_v23  ;;  %1816 = vmatpush.bf16.msra.mxu0 %v7490_v30 }
  0x3d   : > { %v8257_v28 = vld [vmem:[%s14520_s2 + $0x600] sm:$0xf]  ;;  %v9414_v29 = vld [vmem:[%s14520_s2 + $0x60c] sm:$0xf0]  ;;  %v7874_v39 = vor.u32 %v9318_v27, %v7873_v26  ;;  %1865 = vmatpush.bf16.msra.mxu1 %v7618_v34  ;;  %v7555_v26 = vld [vmem:[%s14520_s2 + $0x90] sm:$0xf0] }
  0x3e   : > { %v8113_v31 = vld [vmem:[%s14520_s2 + $0x4e0] sm:$0xf]  ;;  %v9378_v36 = vld [vmem:[%s14520_s2 + $0x4ec] sm:$0xf0]  ;;  %v8258_v43 = vor.u32 %v9414_v29, %v8257_v28  ;;  %1914 = vmatpush.bf16.msra.mxu2 %v7746_v35  ;;  %v7558_v29 = vor.u32 %v9236_v24, %v7555_v26 }
  0x3f   : > { %v8241_v37 = vld [vmem:[%s14520_s2 + $0x5e0] sm:$0xf]  ;;  %v9410_v38 = vld [vmem:[%s14520_s2 + $0x5ec] sm:$0xf0]  ;;  %v8114_v56 = vor.u32 %v9378_v36, %v8113_v31  ;;  %1963 = vmatpush.bf16.msra.mxu3 %v7874_v39  ;;  %v467_v36 = vld [vmem:[%s10316_s30 + $0x128] sm:$0xff] }
  0x40   : > { %v430_v40 = vld [vmem:[%s10316_s30] sm:$0xff]  ;;  %v432_v47 = vld [vmem:[%s10316_s30 + $0x10] sm:$0xff]  ;;  %v8242_v57 = vor.u32 %v9410_v38, %v8241_v37  ;;  %v461_v37 = vld [vmem:[%s10316_s30 + $0xf8] sm:$0xff] }
  0x41   : > { %v10333_v45 = vpack.c.bf16 %v437_v41, %v430_v40  ;;  %v438_v46 = vld [vmem:[%s10316_s30 + $0x40] sm:$0xff]  ;;  %v10340_v51 = vpack.c.bf16 %v439_v48, %v432_v47  ;;  %v440_v53 = vld [vmem:[%s10316_s30 + $0x50] sm:$0xff]  ;;  %2005 = vmatpush.bf16.msrb.mxu0 %v8114_v56 }
  0x42   : > { %v10338_v50 = vpack.c.bf16 %v438_v46, %v431_v42  ;;  %v10347_v55 = vpack.c.bf16 %v440_v53, %v433_v52  ;;  %2110 = vmatpush.bf16.msrb.mxu2 %v8258_v43  ;;  %v8097_v58 = vld [vmem:[%s14520_s2 + $0x4c0] sm:$0xf]  ;;  %v9374_v59 = vld [vmem:[%s14520_s2 + $0x4cc] sm:$0xf0]  ;;  %2054 = vmatpush.bf16.msrb.mxu1 %v8242_v57  ;;  %v9232_v46 = vld [vmem:[%s14520_s2 + $0x64] sm:$0xf] }
  0x43   : > { %14522 = vst [vmem:[#allocation7_spill] sm:$0xff] %v10333_v45  ;;  %1817 = vmatmul.bf16.vlgmr.msra.gmra.mxu0 %v10333_v45  ;;  %2152 = vmatpush.bf16.msrb.mxu3 %v7606_v49  ;;  %v8225_v61 = vld [vmem:[%s14520_s2 + $0x5c0] sm:$0xf]  ;;  %v9406_v62 = vld [vmem:[%s14520_s2 + $0x5cc] sm:$0xf0]  ;;  %v8098_v63 = vor.u32 %v9374_v59, %v8097_v58  ;;  %v479_v57 = vld [vmem:[%s10316_s30 + $0x188] sm:$0xff] }
  0x44   : > { %14523 = vst [vmem:[#allocation8_spill] sm:$0xff] %v10338_v50  ;;  %1866 = vmatmul.bf16.vlgmr.msra.gmra.mxu1 %v10338_v50  ;;  %1915 = vmatmul.bf16.vlgmr.msra.gmra.mxu2 %v10340_v51  ;;  %v8226_v0 = vor.u32 %v9406_v62, %v8225_v61  ;;  %v8081_v1 = vld [vmem:[%s14520_s2 + $0x4a0] sm:$0xf]  ;;  %v9370_v2 = vld [vmem:[%s14520_s2 + $0x4ac] sm:$0xf0]  ;;  %v473_v58 = vld [vmem:[%s10316_s30 + $0x158] sm:$0xff] }
  0x45   : > { %1964 = vmatmul.bf16.vlgmr.msra.gmra.mxu3 %v10347_v55  ;;  %v8209_v5 = vld [vmem:[%s14520_s2 + $0x5a0] sm:$0xf]  ;;  %v9402_v6 = vld [vmem:[%s14520_s2 + $0x5ac] sm:$0xf0]  ;;  %2006 = vmatpush.bf16.msrb.mxu0 %v8098_v63  ;;  %v8082_v8 = vor.u32 %v9370_v2, %v8081_v1  ;;  %v7539_v48 = vld [vmem:[%s14520_s2 + $0x70] sm:$0xf0] }
  0x46   : > { %2055 = vmatpush.bf16.msrb.mxu1 %v8226_v0  ;;  %v8210_v9 = vor.u32 %v9402_v6, %v8209_v5  ;;  %v444_v10 = vld [vmem:[%s10316_s30 + $0x70] sm:$0xff]  ;;  %v446_v14 = vld [vmem:[%s10316_s30 + $0x80] sm:$0xff]  ;;  %v7542_v53 = vor.u32 %v9232_v46, %v7539_v48  ;;  %v481_v61 = vld [vmem:[%s10316_s30 + $0x198] sm:$0xff] }
  0x47   : > { %2153 = vmatpush.bf16.msrb.mxu3 %v7590_v60  ;;  %v452_v13 = vld [vmem:[%s10316_s30 + $0xb0] sm:$0xff]  ;;  %v454_v17 = vld [vmem:[%s10316_s30 + $0xc0] sm:$0xff]  ;;  %v10391_v18 = vpack.c.bf16 %v451_v11, %v444_v10  ;;  %v10395_v20 = vpack.c.bf16 %v453_v15, %v446_v14  ;;  %v475_v62 = vld [vmem:[%s10316_s30 + $0x168] sm:$0xff] }
  0x48   : > { %v10393_v19 = vpack.c.bf16 %v452_v13, %v445_v12  ;;  %v10397_v21 = vpack.c.bf16 %v454_v17, %v447_v16  ;;  %v8065_v22 = vld [vmem:[%s14520_s2 + $0x480] sm:$0xf]  ;;  %v9366_v23 = vld [vmem:[%s14520_s2 + $0x48c] sm:$0xf0]  ;;  %v9228_v6 = vld [vmem:[%s14520_s2 + $0x44] sm:$0xf] }
  0x49   : > { %2007 = vmatpush.bf16.msrb.mxu0 %v8082_v8  ;;  %14524 = vst [vmem:[#allocation9_spill] sm:$0xff] %v10391_v18  ;;  %v8066_v25 = vor.u32 %v9366_v23, %v8065_v22  ;;  %v8193_v27 = vld [vmem:[%s14520_s2 + $0x580] sm:$0xf]  ;;  %v9398_v28 = vld [vmem:[%s14520_s2 + $0x58c] sm:$0xf0]  ;;  %v493_v14 = vld [vmem:[%s10316_s30 + $0x1f8] sm:$0xff] }
  0x4a   : > { %2056 = vmatpush.bf16.msrb.mxu1 %v8210_v9  ;;  %14525 = vst [vmem:[#allocation10_spill] sm:$0xff] %v10393_v19  ;;  %v8194_v30 = vor.u32 %v9398_v28, %v8193_v27  ;;  %v458_v31 = vld [vmem:[%s10316_s30 + $0xe0] sm:$0xff]  ;;  %v460_v35 = vld [vmem:[%s10316_s30 + $0xf0] sm:$0xff]  ;;  %v487_v15 = vld [vmem:[%s10316_s30 + $0x1c8] sm:$0xff] }
  0x4b   : > { %2154 = vmatpush.bf16.msrb.mxu3 %v7574_v7  ;;  %v466_v34 = vld [vmem:[%s10316_s30 + $0x120] sm:$0xff]  ;;  %v468_v38 = vld [vmem:[%s10316_s30 + $0x130] sm:$0xff]  ;;  %v10429_v39 = vpack.c.bf16 %v465_v32, %v458_v31  ;;  %v10433_v41 = vpack.c.bf16 %v467_v36, %v460_v35  ;;  %v495_v22 = vld [vmem:[%s10316_s30 + $0x208] sm:$0xff] }
  0x4c   : > { %v10431_v40 = vpack.c.bf16 %v466_v34, %v459_v33  ;;  %v10435_v42 = vpack.c.bf16 %v468_v38, %v461_v37  ;;  %v8049_v43 = vld [vmem:[%s14520_s2 + $0x460] sm:$0xf]  ;;  %v9362_v44 = vld [vmem:[%s14520_s2 + $0x46c] sm:$0xf0]  ;;  %v7523_v8 = vld [vmem:[%s14520_s2 + $0x50] sm:$0xf0] }
  0x4d   : > { %2008 = vmatpush.bf16.msrb.mxu0 %v8066_v25  ;;  %14526 = vst [vmem:[#allocation11_spill] sm:$0xff] %v10429_v39  ;;  %v8050_v47 = vor.u32 %v9362_v44, %v8049_v43  ;;  %v8177_v49 = vld [vmem:[%s14520_s2 + $0x560] sm:$0xf]  ;;  %v9394_v52 = vld [vmem:[%s14520_s2 + $0x56c] sm:$0xf0]  ;;  %v7526_v11 = vor.u32 %v9228_v6, %v7523_v8  ;;  %v489_v23 = vld [vmem:[%s10316_s30 + $0x1d8] sm:$0xff] }
  0x4e   : > { %2057 = vmatpush.bf16.msrb.mxu1 %v8194_v30  ;;  %14527 = vst [vmem:[#allocation12_spill] sm:$0xff] %v10431_v40  ;;  %v8178_v54 = vor.u32 %v9394_v52, %v8177_v49  ;;  %v472_v56 = vld [vmem:[%s10316_s30 + $0x150] sm:$0xff]  ;;  %v474_v60 = vld [vmem:[%s10316_s30 + $0x160] sm:$0xff]  ;;  %v507_v43 = vld [vmem:[%s10316_s30 + $0x268] sm:$0xff] }
  0x4f   : > { %2155 = vmatpush.bf16.msrb.mxu3 %v7558_v29  ;;  %v480_v59 = vld [vmem:[%s10316_s30 + $0x190] sm:$0xff]  ;;  %v482_v63 = vld [vmem:[%s10316_s30 + $0x1a0] sm:$0xff]  ;;  %v10467_v0 = vpack.c.bf16 %v479_v57, %v472_v56  ;;  %v10471_v2 = vpack.c.bf16 %v481_v61, %v474_v60  ;;  %v501_v44 = vld [vmem:[%s10316_s30 + $0x238] sm:$0xff] }
  0x50   : > { %v10469_v1 = vpack.c.bf16 %v480_v59, %v473_v58  ;;  %v10473_v3 = vpack.c.bf16 %v482_v63, %v475_v62  ;;  %v8033_v4 = vld [vmem:[%s14520_s2 + $0x440] sm:$0xf]  ;;  %v9358_v5 = vld [vmem:[%s14520_s2 + $0x44c] sm:$0xf0]  ;;  %v9224_v31 = vld [vmem:[%s14520_s2 + $0x24] sm:$0xf] }
  0x51   : > { %2009 = vmatpush.bf16.msrb.mxu0 %v8050_v47  ;;  %14528 = vst [vmem:[#allocation13_spill] sm:$0xff] %v10467_v0  ;;  %v8034_v7 = vor.u32 %v9358_v5, %v8033_v4  ;;  %v8161_v9 = vld [vmem:[%s14520_s2 + $0x540] sm:$0xf]  ;;  %v9390_v10 = vld [vmem:[%s14520_s2 + $0x54c] sm:$0xf0]  ;;  %v509_v48 = vld [vmem:[%s10316_s30 + $0x278] sm:$0xff] }
  0x52   : > { %2058 = vmatpush.bf16.msrb.mxu1 %v8178_v54  ;;  %14529 = vst [vmem:[#allocation14_spill] sm:$0xff] %v10469_v1  ;;  %v8162_v12 = vor.u32 %v9390_v10, %v8161_v9  ;;  %v486_v13 = vld [vmem:[%s10316_s30 + $0x1c0] sm:$0xff]  ;;  %v488_v17 = vld [vmem:[%s10316_s30 + $0x1d0] sm:$0xff]  ;;  %v503_v49 = vld [vmem:[%s10316_s30 + $0x248] sm:$0xff] }
  0x53   : > { %1822 = vmatmul.bf16.gmra.mxu0 %v10391_v18  ;;  %2156 = vmatpush.bf16.msrb.mxu3 %v7542_v53  ;;  %v494_v16 = vld [vmem:[%s10316_s30 + $0x200] sm:$0xff]  ;;  %v496_v24 = vld [vmem:[%s10316_s30 + $0x210] sm:$0xff]  ;;  %v10505_v25 = vpack.c.bf16 %v493_v14, %v486_v13  ;;  %v10509_v27 = vpack.c.bf16 %v495_v22, %v488_v17  ;;  %v521_v8 = vld [vmem:[%s10316_s30 + $0x2d8] sm:$0xff] }
  0x54   : > { %1871 = vmatmul.bf16.gmra.mxu1 %v10393_v19  ;;  %1920 = vmatmul.bf16.gmra.mxu2 %v10395_v20  ;;  %v10507_v26 = vpack.c.bf16 %v494_v16, %v487_v15  ;;  %v10511_v28 = vpack.c.bf16 %v496_v24, %v489_v23  ;;  %v8017_v29 = vld [vmem:[%s14520_s2 + $0x420] sm:$0xf]  ;;  %v9354_v30 = vld [vmem:[%s14520_s2 + $0x42c] sm:$0xf0]  ;;  %v7507_v33 = vld [vmem:[%s14520_s2 + $0x30] sm:$0xf0] }
  0x55   : > { %1969 = vmatmul.bf16.gmra.mxu3 %v10397_v21  ;;  %2010 = vmatpush.bf16.msrb.mxu0 %v8034_v7  ;;  %14530 = vst [vmem:[#allocation15_spill] sm:$0xff] %v10505_v25  ;;  %v8018_v32 = vor.u32 %v9354_v30, %v8017_v29  ;;  %v8145_v34 = vld [vmem:[%s14520_s2 + $0x520] sm:$0xf]  ;;  %v9386_v35 = vld [vmem:[%s14520_s2 + $0x52c] sm:$0xf0]  ;;  %v7510_v36 = vor.u32 %v9224_v31, %v7507_v33  ;;  %v515_v9 = vld [vmem:[%s10316_s30 + $0x2a8] sm:$0xff] }
  0x56   : > { %2059 = vmatpush.bf16.msrb.mxu1 %v8162_v12  ;;  %14531 = vst [vmem:[#allocation16_spill] sm:$0xff] %v10507_v26  ;;  %v8146_v37 = vor.u32 %v9386_v35, %v8145_v34  ;;  %v500_v38 = vld [vmem:[%s10316_s30 + $0x230] sm:$0xff]  ;;  %v502_v47 = vld [vmem:[%s10316_s30 + $0x240] sm:$0xff]  ;;  %v523_v12 = vld [vmem:[%s10316_s30 + $0x2e8] sm:$0xff] }
  0x57   : > { %2157 = vmatpush.bf16.msrb.mxu3 %v7526_v11  ;;  %v508_v46 = vld [vmem:[%s10316_s30 + $0x270] sm:$0xff]  ;;  %v510_v52 = vld [vmem:[%s10316_s30 + $0x280] sm:$0xff]  ;;  %v10543_v53 = vpack.c.bf16 %v507_v43, %v500_v38  ;;  %v10547_v56 = vpack.c.bf16 %v509_v48, %v502_v47  ;;  %v517_v13 = vld [vmem:[%s10316_s30 + $0x2b8] sm:$0xff] }
  0x58   : > { %v10545_v54 = vpack.c.bf16 %v508_v46, %v501_v44  ;;  %v10549_v57 = vpack.c.bf16 %v510_v52, %v503_v49  ;;  %v8001_v58 = vld [vmem:[%s14520_s2 + $0x400] sm:$0xf]  ;;  %v9350_v59 = vld [vmem:[%s14520_s2 + $0x40c] sm:$0xf0]  ;;  %v9220_v60 = vld [vmem:[%s14520_s2 + $0x4] sm:$0xf] }
  0x59   : > { %2011 = vmatpush.bf16.msrb.mxu0 %v8018_v32  ;;  %14532 = vst [vmem:[#allocation17_spill] sm:$0xff] %v10543_v53  ;;  %v8002_v61 = vor.u32 %v9350_v59, %v8001_v58  ;;  %v7491_v62 = vld [vmem:[%s14520_s2 + $0x10] sm:$0xf0]  ;;  %v8129_v63 = vld [vmem:[%s14520_s2 + $0x500] sm:$0xf]  ;;  %v535_v44 = vld [vmem:[%s10316_s30 + $0x348] sm:$0xff] }
  0x5a   : > { %2060 = vmatpush.bf16.msrb.mxu1 %v8146_v37  ;;  %14533 = vst [vmem:[#allocation18_spill] sm:$0xff] %v10545_v54  ;;  %v9382_v4 = vld [vmem:[%s14520_s2 + $0x50c] sm:$0xf0]  ;;  %v7494_v5 = vor.u32 %v9220_v60, %v7491_v62  ;;  %v514_v7 = vld [vmem:[%s10316_s30 + $0x2a0] sm:$0xff]  ;;  %v7987_v24 = vld [vmem:[%s14520_s2 + $0x3f0] sm:$0xf0] }
  0x5b   : > { %2158 = vmatpush.bf16.msrb.mxu3 %v7510_v36  ;;  %v8130_v6 = vor.u32 %v9382_v4, %v8129_v63  ;;  %v522_v10 = vld [vmem:[%s10316_s30 + $0x2e0] sm:$0xff]  ;;  %v516_v11 = vld [vmem:[%s10316_s30 + $0x2b0] sm:$0xff]  ;;  %v10581_v15 = vpack.c.bf16 %v521_v8, %v514_v7  ;;  %v529_v46 = vld [vmem:[%s10316_s30 + $0x318] sm:$0xff] }
  0x5c   : > { %v524_v14 = vld [vmem:[%s10316_s30 + $0x2f0] sm:$0xff]  ;;  %v10583_v16 = vpack.c.bf16 %v522_v10, %v515_v9  ;;  %v10585_v17 = vpack.c.bf16 %v523_v12, %v516_v11  ;;  %v9344_v23 = vld [vmem:[%s14520_s2 + $0x3e4] sm:$0xf]  ;;  %v537_v49 = vld [vmem:[%s10316_s30 + $0x358] sm:$0xff] }
  0x5d   : > { %2012 = vmatpush.bf16.msrb.mxu0 %v8002_v61  ;;  %14534 = vst [vmem:[#allocation19_spill] sm:$0xff] %v10581_v15  ;;  %v10587_v22 = vpack.c.bf16 %v524_v14, %v517_v13  ;;  %v9280_v29 = vld [vmem:[%s14520_s2 + $0x1e4] sm:$0xf]  ;;  %v7990_v30 = vor.u32 %v9344_v23, %v7987_v24  ;;  %v7731_v31 = vld [vmem:[%s14520_s2 + $0x1f0] sm:$0xf0]  ;;  %v531_v52 = vld [vmem:[%s10316_s30 + $0x328] sm:$0xff] }
  0x5e   : > { %2061 = vmatpush.bf16.msrb.mxu1 %v8130_v6  ;;  %14535 = vst [vmem:[#allocation20_spill] sm:$0xff] %v10583_v16  ;;  %v9376_v32 = vld [vmem:[%s14520_s2 + $0x4e4] sm:$0xf]  ;;  %v8115_v33 = vld [vmem:[%s14520_s2 + $0x4f0] sm:$0xf0]  ;;  %v7734_v34 = vor.u32 %v9280_v29, %v7731_v31  ;;  %v441_v29 = vld [vmem:[%s10316_s30 + $0x58] sm:$0xff] }
  0x5f   : > { %2159 = vmatpush.bf16.msrb.mxu3 %v7494_v5  ;;  %v8118_v35 = vor.u32 %v9376_v32, %v8115_v33  ;;  %2299 = vmatpush.bf16.msra.mxu2 %v7990_v30  ;;  %v9312_v36 = vld [vmem:[%s14520_s2 + $0x2e4] sm:$0xf]  ;;  %v7859_v37 = vld [vmem:[%s14520_s2 + $0x2f0] sm:$0xf0]  ;;  %v794_v12 = vld [vmem:[%s14419_s3] sm:$0xf] }
  0x60   : > { %v7862_v38 = vor.u32 %v9312_v36, %v7859_v37  ;;  %v528_v43 = vld [vmem:[%s10316_s30 + $0x310] sm:$0xff]  ;;  %v530_v48 = vld [vmem:[%s10316_s30 + $0x320] sm:$0xff]  ;;  %v435_v30 = vld [vmem:[%s10316_s30 + $0x28] sm:$0xff]  ;;  %v10667_v31 = vperm.slane %v794_v12, 0 }
  0x61   : > { %2201 = vmatpush.bf16.msra.mxu0 %v7734_v34  ;;  %v536_v47 = vld [vmem:[%s10316_s30 + $0x350] sm:$0xff]  ;;  %v538_v58 = vld [vmem:[%s10316_s30 + $0x360] sm:$0xff]  ;;  %v10625_v59 = vpack.c.bf16 %v535_v44, %v528_v43  ;;  %v10629_v61 = vpack.c.bf16 %v537_v49, %v530_v48  ;;  %v443_v34 = vld [vmem:[%s10316_s30 + $0x68] sm:$0xff] }
  0x62   : > { %2250 = vmatpush.bf16.msra.mxu1 %v7862_v38  ;;  %v10627_v60 = vpack.c.bf16 %v536_v47, %v529_v46  ;;  %v10631_v62 = vpack.c.bf16 %v538_v58, %v531_v52  ;;  %v9340_v63 = vld [vmem:[%s14520_s2 + $0x3c4] sm:$0xf]  ;;  %v7971_v4 = vld [vmem:[%s14520_s2 + $0x3d0] sm:$0xf0] }
  0x63   : > { %1827 = vmatmul.bf16.gmra.mxu0 %v10429_v39  ;;  %2348 = vmatpush.bf16.msra.mxu3 %v8118_v35  ;;  %14536 = vst [vmem:[#allocation21_spill] sm:$0xff] %v10625_v59  ;;  %v9276_v5 = vld [vmem:[%s14520_s2 + $0x1c4] sm:$0xf]  ;;  %v7974_v6 = vor.u32 %v9340_v63, %v7971_v4  ;;  %v7715_v7 = vld [vmem:[%s14520_s2 + $0x1d0] sm:$0xf0] }
  0x64   : > { %1876 = vmatmul.bf16.gmra.mxu1 %v10431_v40  ;;  %1925 = vmatmul.bf16.gmra.mxu2 %v10433_v41  ;;  %14537 = vst [vmem:[#allocation22_spill] sm:$0xff] %v10627_v60  ;;  %v9372_v8 = vld [vmem:[%s14520_s2 + $0x4c4] sm:$0xf]  ;;  %v8099_v9 = vld [vmem:[%s14520_s2 + $0x4d0] sm:$0xf0]  ;;  %v7718_v10 = vor.u32 %v9276_v5, %v7715_v7 }
  0x65   : > { %1974 = vmatmul.bf16.gmra.mxu3 %v10435_v42  ;;  %14538 = vst [vmem:[#allocation23_spill] sm:$0xff] %v10629_v61  ;;  %v8102_v11 = vor.u32 %v9372_v8, %v8099_v9  ;;  %2300 = vmatpush.bf16.msra.mxu2 %v7974_v6  ;;  %v9308_v13 = vld [vmem:[%s14520_s2 + $0x2c4] sm:$0xf]  ;;  %v7843_v14 = vld [vmem:[%s14520_s2 + $0x2d0] sm:$0xf0] }
  0x66   : > { %14539 = vst [vmem:[#allocation24_spill] sm:$0xff] %v10631_v62  ;;  %2202 = vmatpush.bf16.msra.mxu0 %v7718_v10  ;;  %v7846_v23 = vor.u32 %v9308_v13, %v7843_v14  ;;  %v434_v24 = vld [vmem:[%s10316_s30 + $0x20] sm:$0xff]  ;;  %v436_v33 = vld [vmem:[%s10316_s30 + $0x30] sm:$0xff] }
  0x67   : > { %2349 = vmatpush.bf16.msra.mxu3 %v8102_v11  ;;  %v442_v32 = vld [vmem:[%s10316_s30 + $0x60] sm:$0xff]  ;;  %v10672_v35 = vpack.c.bf16 %v441_v29, %v434_v24  ;;  %v10676_v38 = vpack.c.bf16 %v443_v34, %v436_v33  ;;  %v7955_v48 = vld [vmem:[%s14520_s2 + $0x3b0] sm:$0xf0]  ;;  %v449_v33 = vld [vmem:[%s10316_s30 + $0x98] sm:$0xff] }
  0x68   : > { %2251 = vmatpush.bf16.msra.mxu1 %v7846_v23  ;;  %v10674_v37 = vpack.c.bf16 %v442_v32, %v435_v30  ;;  %v9336_v47 = vld [vmem:[%s14520_s2 + $0x3a4] sm:$0xf]  ;;  %v7699_v58 = vld [vmem:[%s14520_s2 + $0x1b0] sm:$0xf0]  ;;  %v455_v32 = vld [vmem:[%s10316_s30 + $0xc8] sm:$0xff] }
  0x69   : > { %14540 = vst [vmem:[#allocation25_spill] sm:$0xff] %v10672_v35  ;;  %v9272_v49 = vld [vmem:[%s14520_s2 + $0x1a4] sm:$0xf]  ;;  %v7958_v52 = vor.u32 %v9336_v47, %v7955_v48  ;;  %v8083_v4 = vld [vmem:[%s14520_s2 + $0x4b0] sm:$0xf0] }
  0x6a   : > { %14541 = vst [vmem:[#allocation26_spill] sm:$0xff] %v10674_v37  ;;  %v9368_v63 = vld [vmem:[%s14520_s2 + $0x4a4] sm:$0xf]  ;;  %v7702_v6 = vor.u32 %v9272_v49, %v7699_v58  ;;  %v7827_v23 = vld [vmem:[%s14520_s2 + $0x2b0] sm:$0xf0] }
  0x6b   : > { %14542 = vst [vmem:[#allocation27_spill] sm:$0xff] %v10676_v38  ;;  %v8086_v7 = vor.u32 %v9368_v63, %v8083_v4  ;;  %2301 = vmatpush.bf16.msra.mxu2 %v7958_v52  ;;  %v9304_v14 = vld [vmem:[%s14520_s2 + $0x2a4] sm:$0xf]  ;;  %v448_v30 = vld [vmem:[%s10316_s30 + $0x90] sm:$0xff] }
  0x6c   : > { %2203 = vmatpush.bf16.msra.mxu0 %v7702_v6  ;;  %v7830_v29 = vor.u32 %v9304_v14, %v7827_v23  ;;  %v456_v34 = vld [vmem:[%s10316_s30 + $0xd0] sm:$0xff] }
  0x6d   : > { %2350 = vmatpush.bf16.msra.mxu3 %v8086_v7  ;;  %v10719_v52 = vpack.c.bf16 %v456_v34, %v449_v33  ;;  %v9332_v7 = vld [vmem:[%s14520_s2 + $0x384] sm:$0xf]  ;;  %v8067_v14 = vld [vmem:[%s14520_s2 + $0x490] sm:$0xf0] }
  0x6e   : > { %2252 = vmatpush.bf16.msra.mxu1 %v7830_v29 }
  0x6f   : > { %14543 = vst [vmem:[#allocation28_spill] sm:$0xff] %v10719_v52 }
  0x73   : > { %1832 = vmatmul.bf16.gmra.mxu0 %v10467_v0 }
  0x74   : > { %1881 = vmatmul.bf16.gmra.mxu1 %v10469_v1  ;;  %1930 = vmatmul.bf16.gmra.mxu2 %v10471_v2 }
  0x75   : > { %1979 = vmatmul.bf16.gmra.mxu3 %v10473_v3 }
  0x83   : > { %1837 = vmatmul.bf16.gmra.mxu0 %v10505_v25 }
  0x84   : > { %1886 = vmatmul.bf16.gmra.mxu1 %v10507_v26  ;;  %1935 = vmatmul.bf16.gmra.mxu2 %v10509_v27 }
  0x85   : > { %1984 = vmatmul.bf16.gmra.mxu3 %v10511_v28 }
  0x93   : > { %1842 = vmatmul.bf16.gmra.mxu0 %v10543_v53 }
  0x94   : > { %1891 = vmatmul.bf16.gmra.mxu1 %v10545_v54  ;;  %1940 = vmatmul.bf16.gmra.mxu2 %v10547_v56 }
  0x95   : > { %1989 = vmatmul.bf16.gmra.mxu3 %v10549_v57 }
  0xa3   : > { %1847 = vmatmul.bf16.gmra.mxu0 %v10581_v15 }
  0xa4   : > { %1896 = vmatmul.bf16.gmra.mxu1 %v10583_v16  ;;  %1945 = vmatmul.bf16.gmra.mxu2 %v10585_v17 }
  0xa5   : > { %1994 = vmatmul.bf16.gmra.mxu3 %v10587_v22 }
  0xb3   : > { %1852 = vmatmul.bf16.gmra.mxu0 %v10625_v59 }
  0xb4   : > { %1901 = vmatmul.bf16.gmra.mxu1 %v10627_v60  ;;  %1950 = vmatmul.bf16.gmra.mxu2 %v10629_v61 }
  0xb5   : > { %1999 = vmatmul.bf16.gmra.mxu3 %v10631_v62 }
  0xc0   : > { %v1818_v36 = vpop.f32.mrf.mxu0 }
  0xc1   : > { %v1819_v43 = vadd.f32 %v1818_v36, %v10667_v31  ;;  %v1867_v44 = vpop.f32.mrf.mxu1  ;;  %v450_v36 = vld [vmem:[%s10316_s30 + $0xa0] sm:$0xff] }
  0xc3   : > { %v1868_v46 = vadd.f32 %v1867_v44, %v1819_v43  ;;  %2013 = vmatmul.bf16.vlgmr.msrb.gmra.mxu0 %v10672_v35  ;;  %v457_v43 = vld [vmem:[%s10316_s30 + $0xd8] sm:$0xff] }
  0xc4   : > { %2062 = vmatmul.bf16.vlgmr.msrb.gmra.mxu1 %v10674_v37  ;;  %8271 = vmatmul.msk.bf16.vlgmr.msrb.gmra.mxu2 %vm1784_vm0, %v10676_v38  ;;  %v10721_v58 = vpack.c.bf16 %v457_v43, %v450_v36 }
  0xc5   : > { %2160 = vmatmul.bf16.vlgmr.msrb.gmra.mxu3 %v10333_v45 }
  0xc6   : > { %14544 = vst [vmem:[#allocation29_spill] sm:$0xff] %v10721_v58 }
  0xc7   : > { %v1916_v5 = vpop.f32.mrf.mxu2 }
  0xc8   : > { %v1917_v8 = vadd.f32 %v1916_v5, %v1868_v46  ;;  %v1965_v9 = vpop.f32.mrf.mxu3  ;;  %v1820_v10 = vpop.f32.mrf.mxu0  ;;  %v10717_v46 = vpack.c.bf16 %v455_v32, %v448_v30 }
  0xc9   : > { %v1821_v11 = vadd.f32 %v1820_v10, %v10667_v31  ;;  %v1869_v12 = vpop.f32.mrf.mxu1 }
  0xca   : > { %v10703_v13 = vadd.f32 %v1965_v9, %v1917_v8  ;;  %v7939_v8 = vld [vmem:[%s14520_s2 + $0x390] sm:$0xf0]  ;;  %v9268_v9 = vld [vmem:[%s14520_s2 + $0x184] sm:$0xf] }
  0xcb   : > { %v1870_v24 = vadd.f32 %v1869_v12, %v1821_v11  ;;  %v7942_v10 = vor.u32 %v9332_v7, %v7939_v8  ;;  %v7683_v11 = vld [vmem:[%s14520_s2 + $0x190] sm:$0xf0]  ;;  %v9364_v12 = vld [vmem:[%s14520_s2 + $0x484] sm:$0xf] }
  0xcc   : > { %v8070_v29 = vor.u32 %v9364_v12, %v8067_v14  ;;  %v470_v7 = vld [vmem:[%s10316_s30 + $0x140] sm:$0xff]  ;;  %v464_v8 = vld [vmem:[%s10316_s30 + $0x110] sm:$0xff] }
  0xcd   : > { %2302 = vmatpush.bf16.msra.mxu2 %v7942_v10 }
  0xce   : > { %2351 = vmatpush.bf16.msra.mxu3 %v8070_v29 }
  0xcf   : > { %v1918_v44 = vpop.f32.mrf.mxu2 }
  0xd0   : > { %v1919_v47 = vadd.f32 %v1918_v44, %v1870_v24  ;;  %v1967_v48 = vpop.f32.mrf.mxu3  ;;  %v1823_v49 = vpop.f32.mrf.mxu0  ;;  %v7686_v24 = vor.u32 %v9268_v9, %v7683_v11  ;;  %v9300_v44 = vld [vmem:[%s14520_s2 + $0x284] sm:$0xf]  ;;  %v471_v9 = vld [vmem:[%s10316_s30 + $0x148] sm:$0xff] }
  0xd1   : > { %v1824_v63 = vadd.f32 %v1823_v49, %v10667_v31  ;;  %v1872_v4 = vpop.f32.mrf.mxu1  ;;  %v10768_v29 = vpack.c.bf16 %v471_v9, %v464_v8 }
  0xd2   : > { %v10724_v5 = vadd.f32 %v1967_v48, %v1919_v47  ;;  %2204 = vmatpush.bf16.msra.mxu0 %v7686_v24  ;;  %v7811_v47 = vld [vmem:[%s14520_s2 + $0x290] sm:$0xf0] }
  0xd3   : > { %v1873_v6 = vadd.f32 %v1872_v4, %v1824_v63  ;;  %2018 = vmatmul.bf16.gmra.mxu0 %v10717_v46  ;;  %v7814_v49 = vor.u32 %v9300_v44, %v7811_v47  ;;  %v462_v63 = vld [vmem:[%s10316_s30 + $0x100] sm:$0xff]  ;;  %v469_v4 = vld [vmem:[%s10316_s30 + $0x138] sm:$0xff]  ;;  %14546 = vst [vmem:[#allocation31_spill] sm:$0xff] %v10768_v29  ;;  %v7923_v44 = vld [vmem:[%s14520_s2 + $0x370] sm:$0xf0] }
  0xd4   : > { %2067 = vmatmul.bf16.gmra.mxu1 %v10719_v52  ;;  %8272 = vmatmul.msk.bf16.gmra.mxu2 %vm1784_vm0, %v10721_v58  ;;  %v10764_v11 = vpack.c.bf16 %v469_v4, %v462_v63  ;;  %v9264_v47 = vld [vmem:[%s14520_s2 + $0x164] sm:$0xf]  ;;  %v8051_v4 = vld [vmem:[%s14520_s2 + $0x470] sm:$0xf0] }
  0xd5   : > { %2165 = vmatmul.bf16.gmra.mxu3 %v10391_v18  ;;  %2253 = vmatpush.bf16.msra.mxu1 %v7814_v49  ;;  %v7667_v49 = vld [vmem:[%s14520_s2 + $0x170] sm:$0xf0]  ;;  %v9360_v63 = vld [vmem:[%s14520_s2 + $0x464] sm:$0xf] }
  0xd6   : > { %v8054_v8 = vor.u32 %v9360_v63, %v8051_v4  ;;  %v484_v63 = vld [vmem:[%s10316_s30 + $0x1b0] sm:$0xff]  ;;  %v478_v4 = vld [vmem:[%s10316_s30 + $0x180] sm:$0xff] }
  0xd7   : > { %v1921_v23 = vpop.f32.mrf.mxu2 }
  0xd8   : > { %v1922_v30 = vadd.f32 %v1921_v23, %v1873_v6  ;;  %v1970_v32 = vpop.f32.mrf.mxu3  ;;  %v1825_v33 = vpop.f32.mrf.mxu0  ;;  %v463_v6 = vld [vmem:[%s10316_s30 + $0x108] sm:$0xff]  ;;  %2352 = vmatpush.bf16.msra.mxu3 %v8054_v8 }
  0xd9   : > { %v1826_v34 = vadd.f32 %v1825_v33, %v10667_v31  ;;  %v1874_v36 = vpop.f32.mrf.mxu1  ;;  %v10766_v24 = vpack.c.bf16 %v470_v7, %v463_v6  ;;  %v7670_v7 = vor.u32 %v9264_v47, %v7667_v49  ;;  %v476_v47 = vld [vmem:[%s10316_s30 + $0x170] sm:$0xff]  ;;  %v483_v49 = vld [vmem:[%s10316_s30 + $0x1a8] sm:$0xff] }
  0xda   : > { %v10750_v43 = vadd.f32 %v1970_v32, %v1922_v30  ;;  %v10811_v8 = vpack.c.bf16 %v483_v49, %v476_v47  ;;  %v9260_v47 = vld [vmem:[%s14520_s2 + $0x144] sm:$0xf] }
  0xdb   : > { %v1875_v48 = vadd.f32 %v1874_v36, %v1826_v34  ;;  %14545 = vst [vmem:[#allocation30_spill] sm:$0xff] %v10766_v24  ;;  %v9328_v36 = vld [vmem:[%s14520_s2 + $0x364] sm:$0xf]  ;;  %2205 = vmatpush.bf16.msra.mxu0 %v7670_v7 }
  0xdf   : > { %v1923_v10 = vpop.f32.mrf.mxu2 }
  0xe0   : > { %v1924_v12 = vadd.f32 %v1923_v10, %v1875_v48  ;;  %v1972_v14 = vpop.f32.mrf.mxu3  ;;  %v1828_v23 = vpop.f32.mrf.mxu0  ;;  %v7926_v48 = vor.u32 %v9328_v36, %v7923_v44 }
  0xe1   : > { %v1829_v30 = vadd.f32 %v1828_v23, %v10667_v31  ;;  %v1877_v32 = vpop.f32.mrf.mxu1 }
  0xe2   : > { %v10771_v33 = vadd.f32 %v1972_v14, %v1924_v12  ;;  %2303 = vmatpush.bf16.msra.mxu2 %v7926_v48  ;;  %v477_v48 = vld [vmem:[%s10316_s30 + $0x178] sm:$0xff] }
  0xe3   : > { %v1878_v34 = vadd.f32 %v1877_v32, %v1829_v30  ;;  %2023 = vmatmul.bf16.gmra.mxu0 %v10764_v11  ;;  %v9296_v32 = vld [vmem:[%s14520_s2 + $0x264] sm:$0xf] }
  0xe4   : > { %2072 = vmatmul.bf16.gmra.mxu1 %v10766_v24  ;;  %8273 = vmatmul.msk.bf16.gmra.mxu2 %vm1784_vm0, %v10768_v29 }
  0xe5   : > { %2170 = vmatmul.bf16.gmra.mxu3 %v10429_v39  ;;  %v10813_v39 = vpack.c.bf16 %v484_v63, %v477_v48  ;;  %v7651_v48 = vld [vmem:[%s14520_s2 + $0x150] sm:$0xf0]  ;;  %v9356_v63 = vld [vmem:[%s14520_s2 + $0x444] sm:$0xf] }
  0xe7   : > { %v1926_v6 = vpop.f32.mrf.mxu2  ;;  %14547 = vst [vmem:[#allocation32_spill] sm:$0xff] %v10813_v39 }
  0xe8   : > { %v1927_v9 = vadd.f32 %v1926_v6, %v1878_v34  ;;  %v1975_v10 = vpop.f32.mrf.mxu3  ;;  %v1830_v12 = vpop.f32.mrf.mxu0  ;;  %v7795_v34 = vld [vmem:[%s14520_s2 + $0x270] sm:$0xf0]  ;;  %v485_v6 = vld [vmem:[%s10316_s30 + $0x1b8] sm:$0xff] }
  0xe9   : > { %v1831_v14 = vadd.f32 %v1830_v12, %v10667_v31  ;;  %v1879_v23 = vpop.f32.mrf.mxu1  ;;  %v7798_v44 = vor.u32 %v9296_v32, %v7795_v34  ;;  %v10815_v29 = vpack.c.bf16 %v485_v6, %v478_v4  ;;  %v8035_v4 = vld [vmem:[%s14520_s2 + $0x450] sm:$0xf0] }
  0xea   : > { %v10797_v30 = vadd.f32 %v1975_v10, %v1927_v9 }
  0xeb   : > { %v1880_v36 = vadd.f32 %v1879_v23, %v1831_v14  ;;  %2254 = vmatpush.bf16.msra.mxu1 %v7798_v44  ;;  %14548 = vst [vmem:[#allocation33_spill] sm:$0xff] %v10815_v29  ;;  %v7907_v44 = vld [vmem:[%s14520_s2 + $0x350] sm:$0xf0] }
  0xef   : > { %v1928_v7 = vpop.f32.mrf.mxu2 }
  0xf0   : > { %v1929_v9 = vadd.f32 %v1928_v7, %v1880_v36  ;;  %v1977_v10 = vpop.f32.mrf.mxu3  ;;  %v1833_v12 = vpop.f32.mrf.mxu0  ;;  %v9324_v36 = vld [vmem:[%s14520_s2 + $0x344] sm:$0xf]  ;;  %v7654_v7 = vor.u32 %v9260_v47, %v7651_v48 }
  0xf1   : > { %v1834_v14 = vadd.f32 %v1833_v12, %v10667_v31  ;;  %v1882_v23 = vpop.f32.mrf.mxu1  ;;  %v7910_v49 = vor.u32 %v9324_v36, %v7907_v44  ;;  %v9292_v47 = vld [vmem:[%s14520_s2 + $0x244] sm:$0xf] }
  0xf2   : > { %v10818_v32 = vadd.f32 %v1977_v10, %v1929_v9  ;;  %v8038_v9 = vor.u32 %v9356_v63, %v8035_v4  ;;  %2206 = vmatpush.bf16.msra.mxu0 %v7654_v7  ;;  %v490_v4 = vld [vmem:[%s10316_s30 + $0x1e0] sm:$0xff] }
  0xf3   : > { %v1883_v34 = vadd.f32 %v1882_v23, %v1834_v14  ;;  %2028 = vmatmul.bf16.gmra.mxu0 %v10811_v8  ;;  %2304 = vmatpush.bf16.msra.mxu2 %v7910_v49  ;;  %v491_v49 = vld [vmem:[%s10316_s30 + $0x1e8] sm:$0xff] }
  0xf4   : > { %2077 = vmatmul.bf16.gmra.mxu1 %v10813_v39  ;;  %8274 = vmatmul.msk.bf16.gmra.mxu2 %vm1784_vm0, %v10815_v29  ;;  %v499_v29 = vld [vmem:[%s10316_s30 + $0x228] sm:$0xff] }
  0xf5   : > { %2175 = vmatmul.bf16.gmra.mxu3 %v10467_v0  ;;  %v498_v0 = vld [vmem:[%s10316_s30 + $0x220] sm:$0xff] }
  0xf6   : > { %2353 = vmatpush.bf16.msra.mxu3 %v8038_v9  ;;  %v10860_v24 = vpack.c.bf16 %v498_v0, %v491_v49  ;;  %v9320_v0 = vld [vmem:[%s14520_s2 + $0x324] sm:$0xf] }
  0xf7   : > { %v1931_v6 = vpop.f32.mrf.mxu2 }
  0xf8   : > { %v1932_v10 = vadd.f32 %v1931_v6, %v1883_v34  ;;  %v1980_v12 = vpop.f32.mrf.mxu3  ;;  %v1835_v14 = vpop.f32.mrf.mxu0  ;;  %v7779_v34 = vld [vmem:[%s14520_s2 + $0x250] sm:$0xf0]  ;;  %v497_v6 = vld [vmem:[%s10316_s30 + $0x218] sm:$0xff]  ;;  %14549 = vst [vmem:[#allocation34_spill] sm:$0xff] %v10860_v24 }
  0xf9   : > { %v1836_v23 = vadd.f32 %v1835_v14, %v10667_v31  ;;  %v1884_v36 = vpop.f32.mrf.mxu1  ;;  %v7782_v63 = vor.u32 %v9292_v47, %v7779_v34  ;;  %v492_v14 = vld [vmem:[%s10316_s30 + $0x1f0] sm:$0xff]  ;;  %v10858_v9 = vpack.c.bf16 %v497_v6, %v490_v4  ;;  %v9352_v4 = vld [vmem:[%s14520_s2 + $0x424] sm:$0xf] }
  0xfa   : > { %v10844_v44 = vadd.f32 %v1980_v12, %v1932_v10  ;;  %v10862_v18 = vpack.c.bf16 %v499_v29, %v492_v14  ;;  %v9256_v29 = vld [vmem:[%s14520_s2 + $0x124] sm:$0xf]  ;;  %v8019_v6 = vld [vmem:[%s14520_s2 + $0x430] sm:$0xf0] }
  0xfb   : > { %v1885_v48 = vadd.f32 %v1884_v36, %v1836_v23  ;;  %2255 = vmatpush.bf16.msra.mxu1 %v7782_v63  ;;  %v7635_v63 = vld [vmem:[%s14520_s2 + $0x130] sm:$0xf0] }
  0xfc   : > { %14550 = vst [vmem:[#allocation35_spill] sm:$0xff] %v10862_v18  ;;  %v7638_v14 = vor.u32 %v9256_v29, %v7635_v63  ;;  %v9288_v29 = vld [vmem:[%s14520_s2 + $0x224] sm:$0xf] }
  0xfe   : > { %2207 = vmatpush.bf16.msra.mxu0 %v7638_v14 }
  0xff   : > { %v1933_v7 = vpop.f32.mrf.mxu2 }
 0x100   : > { %v1934_v10 = vadd.f32 %v1933_v7, %v1885_v48  ;;  %v1982_v12 = vpop.f32.mrf.mxu3  ;;  %v1838_v39 = vpop.f32.mrf.mxu0  ;;  %v8022_v7 = vor.u32 %v9352_v4, %v8019_v6  ;;  %v504_v6 = vld [vmem:[%s10316_s30 + $0x250] sm:$0xff] }
 0x101   : > { %v1839_v23 = vadd.f32 %v1838_v39, %v10667_v31  ;;  %v1887_v36 = vpop.f32.mrf.mxu1  ;;  %v7891_v39 = vld [vmem:[%s14520_s2 + $0x330] sm:$0xf0] }
 0x102   : > { %v10865_v47 = vadd.f32 %v1982_v12, %v1934_v10  ;;  %v7894_v48 = vor.u32 %v9320_v0, %v7891_v39  ;;  %2354 = vmatpush.bf16.msra.mxu3 %v8022_v7 }
 0x103   : > { %v1888_v34 = vadd.f32 %v1887_v36, %v1839_v23  ;;  %2033 = vmatmul.bf16.gmra.mxu0 %v10858_v9 }
 0x104   : > { %2082 = vmatmul.bf16.gmra.mxu1 %v10860_v24  ;;  %8275 = vmatmul.msk.bf16.gmra.mxu2 %vm1784_vm0, %v10862_v18  ;;  %v513_v18 = vld [vmem:[%s10316_s30 + $0x298] sm:$0xff] }
 0x105   : > { %2180 = vmatmul.bf16.gmra.mxu3 %v10505_v25  ;;  %2305 = vmatpush.bf16.msra.mxu2 %v7894_v48  ;;  %v505_v48 = vld [vmem:[%s10316_s30 + $0x258] sm:$0xff]  ;;  %v512_v25 = vld [vmem:[%s10316_s30 + $0x290] sm:$0xff] }
 0x106   : > { %v10907_v58 = vpack.c.bf16 %v512_v25, %v505_v48  ;;  %v7875_v25 = vld [vmem:[%s14520_s2 + $0x310] sm:$0xf0] }
 0x107   : > { %v1936_v49 = vpop.f32.mrf.mxu2 }
 0x108   : > { %v1937_v10 = vadd.f32 %v1936_v49, %v1888_v34  ;;  %v1985_v12 = vpop.f32.mrf.mxu3  ;;  %v1840_v23 = vpop.f32.mrf.mxu0  ;;  %v7763_v34 = vld [vmem:[%s14520_s2 + $0x230] sm:$0xf0]  ;;  %v511_v49 = vld [vmem:[%s10316_s30 + $0x288] sm:$0xff]  ;;  %14551 = vst [vmem:[#allocation36_spill] sm:$0xff] %v10907_v58 }
 0x109   : > { %v1841_v36 = vadd.f32 %v1840_v23, %v10667_v31  ;;  %v1889_v0 = vpop.f32.mrf.mxu1  ;;  %v7766_v4 = vor.u32 %v9288_v29, %v7763_v34  ;;  %v506_v23 = vld [vmem:[%s10316_s30 + $0x260] sm:$0xff]  ;;  %v10905_v7 = vpack.c.bf16 %v511_v49, %v504_v6  ;;  %v8003_v49 = vld [vmem:[%s14520_s2 + $0x410] sm:$0xf0] }
 0x10a   : > { %v10891_v39 = vadd.f32 %v1985_v12, %v1937_v10  ;;  %v10909_v52 = vpack.c.bf16 %v513_v18, %v506_v23  ;;  %v9316_v18 = vld [vmem:[%s14520_s2 + $0x304] sm:$0xf] }
 0x10b   : > { %v1890_v63 = vadd.f32 %v1889_v0, %v1841_v36  ;;  %2256 = vmatpush.bf16.msra.mxu1 %v7766_v4  ;;  %v7619_v4 = vld [vmem:[%s14520_s2 + $0x110] sm:$0xf0]  ;;  %v9348_v6 = vld [vmem:[%s14520_s2 + $0x404] sm:$0xf] }
 0x10c   : > { %14552 = vst [vmem:[#allocation37_spill] sm:$0xff] %v10909_v52 }
 0x10f   : > { %v1938_v14 = vpop.f32.mrf.mxu2 }
 0x110   : > { %v1939_v10 = vadd.f32 %v1938_v14, %v1890_v63  ;;  %v1987_v12 = vpop.f32.mrf.mxu3  ;;  %v1843_v24 = vpop.f32.mrf.mxu0  ;;  %v7878_v63 = vor.u32 %v9316_v18, %v7875_v25  ;;  %v8006_v14 = vor.u32 %v9348_v6, %v8003_v49  ;;  %v518_v49 = vld [vmem:[%s10316_s30 + $0x2c0] sm:$0xff] }
 0x111   : > { %v1844_v36 = vadd.f32 %v1843_v24, %v10667_v31  ;;  %v1892_v0 = vpop.f32.mrf.mxu1  ;;  %v9252_v24 = vld [vmem:[%s14520_s2 + $0x104] sm:$0xf] }
 0x112   : > { %v10912_v29 = vadd.f32 %v1987_v12, %v1939_v10  ;;  %v7622_v23 = vor.u32 %v9252_v24, %v7619_v4  ;;  %2306 = vmatpush.bf16.msra.mxu2 %v7878_v63  ;;  %2355 = vmatpush.bf16.msra.mxu3 %v8006_v14  ;;  %v9284_v24 = vld [vmem:[%s14520_s2 + $0x204] sm:$0xf]  ;;  %v519_v63 = vld [vmem:[%s10316_s30 + $0x2c8] sm:$0xff] }
 0x113   : > { %v1893_v34 = vadd.f32 %v1892_v0, %v1844_v36  ;;  %2038 = vmatmul.bf16.gmra.mxu0 %v10905_v7 }
 0x114   : > { %2087 = vmatmul.bf16.gmra.mxu1 %v10907_v58  ;;  %8276 = vmatmul.msk.bf16.gmra.mxu2 %vm1784_vm0, %v10909_v52  ;;  %v527_v52 = vld [vmem:[%s10316_s30 + $0x308] sm:$0xff] }
 0x115   : > { %2185 = vmatmul.bf16.gmra.mxu3 %v10543_v53  ;;  %2208 = vmatpush.bf16.msra.mxu0 %v7622_v23  ;;  %v526_v53 = vld [vmem:[%s10316_s30 + $0x300] sm:$0xff] }
 0x116   : > { %v10954_v45 = vpack.c.bf16 %v526_v53, %v519_v63  ;;  %v7609_v53 = vld [vmem:[%s14520_s2 + $0xe8] sm:$0xf] }
 0x117   : > { %v1941_v48 = vpop.f32.mrf.mxu2 }
 0x118   : > { %v1942_v10 = vadd.f32 %v1941_v48, %v1893_v34  ;;  %v1990_v12 = vpop.f32.mrf.mxu3  ;;  %v1845_v36 = vpop.f32.mrf.mxu0  ;;  %v7747_v34 = vld [vmem:[%s14520_s2 + $0x210] sm:$0xf0]  ;;  %v525_v48 = vld [vmem:[%s10316_s30 + $0x2f8] sm:$0xff]  ;;  %14554 = vst [vmem:[#allocation39_spill] sm:$0xff] %v10954_v45 }
 0x119   : > { %v1846_v0 = vadd.f32 %v1845_v36, %v10667_v31  ;;  %v1894_v18 = vpop.f32.mrf.mxu1  ;;  %v7750_v6 = vor.u32 %v9284_v24, %v7747_v34  ;;  %v520_v36 = vld [vmem:[%s10316_s30 + $0x2d0] sm:$0xff]  ;;  %v10952_v14 = vpack.c.bf16 %v525_v48, %v518_v49  ;;  %v7737_v49 = vld [vmem:[%s14520_s2 + $0x1e8] sm:$0xf]  ;;  %v9283_v48 = vld [vmem:[%s14520_s2 + $0x1f4] sm:$0xf0] }
 0x11a   : > { %v10938_v25 = vadd.f32 %v1990_v12, %v1942_v10  ;;  %v10956_v38 = vpack.c.bf16 %v527_v52, %v520_v36  ;;  %v9251_v52 = vld [vmem:[%s14520_s2 + $0xf4] sm:$0xf0] }
 0x11b   : > { %v1895_v4 = vadd.f32 %v1894_v18, %v1846_v0  ;;  %2257 = vmatpush.bf16.msra.mxu1 %v7750_v6  ;;  %14553 = vst [vmem:[#allocation38_spill] sm:$0xff] %v10952_v14  ;;  %v8243_v6 = vld [vmem:[%s14520_s2 + $0x5f0] sm:$0xf0] }
 0x11c   : > { %14555 = vst [vmem:[#allocation40_spill] sm:$0xff] %v10956_v38 }
 0x11f   : > { %v1943_v23 = vpop.f32.mrf.mxu2 }
 0x120   : > { %v1944_v10 = vadd.f32 %v1943_v23, %v1895_v4  ;;  %v1992_v12 = vpop.f32.mrf.mxu3  ;;  %v1848_v58 = vpop.f32.mrf.mxu0  ;;  %v7610_v4 = vor.u32 %v9251_v52, %v7609_v53  ;;  %v7738_v23 = vor.u32 %v9283_v48, %v7737_v49  ;;  %v532_v48 = vld [vmem:[%s10316_s30 + $0x330] sm:$0xff] }
 0x121   : > { %v1849_v0 = vadd.f32 %v1848_v58, %v10667_v31  ;;  %v1897_v18 = vpop.f32.mrf.mxu1  ;;  %v9408_v58 = vld [vmem:[%s14520_s2 + $0x5e4] sm:$0xf] }
 0x122   : > { %v10959_v24 = vadd.f32 %v1992_v12, %v1944_v10  ;;  %v8246_v36 = vor.u32 %v9408_v58, %v8243_v6  ;;  %2495 = vmatpush.bf16.msrb.mxu2 %v7610_v4  ;;  %2544 = vmatpush.bf16.msrb.mxu3 %v7738_v23  ;;  %v9412_v58 = vld [vmem:[%s14520_s2 + $0x604] sm:$0xf]  ;;  %v533_v4 = vld [vmem:[%s10316_s30 + $0x338] sm:$0xff] }
 0x123   : > { %v1898_v34 = vadd.f32 %v1897_v18, %v1849_v0  ;;  %2043 = vmatmul.bf16.gmra.mxu0 %v10952_v14 }
 0x124   : > { %2092 = vmatmul.bf16.gmra.mxu1 %v10954_v45  ;;  %8277 = vmatmul.msk.bf16.gmra.mxu2 %vm1784_vm0, %v10956_v38  ;;  %v541_v38 = vld [vmem:[%s10316_s30 + $0x378] sm:$0xff] }
 0x125   : > { %2190 = vmatmul.bf16.gmra.mxu3 %v10581_v15  ;;  %2397 = vmatpush.bf16.msrb.mxu0 %v8246_v36  ;;  %v540_v15 = vld [vmem:[%s10316_s30 + $0x370] sm:$0xff] }
 0x126   : > { %v11001_v37 = vpack.c.bf16 %v540_v15, %v533_v4  ;;  %v7593_v15 = vld [vmem:[%s14520_s2 + $0xc8] sm:$0xf] }
 0x127   : > { %v1946_v63 = vpop.f32.mrf.mxu2 }
 0x128   : > { %v1947_v10 = vadd.f32 %v1946_v63, %v1898_v34  ;;  %v1995_v12 = vpop.f32.mrf.mxu3  ;;  %v1850_v0 = vpop.f32.mrf.mxu0  ;;  %v8259_v34 = vld [vmem:[%s14520_s2 + $0x610] sm:$0xf0]  ;;  %v539_v63 = vld [vmem:[%s10316_s30 + $0x368] sm:$0xff]  ;;  %14557 = vst [vmem:[#allocation42_spill] sm:$0xff] %v11001_v37 }
 0x129   : > { %v1851_v18 = vadd.f32 %v1850_v0, %v10667_v31  ;;  %v1899_v53 = vpop.f32.mrf.mxu1  ;;  %v8262_v49 = vor.u32 %v9412_v58, %v8259_v34  ;;  %v534_v0 = vld [vmem:[%s10316_s30 + $0x340] sm:$0xff]  ;;  %v10999_v23 = vpack.c.bf16 %v539_v63, %v532_v48  ;;  %v7721_v48 = vld [vmem:[%s14520_s2 + $0x1c8] sm:$0xf]  ;;  %v9279_v63 = vld [vmem:[%s14520_s2 + $0x1d4] sm:$0xf0]  ;;  %s13335_s30 = scalar_lea.vmem %s14426_s10, %s9622_s16 }
 0x12a   : > { %v10985_v52 = vadd.f32 %v1995_v12, %v1947_v10  ;;  %v11003_v62 = vpack.c.bf16 %v541_v38, %v534_v0  ;;  %v9404_v38 = vld [vmem:[%s14520_s2 + $0x5c4] sm:$0xf] }
 0x12b   : > { %v1900_v6 = vadd.f32 %v1899_v53, %v1851_v18  ;;  %2453 = vmatpush.bf16.msrb.mxu1 %v8262_v49  ;;  %14556 = vst [vmem:[#allocation41_spill] sm:$0xff] %v10999_v23  ;;  %v8227_v49 = vld [vmem:[%s14520_s2 + $0x5d0] sm:$0xf0] }
 0x12c   : > { %14558 = vst [vmem:[#allocation43_spill] sm:$0xff] %v11003_v62  ;;  %v8230_v0 = vor.u32 %v9404_v38, %v8227_v49 }
 0x12e   : > { %2398 = vmatpush.bf16.msrb.mxu0 %v8230_v0 }
 0x12f   : > { %v1948_v36 = vpop.f32.mrf.mxu2 }
 0x130   : > { %v1949_v10 = vadd.f32 %v1948_v36, %v1900_v6  ;;  %v1997_v12 = vpop.f32.mrf.mxu3  ;;  %v1853_v45 = vpop.f32.mrf.mxu0  ;;  %v7722_v36 = vor.u32 %v9279_v63, %v7721_v48 }
 0x131   : > { %v1854_v18 = vadd.f32 %v1853_v45, %v10667_v31  ;;  %v1902_v53 = vpop.f32.mrf.mxu1  ;;  %v9247_v45 = vld [vmem:[%s14520_s2 + $0xd4] sm:$0xf0] }
 0x132   : > { %v11006_v58 = vadd.f32 %v1997_v12, %v1949_v10  ;;  %v7594_v6 = vor.u32 %v9247_v45, %v7593_v15  ;;  %2545 = vmatpush.bf16.msrb.mxu3 %v7722_v36 }
 0x133   : > { %v1903_v34 = vadd.f32 %v1902_v53, %v1854_v18  ;;  %2048 = vmatmul.bf16.gmra.mxu0 %v10999_v23 }
 0x134   : > { %2097 = vmatmul.bf16.gmra.mxu1 %v11001_v37  ;;  %8278 = vmatmul.msk.bf16.gmra.mxu2 %vm1784_vm0, %v11003_v62 }
 0x135   : > { %2195 = vmatmul.bf16.gmra.mxu3 %v10625_v59  ;;  %2496 = vmatpush.bf16.msrb.mxu2 %v7594_v6 }
 0x137   : > { %v1951_v4 = vpop.f32.mrf.mxu2 }
 0x138   : > { %v1952_v10 = vadd.f32 %v1951_v4, %v1903_v34  ;;  %v2000_v12 = vpop.f32.mrf.mxu3  ;;  %v1855_v18 = vpop.f32.mrf.mxu0 }
 0x139   : > { %v1856_v53 = vadd.f32 %v1855_v18, %v10667_v31  ;;  %v1904_v15 = vpop.f32.mrf.mxu1  ;;  %v8211_v31 = vld [vmem:[%s14520_s2 + $0x5b0] sm:$0xf0] }
 0x13a   : > { %v11032_v45 = vadd.f32 %v2000_v12, %v1952_v10 }
 0x13b   : > { %v1905_v59 = vadd.f32 %v1904_v15, %v1856_v53 }
 0x13f   : > { %v1953_v62 = vpop.f32.mrf.mxu2 }
 0x140   : > { %v1954_v37 = vadd.f32 %v1953_v62, %v1905_v59  ;;  %v2002_v23 = vpop.f32.mrf.mxu3  ;;  %v2014_v61 = vpop.f32.mrf.mxu0  ;;  %v7577_v59 = vld [vmem:[%s14520_s2 + $0xa8] sm:$0xf] }
 0x141   : > { %v2015_v60 = vadd.f32 %v2014_v61, %v10703_v13  ;;  %v2063_v38 = vpop.f32.mrf.mxu1  ;;  %v9243_v61 = vld [vmem:[%s14520_s2 + $0xb4] sm:$0xf0] }
 0x142   : > { %v11035_v49 = vadd.f32 %v2002_v23, %v1954_v37  ;;  %v7578_v62 = vor.u32 %v9243_v61, %v7577_v59  ;;  %v7705_v37 = vld [vmem:[%s14520_s2 + $0x1a8] sm:$0xf]  ;;  %v9275_v13 = vld [vmem:[%s14520_s2 + $0x1b4] sm:$0xf0] }
 0x143   : > { %v2064_v34 = vadd.f32 %v2063_v38, %v2015_v60  ;;  %2209 = vmatmul.bf16.vlgmr.msra.gmra.mxu0 %v10338_v50  ;;  %v9400_v60 = vld [vmem:[%s14520_s2 + $0x5a4] sm:$0xf]  ;;  %v7706_v48 = vor.u32 %v9275_v13, %v7705_v37 }
 0x144   : > { %2258 = vmatmul.bf16.vlgmr.msra.gmra.mxu1 %v10340_v51  ;;  %2307 = vmatmul.bf16.vlgmr.msra.gmra.mxu2 %v10347_v55  ;;  %v8214_v6 = vor.u32 %v9400_v60, %v8211_v31  ;;  %v9396_v37 = vld [vmem:[%s14520_s2 + $0x584] sm:$0xf] }
 0x145   : > { %2356 = vmatmul.bf16.vlgmr.msra.gmra.mxu3 %v10672_v35  ;;  %2497 = vmatpush.bf16.msrb.mxu2 %v7578_v62 }
 0x146   : > { %2399 = vmatpush.bf16.msrb.mxu0 %v8214_v6  ;;  %2546 = vmatpush.bf16.msrb.mxu3 %v7706_v48  ;;  %v7689_v6 = vld [vmem:[%s14520_s2 + $0x188] sm:$0xf]  ;;  %v9271_v48 = vld [vmem:[%s14520_s2 + $0x194] sm:$0xf0] }
 0x147   : > { %v2112_v23 = vpop.f32.mrf.mxu2 }
 0x148   : > { %v2113_v63 = vadd.f32 %v2112_v23, %v2064_v34  ;;  %v11059_v4 = vpop.f32.mrf.mxu3  ;;  %v2016_v0 = vpop.f32.mrf.mxu0  ;;  %v8195_v23 = vld [vmem:[%s14520_s2 + $0x590] sm:$0xf0] }
 0x149   : > { %v2017_v36 = vadd.f32 %v2016_v0, %v10724_v5  ;;  %v2065_v10 = vpop.f32.mrf.mxu1  ;;  %v7561_v5 = vld [vmem:[%s14520_s2 + $0x88] sm:$0xf]  ;;  %v8198_v0 = vor.u32 %v9396_v37, %v8195_v23 }
 0x14a   : > { %v3181_v60 = vmax.f32 %v2113_v63, 0.0 }
 0x14b   : > { %v2066_v12 = vadd.f32 %v2065_v10, %v2017_v36  ;;  %v7690_v36 = vor.u32 %v9271_v48, %v7689_v6  ;;  %2400 = vmatpush.bf16.msrb.mxu0 %v8198_v0  ;;  %v9392_v48 = vld [vmem:[%s14520_s2 + $0x564] sm:$0xf]  ;;  %v8179_v0 = vld [vmem:[%s14520_s2 + $0x570] sm:$0xf0] }
 0x14d   : > { %2547 = vmatpush.bf16.msrb.mxu3 %v7690_v36  ;;  %v7673_v36 = vld [vmem:[%s14520_s2 + $0x168] sm:$0xf] }
 0x14f   : > { %v2114_v18 = vpop.f32.mrf.mxu2 }
 0x150   : > { %v2115_v53 = vadd.f32 %v2114_v18, %v2066_v12  ;;  %v11062_v15 = vpop.f32.mrf.mxu3  ;;  %v2019_v38 = vpop.f32.mrf.mxu0 }
 0x151   : > { %v2020_v59 = vadd.f32 %v2019_v38, %v10750_v43  ;;  %v2068_v61 = vpop.f32.mrf.mxu1  ;;  %v9239_v43 = vld [vmem:[%s14520_s2 + $0x94] sm:$0xf0] }
 0x152   : > { %v3185_v34 = vmax.f32 %v2115_v53, 0.0  ;;  %v7562_v13 = vor.u32 %v9239_v43, %v7561_v5 }
 0x153   : > { %v2069_v31 = vadd.f32 %v2068_v61, %v2020_v59  ;;  %2214 = vmatmul.bf16.gmra.mxu0 %v10393_v19 }
 0x154   : > { %v11066_v62 = vpack.c.bf16 %v3185_v34, %v3181_v60  ;;  %2263 = vmatmul.bf16.gmra.mxu1 %v10395_v20  ;;  %2312 = vmatmul.bf16.gmra.mxu2 %v10397_v21 }
 0x155   : > { %2361 = vmatmul.bf16.gmra.mxu3 %v10717_v46  ;;  %2498 = vmatpush.bf16.msrb.mxu2 %v7562_v13  ;;  %v7545_v13 = vld [vmem:[%s14520_s2 + $0x68] sm:$0xf] }
 0x156   : > { %14559 = vst [vmem:[#allocation44_spill] sm:$0xff] %v11066_v62 }
 0x157   : > { %v2117_v63 = vpop.f32.mrf.mxu2 }
 0x158   : > { %v2118_v10 = vadd.f32 %v2117_v63, %v2069_v31  ;;  %v11089_v12 = vpop.f32.mrf.mxu3  ;;  %v2021_v18 = vpop.f32.mrf.mxu0 }
 0x159   : > { %v2022_v53 = vadd.f32 %v2021_v18, %v10771_v33  ;;  %v2070_v38 = vpop.f32.mrf.mxu1 }
 0x15a   : > { %v3189_v23 = vmax.f32 %v2118_v10, 0.0  ;;  %v9267_v10 = vld [vmem:[%s14520_s2 + $0x174] sm:$0xf0] }
 0x15b   : > { %v2071_v59 = vadd.f32 %v2070_v38, %v2022_v53  ;;  %v8182_v53 = vor.u32 %v9392_v48, %v8179_v0  ;;  %v7674_v38 = vor.u32 %v9267_v10, %v7673_v36 }
 0x15d   : > { %2401 = vmatpush.bf16.msrb.mxu0 %v8182_v53  ;;  %2548 = vmatpush.bf16.msrb.mxu3 %v7674_v38  ;;  %v7657_v53 = vld [vmem:[%s14520_s2 + $0x148] sm:$0xf]  ;;  %v9263_v38 = vld [vmem:[%s14520_s2 + $0x154] sm:$0xf0] }
 0x15f   : > { %v2119_v61 = vpop.f32.mrf.mxu2 }
 0x160   : > { %v2120_v60 = vadd.f32 %v2119_v61, %v2071_v59  ;;  %v11092_v34 = vpop.f32.mrf.mxu3  ;;  %v2024_v5 = vpop.f32.mrf.mxu0 }
 0x161   : > { %v2025_v43 = vadd.f32 %v2024_v5, %v10797_v30  ;;  %v2073_v37 = vpop.f32.mrf.mxu1  ;;  %v9235_v30 = vld [vmem:[%s14520_s2 + $0x74] sm:$0xf0] }
 0x162   : > { %v3193_v31 = vmax.f32 %v2120_v60, 0.0  ;;  %v7546_v63 = vor.u32 %v9235_v30, %v7545_v13 }
 0x163   : > { %v2074_v6 = vadd.f32 %v2073_v37, %v2025_v43  ;;  %2219 = vmatmul.bf16.gmra.mxu0 %v10431_v40 }
 0x164   : > { %2268 = vmatmul.bf16.gmra.mxu1 %v10433_v41  ;;  %2317 = vmatmul.bf16.gmra.mxu2 %v10435_v42  ;;  %v11098_v33 = vpack.c.bf16 %v3193_v31, %v3189_v23 }
 0x165   : > { %2366 = vmatmul.bf16.gmra.mxu3 %v10764_v11  ;;  %2499 = vmatpush.bf16.msrb.mxu2 %v7546_v63  ;;  %v7529_v63 = vld [vmem:[%s14520_s2 + $0x48] sm:$0xf] }
 0x166   : > { %14560 = vst [vmem:[#allocation45_spill] sm:$0xff] %v11098_v33 }
 0x167   : > { %v2122_v18 = vpop.f32.mrf.mxu2 }
 0x168   : > { %v2123_v59 = vadd.f32 %v2122_v18, %v2074_v6  ;;  %v11119_v61 = vpop.f32.mrf.mxu3  ;;  %v2026_v60 = vpop.f32.mrf.mxu0  ;;  %v8163_v18 = vld [vmem:[%s14520_s2 + $0x550] sm:$0xf0] }
 0x169   : > { %v2027_v5 = vadd.f32 %v2026_v60, %v10818_v32  ;;  %v2075_v43 = vpop.f32.mrf.mxu1 }
 0x16a   : > { %v3197_v0 = vmax.f32 %v2123_v59, 0.0 }
 0x16b   : > { %v2076_v37 = vadd.f32 %v2075_v43, %v2027_v5  ;;  %v7658_v5 = vor.u32 %v9263_v38, %v7657_v53 }
 0x16d   : > { %2549 = vmatpush.bf16.msrb.mxu3 %v7658_v5  ;;  %v9259_v5 = vld [vmem:[%s14520_s2 + $0x134] sm:$0xf0] }
 0x16f   : > { %v2124_v23 = vpop.f32.mrf.mxu2 }
 0x170   : > { %v2125_v31 = vadd.f32 %v2124_v23, %v2076_v37  ;;  %v11122_v13 = vpop.f32.mrf.mxu3  ;;  %v2029_v30 = vpop.f32.mrf.mxu0 }
 0x171   : > { %v2030_v33 = vadd.f32 %v2029_v30, %v10844_v44  ;;  %v2078_v48 = vpop.f32.mrf.mxu1  ;;  %v9231_v44 = vld [vmem:[%s14520_s2 + $0x54] sm:$0xf0] }
 0x172   : > { %v3201_v6 = vmax.f32 %v2125_v31, 0.0  ;;  %v7530_v10 = vor.u32 %v9231_v44, %v7529_v63 }
 0x173   : > { %v2079_v36 = vadd.f32 %v2078_v48, %v2030_v33  ;;  %2224 = vmatmul.bf16.gmra.mxu0 %v10469_v1  ;;  %v9388_v33 = vld [vmem:[%s14520_s2 + $0x544] sm:$0xf] }
 0x174   : > { %2273 = vmatmul.bf16.gmra.mxu1 %v10471_v2  ;;  %2322 = vmatmul.bf16.gmra.mxu2 %v10473_v3  ;;  %v11128_v32 = vpack.c.bf16 %v3201_v6, %v3197_v0  ;;  %v8166_v60 = vor.u32 %v9388_v33, %v8163_v18 }
 0x175   : > { %2371 = vmatmul.bf16.gmra.mxu3 %v10811_v8  ;;  %2500 = vmatpush.bf16.msrb.mxu2 %v7530_v10  ;;  %v7513_v10 = vld [vmem:[%s14520_s2 + $0x28] sm:$0xf] }
 0x176   : > { %14561 = vst [vmem:[#allocation46_spill] sm:$0xff] %v11128_v32  ;;  %2402 = vmatpush.bf16.msrb.mxu0 %v8166_v60  ;;  %v7641_v60 = vld [vmem:[%s14520_s2 + $0x128] sm:$0xf] }
 0x177   : > { %v2127_v59 = vpop.f32.mrf.mxu2 }
 0x178   : > { %v2128_v43 = vadd.f32 %v2127_v59, %v2079_v36  ;;  %v11149_v37 = vpop.f32.mrf.mxu3  ;;  %v2031_v23 = vpop.f32.mrf.mxu0  ;;  %v8147_v59 = vld [vmem:[%s14520_s2 + $0x530] sm:$0xf0] }
 0x179   : > { %v2032_v31 = vadd.f32 %v2031_v23, %v10865_v47  ;;  %v2080_v30 = vpop.f32.mrf.mxu1 }
 0x17a   : > { %v3205_v18 = vmax.f32 %v2128_v43, 0.0 }
 0x17b   : > { %v2081_v48 = vadd.f32 %v2080_v30, %v2032_v31  ;;  %v7642_v31 = vor.u32 %v9259_v5, %v7641_v60 }
 0x17d   : > { %2550 = vmatpush.bf16.msrb.mxu3 %v7642_v31  ;;  %v9255_v31 = vld [vmem:[%s14520_s2 + $0x114] sm:$0xf0] }
 0x17f   : > { %v2129_v0 = vpop.f32.mrf.mxu2 }
 0x180   : > { %v2130_v6 = vadd.f32 %v2129_v0, %v2081_v48  ;;  %v11152_v63 = vpop.f32.mrf.mxu3  ;;  %v2034_v44 = vpop.f32.mrf.mxu0 }
 0x181   : > { %v2035_v32 = vadd.f32 %v2034_v44, %v10891_v39  ;;  %v2083_v33 = vpop.f32.mrf.mxu1  ;;  %v9227_v39 = vld [vmem:[%s14520_s2 + $0x34] sm:$0xf0] }
 0x182   : > { %v3209_v36 = vmax.f32 %v2130_v6, 0.0  ;;  %v7514_v38 = vor.u32 %v9227_v39, %v7513_v10 }
 0x183   : > { %v2084_v53 = vadd.f32 %v2083_v33, %v2035_v32  ;;  %2229 = vmatmul.bf16.gmra.mxu0 %v10507_v26  ;;  %v9384_v32 = vld [vmem:[%s14520_s2 + $0x524] sm:$0xf] }
 0x184   : > { %2278 = vmatmul.bf16.gmra.mxu1 %v10509_v27  ;;  %2327 = vmatmul.bf16.gmra.mxu2 %v10511_v28  ;;  %v11158_v47 = vpack.c.bf16 %v3209_v36, %v3205_v18  ;;  %v8150_v23 = vor.u32 %v9384_v32, %v8147_v59 }
 0x185   : > { %2376 = vmatmul.bf16.gmra.mxu3 %v10858_v9  ;;  %2501 = vmatpush.bf16.msrb.mxu2 %v7514_v38  ;;  %v7497_v38 = vld [vmem:[%s14520_s2 + $0x8] sm:$0xf] }
 0x186   : > { %14562 = vst [vmem:[#allocation47_spill] sm:$0xff] %v11158_v47  ;;  %2403 = vmatpush.bf16.msrb.mxu0 %v8150_v23  ;;  %v7625_v23 = vld [vmem:[%s14520_s2 + $0x108] sm:$0xf] }
 0x187   : > { %v2132_v43 = vpop.f32.mrf.mxu2 }
 0x188   : > { %v2133_v30 = vadd.f32 %v2132_v43, %v2084_v53  ;;  %v11179_v48 = vpop.f32.mrf.mxu3  ;;  %v2036_v0 = vpop.f32.mrf.mxu0  ;;  %v8131_v43 = vld [vmem:[%s14520_s2 + $0x510] sm:$0xf0] }
 0x189   : > { %v2037_v6 = vadd.f32 %v2036_v0, %v10912_v29  ;;  %v2085_v44 = vpop.f32.mrf.mxu1 }
 0x18a   : > { %v3213_v59 = vmax.f32 %v2133_v30, 0.0 }
 0x18b   : > { %v2086_v33 = vadd.f32 %v2085_v44, %v2037_v6  ;;  %v7626_v6 = vor.u32 %v9255_v31, %v7625_v23 }
 0x18d   : > { %2551 = vmatpush.bf16.msrb.mxu3 %v7626_v6  ;;  %v9411_v6 = vld [vmem:[%s14520_s2 + $0x5f4] sm:$0xf0] }
 0x18f   : > { %v2134_v18 = vpop.f32.mrf.mxu2 }
 0x190   : > { %v2135_v36 = vadd.f32 %v2134_v18, %v2086_v33  ;;  %v11182_v10 = vpop.f32.mrf.mxu3  ;;  %v2039_v39 = vpop.f32.mrf.mxu0 }
 0x191   : > { %v2040_v47 = vadd.f32 %v2039_v39, %v10938_v25  ;;  %v2088_v32 = vpop.f32.mrf.mxu1  ;;  %v9223_v25 = vld [vmem:[%s14520_s2 + $0x14] sm:$0xf0] }
 0x192   : > { %v3217_v53 = vmax.f32 %v2135_v36, 0.0  ;;  %v7498_v5 = vor.u32 %v9223_v25, %v7497_v38 }
 0x193   : > { %v2089_v60 = vadd.f32 %v2088_v32, %v2040_v47  ;;  %2234 = vmatmul.bf16.gmra.mxu0 %v10545_v54  ;;  %v9380_v47 = vld [vmem:[%s14520_s2 + $0x504] sm:$0xf] }
 0x194   : > { %2283 = vmatmul.bf16.gmra.mxu1 %v10547_v56  ;;  %2332 = vmatmul.bf16.gmra.mxu2 %v10549_v57  ;;  %v11188_v29 = vpack.c.bf16 %v3217_v53, %v3213_v59  ;;  %v8134_v0 = vor.u32 %v9380_v47, %v8131_v43 }
 0x195   : > { %2381 = vmatmul.bf16.gmra.mxu3 %v10905_v7  ;;  %2502 = vmatpush.bf16.msrb.mxu2 %v7498_v5  ;;  %v8121_v5 = vld [vmem:[%s14520_s2 + $0x4e8] sm:$0xf] }
 0x196   : > { %14563 = vst [vmem:[#allocation48_spill] sm:$0xff] %v11188_v29  ;;  %2404 = vmatpush.bf16.msrb.mxu0 %v8134_v0  ;;  %v8249_v0 = vld [vmem:[%s14520_s2 + $0x5e8] sm:$0xf] }
 0x197   : > { %v2137_v30 = vpop.f32.mrf.mxu2 }
 0x198   : > { %v2138_v44 = vadd.f32 %v2137_v30, %v2089_v60  ;;  %v11209_v33 = vpop.f32.mrf.mxu3  ;;  %v2041_v18 = vpop.f32.mrf.mxu0  ;;  %v9315_v30 = vld [vmem:[%s14520_s2 + $0x2f4] sm:$0xf0] }
 0x199   : > { %v2042_v36 = vadd.f32 %v2041_v18, %v10959_v24  ;;  %v2090_v39 = vpop.f32.mrf.mxu1 }
 0x19a   : > { %v3221_v43 = vmax.f32 %v2138_v44, 0.0 }
 0x19b   : > { %v2091_v32 = vadd.f32 %v2090_v39, %v2042_v36  ;;  %v8250_v36 = vor.u32 %v9411_v6, %v8249_v0 }
 0x19d   : > { %2740 = vmatpush.bf16.msra.mxu3 %v8250_v36  ;;  %v14566_v36 = vld [vmem:[#allocation23_spill] sm:$0xff] }
 0x19f   : > { %v2139_v59 = vpop.f32.mrf.mxu2 }
 0x1a0   : > { %v2140_v53 = vadd.f32 %v2139_v59, %v2091_v32  ;;  %v11212_v38 = vpop.f32.mrf.mxu3  ;;  %v2044_v25 = vpop.f32.mrf.mxu0 }
 0x1a1   : > { %v2045_v29 = vadd.f32 %v2044_v25, %v10985_v52  ;;  %v2093_v47 = vpop.f32.mrf.mxu1  ;;  %v9379_v52 = vld [vmem:[%s14520_s2 + $0x4f4] sm:$0xf0] }
 0x1a2   : > { %v3225_v60 = vmax.f32 %v2140_v53, 0.0  ;;  %v8122_v31 = vor.u32 %v9379_v52, %v8121_v5 }
 0x1a3   : > { %v2094_v23 = vadd.f32 %v2093_v47, %v2045_v29  ;;  %2239 = vmatmul.bf16.gmra.mxu0 %v10583_v16  ;;  %v7865_v29 = vld [vmem:[%s14520_s2 + $0x2e8] sm:$0xf] }
 0x1a4   : > { %2288 = vmatmul.bf16.gmra.mxu1 %v10585_v17  ;;  %2337 = vmatmul.bf16.gmra.mxu2 %v10587_v22  ;;  %v11218_v24 = vpack.c.bf16 %v3225_v60, %v3221_v43  ;;  %v7866_v18 = vor.u32 %v9315_v30, %v7865_v29  ;;  %v7993_v47 = vld [vmem:[%s14520_s2 + $0x3e8] sm:$0xf]  ;;  %v9347_v43 = vld [vmem:[%s14520_s2 + $0x3f4] sm:$0xf0] }
 0x1a5   : > { %2386 = vmatmul.bf16.gmra.mxu3 %v10952_v14  ;;  %2691 = vmatpush.bf16.msra.mxu2 %v8122_v31  ;;  %v7994_v5 = vor.u32 %v9347_v43, %v7993_v47  ;;  %v8105_v47 = vld [vmem:[%s14520_s2 + $0x4c8] sm:$0xf]  ;;  %v14571_v14 = vld [vmem:[#allocation27_spill] sm:$0xff] }
 0x1a6   : > { %14564 = vst [vmem:[#allocation49_spill] sm:$0xff] %v11218_v24  ;;  %2593 = vmatpush.bf16.msra.mxu0 %v7866_v18  ;;  %v14565_v18 = vld [vmem:[#allocation22_spill] sm:$0xff] }
 0x1a7   : > { %v2142_v44 = vpop.f32.mrf.mxu2  ;;  %2642 = vmatpush.bf16.msra.mxu1 %v7994_v5  ;;  %v8233_v5 = vld [vmem:[%s14520_s2 + $0x5c8] sm:$0xf]  ;;  %v9343_v24 = vld [vmem:[%s14520_s2 + $0x3d4] sm:$0xf0] }
 0x1a8   : > { %v2143_v39 = vadd.f32 %v2142_v44, %v2094_v23  ;;  %v11239_v32 = vpop.f32.mrf.mxu3  ;;  %v2046_v59 = vpop.f32.mrf.mxu0 }
 0x1a9   : > { %v2047_v53 = vadd.f32 %v2046_v59, %v11006_v58  ;;  %v2095_v25 = vpop.f32.mrf.mxu1  ;;  %v14567_v59 = vld [vmem:[#allocation24_spill] sm:$0xff] }
 0x1aa   : > { %v3229_v0 = vmax.f32 %v2143_v39, 0.0  ;;  %v7849_v39 = vld [vmem:[%s14520_s2 + $0x2c8] sm:$0xf] }
 0x1ab   : > { %v2096_v60 = vadd.f32 %v2095_v25, %v2047_v53  ;;  %v14569_v25 = vld [vmem:[#allocation41_spill] sm:$0xff] }
 0x1af   : > { %v2144_v23 = vpop.f32.mrf.mxu2 }
 0x1b0   : > { %v2145_v52 = vadd.f32 %v2144_v23, %v2096_v60  ;;  %v11248_v29 = vpop.f32.mrf.mxu3  ;;  %v2049_v31 = vpop.f32.mrf.mxu0  ;;  %v9311_v60 = vld [vmem:[%s14520_s2 + $0x2d4] sm:$0xf0] }
 0x1b1   : > { %v2050_v58 = vadd.f32 %v2049_v31, %v11032_v45  ;;  %v2098_v30 = vpop.f32.mrf.mxu1  ;;  %v9375_v45 = vld [vmem:[%s14520_s2 + $0x4d4] sm:$0xf0]  ;;  %v7850_v31 = vor.u32 %v9311_v60, %v7849_v39 }
 0x1b2   : > { %v3233_v6 = vmax.f32 %v2145_v52, 0.0  ;;  %v8106_v43 = vor.u32 %v9375_v45, %v8105_v47  ;;  %v9407_v23 = vld [vmem:[%s14520_s2 + $0x5d4] sm:$0xf0] }
 0x1b3   : > { %v2099_v44 = vadd.f32 %v2098_v30, %v2050_v58  ;;  %2244 = vmatmul.bf16.gmra.mxu0 %v14565_v18  ;;  %v8234_v58 = vor.u32 %v9407_v23, %v8233_v5 }
 0x1b4   : > { %2293 = vmatmul.bf16.gmra.mxu1 %v14566_v36  ;;  %2342 = vmatmul.bf16.gmra.mxu2 %v14567_v59  ;;  %v11254_v53 = vpack.c.bf16 %v3233_v6, %v3229_v0  ;;  %v14570_v36 = vld [vmem:[#allocation26_spill] sm:$0xff] }
 0x1b5   : > { %2391 = vmatmul.bf16.gmra.mxu3 %v14569_v25  ;;  %2692 = vmatpush.bf16.msra.mxu2 %v8106_v43 }
 0x1b6   : > { %14568 = vst [vmem:[#allocation50_spill] sm:$0xff] %v11254_v53  ;;  %2594 = vmatpush.bf16.msra.mxu0 %v7850_v31  ;;  %2741 = vmatpush.bf16.msra.mxu3 %v8234_v58  ;;  %v7977_v53 = vld [vmem:[%s14520_s2 + $0x3c8] sm:$0xf] }
 0x1b7   : > { %v2147_v52 = vpop.f32.mrf.mxu2  ;;  %v7978_v43 = vor.u32 %v9343_v24, %v7977_v53  ;;  %v14572_v24 = vld [vmem:[#allocation7_spill] sm:$0xff] }
 0x1b8   : > { %v2148_v30 = vadd.f32 %v2147_v52, %v2099_v44  ;;  %v11275_v0 = vpop.f32.mrf.mxu3  ;;  %v2051_v6 = vpop.f32.mrf.mxu0  ;;  %v11287_v44 = vld [vmem:[%s14419_s3] sm:$0xf] }
 0x1b9   : > { %v2052_v47 = vadd.f32 %v2051_v6, %v11035_v49  ;;  %v2100_v45 = vpop.f32.mrf.mxu1  ;;  %v11290_v39 = vperm.slane %v11287_v44, 1  ;;  %2643 = vmatpush.bf16.msra.mxu1 %v7978_v43 }
 0x1ba   : > { %v3237_v62 = vmax.f32 %v2148_v30, 0.0  ;;  %v9371_v30 = vld [vmem:[%s14520_s2 + $0x4b4] sm:$0xf0] }
 0x1bb   : > { %v2101_v49 = vadd.f32 %v2100_v45, %v2052_v47  ;;  %v2162_v60 = vadd.f32 %v11059_v4, %v11290_v39  ;;  %v8089_v4 = vld [vmem:[%s14520_s2 + $0x4a8] sm:$0xf]  ;;  %v2164_v43 = vadd.f32 %v11062_v15, %v11290_v39  ;;  %v9339_v15 = vld [vmem:[%s14520_s2 + $0x3b4] sm:$0xf0] }
 0x1bc   : > { %v7833_v47 = vld [vmem:[%s14520_s2 + $0x2a8] sm:$0xf]  ;;  %v8090_v45 = vor.u32 %v9371_v30, %v8089_v4 }
 0x1be   : > { %2693 = vmatpush.bf16.msra.mxu2 %v8090_v45 }
 0x1bf   : > { %v2149_v5 = vpop.f32.mrf.mxu2 }
 0x1c0   : > { %v2150_v23 = vadd.f32 %v2149_v5, %v2101_v49  ;;  %v11294_v52 = vpop.f32.mrf.mxu3  ;;  %v2210_v31 = vpop.f32.mrf.mxu0  ;;  %v9403_v49 = vld [vmem:[%s14520_s2 + $0x5b4] sm:$0xf0] }
 0x1c1   : > { %v2211_v58 = vadd.f32 %v2210_v31, %v2162_v60  ;;  %v2259_v6 = vpop.f32.mrf.mxu1 }
 0x1c2   : > { %v3241_v25 = vmax.f32 %v2150_v23, 0.0 }
 0x1c3   : > { %v2260_v59 = vadd.f32 %v2259_v6, %v2211_v58  ;;  %2405 = vmatmul.bf16.vlgmr.msrb.gmra.mxu0 %v14570_v36 }
 0x1c4   : > { %8279 = vmatmul.msk.bf16.vlgmr.msrb.gmra.mxu1 %vm1784_vm0, %v14571_v14  ;;  %2503 = vmatmul.bf16.vlgmr.msrb.gmra.mxu2 %v14572_v24  ;;  %v11300_v53 = vpack.c.bf16 %v3241_v25, %v3237_v62  ;;  %v9307_v62 = vld [vmem:[%s14520_s2 + $0x2b4] sm:$0xf0]  ;;  %v8217_v25 = vld [vmem:[%s14520_s2 + $0x5a8] sm:$0xf] }
 0x1c5   : > { %2552 = vmatmul.bf16.vlgmr.msrb.gmra.mxu3 %v10338_v50  ;;  %v7834_v5 = vor.u32 %v9307_v62, %v7833_v47  ;;  %v8218_v23 = vor.u32 %v9403_v49, %v8217_v25  ;;  %v7961_v50 = vld [vmem:[%s14520_s2 + $0x3a8] sm:$0xf] }
 0x1c6   : > { %14573 = vst [vmem:[#allocation27_spill] sm:$0xff] %v11300_v53  ;;  %v7962_v62 = vor.u32 %v9339_v15, %v7961_v50  ;;  %v8073_v50 = vld [vmem:[%s14520_s2 + $0x488] sm:$0xf] }
 0x1c7   : > { %v2308_v60 = vpop.f32.mrf.mxu2  ;;  %2595 = vmatpush.bf16.msra.mxu0 %v7834_v5  ;;  %2742 = vmatpush.bf16.msra.mxu3 %v8218_v23 }
 0x1c8   : > { %v2309_v31 = vadd.f32 %v2308_v60, %v2260_v59  ;;  %v2357_v58 = vpop.f32.mrf.mxu3  ;;  %v2212_v6 = vpop.f32.mrf.mxu0  ;;  %2644 = vmatpush.bf16.msra.mxu1 %v7962_v62  ;;  %v2167_v59 = vadd.f32 %v11089_v12, %v11290_v39  ;;  %v9367_v12 = vld [vmem:[%s14520_s2 + $0x494] sm:$0xf0]  ;;  %v8201_v62 = vld [vmem:[%s14520_s2 + $0x588] sm:$0xf] }
 0x1c9   : > { %v2213_v4 = vadd.f32 %v2212_v6, %v2164_v43  ;;  %v2261_v30 = vpop.f32.mrf.mxu1  ;;  %v14575_v6 = vld [vmem:[#allocation29_spill] sm:$0xff]  ;;  %v8074_v15 = vor.u32 %v9367_v12, %v8073_v50 }
 0x1ca   : > { %v11323_v53 = vadd.f32 %v2357_v58, %v2309_v31  ;;  %v14574_v58 = vld [vmem:[#allocation28_spill] sm:$0xff] }
 0x1cb   : > { %v2262_v47 = vadd.f32 %v2261_v30, %v2213_v4  ;;  %v14576_v4 = vld [vmem:[#allocation9_spill] sm:$0xff]  ;;  %v7817_v30 = vld [vmem:[%s14520_s2 + $0x288] sm:$0xf]  ;;  %2694 = vmatpush.bf16.msra.mxu2 %v8074_v15 }
 0x1cf   : > { %v2310_v45 = vpop.f32.mrf.mxu2 }
 0x1d0   : > { %v2311_v25 = vadd.f32 %v2310_v45, %v2262_v47  ;;  %v2359_v49 = vpop.f32.mrf.mxu3  ;;  %v2215_v43 = vpop.f32.mrf.mxu0  ;;  %v9303_v47 = vld [vmem:[%s14520_s2 + $0x294] sm:$0xf0]  ;;  %v2169_v45 = vadd.f32 %v11092_v34, %v11290_v39 }
 0x1d1   : > { %v2216_v60 = vadd.f32 %v2215_v43, %v2167_v59  ;;  %v2264_v5 = vpop.f32.mrf.mxu1  ;;  %v9399_v59 = vld [vmem:[%s14520_s2 + $0x594] sm:$0xf0] }
 0x1d2   : > { %v11333_v23 = vadd.f32 %v2359_v49, %v2311_v25  ;;  %v7818_v49 = vor.u32 %v9303_v47, %v7817_v30  ;;  %v8202_v43 = vor.u32 %v9399_v59, %v8201_v62  ;;  %v9335_v34 = vld [vmem:[%s14520_s2 + $0x394] sm:$0xf0] }
 0x1d3   : > { %v2265_v31 = vadd.f32 %v2264_v5, %v2216_v60  ;;  %2410 = vmatmul.bf16.gmra.mxu0 %v14574_v58 }
 0x1d4   : > { %8280 = vmatmul.msk.bf16.gmra.mxu1 %vm1784_vm0, %v14575_v6  ;;  %2508 = vmatmul.bf16.gmra.mxu2 %v14576_v4  ;;  %v7945_v6 = vld [vmem:[%s14520_s2 + $0x388] sm:$0xf] }
 0x1d5   : > { %2557 = vmatmul.bf16.gmra.mxu3 %v10393_v19  ;;  %2596 = vmatpush.bf16.msra.mxu0 %v7818_v49  ;;  %v7946_v47 = vor.u32 %v9335_v34, %v7945_v6  ;;  %v9363_v6 = vld [vmem:[%s14520_s2 + $0x474] sm:$0xf0] }
 0x1d6   : > { %2743 = vmatpush.bf16.msra.mxu3 %v8202_v43 }
 0x1d7   : > { %v2313_v25 = vpop.f32.mrf.mxu2  ;;  %2645 = vmatpush.bf16.msra.mxu1 %v7946_v47  ;;  %v8185_v47 = vld [vmem:[%s14520_s2 + $0x568] sm:$0xf] }
 0x1d8   : > { %v2314_v60 = vadd.f32 %v2313_v25, %v2265_v31  ;;  %v2362_v5 = vpop.f32.mrf.mxu3  ;;  %v2217_v50 = vpop.f32.mrf.mxu0  ;;  %v2172_v31 = vadd.f32 %v11119_v61, %v11290_v39  ;;  %v8057_v61 = vld [vmem:[%s14520_s2 + $0x468] sm:$0xf] }
 0x1d9   : > { %v2218_v12 = vadd.f32 %v2217_v50, %v2169_v45  ;;  %v2266_v19 = vpop.f32.mrf.mxu1  ;;  %v14578_v50 = vld [vmem:[#allocation31_spill] sm:$0xff]  ;;  %v8058_v34 = vor.u32 %v9363_v6, %v8057_v61 }
 0x1da   : > { %v11360_v4 = vadd.f32 %v2362_v5, %v2314_v60  ;;  %v14577_v5 = vld [vmem:[#allocation30_spill] sm:$0xff] }
 0x1db   : > { %v2267_v30 = vadd.f32 %v2266_v19, %v2218_v12  ;;  %v14579_v19 = vld [vmem:[#allocation11_spill] sm:$0xff]  ;;  %v7801_v12 = vld [vmem:[%s14520_s2 + $0x268] sm:$0xf]  ;;  %2695 = vmatpush.bf16.msra.mxu2 %v8058_v34 }
 0x1df   : > { %v2315_v15 = vpop.f32.mrf.mxu2 }
 0x1e0   : > { %v2316_v62 = vadd.f32 %v2315_v15, %v2267_v30  ;;  %v2364_v59 = vpop.f32.mrf.mxu3  ;;  %v2220_v45 = vpop.f32.mrf.mxu0  ;;  %v9299_v30 = vld [vmem:[%s14520_s2 + $0x274] sm:$0xf0]  ;;  %v2174_v15 = vadd.f32 %v11122_v13, %v11290_v39 }
 0x1e1   : > { %v2221_v25 = vadd.f32 %v2220_v45, %v2172_v31  ;;  %v2269_v49 = vpop.f32.mrf.mxu1  ;;  %v9395_v31 = vld [vmem:[%s14520_s2 + $0x574] sm:$0xf0] }
 0x1e2   : > { %v11370_v43 = vadd.f32 %v2364_v59, %v2316_v62  ;;  %v7802_v59 = vor.u32 %v9299_v30, %v7801_v12  ;;  %v8186_v45 = vor.u32 %v9395_v31, %v8185_v47  ;;  %v9331_v13 = vld [vmem:[%s14520_s2 + $0x374] sm:$0xf0] }
 0x1e3   : > { %v2270_v60 = vadd.f32 %v2269_v49, %v2221_v25  ;;  %2415 = vmatmul.bf16.gmra.mxu0 %v14577_v5 }
 0x1e4   : > { %8281 = vmatmul.msk.bf16.gmra.mxu1 %vm1784_vm0, %v14578_v50  ;;  %2513 = vmatmul.bf16.gmra.mxu2 %v14579_v19  ;;  %v7929_v50 = vld [vmem:[%s14520_s2 + $0x368] sm:$0xf] }
 0x1e5   : > { %2562 = vmatmul.bf16.gmra.mxu3 %v10431_v40  ;;  %2597 = vmatpush.bf16.msra.mxu0 %v7802_v59  ;;  %v7930_v30 = vor.u32 %v9331_v13, %v7929_v50  ;;  %v9359_v50 = vld [vmem:[%s14520_s2 + $0x454] sm:$0xf0] }
 0x1e6   : > { %2744 = vmatpush.bf16.msra.mxu3 %v8186_v45 }
 0x1e7   : > { %v2318_v62 = vpop.f32.mrf.mxu2  ;;  %2646 = vmatpush.bf16.msra.mxu1 %v7930_v30  ;;  %v8169_v30 = vld [vmem:[%s14520_s2 + $0x548] sm:$0xf] }
 0x1e8   : > { %v2319_v25 = vadd.f32 %v2318_v62, %v2270_v60  ;;  %v2367_v49 = vpop.f32.mrf.mxu3  ;;  %v2222_v61 = vpop.f32.mrf.mxu0  ;;  %v2177_v60 = vadd.f32 %v11149_v37, %v11290_v39  ;;  %v8041_v37 = vld [vmem:[%s14520_s2 + $0x448] sm:$0xf] }
 0x1e9   : > { %v2223_v6 = vadd.f32 %v2222_v61, %v2174_v15  ;;  %v2271_v40 = vpop.f32.mrf.mxu1  ;;  %v14581_v61 = vld [vmem:[#allocation33_spill] sm:$0xff]  ;;  %v8042_v13 = vor.u32 %v9359_v50, %v8041_v37 }
 0x1ea   : > { %v11397_v19 = vadd.f32 %v2367_v49, %v2319_v25  ;;  %v14580_v49 = vld [vmem:[#allocation32_spill] sm:$0xff] }
 0x1eb   : > { %v2272_v12 = vadd.f32 %v2271_v40, %v2223_v6  ;;  %v14582_v40 = vld [vmem:[#allocation13_spill] sm:$0xff]  ;;  %v7785_v6 = vld [vmem:[%s14520_s2 + $0x248] sm:$0xf]  ;;  %2696 = vmatpush.bf16.msra.mxu2 %v8042_v13 }
 0x1ef   : > { %v2320_v34 = vpop.f32.mrf.mxu2 }
 0x1f0   : > { %v2321_v47 = vadd.f32 %v2320_v34, %v2272_v12  ;;  %v2369_v31 = vpop.f32.mrf.mxu3  ;;  %v2225_v15 = vpop.f32.mrf.mxu0  ;;  %v9295_v12 = vld [vmem:[%s14520_s2 + $0x254] sm:$0xf0]  ;;  %v2179_v34 = vadd.f32 %v11152_v63, %v11290_v39 }
 0x1f1   : > { %v2226_v62 = vadd.f32 %v2225_v15, %v2177_v60  ;;  %v2274_v59 = vpop.f32.mrf.mxu1  ;;  %v9391_v60 = vld [vmem:[%s14520_s2 + $0x554] sm:$0xf0] }
 0x1f2   : > { %v11407_v45 = vadd.f32 %v2369_v31, %v2321_v47  ;;  %v7786_v31 = vor.u32 %v9295_v12, %v7785_v6  ;;  %v8170_v15 = vor.u32 %v9391_v60, %v8169_v30  ;;  %v9327_v63 = vld [vmem:[%s14520_s2 + $0x354] sm:$0xf0] }
 0x1f3   : > { %v2275_v25 = vadd.f32 %v2274_v59, %v2226_v62  ;;  %2420 = vmatmul.bf16.gmra.mxu0 %v14580_v49 }
 0x1f4   : > { %8282 = vmatmul.msk.bf16.gmra.mxu1 %vm1784_vm0, %v14581_v61  ;;  %2518 = vmatmul.bf16.gmra.mxu2 %v14582_v40  ;;  %v7913_v61 = vld [vmem:[%s14520_s2 + $0x348] sm:$0xf] }
 0x1f5   : > { %2567 = vmatmul.bf16.gmra.mxu3 %v10469_v1  ;;  %2598 = vmatpush.bf16.msra.mxu0 %v7786_v31  ;;  %v7914_v12 = vor.u32 %v9327_v63, %v7913_v61  ;;  %v9355_v61 = vld [vmem:[%s14520_s2 + $0x434] sm:$0xf0] }
 0x1f6   : > { %2745 = vmatpush.bf16.msra.mxu3 %v8170_v15 }
 0x1f7   : > { %v2323_v47 = vpop.f32.mrf.mxu2  ;;  %2647 = vmatpush.bf16.msra.mxu1 %v7914_v12  ;;  %v8153_v12 = vld [vmem:[%s14520_s2 + $0x528] sm:$0xf] }
 0x1f8   : > { %v2324_v62 = vadd.f32 %v2323_v47, %v2275_v25  ;;  %v2372_v59 = vpop.f32.mrf.mxu3  ;;  %v2227_v37 = vpop.f32.mrf.mxu0  ;;  %v2182_v25 = vadd.f32 %v11179_v48, %v11290_v39  ;;  %v8025_v48 = vld [vmem:[%s14520_s2 + $0x428] sm:$0xf] }
 0x1f9   : > { %v2228_v50 = vadd.f32 %v2227_v37, %v2179_v34  ;;  %v2276_v1 = vpop.f32.mrf.mxu1  ;;  %v14584_v37 = vld [vmem:[#allocation35_spill] sm:$0xff]  ;;  %v8026_v63 = vor.u32 %v9355_v61, %v8025_v48 }
 0x1fa   : > { %v11434_v40 = vadd.f32 %v2372_v59, %v2324_v62  ;;  %v14583_v59 = vld [vmem:[#allocation34_spill] sm:$0xff] }
 0x1fb   : > { %v2277_v6 = vadd.f32 %v2276_v1, %v2228_v50  ;;  %v14585_v1 = vld [vmem:[#allocation15_spill] sm:$0xff]  ;;  %v7769_v50 = vld [vmem:[%s14520_s2 + $0x228] sm:$0xf]  ;;  %2697 = vmatpush.bf16.msra.mxu2 %v8026_v63 }
 0x1ff   : > { %v2325_v13 = vpop.f32.mrf.mxu2 }
 0x200   : > { %v2326_v30 = vadd.f32 %v2325_v13, %v2277_v6  ;;  %v2374_v60 = vpop.f32.mrf.mxu3  ;;  %v2230_v34 = vpop.f32.mrf.mxu0  ;;  %v9291_v6 = vld [vmem:[%s14520_s2 + $0x234] sm:$0xf0]  ;;  %v2184_v13 = vadd.f32 %v11182_v10, %v11290_v39 }
 0x201   : > { %v2231_v47 = vadd.f32 %v2230_v34, %v2182_v25  ;;  %v2279_v31 = vpop.f32.mrf.mxu1  ;;  %v9387_v25 = vld [vmem:[%s14520_s2 + $0x534] sm:$0xf0] }
 0x202   : > { %v11444_v15 = vadd.f32 %v2374_v60, %v2326_v30  ;;  %v7770_v60 = vor.u32 %v9291_v6, %v7769_v50  ;;  %v8154_v34 = vor.u32 %v9387_v25, %v8153_v12  ;;  %v9323_v10 = vld [vmem:[%s14520_s2 + $0x334] sm:$0xf0] }
 0x203   : > { %v2280_v62 = vadd.f32 %v2279_v31, %v2231_v47  ;;  %2425 = vmatmul.bf16.gmra.mxu0 %v14583_v59 }
 0x204   : > { %8283 = vmatmul.msk.bf16.gmra.mxu1 %vm1784_vm0, %v14584_v37  ;;  %2523 = vmatmul.bf16.gmra.mxu2 %v14585_v1  ;;  %v7897_v37 = vld [vmem:[%s14520_s2 + $0x328] sm:$0xf] }
 0x205   : > { %2572 = vmatmul.bf16.gmra.mxu3 %v10507_v26  ;;  %2599 = vmatpush.bf16.msra.mxu0 %v7770_v60  ;;  %v7898_v6 = vor.u32 %v9323_v10, %v7897_v37  ;;  %v9351_v37 = vld [vmem:[%s14520_s2 + $0x414] sm:$0xf0] }
 0x206   : > { %2746 = vmatpush.bf16.msra.mxu3 %v8154_v34 }
 0x207   : > { %v2328_v30 = vpop.f32.mrf.mxu2  ;;  %2648 = vmatpush.bf16.msra.mxu1 %v7898_v6  ;;  %v8137_v6 = vld [vmem:[%s14520_s2 + $0x508] sm:$0xf] }
 0x208   : > { %v2329_v47 = vadd.f32 %v2328_v30, %v2280_v62  ;;  %v2377_v31 = vpop.f32.mrf.mxu3  ;;  %v2232_v48 = vpop.f32.mrf.mxu0  ;;  %v2187_v62 = vadd.f32 %v11209_v33, %v11290_v39  ;;  %v8009_v33 = vld [vmem:[%s14520_s2 + $0x408] sm:$0xf] }
 0x209   : > { %v2233_v61 = vadd.f32 %v2232_v48, %v2184_v13  ;;  %v2281_v26 = vpop.f32.mrf.mxu1  ;;  %v14587_v48 = vld [vmem:[#allocation37_spill] sm:$0xff]  ;;  %v8010_v10 = vor.u32 %v9351_v37, %v8009_v33 }
 0x20a   : > { %v11471_v1 = vadd.f32 %v2377_v31, %v2329_v47  ;;  %v14586_v31 = vld [vmem:[#allocation36_spill] sm:$0xff] }
 0x20b   : > { %v2282_v50 = vadd.f32 %v2281_v26, %v2233_v61  ;;  %v14588_v26 = vld [vmem:[#allocation17_spill] sm:$0xff]  ;;  %v7753_v61 = vld [vmem:[%s14520_s2 + $0x208] sm:$0xf]  ;;  %2698 = vmatpush.bf16.msra.mxu2 %v8010_v10 }
 0x20f   : > { %v2330_v63 = vpop.f32.mrf.mxu2 }
 0x210   : > { %v2331_v12 = vadd.f32 %v2330_v63, %v2282_v50  ;;  %v2379_v25 = vpop.f32.mrf.mxu3  ;;  %v2235_v13 = vpop.f32.mrf.mxu0  ;;  %v9287_v50 = vld [vmem:[%s14520_s2 + $0x214] sm:$0xf0]  ;;  %v2189_v63 = vadd.f32 %v11212_v38, %v11290_v39 }
 0x211   : > { %v2236_v30 = vadd.f32 %v2235_v13, %v2187_v62  ;;  %v2284_v60 = vpop.f32.mrf.mxu1  ;;  %v9383_v62 = vld [vmem:[%s14520_s2 + $0x514] sm:$0xf0] }
 0x212   : > { %v11481_v34 = vadd.f32 %v2379_v25, %v2331_v12  ;;  %v7754_v25 = vor.u32 %v9287_v50, %v7753_v61  ;;  %v8138_v13 = vor.u32 %v9383_v62, %v8137_v6  ;;  %v9319_v38 = vld [vmem:[%s14520_s2 + $0x314] sm:$0xf0] }
 0x213   : > { %v2285_v47 = vadd.f32 %v2284_v60, %v2236_v30  ;;  %2430 = vmatmul.bf16.gmra.mxu0 %v14586_v31 }
 0x214   : > { %8284 = vmatmul.msk.bf16.gmra.mxu1 %vm1784_vm0, %v14587_v48  ;;  %2528 = vmatmul.bf16.gmra.mxu2 %v14588_v26  ;;  %v7881_v48 = vld [vmem:[%s14520_s2 + $0x308] sm:$0xf] }
 0x215   : > { %2577 = vmatmul.bf16.gmra.mxu3 %v10545_v54  ;;  %2600 = vmatpush.bf16.msra.mxu0 %v7754_v25  ;;  %v7882_v50 = vor.u32 %v9319_v38, %v7881_v48  ;;  %v7739_v48 = vld [vmem:[%s14520_s2 + $0x1f8] sm:$0xf0] }
 0x216   : > { %2747 = vmatpush.bf16.msra.mxu3 %v8138_v13 }
 0x217   : > { %v2333_v12 = vpop.f32.mrf.mxu2  ;;  %2649 = vmatpush.bf16.msra.mxu1 %v7882_v50  ;;  %v9313_v50 = vld [vmem:[%s14520_s2 + $0x2ec] sm:$0xf] }
 0x218   : > { %v2334_v30 = vadd.f32 %v2333_v12, %v2285_v47  ;;  %v2382_v60 = vpop.f32.mrf.mxu3  ;;  %v2237_v33 = vpop.f32.mrf.mxu0  ;;  %v2192_v47 = vadd.f32 %v11239_v32, %v11290_v39  ;;  %v9281_v32 = vld [vmem:[%s14520_s2 + $0x1ec] sm:$0xf] }
 0x219   : > { %v2238_v37 = vadd.f32 %v2237_v33, %v2189_v63  ;;  %v2286_v54 = vpop.f32.mrf.mxu1  ;;  %v14590_v33 = vld [vmem:[#allocation40_spill] sm:$0xff]  ;;  %v7742_v38 = vor.u32 %v9281_v32, %v7739_v48 }
 0x21a   : > { %v11508_v26 = vadd.f32 %v2382_v60, %v2334_v30  ;;  %v14589_v60 = vld [vmem:[#allocation39_spill] sm:$0xff] }
 0x21b   : > { %v2287_v61 = vadd.f32 %v2286_v54, %v2238_v37  ;;  %v14591_v54 = vld [vmem:[#allocation19_spill] sm:$0xff]  ;;  %v8265_v37 = vld [vmem:[%s14520_s2 + $0x608] sm:$0xf]  ;;  %2887 = vmatpush.bf16.msrb.mxu2 %v7742_v38 }
 0x21f   : > { %v2335_v10 = vpop.f32.mrf.mxu2 }
 0x220   : > { %v2336_v6 = vadd.f32 %v2335_v10, %v2287_v61  ;;  %v2384_v62 = vpop.f32.mrf.mxu3  ;;  %v2240_v63 = vpop.f32.mrf.mxu0  ;;  %v9415_v61 = vld [vmem:[%s14520_s2 + $0x614] sm:$0xf0]  ;;  %v2194_v10 = vadd.f32 %v11248_v29, %v11290_v39  ;;  %v7611_v29 = vld [vmem:[%s14520_s2 + $0xf8] sm:$0xf0] }
 0x221   : > { %v2241_v12 = vadd.f32 %v2240_v63, %v2192_v47  ;;  %v2289_v25 = vpop.f32.mrf.mxu1  ;;  %v7867_v47 = vld [vmem:[%s14520_s2 + $0x2f8] sm:$0xf0] }
 0x222   : > { %v11518_v13 = vadd.f32 %v2384_v62, %v2336_v6  ;;  %v8266_v62 = vor.u32 %v9415_v61, %v8265_v37  ;;  %v7870_v63 = vor.u32 %v9313_v50, %v7867_v47 }
 0x223   : > { %v2290_v30 = vadd.f32 %v2289_v25, %v2241_v12  ;;  %2435 = vmatmul.bf16.gmra.mxu0 %v14589_v60 }
 0x224   : > { %8285 = vmatmul.msk.bf16.gmra.mxu1 %vm1784_vm0, %v14590_v33  ;;  %2533 = vmatmul.bf16.gmra.mxu2 %v14591_v54  ;;  %v9249_v33 = vld [vmem:[%s14520_s2 + $0xec] sm:$0xf] }
 0x225   : > { %2582 = vmatmul.bf16.gmra.mxu3 %v10583_v16  ;;  %2796 = vmatpush.bf16.msrb.mxu0 %v8266_v62  ;;  %v7614_v61 = vor.u32 %v9249_v33, %v7611_v29  ;;  %v7723_v33 = vld [vmem:[%s14520_s2 + $0x1d8] sm:$0xf0] }
 0x226   : > { %2936 = vmatpush.bf16.msrb.mxu3 %v7870_v63 }
 0x227   : > { %v2338_v6 = vpop.f32.mrf.mxu2  ;;  %2838 = vmatpush.bf16.msrb.mxu1 %v7614_v61  ;;  %v2199_v61 = vadd.f32 %v11294_v52, %v11290_v39 }
 0x228   : > { %v2339_v12 = vadd.f32 %v2338_v6, %v2290_v30  ;;  %v2387_v25 = vpop.f32.mrf.mxu3  ;;  %v2242_v32 = vpop.f32.mrf.mxu0  ;;  %v2197_v30 = vadd.f32 %v11275_v0, %v11290_v39  ;;  %v9277_v0 = vld [vmem:[%s14520_s2 + $0x1cc] sm:$0xf] }
 0x229   : > { %v2243_v48 = vadd.f32 %v2242_v32, %v2194_v10  ;;  %v2291_v16 = vpop.f32.mrf.mxu1  ;;  %v14593_v32 = vld [vmem:[#allocation43_spill] sm:$0xff]  ;;  %v7726_v29 = vor.u32 %v9277_v0, %v7723_v33  ;;  %v9245_v0 = vld [vmem:[%s14520_s2 + $0xcc] sm:$0xf]  ;;  %v7595_v33 = vld [vmem:[%s14520_s2 + $0xd8] sm:$0xf0] }
 0x22a   : > { %v11545_v54 = vadd.f32 %v2387_v25, %v2339_v12  ;;  %v14592_v25 = vld [vmem:[#allocation42_spill] sm:$0xff]  ;;  %v7598_v52 = vor.u32 %v9245_v0, %v7595_v33 }
 0x22b   : > { %v2292_v37 = vadd.f32 %v2291_v16, %v2243_v48  ;;  %v14594_v16 = vld [vmem:[#allocation21_spill] sm:$0xff]  ;;  %v9309_v48 = vld [vmem:[%s14520_s2 + $0x2cc] sm:$0xf]  ;;  %2888 = vmatpush.bf16.msrb.mxu2 %v7726_v29 }
 0x22c   : > { %2839 = vmatpush.bf16.msrb.mxu1 %v7598_v52 }
 0x22f   : > { %v2340_v38 = vpop.f32.mrf.mxu2 }
 0x230   : > { %v2341_v50 = vadd.f32 %v2340_v38, %v2292_v37  ;;  %v2389_v47 = vpop.f32.mrf.mxu3  ;;  %v2245_v10 = vpop.f32.mrf.mxu0  ;;  %v7851_v37 = vld [vmem:[%s14520_s2 + $0x2d8] sm:$0xf0] }
 0x231   : > { %v2246_v6 = vadd.f32 %v2245_v10, %v2197_v30  ;;  %v2294_v62 = vpop.f32.mrf.mxu1  ;;  %v7854_v38 = vor.u32 %v9309_v48, %v7851_v37 }
 0x232   : > { %v11555_v63 = vadd.f32 %v2389_v47, %v2341_v50 }
 0x233   : > { %v2295_v12 = vadd.f32 %v2294_v62, %v2246_v6  ;;  %2440 = vmatmul.bf16.gmra.mxu0 %v14592_v25  ;;  %2937 = vmatpush.bf16.msrb.mxu3 %v7854_v38 }
 0x234   : > { %8286 = vmatmul.msk.bf16.gmra.mxu1 %vm1784_vm0, %v14593_v32  ;;  %2538 = vmatmul.bf16.gmra.mxu2 %v14594_v16 }
 0x235   : > { %2587 = vmatmul.bf16.gmra.mxu3 %v14565_v18 }
 0x237   : > { %v2343_v30 = vpop.f32.mrf.mxu2 }
 0x238   : > { %v2344_v50 = vadd.f32 %v2343_v30, %v2295_v12  ;;  %v2392_v47 = vpop.f32.mrf.mxu3  ;;  %v2247_v10 = vpop.f32.mrf.mxu0 }
 0x239   : > { %v2248_v6 = vadd.f32 %v2247_v10, %v2199_v61  ;;  %v2296_v62 = vpop.f32.mrf.mxu1  ;;  %v9273_v10 = vld [vmem:[%s14520_s2 + $0x1ac] sm:$0xf] }
 0x23a   : > { %v11576_v18 = vadd.f32 %v2392_v47, %v2344_v50  ;;  %v11591_v47 = vperm.slane %v11287_v44, 2  ;;  %v7835_v44 = vld [vmem:[%s14520_s2 + $0x2b8] sm:$0xf0] }
 0x23b   : > { %v2297_v39 = vadd.f32 %v2296_v62, %v2248_v6  ;;  %v9305_v62 = vld [vmem:[%s14520_s2 + $0x2ac] sm:$0xf] }
 0x23c   : > { %v7838_v33 = vor.u32 %v9305_v62, %v7835_v44 }
 0x23e   : > { %2938 = vmatpush.bf16.msrb.mxu3 %v7838_v33 }
 0x23f   : > { %v2345_v12 = vpop.f32.mrf.mxu2 }
 0x240   : > { %v2346_v48 = vadd.f32 %v2345_v12, %v2297_v39  ;;  %v2394_v37 = vpop.f32.mrf.mxu3  ;;  %v2406_v29 = vpop.f32.mrf.mxu0 }
 0x241   : > { %v2407_v61 = vadd.f32 %v2406_v29, %v11323_v53  ;;  %v2455_v30 = vpop.f32.mrf.mxu1  ;;  %v7707_v53 = vld [vmem:[%s14520_s2 + $0x1b8] sm:$0xf0] }
 0x242   : > { %v11585_v38 = vadd.f32 %v2394_v37, %v2346_v48  ;;  %v7710_v6 = vor.u32 %v9273_v10, %v7707_v53 }
 0x243   : > { %v2456_v50 = vadd.f32 %v2455_v30, %v2407_v61  ;;  %2601 = vmatmul.bf16.vlgmr.msra.gmra.mxu0 %v10340_v51  ;;  %v9241_v61 = vld [vmem:[%s14520_s2 + $0xac] sm:$0xf]  ;;  %v7579_v30 = vld [vmem:[%s14520_s2 + $0xb8] sm:$0xf0] }
 0x244   : > { %2650 = vmatmul.bf16.vlgmr.msra.gmra.mxu1 %v10347_v55  ;;  %2699 = vmatmul.bf16.vlgmr.msra.gmra.mxu2 %v10672_v35  ;;  %v7582_v53 = vor.u32 %v9241_v61, %v7579_v30  ;;  %v7819_v61 = vld [vmem:[%s14520_s2 + $0x298] sm:$0xf0] }
 0x245   : > { %2748 = vmatmul.bf16.vlgmr.msra.gmra.mxu3 %v14570_v36  ;;  %2889 = vmatpush.bf16.msrb.mxu2 %v7710_v6  ;;  %v3182_v62 = vmax.f32 %v2456_v50, 0.0  ;;  %v9269_v50 = vld [vmem:[%s14520_s2 + $0x18c] sm:$0xf] }
 0x246   : > { %2840 = vmatpush.bf16.msrb.mxu1 %v7582_v53 }
 0x247   : > { %v2504_v0 = vpop.f32.mrf.mxu2 }
 0x248   : > { %v2505_v39 = vadd.f32 %v2504_v0, %v11591_v47  ;;  %v2553_v52 = vpop.f32.mrf.mxu3  ;;  %v2408_v12 = vpop.f32.mrf.mxu0 }
 0x249   : > { %v2409_v48 = vadd.f32 %v2408_v12, %v11333_v23  ;;  %v2457_v37 = vpop.f32.mrf.mxu1 }
 0x24a   : > { %v11608_v29 = vadd.f32 %v2553_v52, %v2505_v39 }
 0x24b   : > { %v2458_v10 = vadd.f32 %v2457_v37, %v2409_v48  ;;  %v9301_v37 = vld [vmem:[%s14520_s2 + $0x28c] sm:$0xf] }
 0x24d   : > { %v3186_v44 = vmax.f32 %v2458_v10, 0.0  ;;  %v7822_v10 = vor.u32 %v9301_v37, %v7819_v61 }
 0x24f   : > { %v11616_v6 = vpack.c.bf16 %v3186_v44, %v3182_v62  ;;  %v2506_v23 = vpop.f32.mrf.mxu2  ;;  %2939 = vmatpush.bf16.msrb.mxu3 %v7822_v10 }
 0x250   : > { %v2507_v0 = vadd.f32 %v2506_v23, %v11591_v47  ;;  %v2555_v33 = vpop.f32.mrf.mxu3  ;;  %v2411_v39 = vpop.f32.mrf.mxu0 }
 0x251   : > { %14595 = vst [vmem:[#allocation7_spill] sm:$0xff] %v11616_v6  ;;  %v2412_v52 = vadd.f32 %v2411_v39, %v11360_v4  ;;  %v2460_v12 = vpop.f32.mrf.mxu1  ;;  %v7691_v4 = vld [vmem:[%s14520_s2 + $0x198] sm:$0xf0]  ;;  %v9237_v39 = vld [vmem:[%s14520_s2 + $0x8c] sm:$0xf] }
 0x252   : > { %v11620_v36 = vadd.f32 %v2555_v33, %v2507_v0  ;;  %v7694_v48 = vor.u32 %v9269_v50, %v7691_v4 }
 0x253   : > { %v2461_v35 = vadd.f32 %v2460_v12, %v2412_v52  ;;  %2606 = vmatmul.bf16.gmra.mxu0 %v10395_v20  ;;  %v7563_v52 = vld [vmem:[%s14520_s2 + $0x98] sm:$0xf0] }
 0x254   : > { %2655 = vmatmul.bf16.gmra.mxu1 %v10397_v21  ;;  %2704 = vmatmul.bf16.gmra.mxu2 %v10717_v46  ;;  %v7566_v50 = vor.u32 %v9237_v39, %v7563_v52  ;;  %v7803_v39 = vld [vmem:[%s14520_s2 + $0x278] sm:$0xf0] }
 0x255   : > { %2753 = vmatmul.bf16.gmra.mxu3 %v14574_v58  ;;  %2890 = vmatpush.bf16.msrb.mxu2 %v7694_v48  ;;  %v3190_v4 = vmax.f32 %v2461_v35, 0.0  ;;  %v9265_v35 = vld [vmem:[%s14520_s2 + $0x16c] sm:$0xf] }
 0x256   : > { %2841 = vmatpush.bf16.msrb.mxu1 %v7566_v50 }
 0x257   : > { %v2509_v30 = vpop.f32.mrf.mxu2 }
 0x258   : > { %v2510_v53 = vadd.f32 %v2509_v30, %v11591_v47  ;;  %v2558_v62 = vpop.f32.mrf.mxu3  ;;  %v2413_v44 = vpop.f32.mrf.mxu0 }
 0x259   : > { %v2414_v23 = vadd.f32 %v2413_v44, %v11370_v43  ;;  %v2462_v0 = vpop.f32.mrf.mxu1 }
 0x25a   : > { %v11640_v33 = vadd.f32 %v2558_v62, %v2510_v53 }
 0x25b   : > { %v2463_v12 = vadd.f32 %v2462_v0, %v2414_v23  ;;  %v9297_v0 = vld [vmem:[%s14520_s2 + $0x26c] sm:$0xf] }
 0x25d   : > { %v3194_v37 = vmax.f32 %v2463_v12, 0.0  ;;  %v7806_v12 = vor.u32 %v9297_v0, %v7803_v39 }
 0x25f   : > { %v2511_v48 = vpop.f32.mrf.mxu2  ;;  %v11648_v61 = vpack.c.bf16 %v3194_v37, %v3190_v4  ;;  %2940 = vmatpush.bf16.msrb.mxu3 %v7806_v12 }
 0x260   : > { %v2512_v43 = vadd.f32 %v2511_v48, %v11591_v47  ;;  %v2560_v30 = vpop.f32.mrf.mxu3  ;;  %v2416_v10 = vpop.f32.mrf.mxu0 }
 0x261   : > { %14596 = vst [vmem:[#allocation28_spill] sm:$0xff] %v11648_v61  ;;  %v2417_v53 = vadd.f32 %v2416_v10, %v11397_v19  ;;  %v2465_v62 = vpop.f32.mrf.mxu1  ;;  %v7675_v19 = vld [vmem:[%s14520_s2 + $0x178] sm:$0xf0]  ;;  %v9233_v10 = vld [vmem:[%s14520_s2 + $0x6c] sm:$0xf] }
 0x262   : > { %v11652_v44 = vadd.f32 %v2560_v30, %v2512_v43  ;;  %v7678_v23 = vor.u32 %v9265_v35, %v7675_v19 }
 0x263   : > { %v2466_v6 = vadd.f32 %v2465_v62, %v2417_v53  ;;  %2611 = vmatmul.bf16.gmra.mxu0 %v10433_v41  ;;  %v7547_v53 = vld [vmem:[%s14520_s2 + $0x78] sm:$0xf0] }
 0x264   : > { %2660 = vmatmul.bf16.gmra.mxu1 %v10435_v42  ;;  %2709 = vmatmul.bf16.gmra.mxu2 %v10764_v11  ;;  %v7550_v35 = vor.u32 %v9233_v10, %v7547_v53  ;;  %v7787_v10 = vld [vmem:[%s14520_s2 + $0x258] sm:$0xf0] }
 0x265   : > { %2758 = vmatmul.bf16.gmra.mxu3 %v14577_v5  ;;  %2891 = vmatpush.bf16.msrb.mxu2 %v7678_v23  ;;  %v3198_v19 = vmax.f32 %v2466_v6, 0.0  ;;  %v9261_v6 = vld [vmem:[%s14520_s2 + $0x14c] sm:$0xf] }
 0x266   : > { %2842 = vmatpush.bf16.msrb.mxu1 %v7550_v35 }
 0x267   : > { %v2514_v52 = vpop.f32.mrf.mxu2 }
 0x268   : > { %v2515_v50 = vadd.f32 %v2514_v52, %v11591_v47  ;;  %v2563_v4 = vpop.f32.mrf.mxu3  ;;  %v2418_v37 = vpop.f32.mrf.mxu0 }
 0x269   : > { %v2419_v48 = vadd.f32 %v2418_v37, %v11407_v45  ;;  %v2467_v43 = vpop.f32.mrf.mxu1 }
 0x26a   : > { %v11672_v30 = vadd.f32 %v2563_v4, %v2515_v50 }
 0x26b   : > { %v2468_v62 = vadd.f32 %v2467_v43, %v2419_v48  ;;  %v9293_v43 = vld [vmem:[%s14520_s2 + $0x24c] sm:$0xf] }
 0x26d   : > { %v3202_v0 = vmax.f32 %v2468_v62, 0.0  ;;  %v7790_v62 = vor.u32 %v9293_v43, %v7787_v10 }
 0x26f   : > { %v2516_v23 = vpop.f32.mrf.mxu2  ;;  %v11680_v39 = vpack.c.bf16 %v3202_v0, %v3198_v19  ;;  %2941 = vmatpush.bf16.msrb.mxu3 %v7790_v62 }
 0x270   : > { %v2517_v45 = vadd.f32 %v2516_v23, %v11591_v47  ;;  %v2565_v52 = vpop.f32.mrf.mxu3  ;;  %v2421_v12 = vpop.f32.mrf.mxu0 }
 0x271   : > { %14597 = vst [vmem:[#allocation30_spill] sm:$0xff] %v11680_v39  ;;  %v2422_v50 = vadd.f32 %v2421_v12, %v11434_v40  ;;  %v2470_v4 = vpop.f32.mrf.mxu1  ;;  %v7659_v40 = vld [vmem:[%s14520_s2 + $0x158] sm:$0xf0]  ;;  %v9229_v12 = vld [vmem:[%s14520_s2 + $0x4c] sm:$0xf] }
 0x272   : > { %v11684_v37 = vadd.f32 %v2565_v52, %v2517_v45  ;;  %v7662_v48 = vor.u32 %v9261_v6, %v7659_v40 }
 0x273   : > { %v2471_v61 = vadd.f32 %v2470_v4, %v2422_v50  ;;  %2616 = vmatmul.bf16.gmra.mxu0 %v10471_v2  ;;  %v7531_v50 = vld [vmem:[%s14520_s2 + $0x58] sm:$0xf0] }
 0x274   : > { %2665 = vmatmul.bf16.gmra.mxu1 %v10473_v3  ;;  %2714 = vmatmul.bf16.gmra.mxu2 %v10811_v8  ;;  %v7534_v6 = vor.u32 %v9229_v12, %v7531_v50  ;;  %v7771_v12 = vld [vmem:[%s14520_s2 + $0x238] sm:$0xf0] }
 0x275   : > { %2763 = vmatmul.bf16.gmra.mxu3 %v14580_v49  ;;  %2892 = vmatpush.bf16.msrb.mxu2 %v7662_v48  ;;  %v3206_v40 = vmax.f32 %v2471_v61, 0.0  ;;  %v9257_v61 = vld [vmem:[%s14520_s2 + $0x12c] sm:$0xf] }
 0x276   : > { %2843 = vmatpush.bf16.msrb.mxu1 %v7534_v6 }
 0x277   : > { %v2519_v53 = vpop.f32.mrf.mxu2 }
 0x278   : > { %v2520_v35 = vadd.f32 %v2519_v53, %v11591_v47  ;;  %v2568_v19 = vpop.f32.mrf.mxu3  ;;  %v2423_v0 = vpop.f32.mrf.mxu0 }
 0x279   : > { %v2424_v23 = vadd.f32 %v2423_v0, %v11444_v15  ;;  %v2472_v45 = vpop.f32.mrf.mxu1 }
 0x27a   : > { %v11704_v52 = vadd.f32 %v2568_v19, %v2520_v35 }
 0x27b   : > { %v2473_v4 = vadd.f32 %v2472_v45, %v2424_v23  ;;  %v9289_v45 = vld [vmem:[%s14520_s2 + $0x22c] sm:$0xf] }
 0x27d   : > { %v3210_v43 = vmax.f32 %v2473_v4, 0.0  ;;  %v7774_v4 = vor.u32 %v9289_v45, %v7771_v12 }
 0x27f   : > { %v2521_v48 = vpop.f32.mrf.mxu2  ;;  %v11712_v10 = vpack.c.bf16 %v3210_v43, %v3206_v40  ;;  %2942 = vmatpush.bf16.msrb.mxu3 %v7774_v4 }
 0x280   : > { %v2522_v15 = vadd.f32 %v2521_v48, %v11591_v47  ;;  %v2570_v53 = vpop.f32.mrf.mxu3  ;;  %v2426_v62 = vpop.f32.mrf.mxu0 }
 0x281   : > { %14598 = vst [vmem:[#allocation32_spill] sm:$0xff] %v11712_v10  ;;  %v2427_v35 = vadd.f32 %v2426_v62, %v11471_v1  ;;  %v2475_v19 = vpop.f32.mrf.mxu1  ;;  %v7643_v1 = vld [vmem:[%s14520_s2 + $0x138] sm:$0xf0]  ;;  %v9225_v62 = vld [vmem:[%s14520_s2 + $0x2c] sm:$0xf] }
 0x282   : > { %v11716_v0 = vadd.f32 %v2570_v53, %v2522_v15  ;;  %v7646_v23 = vor.u32 %v9257_v61, %v7643_v1 }
 0x283   : > { %v2476_v39 = vadd.f32 %v2475_v19, %v2427_v35  ;;  %2621 = vmatmul.bf16.gmra.mxu0 %v10509_v27  ;;  %v7515_v35 = vld [vmem:[%s14520_s2 + $0x38] sm:$0xf0] }
 0x284   : > { %2670 = vmatmul.bf16.gmra.mxu1 %v10511_v28  ;;  %2719 = vmatmul.bf16.gmra.mxu2 %v10858_v9  ;;  %v7518_v61 = vor.u32 %v9225_v62, %v7515_v35  ;;  %v7755_v62 = vld [vmem:[%s14520_s2 + $0x218] sm:$0xf0] }
 0x285   : > { %2768 = vmatmul.bf16.gmra.mxu3 %v14583_v59  ;;  %2893 = vmatpush.bf16.msrb.mxu2 %v7646_v23  ;;  %v3214_v1 = vmax.f32 %v2476_v39, 0.0  ;;  %v9253_v39 = vld [vmem:[%s14520_s2 + $0x10c] sm:$0xf] }
 0x286   : > { %2844 = vmatpush.bf16.msrb.mxu1 %v7518_v61 }
 0x287   : > { %v2524_v50 = vpop.f32.mrf.mxu2 }
 0x288   : > { %v2525_v6 = vadd.f32 %v2524_v50, %v11591_v47  ;;  %v2573_v40 = vpop.f32.mrf.mxu3  ;;  %v2428_v43 = vpop.f32.mrf.mxu0 }
 0x289   : > { %v2429_v48 = vadd.f32 %v2428_v43, %v11481_v34  ;;  %v2477_v15 = vpop.f32.mrf.mxu1 }
 0x28a   : > { %v11736_v53 = vadd.f32 %v2573_v40, %v2525_v6 }
 0x28b   : > { %v2478_v19 = vadd.f32 %v2477_v15, %v2429_v48  ;;  %v9285_v15 = vld [vmem:[%s14520_s2 + $0x20c] sm:$0xf] }
 0x28d   : > { %v3218_v45 = vmax.f32 %v2478_v19, 0.0  ;;  %v7758_v19 = vor.u32 %v9285_v15, %v7755_v62 }
 0x28f   : > { %v2526_v23 = vpop.f32.mrf.mxu2  ;;  %v11744_v12 = vpack.c.bf16 %v3218_v45, %v3214_v1  ;;  %2943 = vmatpush.bf16.msrb.mxu3 %v7758_v19 }
 0x290   : > { %v2527_v34 = vadd.f32 %v2526_v23, %v11591_v47  ;;  %v2575_v50 = vpop.f32.mrf.mxu3  ;;  %v2431_v4 = vpop.f32.mrf.mxu0 }
 0x291   : > { %14599 = vst [vmem:[#allocation34_spill] sm:$0xff] %v11744_v12  ;;  %v2432_v6 = vadd.f32 %v2431_v4, %v11508_v26  ;;  %v2480_v40 = vpop.f32.mrf.mxu1  ;;  %v7627_v26 = vld [vmem:[%s14520_s2 + $0x118] sm:$0xf0]  ;;  %v9221_v4 = vld [vmem:[%s14520_s2 + $0xc] sm:$0xf] }
 0x292   : > { %v11748_v43 = vadd.f32 %v2575_v50, %v2527_v34  ;;  %v7630_v48 = vor.u32 %v9253_v39, %v7627_v26 }
 0x293   : > { %v2481_v10 = vadd.f32 %v2480_v40, %v2432_v6  ;;  %2626 = vmatmul.bf16.gmra.mxu0 %v10547_v56  ;;  %v7499_v6 = vld [vmem:[%s14520_s2 + $0x18] sm:$0xf0] }
 0x294   : > { %2675 = vmatmul.bf16.gmra.mxu1 %v10549_v57  ;;  %2724 = vmatmul.bf16.gmra.mxu2 %v10905_v7  ;;  %v7502_v39 = vor.u32 %v9221_v4, %v7499_v6  ;;  %v9345_v4 = vld [vmem:[%s14520_s2 + $0x3ec] sm:$0xf]  ;;  %v7995_v6 = vld [vmem:[%s14520_s2 + $0x3f8] sm:$0xf0] }
 0x295   : > { %2773 = vmatmul.bf16.gmra.mxu3 %v14586_v31  ;;  %2894 = vmatpush.bf16.msrb.mxu2 %v7630_v48  ;;  %v3222_v26 = vmax.f32 %v2481_v10, 0.0  ;;  %v14601_v10 = vld [vmem:[#allocation38_spill] sm:$0xff] }
 0x296   : > { %2845 = vmatpush.bf16.msrb.mxu1 %v7502_v39 }
 0x297   : > { %v2529_v35 = vpop.f32.mrf.mxu2 }
 0x298   : > { %v2530_v61 = vadd.f32 %v2529_v35, %v11591_v47  ;;  %v2578_v1 = vpop.f32.mrf.mxu3  ;;  %v2433_v45 = vpop.f32.mrf.mxu0 }
 0x299   : > { %v2434_v23 = vadd.f32 %v2433_v45, %v11518_v13  ;;  %v2482_v34 = vpop.f32.mrf.mxu1 }
 0x29a   : > { %v11768_v50 = vadd.f32 %v2578_v1, %v2530_v61 }
 0x29b   : > { %v2483_v40 = vadd.f32 %v2482_v34, %v2434_v23  ;;  %v9409_v23 = vld [vmem:[%s14520_s2 + $0x5ec] sm:$0xf] }
 0x29d   : > { %v3226_v15 = vmax.f32 %v2483_v40, 0.0  ;;  %v9413_v40 = vld [vmem:[%s14520_s2 + $0x60c] sm:$0xf] }
 0x29f   : > { %v2531_v48 = vpop.f32.mrf.mxu2  ;;  %v11776_v62 = vpack.c.bf16 %v3226_v15, %v3222_v26  ;;  %v7998_v26 = vor.u32 %v9345_v4, %v7995_v6  ;;  %v8267_v15 = vld [vmem:[%s14520_s2 + $0x618] sm:$0xf0] }
 0x2a0   : > { %v2532_v13 = vadd.f32 %v2531_v48, %v11591_v47  ;;  %v2580_v35 = vpop.f32.mrf.mxu3  ;;  %v2436_v19 = vpop.f32.mrf.mxu0  ;;  %v8123_v4 = vld [vmem:[%s14520_s2 + $0x4f8] sm:$0xf0] }
 0x2a1   : > { %14600 = vst [vmem:[#allocation36_spill] sm:$0xff] %v11776_v62  ;;  %v2437_v61 = vadd.f32 %v2436_v19, %v11545_v54  ;;  %v2485_v1 = vpop.f32.mrf.mxu1  ;;  %v8251_v54 = vld [vmem:[%s14520_s2 + $0x5f8] sm:$0xf0]  ;;  %v8270_v19 = vor.u32 %v9413_v40, %v8267_v15  ;;  %2985 = vmatpush.bf16.msra.mxu0 %v7998_v26 }
 0x2a2   : > { %v11780_v45 = vadd.f32 %v2580_v35, %v2532_v13  ;;  %v8254_v34 = vor.u32 %v9409_v23, %v8251_v54  ;;  %v9377_v54 = vld [vmem:[%s14520_s2 + $0x4ec] sm:$0xf] }
 0x2a3   : > { %v2486_v12 = vadd.f32 %v2485_v1, %v2437_v61  ;;  %2631 = vmatmul.bf16.gmra.mxu0 %v10585_v17  ;;  %3139 = vmatpush.bf16.msra.mxu3 %v8270_v19 }
 0x2a4   : > { %2680 = vmatmul.bf16.gmra.mxu1 %v10587_v22  ;;  %2729 = vmatmul.bf16.gmra.mxu2 %v14601_v10  ;;  %v14603_v10 = vld [vmem:[#allocation23_spill] sm:$0xff] }
 0x2a5   : > { %2778 = vmatmul.bf16.gmra.mxu3 %v14589_v60  ;;  %3083 = vmatpush.bf16.msra.mxu2 %v8254_v34  ;;  %v3230_v62 = vmax.f32 %v2486_v12, 0.0  ;;  %v14605_v12 = vld [vmem:[#allocation41_spill] sm:$0xff] }
 0x2a7   : > { %v2534_v39 = vpop.f32.mrf.mxu2 }
 0x2a8   : > { %v2535_v48 = vadd.f32 %v2534_v39, %v11591_v47  ;;  %v2583_v13 = vpop.f32.mrf.mxu3  ;;  %v2438_v35 = vpop.f32.mrf.mxu0  ;;  %v8126_v39 = vor.u32 %v9377_v54, %v8123_v4  ;;  %v9341_v54 = vld [vmem:[%s14520_s2 + $0x3cc] sm:$0xf]  ;;  %v7979_v4 = vld [vmem:[%s14520_s2 + $0x3d8] sm:$0xf0] }
 0x2a9   : > { %v2439_v61 = vadd.f32 %v2438_v35, %v11555_v63  ;;  %v2487_v1 = vpop.f32.mrf.mxu1 }
 0x2aa   : > { %v11806_v23 = vadd.f32 %v2583_v13, %v2535_v48  ;;  %3034 = vmatpush.bf16.msra.mxu1 %v8126_v39  ;;  %v7982_v39 = vor.u32 %v9341_v54, %v7979_v4 }
 0x2ab   : > { %v2488_v6 = vadd.f32 %v2487_v1, %v2439_v61  ;;  %v14604_v61 = vld [vmem:[#allocation24_spill] sm:$0xff] }
 0x2ac   : > { %2986 = vmatpush.bf16.msra.mxu0 %v7982_v39 }
 0x2ad   : > { %v3234_v34 = vmax.f32 %v2488_v6, 0.0 }
 0x2af   : > { %v2536_v40 = vpop.f32.mrf.mxu2  ;;  %v11814_v63 = vpack.c.bf16 %v3234_v34, %v3230_v62  ;;  %v9405_v62 = vld [vmem:[%s14520_s2 + $0x5cc] sm:$0xf] }
 0x2b0   : > { %v2537_v26 = vadd.f32 %v2536_v40, %v11591_v47  ;;  %v2585_v15 = vpop.f32.mrf.mxu3  ;;  %v2441_v48 = vpop.f32.mrf.mxu0 }
 0x2b1   : > { %14602 = vst [vmem:[#allocation43_spill] sm:$0xff] %v11814_v63  ;;  %v2442_v13 = vadd.f32 %v2441_v48, %v11576_v18  ;;  %v2490_v35 = vpop.f32.mrf.mxu1  ;;  %v8235_v18 = vld [vmem:[%s14520_s2 + $0x5d8] sm:$0xf0] }
 0x2b2   : > { %v11818_v19 = vadd.f32 %v2585_v15, %v2537_v26  ;;  %v8238_v1 = vor.u32 %v9405_v62, %v8235_v18  ;;  %v8107_v62 = vld [vmem:[%s14520_s2 + $0x4d8] sm:$0xf0] }
 0x2b3   : > { %v2491_v60 = vadd.f32 %v2490_v35, %v2442_v13  ;;  %2636 = vmatmul.bf16.gmra.mxu0 %v14603_v10  ;;  %v9373_v35 = vld [vmem:[%s14520_s2 + $0x4cc] sm:$0xf] }
 0x2b4   : > { %2685 = vmatmul.bf16.gmra.mxu1 %v14604_v61  ;;  %2734 = vmatmul.bf16.gmra.mxu2 %v14605_v12  ;;  %v8110_v54 = vor.u32 %v9373_v35, %v8107_v62 }
 0x2b5   : > { %2783 = vmatmul.bf16.gmra.mxu3 %v14592_v25  ;;  %3084 = vmatpush.bf16.msra.mxu2 %v8238_v1  ;;  %v3238_v4 = vmax.f32 %v2491_v60, 0.0  ;;  %v14606_v60 = vld [vmem:[#allocation8_spill] sm:$0xff] }
 0x2b6   : > { %3035 = vmatpush.bf16.msra.mxu1 %v8110_v54 }
 0x2b7   : > { %v2539_v6 = vpop.f32.mrf.mxu2 }
 0x2b8   : > { %v2540_v34 = vadd.f32 %v2539_v6, %v11591_v47  ;;  %v2588_v40 = vpop.f32.mrf.mxu3  ;;  %v2443_v26 = vpop.f32.mrf.mxu0 }
 0x2b9   : > { %v2444_v15 = vadd.f32 %v2443_v26, %v11585_v38  ;;  %v2492_v48 = vpop.f32.mrf.mxu1 }
 0x2ba   : > { %v11838_v13 = vadd.f32 %v2588_v40, %v2540_v34 }
 0x2bb   : > { %v2493_v18 = vadd.f32 %v2492_v48, %v2444_v15  ;;  %v9337_v15 = vld [vmem:[%s14520_s2 + $0x3ac] sm:$0xf] }
 0x2bd   : > { %v3242_v6 = vmax.f32 %v2493_v18, 0.0 }
 0x2bf   : > { %v2541_v1 = vpop.f32.mrf.mxu2  ;;  %v11846_v63 = vpack.c.bf16 %v3242_v6, %v3238_v4 }
 0x2c0   : > { %v2542_v38 = vadd.f32 %v2541_v1, %v11591_v47  ;;  %v2590_v39 = vpop.f32.mrf.mxu3  ;;  %v2602_v34 = vpop.f32.mrf.mxu0  ;;  %v9401_v47 = vld [vmem:[%s14520_s2 + $0x5ac] sm:$0xf] }
 0x2c1   : > { %v2603_v40 = vadd.f32 %v2602_v34, %v11608_v29  ;;  %v2651_v26 = vpop.f32.mrf.mxu1  ;;  %v8219_v29 = vld [vmem:[%s14520_s2 + $0x5b8] sm:$0xf0] }
 0x2c2   : > { %v11850_v25 = vadd.f32 %v2590_v39, %v2542_v38  ;;  %v8222_v48 = vor.u32 %v9401_v47, %v8219_v29  ;;  %v9369_v38 = vld [vmem:[%s14520_s2 + $0x4ac] sm:$0xf]  ;;  %v8091_v39 = vld [vmem:[%s14520_s2 + $0x4b8] sm:$0xf0] }
 0x2c3   : > { %v2652_v12 = vadd.f32 %v2651_v26, %v2603_v40  ;;  %8287 = vmatmul.msk.bf16.vlgmr.msrb.gmra.mxu0 %vm1784_vm0, %v14571_v14  ;;  %v8094_v40 = vor.u32 %v9369_v38, %v8091_v39 }
 0x2c4   : > { %2846 = vmatmul.bf16.vlgmr.msrb.gmra.mxu1 %v14572_v24  ;;  %2895 = vmatmul.bf16.vlgmr.msrb.gmra.mxu2 %v14606_v60  ;;  %v7963_v24 = vld [vmem:[%s14520_s2 + $0x3b8] sm:$0xf0] }
 0x2c5   : > { %2944 = vmatmul.bf16.vlgmr.msrb.gmra.mxu3 %v10340_v51  ;;  %v7966_v62 = vor.u32 %v9337_v15, %v7963_v24  ;;  %3085 = vmatpush.bf16.msra.mxu2 %v8222_v48  ;;  %v14607_v24 = vld [vmem:[#allocation29_spill] sm:$0xff] }
 0x2c6   : > { %3036 = vmatpush.bf16.msra.mxu1 %v8094_v40 }
 0x2c7   : > { %v2700_v35 = vpop.f32.mrf.mxu2  ;;  %2987 = vmatpush.bf16.msra.mxu0 %v7966_v62  ;;  %v14609_v62 = vld [vmem:[#allocation10_spill] sm:$0xff] }
 0x2c8   : > { %v2701_v51 = vadd.f32 %v2700_v35, %v2652_v12  ;;  %v2749_v18 = vpop.f32.mrf.mxu3  ;;  %v2604_v54 = vpop.f32.mrf.mxu0  ;;  %v14608_v35 = vld [vmem:[#allocation9_spill] sm:$0xff] }
 0x2c9   : > { %v2605_v4 = vadd.f32 %v2604_v54, %v11620_v36  ;;  %v2653_v6 = vpop.f32.mrf.mxu1 }
 0x2ca   : > { %v11870_v1 = vadd.f32 %v2749_v18, %v2701_v51  ;;  %v9397_v51 = vld [vmem:[%s14520_s2 + $0x58c] sm:$0xf] }
 0x2cb   : > { %v2654_v34 = vadd.f32 %v2653_v6, %v2605_v4  ;;  %v9333_v18 = vld [vmem:[%s14520_s2 + $0x38c] sm:$0xf]  ;;  %v7947_v4 = vld [vmem:[%s14520_s2 + $0x398] sm:$0xf0] }
 0x2cc   : > { %v7950_v38 = vor.u32 %v9333_v18, %v7947_v4  ;;  %v14610_v4 = vld [vmem:[#allocation31_spill] sm:$0xff] }
 0x2ce   : > { %2988 = vmatpush.bf16.msra.mxu0 %v7950_v38  ;;  %v14612_v38 = vld [vmem:[#allocation12_spill] sm:$0xff] }
 0x2cf   : > { %v2702_v12 = vpop.f32.mrf.mxu2 }
 0x2d0   : > { %v2703_v26 = vadd.f32 %v2702_v12, %v2654_v34  ;;  %v2751_v60 = vpop.f32.mrf.mxu3  ;;  %v2607_v47 = vpop.f32.mrf.mxu0 }
 0x2d1   : > { %v2608_v36 = vadd.f32 %v2607_v47, %v11640_v33  ;;  %v2656_v29 = vpop.f32.mrf.mxu1  ;;  %v8203_v33 = vld [vmem:[%s14520_s2 + $0x598] sm:$0xf0] }
 0x2d2   : > { %v11879_v15 = vadd.f32 %v2751_v60, %v2703_v26  ;;  %v8206_v54 = vor.u32 %v9397_v51, %v8203_v33  ;;  %v9365_v60 = vld [vmem:[%s14520_s2 + $0x48c] sm:$0xf]  ;;  %v8075_v47 = vld [vmem:[%s14520_s2 + $0x498] sm:$0xf0] }
 0x2d3   : > { %v2657_v48 = vadd.f32 %v2656_v29, %v2608_v36  ;;  %8288 = vmatmul.msk.bf16.gmra.mxu0 %vm1784_vm0, %v14607_v24  ;;  %v8078_v29 = vor.u32 %v9365_v60, %v8075_v47 }
 0x2d4   : > { %2851 = vmatmul.bf16.gmra.mxu1 %v14608_v35  ;;  %2900 = vmatmul.bf16.gmra.mxu2 %v14609_v62 }
 0x2d5   : > { %2949 = vmatmul.bf16.gmra.mxu3 %v10395_v20  ;;  %3086 = vmatpush.bf16.msra.mxu2 %v8206_v54 }
 0x2d6   : > { %3037 = vmatpush.bf16.msra.mxu1 %v8078_v29 }
 0x2d7   : > { %v2705_v6 = vpop.f32.mrf.mxu2 }
 0x2d8   : > { %v2706_v20 = vadd.f32 %v2705_v6, %v2657_v48  ;;  %v2754_v39 = vpop.f32.mrf.mxu3  ;;  %v2609_v34 = vpop.f32.mrf.mxu0  ;;  %v14611_v6 = vld [vmem:[#allocation11_spill] sm:$0xff] }
 0x2d9   : > { %v2610_v40 = vadd.f32 %v2609_v34, %v11652_v44  ;;  %v2658_v12 = vpop.f32.mrf.mxu1 }
 0x2da   : > { %v11899_v26 = vadd.f32 %v2754_v39, %v2706_v20  ;;  %v9393_v20 = vld [vmem:[%s14520_s2 + $0x56c] sm:$0xf] }
 0x2db   : > { %v2659_v36 = vadd.f32 %v2658_v12, %v2610_v40  ;;  %v9329_v39 = vld [vmem:[%s14520_s2 + $0x36c] sm:$0xf]  ;;  %v7931_v40 = vld [vmem:[%s14520_s2 + $0x378] sm:$0xf0] }
 0x2dc   : > { %v7934_v60 = vor.u32 %v9329_v39, %v7931_v40  ;;  %v14613_v40 = vld [vmem:[#allocation33_spill] sm:$0xff] }
 0x2de   : > { %2989 = vmatpush.bf16.msra.mxu0 %v7934_v60  ;;  %v14615_v60 = vld [vmem:[#allocation14_spill] sm:$0xff] }
 0x2df   : > { %v2707_v48 = vpop.f32.mrf.mxu2 }
 0x2e0   : > { %v2708_v35 = vadd.f32 %v2707_v48, %v2659_v36  ;;  %v2756_v62 = vpop.f32.mrf.mxu3  ;;  %v2612_v51 = vpop.f32.mrf.mxu0 }
 0x2e1   : > { %v2613_v44 = vadd.f32 %v2612_v51, %v11672_v30  ;;  %v2661_v33 = vpop.f32.mrf.mxu1  ;;  %v8187_v30 = vld [vmem:[%s14520_s2 + $0x578] sm:$0xf0] }
 0x2e2   : > { %v11908_v18 = vadd.f32 %v2756_v62, %v2708_v35  ;;  %v8190_v34 = vor.u32 %v9393_v20, %v8187_v30  ;;  %v9361_v62 = vld [vmem:[%s14520_s2 + $0x46c] sm:$0xf]  ;;  %v8059_v51 = vld [vmem:[%s14520_s2 + $0x478] sm:$0xf0] }
 0x2e3   : > { %v2662_v54 = vadd.f32 %v2661_v33, %v2613_v44  ;;  %8289 = vmatmul.msk.bf16.gmra.mxu0 %vm1784_vm0, %v14610_v4  ;;  %v8062_v33 = vor.u32 %v9361_v62, %v8059_v51 }
 0x2e4   : > { %2856 = vmatmul.bf16.gmra.mxu1 %v14611_v6  ;;  %2905 = vmatmul.bf16.gmra.mxu2 %v14612_v38 }
 0x2e5   : > { %2954 = vmatmul.bf16.gmra.mxu3 %v10433_v41  ;;  %3087 = vmatpush.bf16.msra.mxu2 %v8190_v34 }
 0x2e6   : > { %3038 = vmatpush.bf16.msra.mxu1 %v8062_v33 }
 0x2e7   : > { %v2710_v12 = vpop.f32.mrf.mxu2 }
 0x2e8   : > { %v2711_v41 = vadd.f32 %v2710_v12, %v2662_v54  ;;  %v2759_v47 = vpop.f32.mrf.mxu3  ;;  %v2614_v36 = vpop.f32.mrf.mxu0  ;;  %v14614_v12 = vld [vmem:[#allocation13_spill] sm:$0xff] }
 0x2e9   : > { %v2615_v29 = vadd.f32 %v2614_v36, %v11684_v37  ;;  %v2663_v48 = vpop.f32.mrf.mxu1 }
 0x2ea   : > { %v11928_v35 = vadd.f32 %v2759_v47, %v2711_v41  ;;  %v9389_v41 = vld [vmem:[%s14520_s2 + $0x54c] sm:$0xf] }
 0x2eb   : > { %v2664_v44 = vadd.f32 %v2663_v48, %v2615_v29  ;;  %v9325_v47 = vld [vmem:[%s14520_s2 + $0x34c] sm:$0xf]  ;;  %v7915_v29 = vld [vmem:[%s14520_s2 + $0x358] sm:$0xf0] }
 0x2ec   : > { %v7918_v62 = vor.u32 %v9325_v47, %v7915_v29  ;;  %v14616_v29 = vld [vmem:[#allocation35_spill] sm:$0xff] }
 0x2ee   : > { %2990 = vmatpush.bf16.msra.mxu0 %v7918_v62  ;;  %v14618_v62 = vld [vmem:[#allocation16_spill] sm:$0xff] }
 0x2ef   : > { %v2712_v54 = vpop.f32.mrf.mxu2 }
 0x2f0   : > { %v2713_v6 = vadd.f32 %v2712_v54, %v2664_v44  ;;  %v2761_v38 = vpop.f32.mrf.mxu3  ;;  %v2617_v20 = vpop.f32.mrf.mxu0 }
 0x2f1   : > { %v2618_v37 = vadd.f32 %v2617_v20, %v11704_v52  ;;  %v2666_v30 = vpop.f32.mrf.mxu1  ;;  %v8171_v52 = vld [vmem:[%s14520_s2 + $0x558] sm:$0xf0] }
 0x2f2   : > { %v11937_v39 = vadd.f32 %v2761_v38, %v2713_v6  ;;  %v8174_v36 = vor.u32 %v9389_v41, %v8171_v52  ;;  %v9357_v38 = vld [vmem:[%s14520_s2 + $0x44c] sm:$0xf]  ;;  %v8043_v20 = vld [vmem:[%s14520_s2 + $0x458] sm:$0xf0] }
 0x2f3   : > { %v2667_v34 = vadd.f32 %v2666_v30, %v2618_v37  ;;  %8290 = vmatmul.msk.bf16.gmra.mxu0 %vm1784_vm0, %v14613_v40  ;;  %v8046_v30 = vor.u32 %v9357_v38, %v8043_v20 }
 0x2f4   : > { %2861 = vmatmul.bf16.gmra.mxu1 %v14614_v12  ;;  %2910 = vmatmul.bf16.gmra.mxu2 %v14615_v60 }
 0x2f5   : > { %2959 = vmatmul.bf16.gmra.mxu3 %v10471_v2  ;;  %3088 = vmatpush.bf16.msra.mxu2 %v8174_v36 }
 0x2f6   : > { %3039 = vmatpush.bf16.msra.mxu1 %v8046_v30 }
 0x2f7   : > { %v2715_v48 = vpop.f32.mrf.mxu2 }
 0x2f8   : > { %v2716_v2 = vadd.f32 %v2715_v48, %v2667_v34  ;;  %v2764_v51 = vpop.f32.mrf.mxu3  ;;  %v2619_v44 = vpop.f32.mrf.mxu0  ;;  %v14617_v48 = vld [vmem:[#allocation15_spill] sm:$0xff] }
 0x2f9   : > { %v2620_v33 = vadd.f32 %v2619_v44, %v11716_v0  ;;  %v2668_v54 = vpop.f32.mrf.mxu1 }
 0x2fa   : > { %v11957_v6 = vadd.f32 %v2764_v51, %v2716_v2  ;;  %v9385_v2 = vld [vmem:[%s14520_s2 + $0x52c] sm:$0xf] }
 0x2fb   : > { %v2669_v37 = vadd.f32 %v2668_v54, %v2620_v33  ;;  %v9321_v51 = vld [vmem:[%s14520_s2 + $0x32c] sm:$0xf]  ;;  %v7899_v33 = vld [vmem:[%s14520_s2 + $0x338] sm:$0xf0] }
 0x2fc   : > { %v7902_v38 = vor.u32 %v9321_v51, %v7899_v33  ;;  %v14619_v33 = vld [vmem:[#allocation37_spill] sm:$0xff] }
 0x2fe   : > { %2991 = vmatpush.bf16.msra.mxu0 %v7902_v38  ;;  %v14621_v38 = vld [vmem:[#allocation18_spill] sm:$0xff] }
 0x2ff   : > { %v2717_v34 = vpop.f32.mrf.mxu2 }
 0x300   : > { %v2718_v12 = vadd.f32 %v2717_v34, %v2669_v37  ;;  %v2766_v60 = vpop.f32.mrf.mxu3  ;;  %v2622_v41 = vpop.f32.mrf.mxu0 }
 0x301   : > { %v2623_v0 = vadd.f32 %v2622_v41, %v11736_v53  ;;  %v2671_v52 = vpop.f32.mrf.mxu1  ;;  %v8155_v53 = vld [vmem:[%s14520_s2 + $0x538] sm:$0xf0] }
 0x302   : > { %v11966_v47 = vadd.f32 %v2766_v60, %v2718_v12  ;;  %v8158_v44 = vor.u32 %v9385_v2, %v8155_v53  ;;  %v9353_v60 = vld [vmem:[%s14520_s2 + $0x42c] sm:$0xf]  ;;  %v8027_v41 = vld [vmem:[%s14520_s2 + $0x438] sm:$0xf0] }
 0x303   : > { %v2672_v36 = vadd.f32 %v2671_v52, %v2623_v0  ;;  %8291 = vmatmul.msk.bf16.gmra.mxu0 %vm1784_vm0, %v14616_v29  ;;  %v8030_v52 = vor.u32 %v9353_v60, %v8027_v41 }
 0x304   : > { %2866 = vmatmul.bf16.gmra.mxu1 %v14617_v48  ;;  %2915 = vmatmul.bf16.gmra.mxu2 %v14618_v62 }
 0x305   : > { %2964 = vmatmul.bf16.gmra.mxu3 %v10509_v27  ;;  %3089 = vmatpush.bf16.msra.mxu2 %v8158_v44 }
 0x306   : > { %3040 = vmatpush.bf16.msra.mxu1 %v8030_v52 }
 0x307   : > { %v2720_v54 = vpop.f32.mrf.mxu2 }
 0x308   : > { %v2721_v27 = vadd.f32 %v2720_v54, %v2672_v36  ;;  %v2769_v20 = vpop.f32.mrf.mxu3  ;;  %v2624_v37 = vpop.f32.mrf.mxu0  ;;  %v14620_v54 = vld [vmem:[#allocation17_spill] sm:$0xff] }
 0x309   : > { %v2625_v30 = vadd.f32 %v2624_v37, %v11748_v43  ;;  %v2673_v34 = vpop.f32.mrf.mxu1 }
 0x30a   : > { %v11986_v12 = vadd.f32 %v2769_v20, %v2721_v27  ;;  %v9381_v27 = vld [vmem:[%s14520_s2 + $0x50c] sm:$0xf] }
 0x30b   : > { %v2674_v0 = vadd.f32 %v2673_v34, %v2625_v30  ;;  %v9317_v20 = vld [vmem:[%s14520_s2 + $0x30c] sm:$0xf]  ;;  %v7883_v30 = vld [vmem:[%s14520_s2 + $0x318] sm:$0xf0] }
 0x30c   : > { %v7886_v60 = vor.u32 %v9317_v20, %v7883_v30  ;;  %v14622_v30 = vld [vmem:[#allocation40_spill] sm:$0xff] }
 0x30e   : > { %2992 = vmatpush.bf16.msra.mxu0 %v7886_v60  ;;  %v14624_v60 = vld [vmem:[#allocation20_spill] sm:$0xff] }
 0x30f   : > { %v2722_v36 = vpop.f32.mrf.mxu2 }
 0x310   : > { %v2723_v48 = vadd.f32 %v2722_v36, %v2674_v0  ;;  %v2771_v62 = vpop.f32.mrf.mxu3  ;;  %v2627_v2 = vpop.f32.mrf.mxu0 }
 0x311   : > { %v2628_v43 = vadd.f32 %v2627_v2, %v11768_v50  ;;  %v2676_v53 = vpop.f32.mrf.mxu1  ;;  %v8139_v50 = vld [vmem:[%s14520_s2 + $0x518] sm:$0xf0] }
 0x312   : > { %v11995_v51 = vadd.f32 %v2771_v62, %v2723_v48  ;;  %v8142_v37 = vor.u32 %v9381_v27, %v8139_v50  ;;  %v9349_v62 = vld [vmem:[%s14520_s2 + $0x40c] sm:$0xf]  ;;  %v8011_v2 = vld [vmem:[%s14520_s2 + $0x418] sm:$0xf0]  ;;  %s14647_s2 = smov 108  }
 0x313   : > { %v2677_v44 = vadd.f32 %v2676_v53, %v2628_v43  ;;  %8292 = vmatmul.msk.bf16.gmra.mxu0 %vm1784_vm0, %v14619_v33  ;;  %v8014_v53 = vor.u32 %v9349_v62, %v8011_v2 }
 0x314   : > { %2871 = vmatmul.bf16.gmra.mxu1 %v14620_v54  ;;  %2920 = vmatmul.bf16.gmra.mxu2 %v14621_v38 }
 0x315   : > { %2969 = vmatmul.bf16.gmra.mxu3 %v10547_v56  ;;  %3090 = vmatpush.bf16.msra.mxu2 %v8142_v37 }
 0x316   : > { %3041 = vmatpush.bf16.msra.mxu1 %v8014_v53 }
 0x317   : > { %v2725_v34 = vpop.f32.mrf.mxu2 }
 0x318   : > { %v2726_v56 = vadd.f32 %v2725_v34, %v2677_v44  ;;  %v2774_v41 = vpop.f32.mrf.mxu3  ;;  %v2629_v0 = vpop.f32.mrf.mxu0  ;;  %v14623_v34 = vld [vmem:[#allocation19_spill] sm:$0xff] }
 0x319   : > { %v2630_v52 = vadd.f32 %v2629_v0, %v11780_v45  ;;  %v2678_v36 = vpop.f32.mrf.mxu1 }
 0x31a   : > { %v12015_v48 = vadd.f32 %v2774_v41, %v2726_v56 }
 0x31b   : > { %v2679_v43 = vadd.f32 %v2678_v36, %v2630_v52 }
 0x31f   : > { %v2727_v44 = vpop.f32.mrf.mxu2 }
 0x320   : > { %v2728_v54 = vadd.f32 %v2727_v44, %v2679_v43  ;;  %v2776_v38 = vpop.f32.mrf.mxu3  ;;  %v2632_v27 = vpop.f32.mrf.mxu0 }
 0x321   : > { %v2633_v45 = vadd.f32 %v2632_v27, %v11806_v23  ;;  %v2681_v50 = vpop.f32.mrf.mxu1 }
 0x322   : > { %v12024_v20 = vadd.f32 %v2776_v38, %v2728_v54 }
 0x323   : > { %v2682_v37 = vadd.f32 %v2681_v50, %v2633_v45  ;;  %8293 = vmatmul.msk.bf16.gmra.mxu0 %vm1784_vm0, %v14622_v30  ;;  %v9439_v50 = vld [vmem:[%s14420_s4 + $0xb8] sm:$0xff] }
 0x324   : > { %2876 = vmatmul.bf16.gmra.mxu1 %v14623_v34  ;;  %2925 = vmatmul.bf16.gmra.mxu2 %v14624_v60 }
 0x325   : > { %2974 = vmatmul.bf16.gmra.mxu3 %v10585_v17  ;;  %3603 = vmatpush.bf16.msrb.mxu2 %v9439_v50  ;;  %v14627_v50 = vld [vmem:[#allocation26_spill] sm:$0xff] }
 0x327   : > { %v2730_v56 = vpop.f32.mrf.mxu2 }
 0x328   : > { %v2731_v41 = vadd.f32 %v2730_v56, %v2682_v37  ;;  %v2779_v0 = vpop.f32.mrf.mxu3  ;;  %v2634_v52 = vpop.f32.mrf.mxu0 }
 0x329   : > { %v2635_v36 = vadd.f32 %v2634_v52, %v11818_v19  ;;  %v2683_v23 = vpop.f32.mrf.mxu1  ;;  %v14625_v19 = vld [vmem:[#allocation22_spill] sm:$0xff] }
 0x32a   : > { %v12032_v62 = vadd.f32 %v2779_v0, %v2731_v41 }
 0x32b   : > { %v2684_v2 = vadd.f32 %v2683_v23, %v2635_v36  ;;  %v9431_v36 = vld [vmem:[%s14420_s4 + $0x78] sm:$0xff] }
 0x32c   : > { %3554 = vmatpush.bf16.msrb.mxu1 %v9431_v36 }
 0x32f   : > { %v2732_v43 = vpop.f32.mrf.mxu2 }
 0x330   : > { %v2733_v53 = vadd.f32 %v2732_v43, %v2684_v2  ;;  %v2781_v44 = vpop.f32.mrf.mxu3  ;;  %v2637_v54 = vpop.f32.mrf.mxu0 }
 0x331   : > { %v2638_v38 = vadd.f32 %v2637_v54, %v11838_v13  ;;  %v2686_v27 = vpop.f32.mrf.mxu1 }
 0x332   : > { %v12035_v45 = vadd.f32 %v2781_v44, %v2733_v53  ;;  %v9923_v53 = vld [vmem:[%s14419_s3] sm:$0xf] }
 0x333   : > { %v2687_v17 = vadd.f32 %v2686_v27, %v2638_v38  ;;  %8294 = vmatmul.msk.bf16.gmra.mxu0 %vm1784_vm0, %v14593_v32  ;;  %v12060_v44 = vperm.slane %v9923_v53, 3 }
 0x334   : > { %2881 = vmatmul.bf16.gmra.mxu1 %v14594_v16  ;;  %2930 = vmatmul.bf16.gmra.mxu2 %v14625_v19  ;;  %v9423_v16 = vld [vmem:[%s14420_s4 + $0x38] sm:$0xff]  ;;  %v14626_v19 = vld [vmem:[#allocation25_spill] sm:$0xff] }
 0x335   : > { %2979 = vmatmul.bf16.gmra.mxu3 %v14603_v10  ;;  %v9440_v10 = vld [vmem:[%s14420_s4 + $0xc0] sm:$0xff]  ;;  %3505 = vmatpush.bf16.msrb.mxu0 %v9423_v16  ;;  %v9422_v16 = vld [vmem:[%s14420_s4 + $0x30] sm:$0xff] }
 0x336   : > { %3659 = vmatpush.bf16.msrb.mxu3 %v9440_v10 }
 0x337   : > { %v2735_v37 = vpop.f32.mrf.mxu2 }
 0x338   : > { %v2736_v13 = vadd.f32 %v2735_v37, %v2687_v17  ;;  %v2784_v34 = vpop.f32.mrf.mxu3  ;;  %v2639_v60 = vpop.f32.mrf.mxu0  ;;  %v9438_v37 = vld [vmem:[%s14420_s4 + $0xb0] sm:$0xff] }
 0x339   : > { %v2640_v56 = vadd.f32 %v2639_v60, %v11850_v25  ;;  %v2688_v41 = vpop.f32.mrf.mxu1  ;;  %3604 = vmatpush.bf16.msrb.mxu2 %v9438_v37  ;;  %3506 = vmatpush.bf16.msrb.mxu0 %v9422_v16 }
 0x33a   : > { %v12046_v0 = vadd.f32 %v2784_v34, %v2736_v13 }
 0x33b   : > { %v2689_v52 = vadd.f32 %v2688_v41, %v2640_v56 }
 0x33f   : > { %v2737_v25 = vpop.f32.mrf.mxu2 }
 0x340   : > { %v2738_v23 = vadd.f32 %v2737_v25, %v2689_v52  ;;  %v2786_v2 = vpop.f32.mrf.mxu3  ;;  %v2798_v43 = vpop.f32.mrf.mxu0  ;;  %v9430_v52 = vld [vmem:[%s14420_s4 + $0x70] sm:$0xff] }
 0x341   : > { %v2799_v54 = vadd.f32 %v2798_v43, %v11870_v1  ;;  %v2847_v38 = vpop.f32.mrf.mxu1  ;;  %3555 = vmatpush.bf16.msrb.mxu1 %v9430_v52 }
 0x342   : > { %v12063_v27 = vadd.f32 %v2786_v2, %v2738_v23  ;;  %v2848_v17 = vadd.f32 %v2847_v38, %v12060_v44 }
 0x343   : > { %2993 = vmatmul.bf16.vlgmr.msra.gmra.mxu0 %v10347_v55  ;;  %v3183_v10 = vmax.f32 %v2799_v54, 0.0 }
 0x344   : > { %3042 = vmatmul.bf16.vlgmr.msra.gmra.mxu1 %v14626_v19  ;;  %3091 = vmatmul.bf16.vlgmr.msra.gmra.mxu2 %v14627_v50  ;;  %v9437_v19 = vld [vmem:[%s14420_s4 + $0xa8] sm:$0xff] }
 0x345   : > { %8295 = vmatmul.msk.bf16.vlgmr.msra.gmra.mxu3 %vm1784_vm0, %v14571_v14  ;;  %3605 = vmatpush.bf16.msrb.mxu2 %v9437_v19 }
 0x347   : > { %v2896_v13 = vpop.f32.mrf.mxu2 }
 0x348   : > { %v2897_v1 = vadd.f32 %v2896_v13, %v2848_v17  ;;  %v2945_v34 = vpop.f32.mrf.mxu3  ;;  %v2800_v60 = vpop.f32.mrf.mxu0 }
 0x349   : > { %v2801_v55 = vadd.f32 %v2800_v60, %v11879_v15  ;;  %v2849_v56 = vpop.f32.mrf.mxu1  ;;  %v9429_v60 = vld [vmem:[%s14420_s4 + $0x68] sm:$0xff] }
 0x34a   : > { %v12075_v41 = vadd.f32 %v2945_v34, %v2897_v1  ;;  %v2850_v25 = vadd.f32 %v2849_v56, %v12060_v44  ;;  %3556 = vmatpush.bf16.msrb.mxu1 %v9429_v60 }
 0x34b   : > { %v3187_v14 = vmax.f32 %v2801_v55, 0.0 }
 0x34d   : > { %v12083_v36 = vpack.c.bf16 %v3187_v14, %v3183_v10 }
 0x34f   : > { %v2898_v15 = vpop.f32.mrf.mxu2 }
 0x350   : > { %v2899_v23 = vadd.f32 %v2898_v15, %v2850_v25  ;;  %v2947_v2 = vpop.f32.mrf.mxu3  ;;  %v2803_v43 = vpop.f32.mrf.mxu0 }
 0x351   : > { %v2804_v53 = vadd.f32 %v2803_v43, %v11899_v26  ;;  %v2852_v38 = vpop.f32.mrf.mxu1 }
 0x352   : > { %v12087_v17 = vadd.f32 %v2947_v2, %v2899_v23  ;;  %v2853_v54 = vadd.f32 %v2852_v38, %v12060_v44  ;;  %v9436_v2 = vld [vmem:[%s14420_s4 + $0xa0] sm:$0xff] }
 0x353   : > { %2998 = vmatmul.bf16.gmra.mxu0 %v10397_v21  ;;  %3606 = vmatpush.bf16.msrb.mxu2 %v9436_v2 }
 0x354   : > { %3047 = vmatmul.bf16.gmra.mxu1 %v10717_v46  ;;  %3096 = vmatmul.bf16.gmra.mxu2 %v14574_v58  ;;  %v9421_v46 = vld [vmem:[%s14420_s4 + $0x28] sm:$0xff]  ;;  %v3191_v58 = vmax.f32 %v2804_v53, 0.0 }
 0x355   : > { %8296 = vmatmul.msk.bf16.gmra.mxu3 %vm1784_vm0, %v14607_v24  ;;  %3507 = vmatpush.bf16.msrb.mxu0 %v9421_v46 }
 0x357   : > { %v2901_v50 = vpop.f32.mrf.mxu2 }
 0x358   : > { %v2902_v26 = vadd.f32 %v2901_v50, %v2853_v54  ;;  %v2950_v37 = vpop.f32.mrf.mxu3  ;;  %v2805_v13 = vpop.f32.mrf.mxu0  ;;  %v9428_v50 = vld [vmem:[%s14420_s4 + $0x60] sm:$0xff] }
 0x359   : > { %v2806_v21 = vadd.f32 %v2805_v13, %v11908_v18  ;;  %v2854_v1 = vpop.f32.mrf.mxu1  ;;  %3557 = vmatpush.bf16.msrb.mxu1 %v9428_v50 }
 0x35a   : > { %v12099_v34 = vadd.f32 %v2950_v37, %v2902_v26  ;;  %v2855_v56 = vadd.f32 %v2854_v1, %v12060_v44 }
 0x35b   : > { %v3195_v24 = vmax.f32 %v2806_v21, 0.0 }
 0x35d   : > { %v12107_v55 = vpack.c.bf16 %v3195_v24, %v3191_v58 }
 0x35f   : > { %v2903_v18 = vpop.f32.mrf.mxu2 }
 0x360   : > { %v2904_v16 = vadd.f32 %v2903_v18, %v2855_v56  ;;  %v2952_v10 = vpop.f32.mrf.mxu3  ;;  %v2808_v14 = vpop.f32.mrf.mxu0  ;;  %v9435_v56 = vld [vmem:[%s14420_s4 + $0x98] sm:$0xff] }
 0x361   : > { %v2809_v52 = vadd.f32 %v2808_v14, %v11928_v35  ;;  %v2857_v25 = vpop.f32.mrf.mxu1  ;;  %3607 = vmatpush.bf16.msrb.mxu2 %v9435_v56 }
 0x362   : > { %v12111_v15 = vadd.f32 %v2952_v10, %v2904_v16  ;;  %v2858_v23 = vadd.f32 %v2857_v25, %v12060_v44  ;;  %v9427_v25 = vld [vmem:[%s14420_s4 + $0x58] sm:$0xff] }
 0x363   : > { %3003 = vmatmul.bf16.gmra.mxu0 %v10435_v42  ;;  %3558 = vmatpush.bf16.msrb.mxu1 %v9427_v25  ;;  %v9425_v25 = vld [vmem:[%s14420_s4 + $0x48] sm:$0xff] }
 0x364   : > { %3052 = vmatmul.bf16.gmra.mxu1 %v10764_v11  ;;  %3101 = vmatmul.bf16.gmra.mxu2 %v14577_v5  ;;  %v9420_v11 = vld [vmem:[%s14420_s4 + $0x20] sm:$0xff]  ;;  %v3199_v5 = vmax.f32 %v2809_v52, 0.0 }
 0x365   : > { %8297 = vmatmul.msk.bf16.gmra.mxu3 %vm1784_vm0, %v14610_v4  ;;  %3508 = vmatpush.bf16.msrb.mxu0 %v9420_v11 }
 0x367   : > { %v2906_v43 = vpop.f32.mrf.mxu2 }
 0x368   : > { %v2907_v35 = vadd.f32 %v2906_v43, %v2858_v23  ;;  %v2955_v53 = vpop.f32.mrf.mxu3  ;;  %v2810_v38 = vpop.f32.mrf.mxu0 }
 0x369   : > { %v2811_v42 = vadd.f32 %v2810_v38, %v11937_v39  ;;  %v2859_v54 = vpop.f32.mrf.mxu1 }
 0x36a   : > { %v12123_v19 = vadd.f32 %v2955_v53, %v2907_v35  ;;  %v2860_v37 = vadd.f32 %v2859_v54, %v12060_v44 }
 0x36b   : > { %v3203_v4 = vmax.f32 %v2811_v42, 0.0 }
 0x36d   : > { %v12131_v26 = vpack.c.bf16 %v3203_v4, %v3199_v5  ;;  %v9434_v5 = vld [vmem:[%s14420_s4 + $0x90] sm:$0xff] }
 0x36e   : > { %3608 = vmatpush.bf16.msrb.mxu2 %v9434_v5 }
 0x36f   : > { %v2908_v39 = vpop.f32.mrf.mxu2 }
 0x370   : > { %v2909_v13 = vadd.f32 %v2908_v39, %v2860_v37  ;;  %v2957_v21 = vpop.f32.mrf.mxu3  ;;  %v2813_v1 = vpop.f32.mrf.mxu0 }
 0x371   : > { %v2814_v46 = vadd.f32 %v2813_v1, %v11957_v6  ;;  %v2862_v58 = vpop.f32.mrf.mxu1 }
 0x372   : > { %v12135_v24 = vadd.f32 %v2957_v21, %v2909_v13  ;;  %v2863_v60 = vadd.f32 %v2862_v58, %v12060_v44  ;;  %v9426_v21 = vld [vmem:[%s14420_s4 + $0x50] sm:$0xff] }
 0x373   : > { %3008 = vmatmul.bf16.gmra.mxu0 %v10473_v3  ;;  %3559 = vmatpush.bf16.msrb.mxu1 %v9426_v21 }
 0x374   : > { %3057 = vmatmul.bf16.gmra.mxu1 %v10811_v8  ;;  %3106 = vmatmul.bf16.gmra.mxu2 %v14580_v49  ;;  %v9419_v8 = vld [vmem:[%s14420_s4 + $0x18] sm:$0xff]  ;;  %v3207_v49 = vmax.f32 %v2814_v46, 0.0 }
 0x375   : > { %8298 = vmatmul.msk.bf16.gmra.mxu3 %vm1784_vm0, %v14613_v40  ;;  %3509 = vmatpush.bf16.msrb.mxu0 %v9419_v8 }
 0x377   : > { %v2911_v18 = vpop.f32.mrf.mxu2  ;;  %3560 = vmatpush.bf16.msrb.mxu1 %v9425_v25 }
 0x378   : > { %v2912_v6 = vadd.f32 %v2911_v18, %v2863_v60  ;;  %v2960_v16 = vpop.f32.mrf.mxu3  ;;  %v2815_v10 = vpop.f32.mrf.mxu0 }
 0x379   : > { %v2816_v3 = vadd.f32 %v2815_v10, %v11966_v47  ;;  %v2864_v14 = vpop.f32.mrf.mxu1  ;;  %v9433_v10 = vld [vmem:[%s14420_s4 + $0x88] sm:$0xff] }
 0x37a   : > { %v12147_v52 = vadd.f32 %v2960_v16, %v2912_v6  ;;  %v2865_v2 = vadd.f32 %v2864_v14, %v12060_v44  ;;  %3609 = vmatpush.bf16.msrb.mxu2 %v9433_v10 }
 0x37b   : > { %v3211_v40 = vmax.f32 %v2816_v3, 0.0 }
 0x37d   : > { %v12155_v23 = vpack.c.bf16 %v3211_v40, %v3207_v49 }
 0x37f   : > { %v2913_v47 = vpop.f32.mrf.mxu2 }
 0x380   : > { %v2914_v43 = vadd.f32 %v2913_v47, %v2865_v2  ;;  %v2962_v35 = vpop.f32.mrf.mxu3  ;;  %v2818_v53 = vpop.f32.mrf.mxu0 }
 0x381   : > { %v2819_v38 = vadd.f32 %v2818_v53, %v11986_v12  ;;  %v2867_v42 = vpop.f32.mrf.mxu1 }
 0x382   : > { %v12159_v54 = vadd.f32 %v2962_v35, %v2914_v43  ;;  %v2868_v11 = vadd.f32 %v2867_v42, %v12060_v44  ;;  %v9424_v42 = vld [vmem:[%s14420_s4 + $0x40] sm:$0xff] }
 0x383   : > { %3013 = vmatmul.bf16.gmra.mxu0 %v10511_v28  ;;  %3561 = vmatpush.bf16.msrb.mxu1 %v9424_v42 }
 0x384   : > { %3062 = vmatmul.bf16.gmra.mxu1 %v10858_v9  ;;  %3111 = vmatmul.bf16.gmra.mxu2 %v14583_v59  ;;  %v9418_v9 = vld [vmem:[%s14420_s4 + $0x10] sm:$0xff]  ;;  %v3215_v59 = vmax.f32 %v2819_v38, 0.0  ;;  %v9416_v38 = vld [vmem:[%s14420_s4] sm:$0xff] }
 0x385   : > { %8299 = vmatmul.msk.bf16.gmra.mxu3 %vm1784_vm0, %v14616_v29  ;;  %3510 = vmatpush.bf16.msrb.mxu0 %v9418_v9 }
 0x387   : > { %v2916_v4 = vpop.f32.mrf.mxu2 }
 0x388   : > { %v2917_v12 = vadd.f32 %v2916_v4, %v2868_v11  ;;  %v2965_v50 = vpop.f32.mrf.mxu3  ;;  %v2820_v37 = vpop.f32.mrf.mxu0  ;;  %v9432_v11 = vld [vmem:[%s14420_s4 + $0x80] sm:$0xff] }
 0x389   : > { %v2821_v28 = vadd.f32 %v2820_v37, %v11995_v51  ;;  %v2869_v39 = vpop.f32.mrf.mxu1  ;;  %3610 = vmatpush.bf16.msrb.mxu2 %v9432_v11  ;;  %v14629_v37 = vld [vmem:[#allocation39_spill] sm:$0xff] }
 0x38a   : > { %v12171_v13 = vadd.f32 %v2965_v50, %v2917_v12  ;;  %v2870_v46 = vadd.f32 %v2869_v39, %v12060_v44  ;;  %v14628_v50 = vld [vmem:[#allocation38_spill] sm:$0xff] }
 0x38b   : > { %v3219_v29 = vmax.f32 %v2821_v28, 0.0 }
 0x38d   : > { %v12179_v1 = vpack.c.bf16 %v3219_v29, %v3215_v59 }
 0x38f   : > { %v2918_v51 = vpop.f32.mrf.mxu2 }
 0x390   : > { %v12182_v58 = vadd.f32 %v2918_v51, %v2870_v46  ;;  %v12184_v60 = vpop.f32.mrf.mxu3  ;;  %v2823_v56 = vpop.f32.mrf.mxu0 }
 0x391   : > { %v2824_v18 = vadd.f32 %v2823_v56, %v12015_v48  ;;  %v2872_v6 = vpop.f32.mrf.mxu1 }
 0x392   : > { %v2873_v16 = vadd.f32 %v2872_v6, %v12060_v44 }
 0x393   : > { %3018 = vmatmul.bf16.gmra.mxu0 %v10549_v57 }
 0x394   : > { %3067 = vmatmul.bf16.gmra.mxu1 %v10905_v7  ;;  %3116 = vmatmul.bf16.gmra.mxu2 %v14586_v31  ;;  %v9417_v7 = vld [vmem:[%s14420_s4 + $0x8] sm:$0xff]  ;;  %v3223_v31 = vmax.f32 %v2824_v18, 0.0 }
 0x395   : > { %8300 = vmatmul.msk.bf16.gmra.mxu3 %vm1784_vm0, %v14619_v33  ;;  %3511 = vmatpush.bf16.msrb.mxu0 %v9417_v7 }
 0x397   : > { %v2921_v3 = vpop.f32.mrf.mxu2 }
 0x398   : > { %v2922_v14 = vadd.f32 %v2921_v3, %v2873_v16  ;;  %v2970_v48 = vpop.f32.mrf.mxu3  ;;  %v2825_v8 = vpop.f32.mrf.mxu0 }
 0x399   : > { %v2826_v57 = vadd.f32 %v2825_v8, %v12024_v20  ;;  %v2874_v49 = vpop.f32.mrf.mxu1  ;;  %3512 = vmatpush.bf16.msrb.mxu0 %v9416_v38 }
 0x39a   : > { %v12197_v40 = vadd.f32 %v2970_v48, %v2922_v14  ;;  %v2875_v47 = vadd.f32 %v2874_v49, %v12060_v44  ;;  %v14630_v14 = vld [vmem:[#allocation41_spill] sm:$0xff]  ;;  %v14631_v48 = vld [vmem:[#allocation42_spill] sm:$0xff] }
 0x39b   : > { %v3227_v33 = vmax.f32 %v2826_v57, 0.0 }
 0x39d   : > { %v12205_v2 = vpack.c.bf16 %v3227_v33, %v3223_v31 }
 0x39f   : > { %v2923_v20 = vpop.f32.mrf.mxu2 }
 0x3a0   : > { %v12208_v43 = vadd.f32 %v2923_v20, %v2875_v47  ;;  %v12210_v35 = vpop.f32.mrf.mxu3  ;;  %v2828_v53 = vpop.f32.mrf.mxu0 }
 0x3a1   : > { %v2829_v5 = vadd.f32 %v2828_v53, %v12032_v62  ;;  %v2877_v4 = vpop.f32.mrf.mxu1 }
 0x3a2   : > { %v2878_v12 = vadd.f32 %v2877_v4, %v12060_v44  ;;  %v14633_v4 = vld [vmem:[#allocation7_spill] sm:$0xff] }
 0x3a3   : > { %3023 = vmatmul.bf16.gmra.mxu0 %v10587_v22  ;;  %v3231_v22 = vmax.f32 %v2829_v5, 0.0  ;;  %v14632_v5 = vld [vmem:[#allocation44_spill] sm:$0xff] }
 0x3a4   : > { %3072 = vmatmul.bf16.gmra.mxu1 %v14628_v50  ;;  %3121 = vmatmul.bf16.gmra.mxu2 %v14629_v37 }
 0x3a5   : > { %8301 = vmatmul.msk.bf16.gmra.mxu3 %vm1784_vm0, %v14622_v30 }
 0x3a7   : > { %v2926_v28 = vpop.f32.mrf.mxu2 }
 0x3a8   : > { %v2927_v39 = vadd.f32 %v2926_v28, %v2878_v12  ;;  %v2975_v9 = vpop.f32.mrf.mxu3  ;;  %v2830_v59 = vpop.f32.mrf.mxu0 }
 0x3a9   : > { %v2831_v62 = vadd.f32 %v2830_v59, %v12035_v45  ;;  %v2879_v29 = vpop.f32.mrf.mxu1 }
 0x3aa   : > { %v12229_v21 = vadd.f32 %v2975_v9, %v2927_v39  ;;  %v2880_v56 = vadd.f32 %v2879_v29, %v12060_v44 }
 0x3ab   : > { %v3235_v46 = vmax.f32 %v2831_v62, 0.0 }
 0x3ad   : > { %v12231_v51 = vpack.c.bf16 %v3235_v46, %v3231_v22 }
 0x3af   : > { %v2928_v18 = vpop.f32.mrf.mxu2 }
 0x3b0   : > { %v12234_v6 = vadd.f32 %v2928_v18, %v2880_v56  ;;  %v12236_v16 = vpop.f32.mrf.mxu3  ;;  %v2833_v30 = vpop.f32.mrf.mxu0 }
 0x3b1   : > { %v2834_v10 = vadd.f32 %v2833_v30, %v12046_v0  ;;  %v2882_v3 = vpop.f32.mrf.mxu1 }
 0x3b2   : > { %v2883_v45 = vadd.f32 %v2882_v3, %v12060_v44  ;;  %v14635_v3 = vld [vmem:[#allocation28_spill] sm:$0xff] }
 0x3b3   : > { %3028 = vmatmul.bf16.gmra.mxu0 %v14604_v61  ;;  %v3239_v25 = vmax.f32 %v2834_v10, 0.0  ;;  %v14634_v10 = vld [vmem:[#allocation45_spill] sm:$0xff] }
 0x3b4   : > { %3077 = vmatmul.bf16.gmra.mxu1 %v14630_v14  ;;  %3126 = vmatmul.bf16.gmra.mxu2 %v14631_v48 }
 0x3b5   : > { %8302 = vmatmul.msk.bf16.gmra.mxu3 %vm1784_vm0, %v14593_v32 }
 0x3b7   : > { %v2931_v8 = vpop.f32.mrf.mxu2 }
 0x3b8   : > { %v2932_v57 = vadd.f32 %v2931_v8, %v2883_v45  ;;  %v2980_v49 = vpop.f32.mrf.mxu3  ;;  %v2835_v7 = vpop.f32.mrf.mxu0 }
 0x3b9   : > { %v2836_v31 = vadd.f32 %v2835_v7, %v12063_v27  ;;  %v2884_v33 = vpop.f32.mrf.mxu1 }
 0x3ba   : > { %v12246_v0 = vadd.f32 %v2980_v49, %v2932_v57  ;;  %v2885_v20 = vadd.f32 %v2884_v33, %v12060_v44 }
 0x3bb   : > { %v3243_v61 = vmax.f32 %v2836_v31, 0.0 }
 0x3bd   : > { %v12248_v47 = vpack.c.bf16 %v3243_v61, %v3239_v25 }
 0x3bf   : > { %v2933_v53 = vpop.f32.mrf.mxu2 }
 0x3c0   : > { %v12251_v38 = vadd.f32 %v2933_v53, %v2885_v20  ;;  %v12253_v42 = vpop.f32.mrf.mxu3  ;;  %v2994_v32 = vpop.f32.mrf.mxu0 }
 0x3c1   : > { %v3043_v11 = vpop.f32.mrf.mxu1  ;;  %v2995_v27 = vadd.f32 %v2994_v32, %v12075_v41 }
 0x3c3   : > { %3513 = vmatmul.bf16.vlgmr.msrb.gmra.mxu0 %v14632_v5  ;;  %v3044_v44 = vadd.f32 %v3043_v11, %v2995_v27  ;;  %v14636_v5 = vld [vmem:[#allocation46_spill] sm:$0xff] }
 0x3c4   : > { %3562 = vmatmul.bf16.vlgmr.msrb.gmra.mxu1 %v14633_v4  ;;  %3611 = vmatmul.bf16.vlgmr.msrb.gmra.mxu2 %v12083_v36  ;;  %v14637_v27 = vld [vmem:[#allocation30_spill] sm:$0xff] }
 0x3c7   : > { %v3092_v12 = vpop.f32.mrf.mxu2 }
 0x3c8   : > { %v3141_v50 = vpop.f32.mrf.mxu3  ;;  %v2996_v37 = vpop.f32.mrf.mxu0  ;;  %v3093_v9 = vadd.f32 %v3092_v12, %v3044_v44 }
 0x3c9   : > { %v3045_v28 = vpop.f32.mrf.mxu1  ;;  %v2997_v39 = vadd.f32 %v2996_v37, %v12087_v17 }
 0x3ca   : > { %v3142_v29 = vadd.f32 %v3141_v50, %v3093_v9 }
 0x3cb   : > { %v3046_v59 = vadd.f32 %v3045_v28, %v2997_v39 }
 0x3cc   : > { %v3184_v36 = vmax.f32 %v3142_v29, 0.0 }
 0x3cf   : > { %v3094_v62 = vpop.f32.mrf.mxu2 }
 0x3d0   : > { %v3095_v22 = vadd.f32 %v3094_v62, %v3046_v59  ;;  %v3143_v46 = vpop.f32.mrf.mxu3  ;;  %v2999_v56 = vpop.f32.mrf.mxu0 }
 0x3d1   : > { %v3048_v18 = vpop.f32.mrf.mxu1  ;;  %v3000_v17 = vadd.f32 %v2999_v56, %v12099_v34 }
 0x3d2   : > { %v3144_v30 = vadd.f32 %v3143_v46, %v3095_v22 }
 0x3d3   : > { %3518 = vmatmul.bf16.gmra.mxu0 %v14634_v10  ;;  %v3049_v49 = vadd.f32 %v3048_v18, %v3000_v17  ;;  %v14638_v10 = vld [vmem:[#allocation47_spill] sm:$0xff] }
 0x3d4   : > { %v3188_v41 = vmax.f32 %v3144_v30, 0.0  ;;  %3567 = vmatmul.bf16.gmra.mxu1 %v14635_v3  ;;  %3616 = vmatmul.bf16.gmra.mxu2 %v12107_v55 }
 0x3d6   : > { %v3248_v45 = vpack.c.bf16 %v3188_v41, %v3184_v36  ;;  %v14639_v41 = vld [vmem:[#allocation32_spill] sm:$0xff] }
 0x3d7   : > { %v3097_v14 = vpop.f32.mrf.mxu2 }
 0x3d8   : > { %v3146_v48 = vpop.f32.mrf.mxu3  ;;  %8403 = vmatmul.msk.bf16.vlgmr.msrb.gmra.mxu3 %vm1784_vm0, %v3248_v45  ;;  %v3001_v8 = vpop.f32.mrf.mxu0  ;;  %v3098_v31 = vadd.f32 %v3097_v14, %v3049_v49 }
 0x3d9   : > { %v3050_v57 = vpop.f32.mrf.mxu1  ;;  %v3002_v7 = vadd.f32 %v3001_v8, %v12111_v15 }
 0x3da   : > { %v3147_v61 = vadd.f32 %v3146_v48, %v3098_v31 }
 0x3db   : > { %v3051_v33 = vadd.f32 %v3050_v57, %v3002_v7 }
 0x3dc   : > { %v3192_v34 = vmax.f32 %v3147_v61, 0.0 }
 0x3df   : > { %v3099_v25 = vpop.f32.mrf.mxu2 }
 0x3e0   : > { %v3100_v20 = vadd.f32 %v3099_v25, %v3051_v33  ;;  %v3148_v53 = vpop.f32.mrf.mxu3  ;;  %v3004_v32 = vpop.f32.mrf.mxu0 }
 0x3e1   : > { %v3053_v55 = vpop.f32.mrf.mxu1  ;;  %v3005_v15 = vadd.f32 %v3004_v32, %v12123_v19  ;;  %v14640_v32 = vld [vmem:[#allocation48_spill] sm:$0xff] }
 0x3e2   : > { %v3149_v11 = vadd.f32 %v3148_v53, %v3100_v20 }
 0x3e3   : > { %3523 = vmatmul.bf16.gmra.mxu0 %v14636_v5  ;;  %v3054_v39 = vadd.f32 %v3053_v55, %v3005_v15 }
 0x3e4   : > { %v3196_v4 = vmax.f32 %v3149_v11, 0.0  ;;  %3572 = vmatmul.bf16.gmra.mxu1 %v14637_v27  ;;  %3621 = vmatmul.bf16.gmra.mxu2 %v12131_v26  ;;  %v14641_v11 = vld [vmem:[#allocation34_spill] sm:$0xff] }
 0x3e6   : > { %v3252_v12 = vpack.c.bf16 %v3196_v4, %v3192_v34  ;;  %v2968_v4 = vadd.f32 %v12184_v60, %v12182_v58  ;;  %v14643_v60 = vld [vmem:[#allocation36_spill] sm:$0xff] }
 0x3e7   : > { %v3102_v50 = vpop.f32.mrf.mxu2 }
 0x3e8   : > { %v3151_v37 = vpop.f32.mrf.mxu3  ;;  %8404 = vmatmul.msk.bf16.gmra.mxu3 %vm1784_vm0, %v3252_v12  ;;  %v3006_v28 = vpop.f32.mrf.mxu0  ;;  %v3103_v59 = vadd.f32 %v3102_v50, %v3054_v39 }
 0x3e9   : > { %v3055_v44 = vpop.f32.mrf.mxu1  ;;  %v3007_v9 = vadd.f32 %v3006_v28, %v12135_v24 }
 0x3ea   : > { %v3152_v22 = vadd.f32 %v3151_v37, %v3103_v59 }
 0x3eb   : > { %v3056_v62 = vadd.f32 %v3055_v44, %v3007_v9 }
 0x3ec   : > { %v3200_v19 = vmax.f32 %v3152_v22, 0.0  ;;  %v14642_v22 = vld [vmem:[#allocation49_spill] sm:$0xff] }
 0x3ef   : > { %v3104_v29 = vpop.f32.mrf.mxu2 }
 0x3f0   : > { %v3105_v46 = vadd.f32 %v3104_v29, %v3056_v62  ;;  %v3153_v56 = vpop.f32.mrf.mxu3  ;;  %v3009_v18 = vpop.f32.mrf.mxu0 }
 0x3f1   : > { %v3058_v26 = vpop.f32.mrf.mxu1  ;;  %v3010_v24 = vadd.f32 %v3009_v18, %v12147_v52 }
 0x3f2   : > { %v3154_v30 = vadd.f32 %v3153_v56, %v3105_v46 }
 0x3f3   : > { %3528 = vmatmul.bf16.gmra.mxu0 %v14638_v10  ;;  %v3059_v8 = vadd.f32 %v3058_v26, %v3010_v24 }
 0x3f4   : > { %v3204_v36 = vmax.f32 %v3154_v30, 0.0  ;;  %3577 = vmatmul.bf16.gmra.mxu1 %v14639_v41  ;;  %3626 = vmatmul.bf16.gmra.mxu2 %v12155_v23  ;;  %v2973_v30 = vadd.f32 %v12210_v35, %v12208_v43  ;;  %v14645_v35 = vld [vmem:[#allocation43_spill] sm:$0xff] }
 0x3f6   : > { %v3256_v3 = vpack.c.bf16 %v3204_v36, %v3200_v19 }
 0x3f7   : > { %v3107_v45 = vpop.f32.mrf.mxu2 }
 0x3f8   : > { %v3156_v17 = vpop.f32.mrf.mxu3  ;;  %8405 = vmatmul.msk.bf16.gmra.mxu3 %vm1784_vm0, %v3256_v3  ;;  %v3011_v14 = vpop.f32.mrf.mxu0  ;;  %v3108_v49 = vadd.f32 %v3107_v45, %v3059_v8 }
 0x3f9   : > { %v3060_v48 = vpop.f32.mrf.mxu1  ;;  %v3012_v57 = vadd.f32 %v3011_v14, %v12159_v54 }
 0x3fa   : > { %v3157_v33 = vadd.f32 %v3156_v17, %v3108_v49  ;;  %v14644_v49 = vld [vmem:[#allocation50_spill] sm:$0xff] }
 0x3fb   : > { %v3061_v7 = vadd.f32 %v3060_v48, %v3012_v57 }
 0x3fc   : > { %v3208_v52 = vmax.f32 %v3157_v33, 0.0 }
 0x3ff   : > { %v3109_v31 = vpop.f32.mrf.mxu2 }
 0x400   : > { %v3110_v25 = vadd.f32 %v3109_v31, %v3061_v7  ;;  %v3158_v61 = vpop.f32.mrf.mxu3  ;;  %v3014_v20 = vpop.f32.mrf.mxu0 }
 0x401   : > { %v3063_v23 = vpop.f32.mrf.mxu1  ;;  %v3015_v54 = vadd.f32 %v3014_v20, %v12171_v13 }
 0x402   : > { %v3159_v53 = vadd.f32 %v3158_v61, %v3110_v25  ;;  %v2978_v61 = vadd.f32 %v12236_v16, %v12234_v6 }
 0x403   : > { %3533 = vmatmul.bf16.gmra.mxu0 %v14640_v32  ;;  %v3064_v50 = vadd.f32 %v3063_v23, %v3015_v54 }
 0x404   : > { %v3212_v55 = vmax.f32 %v3159_v53, 0.0  ;;  %3582 = vmatmul.bf16.gmra.mxu1 %v14641_v11  ;;  %3631 = vmatmul.bf16.gmra.mxu2 %v12179_v1 }
 0x406   : > { %v3260_v5 = vpack.c.bf16 %v3212_v55, %v3208_v52 }
 0x407   : > { %v3112_v34 = vpop.f32.mrf.mxu2 }
 0x408   : > { %v3161_v27 = vpop.f32.mrf.mxu3  ;;  %8406 = vmatmul.msk.bf16.gmra.mxu3 %vm1784_vm0, %v3260_v5  ;;  %v3016_v12 = vpop.f32.mrf.mxu0  ;;  %v3113_v28 = vadd.f32 %v3112_v34, %v3064_v50 }
 0x409   : > { %v3065_v15 = vpop.f32.mrf.mxu1  ;;  %v3017_v37 = vadd.f32 %v3016_v12, %v2968_v4  ;;  %v14646_v12 = vld [vmem:[#allocation27_spill] sm:$0xff] }
 0x40a   : > { %v3162_v9 = vadd.f32 %v3161_v27, %v3113_v28  ;;  %v2983_v28 = vadd.f32 %v12253_v42, %v12251_v38 }
 0x40b   : > { %v3066_v44 = vadd.f32 %v3065_v15, %v3017_v37 }
 0x40c   : > { %v3216_v46 = vmax.f32 %v3162_v9, 0.0 }
 0x40f   : > { %v3114_v39 = vpop.f32.mrf.mxu2 }
 0x410   : > { %v3115_v59 = vadd.f32 %v3114_v39, %v3066_v44  ;;  %v3163_v1 = vpop.f32.mrf.mxu3  ;;  %v3019_v62 = vpop.f32.mrf.mxu0 }
 0x411   : > { %v3068_v29 = vpop.f32.mrf.mxu1  ;;  %v3020_v18 = vadd.f32 %v3019_v62, %v12197_v40 }
 0x412   : > { %v3164_v13 = vadd.f32 %v3163_v1, %v3115_v59 }
 0x413   : > { %3538 = vmatmul.bf16.gmra.mxu0 %v14642_v22  ;;  %v3069_v41 = vadd.f32 %v3068_v29, %v3020_v18 }
 0x414   : > { %v3220_v58 = vmax.f32 %v3164_v13, 0.0  ;;  %3587 = vmatmul.bf16.gmra.mxu1 %v14643_v60  ;;  %3636 = vmatmul.bf16.gmra.mxu2 %v12205_v2 }
 0x416   : > { %v3264_v56 = vpack.c.bf16 %v3220_v58, %v3216_v46 }
 0x417   : > { %v3117_v26 = vpop.f32.mrf.mxu2 }
 0x418   : > { %v3166_v10 = vpop.f32.mrf.mxu3  ;;  %8407 = vmatmul.msk.bf16.gmra.mxu3 %vm1784_vm0, %v3264_v56  ;;  %v3021_v19 = vpop.f32.mrf.mxu0  ;;  %v3118_v24 = vadd.f32 %v3117_v26, %v3069_v41  ;;  %v12313_v41 = vld [vmem:[%s14421_s5] ss:$0 sm:$0xff] }
 0x419   : > { %v3070_v36 = vpop.f32.mrf.mxu1  ;;  %v3022_v3 = vadd.f32 %v3021_v19, %v2973_v30  ;;  %v3874_v30 = vld [vmem:[%s14422_s6 + $0x28] sm:$0x33] }
 0x41a   : > { %v3167_v14 = vadd.f32 %v3166_v10, %v3118_v24  ;;  %v3901_v10 = vunpack.c.l.b16 %v3874_v30 }
 0x41b   : > { %v3071_v45 = vadd.f32 %v3070_v36, %v3022_v3 }
 0x41c   : > { %v3224_v7 = vmax.f32 %v3167_v14, 0.0  ;;  %v3909_v19 = vpack.c.b16 %v3901_v10, %v3901_v10  ;;  %v3873_v14 = vld [vmem:[%s14422_s6 + $0x20] sm:$0x33] }
 0x41e   : > { %v3948_v24 = vsel %vm3940_vm1, %v3909_v19, 0 }
 0x41f   : > { %v3119_v17 = vpop.f32.mrf.mxu2  ;;  %4057 = vmatpush.bf16.msra.mxu2 %v3948_v24 }
 0x420   : > { %v3120_v48 = vadd.f32 %v3119_v17, %v3071_v45  ;;  %v3168_v2 = vpop.f32.mrf.mxu3  ;;  %v3024_v8 = vpop.f32.mrf.mxu0  ;;  %v3902_v17 = vunpack.c.h.b16 %v3874_v30 }
 0x421   : > { %v3073_v57 = vpop.f32.mrf.mxu1  ;;  %v3025_v33 = vadd.f32 %v3024_v8, %v12229_v21  ;;  %v3899_v8 = vunpack.c.l.b16 %v3873_v14 }
 0x422   : > { %v3169_v40 = vadd.f32 %v3168_v2, %v3120_v48  ;;  %v3910_v2 = vpack.c.b16 %v3902_v17, %v3902_v17 }
 0x423   : > { %3543 = vmatmul.bf16.gmra.mxu0 %v14644_v49  ;;  %v3074_v32 = vadd.f32 %v3073_v57, %v3025_v33 }
 0x424   : > { %v3228_v43 = vmax.f32 %v3169_v40, 0.0  ;;  %3592 = vmatmul.bf16.gmra.mxu1 %v14645_v35  ;;  %3641 = vmatmul.bf16.gmra.mxu2 %v12231_v51  ;;  %v3951_v57 = vsel %vm3940_vm1, %v3910_v2, 0  ;;  %v3907_v40 = vpack.c.b16 %v3899_v8, %v3899_v8 }
 0x425   : > { %4106 = vmatpush.bf16.msra.mxu3 %v3951_v57 }
 0x426   : > { %v3268_v31 = vpack.c.bf16 %v3228_v43, %v3224_v7  ;;  %v3942_v35 = vsel %vm3940_vm1, %v3907_v40, 0 }
 0x427   : > { %v3122_v25 = vpop.f32.mrf.mxu2  ;;  %3959 = vmatpush.bf16.msra.mxu0 %v3942_v35 }
 0x428   : > { %v3171_v20 = vpop.f32.mrf.mxu3  ;;  %8408 = vmatmul.msk.bf16.gmra.mxu3 %vm1784_vm0, %v3268_v31  ;;  %v3026_v23 = vpop.f32.mrf.mxu0  ;;  %v3123_v55 = vadd.f32 %v3122_v25, %v3074_v32  ;;  %v3900_v25 = vunpack.c.h.b16 %v3873_v14 }
 0x429   : > { %v3075_v53 = vpop.f32.mrf.mxu1  ;;  %v3027_v52 = vadd.f32 %v3026_v23, %v2978_v61 }
 0x42a   : > { %v3172_v54 = vadd.f32 %v3171_v20, %v3123_v55 }
 0x42b   : > { %v3076_v11 = vadd.f32 %v3075_v53, %v3027_v52  ;;  %v3908_v53 = vpack.c.b16 %v3900_v25, %v3900_v25 }
 0x42c   : > { %v3232_v15 = vmax.f32 %v3172_v54, 0.0 }
 0x42d   : > { %v3945_v52 = vsel %vm3940_vm1, %v3908_v53, 0 }
 0x42e   : > { %4008 = vmatpush.bf16.msra.mxu1 %v3945_v52  ;;  %v9444_v52 = vld [vmem:[%s14422_s6 + $0x14] sm:$0xf0] }
 0x42f   : > { %v3124_v5 = vpop.f32.mrf.mxu2 }
 0x430   : > { %v3125_v34 = vadd.f32 %v3124_v5, %v3076_v11  ;;  %v3173_v51 = vpop.f32.mrf.mxu3  ;;  %v3029_v4 = vpop.f32.mrf.mxu0 }
 0x431   : > { %v3078_v27 = vpop.f32.mrf.mxu1  ;;  %v3030_v50 = vadd.f32 %v3029_v4, %v12246_v0 }
 0x432   : > { %v3174_v21 = vadd.f32 %v3173_v51, %v3125_v34 }
 0x433   : > { %3548 = vmatmul.bf16.gmra.mxu0 %v14646_v12  ;;  %v3079_v59 = vadd.f32 %v3078_v27, %v3030_v50 }
 0x434   : > { %v3236_v6 = vmax.f32 %v3174_v21, 0.0  ;;  %3597 = vmatmul.bf16.gmra.mxu1 %v11846_v63  ;;  %3646 = vmatmul.bf16.gmra.mxu2 %v12248_v47 }
 0x436   : > { %v3272_v16 = vpack.c.bf16 %v3236_v6, %v3232_v15 }
 0x437   : > { %v3127_v37 = vpop.f32.mrf.mxu2 }
 0x438   : > { %v3176_v44 = vpop.f32.mrf.mxu3  ;;  %8409 = vmatmul.msk.bf16.gmra.mxu3 %vm1784_vm0, %v3272_v16  ;;  %v3031_v39 = vpop.f32.mrf.mxu0  ;;  %v3128_v62 = vadd.f32 %v3127_v37, %v3079_v59 }
 0x439   : > { %v3080_v9 = vpop.f32.mrf.mxu1  ;;  %v3032_v1 = vadd.f32 %v3031_v39, %v2983_v28 }
 0x43a   : > { %v3177_v63 = vadd.f32 %v3176_v44, %v3128_v62 }
 0x43b   : > { %v3081_v29 = vadd.f32 %v3080_v9, %v3032_v1 }
 0x43c   : > { %v3240_v60 = vmax.f32 %v3177_v63, 0.0 }
 0x43f   : > { %v3129_v13 = vpop.f32.mrf.mxu2 }
 0x440   : > { %v3130_v22 = vadd.f32 %v3129_v13, %v3081_v29  ;;  %v3514_v47 = vpop.f32.mrf.mxu0  ;;  %v3178_v46 = vpop.f32.mrf.mxu3 }
 0x441   : > { %v3563_v58 = vpop.f32.mrf.mxu1  ;;  %v3515_v48 = vadd.f32 %v12313_v41, %v3514_v47 }
 0x442   : > { %v3179_v0 = vadd.f32 %v3178_v46, %v3130_v22 }
 0x443   : > { %v3564_v7 = vadd.f32 %v3563_v58, %v3515_v48 }
 0x444   : > { %v3244_v56 = vmax.f32 %v3179_v0, 0.0 }
 0x446   : > { %v3276_v18 = vpack.c.bf16 %v3244_v56, %v3240_v60 }
 0x447   : > { %v3612_v38 = vpop.f32.mrf.mxu2 }
 0x448   : > { %8410 = vmatmul.msk.bf16.gmra.mxu3 %vm1784_vm0, %v3276_v18  ;;  %v3516_v42 = vpop.f32.mrf.mxu0  ;;  %v3613_v33 = vadd.f32 %v3612_v38, %v3564_v7 }
 0x449   : > { %v3565_v26 = vpop.f32.mrf.mxu1  ;;  %v3517_v20 = vadd.f32 %v12313_v41, %v3516_v42 }
 0x44b   : > { %v3566_v11 = vadd.f32 %v3565_v26, %v3517_v20 }
 0x44f   : > { %v3614_v36 = vpop.f32.mrf.mxu2 }
 0x450   : > { %v3519_v3 = vpop.f32.mrf.mxu0  ;;  %v3615_v51 = vadd.f32 %v3614_v36, %v3566_v11 }
 0x451   : > { %v3568_v45 = vpop.f32.mrf.mxu1  ;;  %v3520_v27 = vadd.f32 %v12313_v41, %v3519_v3 }
 0x453   : > { %v3569_v16 = vadd.f32 %v3568_v45, %v3520_v27 }
 0x457   : > { %v3617_v49 = vpop.f32.mrf.mxu2 }
 0x458   : > { %v3521_v43 = vpop.f32.mrf.mxu0  ;;  %v3618_v28 = vadd.f32 %v3617_v49, %v3569_v16  ;;  %v8423_v16 = vld [vmem:[%s14422_s6 + $0x18] sm:$0xf0] }
 0x459   : > { %v3570_v31 = vpop.f32.mrf.mxu1  ;;  %v3522_v9 = vadd.f32 %v12313_v41, %v3521_v43 }
 0x45b   : > { %v3661_v61 = vpop.f32.mrf.mxu3  ;;  %v3571_v13 = vadd.f32 %v3570_v31, %v3522_v9 }
 0x45c   : > { %v12326_v23 = vadd.f32 %v3661_v61, %v3613_v33 }
 0x45e   : > { %v3717_v32 = vmul.f32 0.5, %v12326_v23  ;;  %7334 = vst [vmem:[%s12329_s12] sm:$0xff] %v12326_v23 }
 0x45f   : > { %v3619_v55 = vpop.f32.mrf.mxu2 }
 0x460   : > { %v3733_v5 = vmul.f32 1.442695, %v3717_v32  ;;  %v3524_v54 = vpop.f32.mrf.mxu0  ;;  %v3620_v47 = vadd.f32 %v3619_v55, %v3571_v13  ;;  %v8421_v32 = vld [vmem:[%s14422_s6 + $0x8] sm:$0xf] }
 0x461   : > { %v3573_v34 = vpop.f32.mrf.mxu1  ;;  %v3525_v58 = vadd.f32 %v12313_v41, %v3524_v54 }
 0x462   : > { %9666 = vpow2.f32 %v3733_v5  ;;  %v8422_v5 = vor.u32 %v9444_v52, %v8421_v32 }
 0x463   : > { %v3663_v4 = vpop.f32.mrf.mxu3  ;;  %v3574_v42 = vadd.f32 %v3573_v34, %v3525_v58  ;;  %v9441_v58 = vld [vmem:[%s14422_s6 + $0x4] sm:$0xf] }
 0x464   : > { %v12335_v21 = vadd.f32 %v3663_v4, %v3615_v51  ;;  %4058 = vmatpush.bf16.msra.mxu2 %v8422_v5 }
 0x466   : > { %v3718_v12 = vmul.f32 0.5, %v12335_v21  ;;  %7335 = vst [vmem:[%s12329_s12 + $0x8] sm:$0xff] %v12335_v21 }
 0x467   : > { %v3622_v15 = vpop.f32.mrf.mxu2 }
 0x468   : > { %v9667_v6 = vpop.eup %9666  ;;  %v3735_v50 = vmul.f32 1.442695, %v3718_v12  ;;  %v3526_v37 = vpop.f32.mrf.mxu0  ;;  %v3623_v10 = vadd.f32 %v3622_v15, %v3574_v42 }
 0x469   : > { %3781 = vrot.lane.b32.xlu0 %v9667_v6, %s14500_s13  ;;  %v3575_v44 = vpop.f32.mrf.mxu1  ;;  %v3527_v36 = vadd.f32 %v12313_v41, %v3526_v37  ;;  %v9442_v6 = vld [vmem:[%s14422_s6 + $0xc] sm:$0xf] }
 0x46a   : > { %9668 = vpow2.f32 %v3735_v50 }
 0x46b   : > { %v3666_v39 = vpop.f32.mrf.mxu3  ;;  %v3576_v48 = vadd.f32 %v3575_v44, %v3527_v36  ;;  %v8413_v44 = vld [vmem:[%s14422_s6] sm:$0xf] }
 0x46c   : > { %v12342_v59 = vadd.f32 %v3666_v39, %v3618_v28  ;;  %v8426_v28 = vor.u32 %v9442_v6, %v8423_v16  ;;  %v9443_v39 = vld [vmem:[%s14422_s6 + $0xc] sm:$0xf0] }
 0x46e   : > { %v3719_v1 = vmul.f32 0.5, %v12342_v59  ;;  %7336 = vst [vmem:[%s12329_s12 + $0x10] sm:$0xff] %v12342_v59  ;;  %4107 = vmatpush.bf16.msra.mxu3 %v8426_v28 }
 0x46f   : > { %v3624_v62 = vpop.f32.mrf.mxu2 }
 0x470   : > { %v9669_v29 = vpop.eup %9668  ;;  %v3737_v63 = vmul.f32 1.442695, %v3719_v1  ;;  %v3529_v22 = vpop.f32.mrf.mxu0  ;;  %v3625_v8 = vadd.f32 %v3624_v62, %v3576_v48  ;;  %v8414_v62 = vor.u32 %v9443_v39, %v8413_v44 }
 0x471   : > { %3783 = vrot.lane.b32.xlu0 %v9669_v29, %s14500_s13  ;;  %v3578_v0 = vpop.f32.mrf.mxu1  ;;  %v3530_v49 = vadd.f32 %v12313_v41, %v3529_v22 }
 0x472   : > { %9670 = vpow2.f32 %v3737_v63  ;;  %3960 = vmatpush.bf16.msra.mxu0 %v8414_v62 }
 0x473   : > { %v3668_v46 = vpop.f32.mrf.mxu3  ;;  %v3579_v31 = vadd.f32 %v3578_v0, %v3530_v49  ;;  %v8415_v0 = vld [vmem:[%s14422_s6 + $0x10] sm:$0xf0] }
 0x474   : > { %v12349_v60 = vadd.f32 %v3668_v46, %v3620_v47 }
 0x476   : > { %v3720_v56 = vmul.f32 0.5, %v12349_v60  ;;  %7337 = vst [vmem:[%s12329_s12 + $0x18] sm:$0xff] %v12349_v60 }
 0x477   : > { %v3627_v18 = vpop.f32.mrf.mxu2 }
 0x478   : > { %v9671_v38 = vpop.eup %9670  ;;  %v3739_v26 = vmul.f32 1.442695, %v3720_v56  ;;  %v3531_v30 = vpop.f32.mrf.mxu0  ;;  %v3628_v20 = vadd.f32 %v3627_v18, %v3579_v31  ;;  %v8418_v18 = vor.u32 %v9441_v58, %v8415_v0 }
 0x479   : > { %3785 = vrot.lane.b32.xlu1 %v9671_v38, %s14500_s13  ;;  %v3580_v24 = vpop.f32.mrf.mxu1  ;;  %v3532_v55 = vadd.f32 %v12313_v41, %v3531_v30 }
 0x47a   : > { %9672 = vpow2.f32 %v3739_v26  ;;  %4009 = vmatpush.bf16.msra.mxu1 %v8418_v18 }
 0x47b   : > { %v3671_v19 = vpop.f32.mrf.mxu3  ;;  %v3581_v4 = vadd.f32 %v3580_v24, %v3532_v55 }
 0x47c   : > { %v12356_v3 = vadd.f32 %v3671_v19, %v3623_v10 }
 0x47e   : > { %v3721_v45 = vmul.f32 0.5, %v12356_v3  ;;  %7338 = vst [vmem:[%s12329_s12 + $0x20] sm:$0xff] %v12356_v3 }
 0x47f   : > { %v3629_v17 = vpop.f32.mrf.mxu2 }
 0x480   : > { %v9673_v14 = vpop.eup %9672  ;;  %v3741_v2 = vmul.f32 1.442695, %v3721_v45  ;;  %v3534_v57 = vpop.f32.mrf.mxu0  ;;  %v3630_v12 = vadd.f32 %v3629_v17, %v3581_v4 }
 0x481   : > { %3787 = vrot.lane.b32.xlu1 %v9673_v14, %s14500_s13  ;;  %v3583_v33 = vpop.f32.mrf.mxu1  ;;  %v3535_v9 = vadd.f32 %v12313_v41, %v3534_v57 }
 0x482   : > { %9674 = vpow2.f32 %v3741_v2 }
 0x483   : > { %v3673_v40 = vpop.f32.mrf.mxu3  ;;  %v3584_v22 = vadd.f32 %v3583_v33, %v3535_v9 }
 0x484   : > { %v12363_v7 = vadd.f32 %v3673_v40, %v3625_v8 }
 0x486   : > { %v3722_v43 = vmul.f32 0.5, %v12363_v7  ;;  %7339 = vst [vmem:[%s12329_s12 + $0x28] sm:$0xff] %v12363_v7 }
 0x487   : > { %v3632_v61 = vpop.f32.mrf.mxu2 }
 0x488   : > { %v9675_v35 = vpop.eup %9674  ;;  %v3743_v25 = vmul.f32 1.442695, %v3722_v43  ;;  %v3536_v54 = vpop.f32.mrf.mxu0  ;;  %v3633_v46 = vadd.f32 %v3632_v61, %v3584_v22 }
 0x489   : > { %3789 = vrot.lane.b32.xlu2 %v9675_v35, %s14500_s13  ;;  %v3585_v15 = vpop.f32.mrf.mxu1  ;;  %v3537_v38 = vadd.f32 %v12313_v41, %v3536_v54 }
 0x48a   : > { %9676 = vpow2.f32 %v3743_v25 }
 0x48b   : > { %v3676_v53 = vpop.f32.mrf.mxu3  ;;  %v3586_v36 = vadd.f32 %v3585_v15, %v3537_v38 }
 0x48c   : > { %v12376_v11 = vadd.f32 %v3676_v53, %v3628_v20 }
 0x48e   : > { %v3723_v34 = vmul.f32 0.5, %v12376_v11  ;;  %7340 = vst [vmem:[%s12329_s12 + $0x30] sm:$0xff] %v12376_v11 }
 0x48f   : > { %v3634_v50 = vpop.f32.mrf.mxu2 }
 0x490   : > { %v9677_v51 = vpop.eup %9676  ;;  %v3745_v27 = vmul.f32 1.442695, %v3723_v34  ;;  %v3539_v13 = vpop.f32.mrf.mxu0  ;;  %v3635_v17 = vadd.f32 %v3634_v50, %v3586_v36 }
 0x491   : > { %3791 = vrot.lane.b32.xlu2 %v9677_v51, %s14500_s13  ;;  %v3588_v42 = vpop.f32.mrf.mxu1  ;;  %v3540_v48 = vadd.f32 %v12313_v41, %v3539_v13 }
 0x492   : > { %9678 = vpow2.f32 %v3745_v27 }
 0x493   : > { %v3678_v37 = vpop.f32.mrf.mxu3  ;;  %v3589_v43 = vadd.f32 %v3588_v42, %v3540_v48 }
 0x494   : > { %v12395_v1 = vadd.f32 %v3678_v37, %v3630_v12 }
 0x496   : > { %v3724_v29 = vmul.f32 0.5, %v12395_v1  ;;  %7341 = vst [vmem:[%s12329_s12 + $0x38] sm:$0xff] %v12395_v1 }
 0x497   : > { %v3637_v30 = vpop.f32.mrf.mxu2 }
 0x498   : > { %v9679_v63 = vpop.eup %9678  ;;  %v3747_v47 = vmul.f32 1.442695, %v3724_v29  ;;  %v3541_v45 = vpop.f32.mrf.mxu0  ;;  %v3638_v31 = vadd.f32 %v3637_v30, %v3589_v43 }
 0x499   : > { %3793 = vrot.lane.b32.xlu0 %v9679_v63, %s14500_s13  ;;  %v3590_v8 = vpop.f32.mrf.mxu1  ;;  %v3542_v61 = vadd.f32 %v12313_v41, %v3541_v45 }
 0x49a   : > { %9680 = vpow2.f32 %v3747_v47 }
 0x49b   : > { %v3681_v56 = vpop.f32.mrf.mxu3  ;;  %v3591_v52 = vadd.f32 %v3590_v8, %v3542_v61 }
 0x49c   : > { %v12408_v26 = vadd.f32 %v3681_v56, %v3633_v46 }
 0x49e   : > { %v3725_v10 = vmul.f32 0.5, %v12408_v26  ;;  %7342 = vst [vmem:[%s12329_s12 + $0x40] sm:$0xff] %v12408_v26 }
 0x49f   : > { %v3639_v40 = vpop.f32.mrf.mxu2 }
 0x4a0   : > { %v9681_v19 = vpop.eup %9680  ;;  %v3749_v24 = vmul.f32 1.442695, %v3725_v10  ;;  %v3544_v33 = vpop.f32.mrf.mxu0  ;;  %v3640_v34 = vadd.f32 %v3639_v40, %v3591_v52  ;;  %v9609_v52 = vld [vmem:[%s14424_s8 + $0x520] sm:$0xf0] }
 0x4a1   : > { %3795 = vrot.lane.b32.xlu1 %v9681_v19, %s14500_s13  ;;  %v3593_v55 = vpop.f32.mrf.mxu1  ;;  %v3545_v4 = vadd.f32 %v12313_v41, %v3544_v33 }
 0x4a2   : > { %9682 = vpow2.f32 %v3749_v24 }
 0x4a3   : > { %v3683_v14 = vpop.f32.mrf.mxu3  ;;  %v3594_v16 = vadd.f32 %v3593_v55, %v3545_v4  ;;  %v8657_v55 = vld [vmem:[%s14424_s8 + $0x188] sm:$0xf] }
 0x4a4   : > { %v12415_v2 = vadd.f32 %v3683_v14, %v3635_v17 }
 0x4a6   : > { %v3726_v57 = vmul.f32 0.5, %v12415_v2  ;;  %7343 = vst [vmem:[%s12329_s12 + $0x48] sm:$0xff] %v12415_v2 }
 0x4a7   : > { %v3642_v54 = vpop.f32.mrf.mxu2 }
 0x4a8   : > { %v9683_v49 = vpop.eup %9682  ;;  %v3751_v35 = vmul.f32 1.442695, %v3726_v57  ;;  %v3546_v12 = vpop.f32.mrf.mxu0  ;;  %v3643_v37 = vadd.f32 %v3642_v54, %v3594_v16  ;;  %v9497_v54 = vld [vmem:[%s14424_s8 + $0x1a0] sm:$0xf0] }
 0x4a9   : > { %3797 = vrot.lane.b32.xlu2 %v9683_v49, %s14500_s13  ;;  %v3595_v28 = vpop.f32.mrf.mxu1  ;;  %v3547_v9 = vadd.f32 %v12313_v41, %v3546_v12  ;;  %v8658_v4 = vor.u32 %v9497_v54, %v8657_v55 }
 0x4aa   : > { %9684 = vpow2.f32 %v3751_v35 }
 0x4ab   : > { %v3686_v25 = vpop.f32.mrf.mxu3  ;;  %v3596_v22 = vadd.f32 %v3595_v28, %v3547_v9  ;;  %5385 = vmatpush.bf16.msrb.mxu0 %v8658_v4  ;;  %v3702_v28 = vld [vmem:[%s12475_s19 + $0x8] sm:$0xff]  ;;  %v3708_v4 = vld [vmem:[%s12475_s19 + $0x38] sm:$0xff] }
 0x4ac   : > { %v12422_v20 = vadd.f32 %v3686_v25, %v3638_v31 }
 0x4ae   : > { %v3727_v53 = vmul.f32 0.5, %v12422_v20  ;;  %7344 = vst [vmem:[%s12329_s12 + $0x50] sm:$0xff] %v12422_v20 }
 0x4af   : > { %v3644_v44 = vpop.f32.mrf.mxu2 }
 0x4b0   : > { %v9685_v32 = vpop.eup %9684  ;;  %v3753_v5 = vmul.f32 1.442695, %v3727_v53  ;;  %v3549_v13 = vpop.f32.mrf.mxu0  ;;  %v3645_v46 = vadd.f32 %v3644_v44, %v3596_v22 }
 0x4b1   : > { %3799 = vrot.lane.b32.xlu0 %v9685_v32, %s14500_s13  ;;  %v3550_v0 = vadd.f32 %v12313_v41, %v3549_v13  ;;  %v3598_v18 = vpop.f32.mrf.mxu1  ;;  %v9105_v32 = vld [vmem:[%s14424_s8 + $0x508] sm:$0xf] }
 0x4b2   : > { %9686 = vpow2.f32 %v3753_v5  ;;  %v9106_v5 = vor.u32 %v9609_v52, %v9105_v32 }
 0x4b3   : > { %v3688_v51 = vpop.f32.mrf.mxu3  ;;  %v3599_v10 = vadd.f32 %v3598_v18, %v3550_v0  ;;  %v9490_v0 = vld [vmem:[%s14424_s8 + $0x168] sm:$0xf0]  ;;  %v8853_v18 = vld [vmem:[%s14424_s8 + $0x310] sm:$0xf] }
 0x4b4   : > { %v12429_v27 = vadd.f32 %v3688_v51, %v3640_v34  ;;  %v9133_v34 = vld [vmem:[%s14424_s8 + $0x540] sm:$0xf]  ;;  %v9616_v51 = vld [vmem:[%s14424_s8 + $0x558] sm:$0xf0]  ;;  %5483 = vmatpush.bf16.msrb.mxu2 %v9106_v5 }
 0x4b5   : > { %v9134_v12 = vor.u32 %v9616_v51, %v9133_v34  ;;  %v3707_v34 = vld [vmem:[%s12475_s19 + $0x30] sm:$0xff] }
 0x4b6   : > { %v3728_v15 = vmul.f32 0.5, %v12429_v27  ;;  %7345 = vst [vmem:[%s12329_s12 + $0x58] sm:$0xff] %v12429_v27 }
 0x4b7   : > { %v3647_v38 = vpop.f32.mrf.mxu2  ;;  %5539 = vmatpush.bf16.msrb.mxu3 %v9134_v12  ;;  %v9021_v12 = vld [vmem:[%s14424_s8 + $0x460] sm:$0xf] }
 0x4b8   : > { %v9687_v6 = vpop.eup %9686  ;;  %v3755_v50 = vmul.f32 1.442695, %v3728_v15  ;;  %v3551_v36 = vpop.f32.mrf.mxu0  ;;  %v3648_v24 = vadd.f32 %v3647_v38, %v3599_v10  ;;  %v8881_v15 = vld [vmem:[%s14424_s8 + $0x348] sm:$0xf]  ;;  %v9546_v38 = vld [vmem:[%s14424_s8 + $0x328] sm:$0xf0] }
 0x4b9   : > { %3801 = vrot.lane.b32.xlu1 %v9687_v6, %s14500_s13  ;;  %v3552_v17 = vadd.f32 %v12313_v41, %v3551_v36  ;;  %v3600_v8 = vpop.f32.mrf.mxu1  ;;  %v9553_v6 = vld [vmem:[%s14424_s8 + $0x360] sm:$0xf0]  ;;  %v3704_v10 = vld [vmem:[%s12475_s19 + $0x18] sm:$0xff] }
 0x4ba   : > { %9688 = vpow2.f32 %v3755_v50  ;;  %v8882_v16 = vor.u32 %v9553_v6, %v8881_v15  ;;  %v3701_v50 = vld [vmem:[%s12475_s19] sm:$0xff]  ;;  %v9476_v6 = vld [vmem:[%s14424_s8 + $0xf8] sm:$0xf0] }
 0x4bb   : > { %v3691_v39 = vpop.f32.mrf.mxu3  ;;  %v3601_v49 = vadd.f32 %v3600_v8, %v3552_v17 }
 0x4bc   : > { %v12436_v62 = vadd.f32 %v3691_v39, %v3643_v37  ;;  %5434 = vmatpush.bf16.msrb.mxu1 %v8882_v16  ;;  %v8797_v16 = vld [vmem:[%s14424_s8 + $0x2a0] sm:$0xf] }
 0x4be   : > { %v3729_v29 = vmul.f32 0.5, %v12436_v62  ;;  %7346 = vst [vmem:[%s12329_s12 + $0x60] sm:$0xff] %v12436_v62 }
 0x4bf   : > { %v3649_v57 = vpop.f32.mrf.mxu2 }
 0x4c0   : > { %v9689_v63 = vpop.eup %9688  ;;  %v3757_v47 = vmul.f32 1.442695, %v3729_v29  ;;  %v3650_v35 = vadd.f32 %v3649_v57, %v3601_v49  ;;  %v3705_v57 = vld [vmem:[%s12475_s19 + $0x20] sm:$0xff] }
 0x4c1   : > { %3803 = vrot.lane.b32.xlu2 %v9689_v63, %s14500_s13 }
 0x4c2   : > { %9690 = vpow2.f32 %v3757_v47  ;;  %v3703_v47 = vld [vmem:[%s12475_s19 + $0x10] sm:$0xff] }
 0x4c3   : > { %v3693_v58 = vpop.f32.mrf.mxu3 }
 0x4c4   : > { %v12443_v56 = vadd.f32 %v3693_v58, %v3645_v46  ;;  %v9077_v46 = vld [vmem:[%s14424_s8 + $0x4d0] sm:$0xf] }
 0x4c6   : > { %v3730_v42 = vmul.f32 0.5, %v12443_v56  ;;  %7347 = vst [vmem:[%s12329_s12 + $0x68] sm:$0xff] %v12443_v56 }
 0x4c8   : > { %v9691_v30 = vpop.eup %9690  ;;  %v3759_v19 = vmul.f32 1.442695, %v3730_v42 }
 0x4c9   : > { %3805 = vrot.lane.b32.xlu0 %v9691_v30, %s14500_s13  ;;  %v8854_v30 = vor.u32 %v9546_v38, %v8853_v18 }
 0x4ca   : > { %9692 = vpow2.f32 %v3759_v19 }
 0x4cb   : > { %v3696_v45 = vpop.f32.mrf.mxu3  ;;  %5435 = vmatpush.bf16.msrb.mxu1 %v8854_v30 }
 0x4cc   : > { %v12450_v14 = vadd.f32 %v3696_v45, %v3648_v24 }
 0x4ce   : > { %v3731_v48 = vmul.f32 0.5, %v12450_v14  ;;  %7348 = vst [vmem:[%s12329_s12 + $0x70] sm:$0xff] %v12450_v14 }
 0x4d0   : > { %v9693_v40 = vpop.eup %9692  ;;  %v3761_v43 = vmul.f32 1.442695, %v3731_v48 }
 0x4d1   : > { %3807 = vrot.lane.b32.xlu1 %v9693_v40, %s14500_s13  ;;  %v3706_v40 = vld [vmem:[%s12475_s19 + $0x28] sm:$0xff] }
 0x4d2   : > { %9694 = vpow2.f32 %v3761_v43  ;;  %v9049_v43 = vld [vmem:[%s14424_s8 + $0x498] sm:$0xf] }
 0x4d3   : > { %v3698_v31 = vpop.f32.mrf.mxu3 }
 0x4d4   : > { %v12456_v33 = vadd.f32 %v3698_v31, %v3650_v35  ;;  %v9483_v31 = vld [vmem:[%s14424_s8 + $0x130] sm:$0xf0] }
 0x4d6   : > { %v3732_v41 = vmul.f32 0.5, %v12456_v33  ;;  %7349 = vst [vmem:[%s12329_s12 + $0x78] sm:$0xff] %v12456_v33 }
 0x4d8   : > { %v9695_v25 = vpop.eup %9694  ;;  %v3763_v61 = vmul.f32 1.442695, %v3732_v41  ;;  %v8825_v41 = vld [vmem:[%s14424_s8 + $0x2d8] sm:$0xf] }
 0x4d9   : > { %3809 = vrot.lane.b32.xlu2 %v9695_v25, %s14500_s13  ;;  %v9539_v25 = vld [vmem:[%s14424_s8 + $0x2f0] sm:$0xf0]  ;;  %s7373_s13 = sshll.u32 %s12329_s12, 4  ;;  %s7374_s13 = int_to_ptr.vmem [resolvable:$true] %s7373_s13 }
 0x4da   : > { %9696 = vpow2.f32 %v3763_v61  ;;  %v8826_v32 = vor.u32 %v9539_v25, %v8825_v41 }
 0x4db   : > { %v3782_v53 = vpop.permute.xlu0 %3781 }
 0x4dc   : > { %v3829_v44 = vmul.f32 %v3782_v53, %v3701_v50  ;;  %5436 = vmatpush.bf16.msrb.mxu1 %v8826_v32  ;;  %v9532_v50 = vld [vmem:[%s14424_s8 + $0x2b8] sm:$0xf0] }
 0x4de   : > { %v3845_v29 = vadd.f32 %v3829_v44, %v12326_v23  ;;  %v9602_v23 = vld [vmem:[%s14424_s8 + $0x4e8] sm:$0xf0]  ;;  %v8798_v44 = vor.u32 %v9532_v50, %v8797_v16 }
 0x4df   : > { %v9078_v58 = vor.u32 %v9602_v23, %v9077_v46 }
 0x4e0   : > { %v9697_v37 = vpop.eup %9696  ;;  %5437 = vmatpush.bf16.msrb.mxu1 %v8798_v44  ;;  %v8909_v44 = vld [vmem:[%s14424_s8 + $0x380] sm:$0xf] }
 0x4e1   : > { %3811 = vrot.lane.b32.xlu0 %v9697_v37, %s14647_s2  ;;  %5484 = vmatpush.bf16.msrb.mxu2 %v9078_v58  ;;  %v8769_v58 = vld [vmem:[%s14424_s8 + $0x268] sm:$0xf]  ;;  %s7372_s2 = scalar_lea.hbm %s14427_s11, %s9620_s26 }
 0x4e2   : > { %s7375_s25 = sshll.u32 %s7372_s2, 4  ;;  %s7376_s25 = int_to_ptr.hbm [resolvable:$true] %s7375_s25 }
 0x4e3   : > { %v3784_v39 = vpop.permute.xlu0 %3783  ;;  %v3790_v36 = vpop.permute.xlu2 %3789  ;;  %s9941_s14 = sshra.s32 %s7376_s25, 4  ;;  %s9942_s14 = int_to_ptr.hbm [resolvable:$true] %s9941_s14 }
 0x4e4   : > { %v3830_v9 = vmul.f32 %v3784_v39, %v3702_v28  ;;  %v3833_v52 = vmul.f32 %v3790_v36, %v3705_v57  ;;  %v8741_v57 = vld [vmem:[%s14424_s8 + $0x230] sm:$0xf]  ;;  %s9943_s15 = scalar_lea.hbm %s9942_s14, 128  ;;  %p9948_p0 = scmp.lt.s32.totalorder %s9942_s14, %s14427_s11 }
 0x4e5   : > { %p9944_p11 = scmp.ne.s32.totalorder %s9942_s14, %s9943_s15  ;;  %p9949_p1 = scmp.lt.s32.totalorder %s9947_s0, %s9943_s15 }
 0x4e6   : > { %v3846_v13 = vadd.f32 %v3830_v9, %v12335_v21  ;;  %v8629_v21 = vld [vmem:[%s14424_s8 + $0x150] sm:$0xf]  ;;  %v3849_v5 = vadd.f32 %v3833_v52, %v12356_v3  ;;  %v9588_v3 = vld [vmem:[%s14424_s8 + $0x478] sm:$0xf0]  ;;  %v8937_v52 = vld [vmem:[%s14424_s8 + $0x3b8] sm:$0xf] }
 0x4e7   : > { %v8630_v42 = vor.u32 %v9490_v0, %v8629_v21  ;;  %v9022_v15 = vor.u32 %v9588_v3, %v9021_v12  ;;  %v9469_v21 = vld [vmem:[%s14424_s8 + $0xc0] sm:$0xf0]  ;;  %p9945_p12 = pnand %p9944_p11, %p10092_p5  ;;  %p9950_p2 = por %p9949_p1, %p9948_p0 }
 0x4e8   : > { %v3861_v63 = vpack.c.bf16 %v3846_v13, %v3845_v29  ;;  %v9525_v0 = vld [vmem:[%s14424_s8 + $0x280] sm:$0xf0] }
 0x4e9   : > { %5386 = vmatpush.bf16.msrb.mxu0 %v8630_v42  ;;  %v8770_v38 = vor.u32 %v9525_v0, %v8769_v58  ;;  %v3710_v42 = vld [vmem:[%s12475_s19 + $0x48] sm:$0xff]  ;;  %v3713_v12 = vld [vmem:[%s12475_s19 + $0x60] sm:$0xff]  ;;  %p9946_p13 = pneg %p9945_p12 }
 0x4ea   : > { %8427 = vmatmul.msk.bf16.vlgmr.msra.gmra.mxu0 %vm3915_vm2, %v3861_v63  ;;  %8435 = vmatmul.msk.bf16.vlgmr.msra.gmra.mxu1 %vm3915_vm2, %v3861_v63 }
 0x4eb   : > { %8443 = vmatmul.msk.bf16.vlgmr.msra.gmra.mxu2 %vm3915_vm2, %v3861_v63  ;;  %8451 = vmatmul.msk.bf16.vlgmr.msra.gmra.mxu3 %vm3915_vm2, %v3861_v63  ;;  %v3786_v22 = vpop.permute.xlu1 %3785  ;;  %v3792_v49 = vpop.permute.xlu2 %3791  ;;  %p9951_p3 = pnand %p9950_p2, %p9946_p13 }
 0x4ec   : > { %v3831_v19 = vmul.f32 %v3786_v22, %v3703_v47  ;;  %v3834_v61 = vmul.f32 %v3792_v49, %v3706_v40  ;;  %v3709_v22 = vld [vmem:[%s12475_s19 + $0x40] sm:$0xff]  ;;  %v8993_v47 = vld [vmem:[%s14424_s8 + $0x428] sm:$0xf]  ;;  %5438 = vmatpush.bf16.msrb.mxu1 %v8770_v38  ;;  %v9518_v40 = vld [vmem:[%s14424_s8 + $0x248] sm:$0xf0] }
 0x4ed   : > { %v3711_v49 = vld [vmem:[%s12475_s19 + $0x50] sm:$0xff]  ;;  %v9606_v38 = vld [vmem:[%s14424_s8 + $0x50c] sm:$0xf] }
 0x4ee   : > { %v3847_v17 = vadd.f32 %v3831_v19, %v12342_v59  ;;  %v9595_v59 = vld [vmem:[%s14424_s8 + $0x4b0] sm:$0xf0]  ;;  %v3850_v55 = vadd.f32 %v3834_v61, %v12363_v7  ;;  %v8573_v7 = vld [vmem:[%s14424_s8 + $0xe0] sm:$0xf] }
 0x4ef   : > { %v9050_v35 = vor.u32 %v9595_v59, %v9049_v43  ;;  %v8574_v28 = vor.u32 %v9476_v6, %v8573_v7  ;;  %v3714_v7 = vld [vmem:[%s12475_s19 + $0x68] sm:$0xff] }
 0x4f0   : > { %v3863_v54 = vpack.c.bf16 %v3850_v55, %v3849_v5  ;;  %v9455_v5 = vld [vmem:[%s14424_s8 + $0x50] sm:$0xf0] }
 0x4f1   : > { %5485 = vmatpush.bf16.msrb.mxu2 %v9050_v35  ;;  %v3712_v35 = vld [vmem:[%s12475_s19 + $0x58] sm:$0xff] }
 0x4f3   : > { %v3788_v24 = vpop.permute.xlu1 %3787 }
 0x4f4   : > { %v3832_v45 = vmul.f32 %v3788_v24, %v3704_v10 }
 0x4f5   : > { %5486 = vmatpush.bf16.msrb.mxu2 %v9022_v15 }
 0x4f6   : > { %v3848_v48 = vadd.f32 %v3832_v45, %v12349_v60  ;;  %v8601_v60 = vld [vmem:[%s14424_s8 + $0x118] sm:$0xf] }
 0x4f7   : > { %v8602_v53 = vor.u32 %v9483_v31, %v8601_v60  ;;  %v8742_v60 = vor.u32 %v9518_v40, %v8741_v57 }
 0x4f8   : > { %v3862_v8 = vpack.c.bf16 %v3848_v48, %v3847_v17  ;;  %v8965_v17 = vld [vmem:[%s14424_s8 + $0x3f0] sm:$0xf] }
 0x4f9   : > { %5387 = vmatpush.bf16.msrb.mxu0 %v8602_v53  ;;  %5439 = vmatpush.bf16.msrb.mxu1 %v8742_v60 }
 0x4fa   : > { %8428 = vmatmul.msk.bf16.gmra.mxu0 %vm3915_vm2, %v3862_v8  ;;  %8436 = vmatmul.msk.bf16.gmra.mxu1 %vm3915_vm2, %v3862_v8 }
 0x4fb   : > { %8444 = vmatmul.msk.bf16.gmra.mxu2 %vm3915_vm2, %v3862_v8  ;;  %8452 = vmatmul.msk.bf16.gmra.mxu3 %vm3915_vm2, %v3862_v8  ;;  %v9462_v8 = vld [vmem:[%s14424_s8 + $0x88] sm:$0xf0] }
 0x4fd   : > { %5388 = vmatpush.bf16.msrb.mxu0 %v8574_v28 }
 0x503   : > { %v3798_v46 = vpop.permute.xlu2 %3797 }
 0x504   : > { %v3837_v30 = vmul.f32 %v3798_v46, %v3709_v22  ;;  %v8685_v22 = vld [vmem:[%s14424_s8 + $0x1c0] sm:$0xf] }
 0x506   : > { %v3853_v36 = vadd.f32 %v3837_v30, %v12408_v26  ;;  %v9574_v26 = vld [vmem:[%s14424_s8 + $0x408] sm:$0xf0]  ;;  %v8659_v30 = vld [vmem:[%s14424_s8 + $0x1a4] sm:$0xf0] }
 0x507   : > { %v8966_v48 = vor.u32 %v9574_v26, %v8965_v17  ;;  %v8883_v17 = vld [vmem:[%s14424_s8 + $0x364] sm:$0xf0] }
 0x50a   : > { %8429 = vmatmul.msk.bf16.gmra.mxu0 %vm3915_vm2, %v3863_v54  ;;  %8437 = vmatmul.msk.bf16.gmra.mxu1 %vm3915_vm2, %v3863_v54 }
 0x50b   : > { %8445 = vmatmul.msk.bf16.gmra.mxu2 %vm3915_vm2, %v3863_v54  ;;  %8453 = vmatmul.msk.bf16.gmra.mxu3 %vm3915_vm2, %v3863_v54  ;;  %v3794_v51 = vpop.permute.xlu0 %3793  ;;  %v8713_v54 = vld [vmem:[%s14424_s8 + $0x1f8] sm:$0xf] }
 0x50c   : > { %v3835_v37 = vmul.f32 %v3794_v51, %v3707_v34  ;;  %v9511_v34 = vld [vmem:[%s14424_s8 + $0x210] sm:$0xf0] }
 0x50e   : > { %v3851_v29 = vadd.f32 %v3835_v37, %v12376_v11  ;;  %v9581_v11 = vld [vmem:[%s14424_s8 + $0x440] sm:$0xf0] }
 0x50f   : > { %v8994_v23 = vor.u32 %v9581_v11, %v8993_v47 }
 0x511   : > { %5487 = vmatpush.bf16.msrb.mxu2 %v8994_v23 }
 0x513   : > { %v3796_v39 = vpop.permute.xlu1 %3795 }
 0x514   : > { %v3836_v9 = vmul.f32 %v3796_v39, %v3708_v4  ;;  %v8714_v4 = vor.u32 %v9511_v34, %v8713_v54  ;;  %v9560_v39 = vld [vmem:[%s14424_s8 + $0x398] sm:$0xf0] }
 0x515   : > { %5488 = vmatpush.bf16.msrb.mxu2 %v8966_v48 }
 0x516   : > { %v3852_v13 = vadd.f32 %v3836_v9, %v12395_v1  ;;  %v8545_v1 = vld [vmem:[%s14424_s8 + $0xa8] sm:$0xf]  ;;  %5440 = vmatpush.bf16.msrb.mxu1 %v8714_v4 }
 0x517   : > { %v8546_v18 = vor.u32 %v9469_v21, %v8545_v1  ;;  %v9504_v1 = vld [vmem:[%s14424_s8 + $0x1d8] sm:$0xf0] }
 0x518   : > { %v3864_v63 = vpack.c.bf16 %v3852_v13, %v3851_v29  ;;  %v3716_v29 = vld [vmem:[%s12475_s19 + $0x78] sm:$0xff]  ;;  %v8461_v13 = vld [vmem:[%s14424_s8] sm:$0xf]  ;;  %v8686_v23 = vor.u32 %v9504_v1, %v8685_v22 }
 0x519   : > { %5389 = vmatpush.bf16.msrb.mxu0 %v8546_v18  ;;  %v9592_v1 = vld [vmem:[%s14424_s8 + $0x49c] sm:$0xf] }
 0x51a   : > { %8430 = vmatmul.msk.bf16.gmra.mxu0 %vm3915_vm2, %v3864_v63  ;;  %8438 = vmatmul.msk.bf16.gmra.mxu1 %vm3915_vm2, %v3864_v63 }
 0x51b   : > { %8446 = vmatmul.msk.bf16.gmra.mxu2 %vm3915_vm2, %v3864_v63  ;;  %8454 = vmatmul.msk.bf16.gmra.mxu3 %vm3915_vm2, %v3864_v63  ;;  %v3804_v31 = vpop.permute.xlu2 %3803  ;;  %v9448_v63 = vld [vmem:[%s14424_s8 + $0x18] sm:$0xf0] }
 0x51c   : > { %v3840_v25 = vmul.f32 %v3804_v31, %v3712_v35  ;;  %v8462_v11 = vor.u32 %v9448_v63, %v8461_v13  ;;  %5441 = vmatpush.bf16.msrb.mxu1 %v8686_v23 }
 0x51e   : > { %v3856_v53 = vadd.f32 %v3840_v25, %v12429_v27  ;;  %v8489_v27 = vld [vmem:[%s14424_s8 + $0x38] sm:$0xf] }
 0x51f   : > { %v8490_v51 = vor.u32 %v9455_v5, %v8489_v27  ;;  %v8631_v5 = vld [vmem:[%s14424_s8 + $0x16c] sm:$0xf0] }
 0x523   : > { %v3800_v10 = vpop.permute.xlu0 %3799 }
 0x524   : > { %v3838_v19 = vmul.f32 %v3800_v10, %v3710_v42  ;;  %v9107_v42 = vld [vmem:[%s14424_s8 + $0x524] sm:$0xf0]  ;;  %v9613_v10 = vld [vmem:[%s14424_s8 + $0x544] sm:$0xf] }
 0x526   : > { %v3854_v24 = vadd.f32 %v3838_v19, %v12415_v2  ;;  %v8517_v2 = vld [vmem:[%s14424_s8 + $0x70] sm:$0xf] }
 0x527   : > { %v8518_v59 = vor.u32 %v9462_v8, %v8517_v2  ;;  %v3875_v2 = vld [vmem:[%s14423_s7] sm:$0xf] }
 0x528   : > { %v3865_v45 = vpack.c.bf16 %v3854_v24, %v3853_v36  ;;  %v9135_v36 = vld [vmem:[%s14424_s8 + $0x55c] sm:$0xf0]  ;;  %v12710_v57 = vperm.slane %v3875_v2, 0  ;;  %v12712_v40 = vperm.slane %v3875_v2, 1  ;;  %v12726_v27 = vperm.slane %v3875_v2, 3 }
 0x529   : > { %5390 = vmatpush.bf16.msrb.mxu0 %v8518_v59  ;;  %v9138_v24 = vor.u32 %v9613_v10, %v9135_v36  ;;  %v9079_v59 = vld [vmem:[%s14424_s8 + $0x4ec] sm:$0xf0]  ;;  %v8603_v10 = vld [vmem:[%s14424_s8 + $0x134] sm:$0xf0] }
 0x52a   : > { %8431 = vmatmul.msk.bf16.gmra.mxu0 %vm3915_vm2, %v3865_v45  ;;  %8439 = vmatmul.msk.bf16.gmra.mxu1 %vm3915_vm2, %v3865_v45 }
 0x52b   : > { %8447 = vmatmul.msk.bf16.gmra.mxu2 %vm3915_vm2, %v3865_v45  ;;  %8455 = vmatmul.msk.bf16.gmra.mxu3 %vm3915_vm2, %v3865_v45  ;;  %v3802_v43 = vpop.permute.xlu1 %3801  ;;  %v9550_v45 = vld [vmem:[%s14424_s8 + $0x34c] sm:$0xf] }
 0x52c   : > { %v3839_v41 = vmul.f32 %v3802_v43, %v3711_v49  ;;  %5735 = vmatpush.bf16.msra.mxu3 %v9138_v24  ;;  %v8886_v26 = vor.u32 %v9550_v45, %v8883_v17  ;;  %v9599_v43 = vld [vmem:[%s14424_s8 + $0x4d4] sm:$0xf] }
 0x52d   : > { %5391 = vmatpush.bf16.msrb.mxu0 %v8490_v51 }
 0x52e   : > { %v3855_v61 = vadd.f32 %v3839_v41, %v12422_v20  ;;  %v9567_v20 = vld [vmem:[%s14424_s8 + $0x3d0] sm:$0xf0]  ;;  %5630 = vmatpush.bf16.msra.mxu1 %v8886_v26  ;;  %v9082_v41 = vor.u32 %v9599_v43, %v9079_v59 }
 0x52f   : > { %v8938_v55 = vor.u32 %v9567_v20, %v8937_v52 }
 0x530   : > { %v3866_v32 = vpack.c.bf16 %v3856_v53, %v3855_v61  ;;  %v12722_v53 = vperm.slane %v3875_v2, 2  ;;  %v9536_v2 = vld [vmem:[%s14424_s8 + $0x2dc] sm:$0xf] }
 0x531   : > { %5489 = vmatpush.bf16.msrb.mxu2 %v8938_v55  ;;  %5392 = vmatpush.bf16.msrb.mxu0 %v8462_v11  ;;  %v9487_v55 = vld [vmem:[%s14424_s8 + $0x154] sm:$0xf] }
 0x532   : > { %v8634_v4 = vor.u32 %v9487_v55, %v8631_v5 }
 0x533   : > { %v3810_v9 = vpop.permute.xlu2 %3809 }
 0x53a   : > { %8432 = vmatmul.msk.bf16.gmra.mxu0 %vm3915_vm2, %v3866_v32  ;;  %8440 = vmatmul.msk.bf16.gmra.mxu1 %vm3915_vm2, %v3866_v32 }
 0x53b   : > { %8448 = vmatmul.msk.bf16.gmra.mxu2 %vm3915_vm2, %v3866_v32  ;;  %8456 = vmatmul.msk.bf16.gmra.mxu3 %vm3915_vm2, %v3866_v32  ;;  %v3806_v3 = vpop.permute.xlu0 %3805 }
 0x53c   : > { %v3841_v15 = vmul.f32 %v3806_v3, %v3713_v12 }
 0x53e   : > { %v3857_v50 = vadd.f32 %v3841_v15, %v12436_v62  ;;  %v8910_v62 = vor.u32 %v9560_v39, %v8909_v44  ;;  %v8855_v15 = vld [vmem:[%s14424_s8 + $0x32c] sm:$0xf0] }
 0x540   : > { %5490 = vmatpush.bf16.msrb.mxu2 %v8910_v62 }
 0x543   : > { %v3808_v6 = vpop.permute.xlu1 %3807 }
 0x544   : > { %v3842_v16 = vmul.f32 %v3808_v6, %v3714_v7  ;;  %v9543_v7 = vld [vmem:[%s14424_s8 + $0x314] sm:$0xf] }
 0x546   : > { %v3858_v37 = vadd.f32 %v3842_v16, %v12443_v56  ;;  %v3715_v56 = vld [vmem:[%s12475_s19 + $0x70] sm:$0xff] }
 0x547   : > { %v3843_v47 = vmul.f32 %v3810_v9, %v3715_v56 }
 0x548   : > { %v3867_v28 = vpack.c.bf16 %v3858_v37, %v3857_v50  ;;  %v8858_v50 = vor.u32 %v9543_v7, %v8855_v15 }
 0x549   : > { %v3859_v58 = vadd.f32 %v3843_v47, %v12450_v14  ;;  %v9110_v14 = vor.u32 %v9606_v38, %v9107_v42 }
 0x54a   : > { %8433 = vmatmul.msk.bf16.gmra.mxu0 %vm3915_vm2, %v3867_v28  ;;  %8441 = vmatmul.msk.bf16.gmra.mxu1 %vm3915_vm2, %v3867_v28 }
 0x54b   : > { %8449 = vmatmul.msk.bf16.gmra.mxu2 %vm3915_vm2, %v3867_v28  ;;  %8457 = vmatmul.msk.bf16.gmra.mxu3 %vm3915_vm2, %v3867_v28 }
 0x54c   : > { %5679 = vmatpush.bf16.msra.mxu2 %v9110_v14  ;;  %5631 = vmatpush.bf16.msra.mxu1 %v8858_v50 }
 0x550   : > { %5680 = vmatpush.bf16.msra.mxu2 %v9082_v41 }
 0x553   : > { %v3812_v46 = vpop.permute.xlu0 %3811 }
 0x554   : > { %v3844_v21 = vmul.f32 %v3812_v46, %v3716_v29  ;;  %v9051_v46 = vld [vmem:[%s14424_s8 + $0x4b4] sm:$0xf0] }
 0x556   : > { %v3860_v0 = vadd.f32 %v3844_v21, %v12456_v33  ;;  %v9494_v33 = vld [vmem:[%s14424_s8 + $0x18c] sm:$0xf] }
 0x557   : > { %v8662_v19 = vor.u32 %v9494_v33, %v8659_v30  ;;  %v9480_v30 = vld [vmem:[%s14424_s8 + $0x11c] sm:$0xf] }
 0x558   : > { %v3868_v18 = vpack.c.bf16 %v3860_v0, %v3859_v58  ;;  %v9054_v0 = vor.u32 %v9592_v1, %v9051_v46  ;;  %v8606_v45 = vor.u32 %v9480_v30, %v8603_v10  ;;  %v9529_v1 = vld [vmem:[%s14424_s8 + $0x2a4] sm:$0xf]  ;;  %v8799_v46 = vld [vmem:[%s14424_s8 + $0x2bc] sm:$0xf0] }
 0x559   : > { %5581 = vmatpush.bf16.msra.mxu0 %v8662_v19 }
 0x55a   : > { %8434 = vmatmul.msk.bf16.gmra.mxu0 %vm3915_vm2, %v3868_v18  ;;  %8442 = vmatmul.msk.bf16.gmra.mxu1 %vm3915_vm2, %v3868_v18 }
 0x55b   : > { %8450 = vmatmul.msk.bf16.gmra.mxu2 %vm3915_vm2, %v3868_v18  ;;  %8458 = vmatmul.msk.bf16.gmra.mxu3 %vm3915_vm2, %v3868_v18 }
 0x55c   : > { %5681 = vmatpush.bf16.msra.mxu2 %v9054_v0 }
 0x55d   : > { %5582 = vmatpush.bf16.msra.mxu0 %v8634_v4 }
 0x561   : > { %5583 = vmatpush.bf16.msra.mxu0 %v8606_v45 }
 0x567   : > { %v3962_v48 = vpop.f32.mrf.mxu0  ;;  %v4011_v8 = vpop.f32.mrf.mxu1 }
 0x568   : > { %v3963_v49 = vadd.f32 %v3962_v48, %v12710_v57  ;;  %v4012_v60 = vadd.f32 %v4011_v8, %v12712_v40  ;;  %v8827_v48 = vld [vmem:[%s14424_s8 + $0x2f4] sm:$0xf0] }
 0x569   : > { %v8830_v43 = vor.u32 %v9536_v2, %v8827_v48  ;;  %v9578_v48 = vld [vmem:[%s14424_s8 + $0x42c] sm:$0xf] }
 0x56a   : > { %v4149_v20 = vmax.f32 %v3963_v49, 0.0  ;;  %v4150_v54 = vmax.f32 %v4012_v60, 0.0 }
 0x56b   : > { %5632 = vmatpush.bf16.msra.mxu1 %v8830_v43 }
 0x56e   : > { %v4060_v35 = vpop.f32.mrf.mxu2  ;;  %v4109_v31 = vpop.f32.mrf.mxu3 }
 0x56f   : > { %v3964_v25 = vpop.f32.mrf.mxu0  ;;  %v4013_v61 = vpop.f32.mrf.mxu1  ;;  %v4061_v6 = vadd.f32 %v4060_v35, %v12722_v53  ;;  %v4110_v16 = vadd.f32 %v4109_v31, %v12726_v27 }
 0x570   : > { %v3965_v32 = vadd.f32 %v3964_v25, %v12710_v57  ;;  %v4014_v52 = vadd.f32 %v4013_v61, %v12712_v40 }
 0x571   : > { %v4151_v9 = vmax.f32 %v4061_v6, 0.0  ;;  %v4152_v29 = vmax.f32 %v4110_v16, 0.0 }
 0x572   : > { %v4153_v34 = vmax.f32 %v3965_v32, 0.0  ;;  %v4154_v51 = vmax.f32 %v4014_v52, 0.0 }
 0x574   : > { %v12734_v12 = vpack.c.bf16 %v4153_v34, %v4149_v20  ;;  %v12736_v3 = vpack.c.bf16 %v4154_v51, %v4150_v54  ;;  %v9585_v34 = vld [vmem:[%s14424_s8 + $0x464] sm:$0xf]  ;;  %v9023_v51 = vld [vmem:[%s14424_s8 + $0x47c] sm:$0xf0] }
 0x575   : > { %v9026_v6 = vor.u32 %v9585_v34, %v9023_v51 }
 0x576   : > { %14648 = vst [vmem:[#allocation21_spill] sm:$0xff] %v12736_v3  ;;  %v4062_v37 = vpop.f32.mrf.mxu2  ;;  %v4111_v28 = vpop.f32.mrf.mxu3  ;;  %5393 = vmatmul.bf16.vlgmr.msrb.gmra.mxu0 %v12734_v12  ;;  %5442 = vmatmul.bf16.vlgmr.msrb.gmra.mxu1 %v12736_v3 }
 0x577   : > { %v4063_v44 = vadd.f32 %v4062_v37, %v12722_v53  ;;  %v4112_v39 = vadd.f32 %v4111_v28, %v12726_v27  ;;  %v3967_v62 = vpop.f32.mrf.mxu0  ;;  %v4016_v56 = vpop.f32.mrf.mxu1  ;;  %5682 = vmatpush.bf16.msra.mxu2 %v9026_v6  ;;  %v8771_v6 = vld [vmem:[%s14424_s8 + $0x284] sm:$0xf0] }
 0x578   : > { %v3968_v11 = vadd.f32 %v3967_v62, %v12710_v57  ;;  %v4017_v23 = vadd.f32 %v4016_v56, %v12712_v40  ;;  %v8575_v62 = vld [vmem:[%s14424_s8 + $0xfc] sm:$0xf0] }
 0x579   : > { %v4155_v13 = vmax.f32 %v4063_v44, 0.0  ;;  %v4156_v63 = vmax.f32 %v4112_v39, 0.0  ;;  %v9473_v39 = vld [vmem:[%s14424_s8 + $0xe4] sm:$0xf] }
 0x57a   : > { %v4157_v33 = vmax.f32 %v3968_v11, 0.0  ;;  %v4158_v19 = vmax.f32 %v4017_v23, 0.0 }
 0x57b   : > { %v12750_v22 = vpack.c.bf16 %v4155_v13, %v4151_v9  ;;  %v12752_v47 = vpack.c.bf16 %v4156_v63, %v4152_v29  ;;  %v8578_v13 = vor.u32 %v9473_v39, %v8575_v62 }
 0x57d   : > { %14649 = vst [vmem:[#allocation23_spill] sm:$0xff] %v12750_v22  ;;  %5491 = vmatmul.bf16.vlgmr.msrb.gmra.mxu2 %v12750_v22  ;;  %9159 = vmatmul.msk.bf16.vlgmr.msrb.gmra.mxu3 %vm1784_vm0, %v12752_v47 }
 0x57e   : > { %14650 = vst [vmem:[#allocation24_spill] sm:$0xff] %v12752_v47  ;;  %v4065_v21 = vpop.f32.mrf.mxu2  ;;  %v4114_v58 = vpop.f32.mrf.mxu3  ;;  %5584 = vmatpush.bf16.msra.mxu0 %v8578_v13 }
 0x57f   : > { %v3969_v18 = vpop.f32.mrf.mxu0  ;;  %v4018_v38 = vpop.f32.mrf.mxu1  ;;  %v4066_v8 = vadd.f32 %v4065_v21, %v12722_v53  ;;  %v4115_v49 = vadd.f32 %v4114_v58, %v12726_v27  ;;  %v8802_v58 = vor.u32 %v9529_v1, %v8799_v46 }
 0x580   : > { %v3970_v42 = vadd.f32 %v3969_v18, %v12710_v57  ;;  %v4019_v14 = vadd.f32 %v4018_v38, %v12712_v40 }
 0x581   : > { %v4159_v61 = vmax.f32 %v4066_v8, 0.0  ;;  %v4160_v32 = vmax.f32 %v4115_v49, 0.0  ;;  %5633 = vmatpush.bf16.msra.mxu1 %v8802_v58  ;;  %v8995_v8 = vld [vmem:[%s14424_s8 + $0x444] sm:$0xf0] }
 0x582   : > { %v4161_v36 = vmax.f32 %v3970_v42, 0.0  ;;  %v4162_v24 = vmax.f32 %v4019_v14, 0.0 }
 0x584   : > { %v12773_v17 = vpack.c.bf16 %v4161_v36, %v4157_v33  ;;  %v12775_v26 = vpack.c.bf16 %v4162_v24, %v4158_v19 }
 0x586   : > { %v4067_v59 = vpop.f32.mrf.mxu2  ;;  %v4116_v60 = vpop.f32.mrf.mxu3  ;;  %5398 = vmatmul.bf16.gmra.mxu0 %v12773_v17  ;;  %5447 = vmatmul.bf16.gmra.mxu1 %v12775_v26 }
 0x587   : > { %v4068_v35 = vadd.f32 %v4067_v59, %v12722_v53  ;;  %v4117_v31 = vadd.f32 %v4116_v60, %v12726_v27  ;;  %v3972_v41 = vpop.f32.mrf.mxu0  ;;  %v4021_v25 = vpop.f32.mrf.mxu1  ;;  %v8998_v60 = vor.u32 %v9578_v48, %v8995_v8  ;;  %v9459_v48 = vld [vmem:[%s14424_s8 + $0x74] sm:$0xf]  ;;  %v8519_v8 = vld [vmem:[%s14424_s8 + $0x8c] sm:$0xf0] }
 0x588   : > { %v3973_v54 = vadd.f32 %v3972_v41, %v12710_v57  ;;  %v4022_v4 = vadd.f32 %v4021_v25, %v12712_v40 }
 0x589   : > { %v4163_v52 = vmax.f32 %v4068_v35, 0.0  ;;  %v4164_v20 = vmax.f32 %v4117_v31, 0.0  ;;  %5683 = vmatpush.bf16.msra.mxu2 %v8998_v60  ;;  %v8522_v60 = vor.u32 %v9459_v48, %v8519_v8  ;;  %v9508_v8 = vld [vmem:[%s14424_s8 + $0x1fc] sm:$0xf] }
 0x58a   : > { %v4165_v44 = vmax.f32 %v3973_v54, 0.0  ;;  %v4166_v56 = vmax.f32 %v4022_v4, 0.0 }
 0x58b   : > { %v12789_v55 = vpack.c.bf16 %v4163_v52, %v4159_v61  ;;  %v12791_v5 = vpack.c.bf16 %v4164_v20, %v4160_v32  ;;  %v9466_v32 = vld [vmem:[%s14424_s8 + $0xac] sm:$0xf]  ;;  %v8547_v52 = vld [vmem:[%s14424_s8 + $0xc4] sm:$0xf0] }
 0x58c   : > { %v8550_v51 = vor.u32 %v9466_v32, %v8547_v52 }
 0x58d   : > { %14651 = vst [vmem:[#allocation8_spill] sm:$0xff] %v12789_v55  ;;  %5496 = vmatmul.bf16.gmra.mxu2 %v12789_v55  ;;  %9160 = vmatmul.msk.bf16.gmra.mxu3 %vm1784_vm0, %v12791_v5 }
 0x58e   : > { %14652 = vst [vmem:[#allocation29_spill] sm:$0xff] %v12791_v5  ;;  %v4070_v7 = vpop.f32.mrf.mxu2  ;;  %v4119_v15 = vpop.f32.mrf.mxu3  ;;  %5585 = vmatpush.bf16.msra.mxu0 %v8550_v51 }
 0x58f   : > { %v3974_v16 = vpop.f32.mrf.mxu0  ;;  %v4023_v50 = vpop.f32.mrf.mxu1  ;;  %v4071_v23 = vadd.f32 %v4070_v7, %v12722_v53  ;;  %v4120_v21 = vadd.f32 %v4119_v15, %v12726_v27  ;;  %v9522_v15 = vld [vmem:[%s14424_s8 + $0x26c] sm:$0xf] }
 0x590   : > { %v3975_v37 = vadd.f32 %v3974_v16, %v12710_v57  ;;  %v4024_v28 = vadd.f32 %v4023_v50, %v12712_v40 }
 0x591   : > { %v4167_v30 = vmax.f32 %v4071_v23, 0.0  ;;  %v4168_v10 = vmax.f32 %v4120_v21, 0.0 }
 0x592   : > { %v4169_v9 = vmax.f32 %v3975_v37, 0.0  ;;  %v4170_v29 = vmax.f32 %v4024_v28, 0.0  ;;  %v8774_v37 = vor.u32 %v9522_v15, %v8771_v6  ;;  %5586 = vmatpush.bf16.msra.mxu0 %v8522_v60 }
 0x594   : > { %v12812_v63 = vpack.c.bf16 %v4169_v9, %v4165_v44  ;;  %v12814_v11 = vpack.c.bf16 %v4170_v29, %v4166_v56  ;;  %5634 = vmatpush.bf16.msra.mxu1 %v8774_v37 }
 0x596   : > { %v4072_v0 = vpop.f32.mrf.mxu2  ;;  %v4121_v18 = vpop.f32.mrf.mxu3  ;;  %5403 = vmatmul.bf16.gmra.mxu0 %v12812_v63  ;;  %5452 = vmatmul.bf16.gmra.mxu1 %v12814_v11 }
 0x597   : > { %v4073_v38 = vadd.f32 %v4072_v0, %v12722_v53  ;;  %v4122_v42 = vadd.f32 %v4121_v18, %v12726_v27  ;;  %v3977_v14 = vpop.f32.mrf.mxu0  ;;  %v4026_v33 = vpop.f32.mrf.mxu1  ;;  %v9571_v0 = vld [vmem:[%s14424_s8 + $0x3f4] sm:$0xf]  ;;  %v8967_v18 = vld [vmem:[%s14424_s8 + $0x40c] sm:$0xf0] }
 0x598   : > { %v3978_v2 = vadd.f32 %v3977_v14, %v12710_v57  ;;  %v4027_v49 = vadd.f32 %v4026_v33, %v12712_v40  ;;  %v8970_v33 = vor.u32 %v9571_v0, %v8967_v18 }
 0x599   : > { %v4171_v19 = vmax.f32 %v4073_v38, 0.0  ;;  %v4172_v36 = vmax.f32 %v4122_v42, 0.0 }
 0x59a   : > { %v4173_v61 = vmax.f32 %v3978_v2, 0.0  ;;  %v4174_v20 = vmax.f32 %v4027_v49, 0.0  ;;  %5684 = vmatpush.bf16.msra.mxu2 %v8970_v33  ;;  %v8491_v33 = vld [vmem:[%s14424_s8 + $0x54] sm:$0xf0] }
 0x59b   : > { %v12828_v24 = vpack.c.bf16 %v4171_v19, %v4167_v30  ;;  %v12830_v45 = vpack.c.bf16 %v4172_v36, %v4168_v10 }
 0x59d   : > { %5501 = vmatmul.bf16.gmra.mxu2 %v12828_v24  ;;  %9161 = vmatmul.msk.bf16.gmra.mxu3 %vm1784_vm0, %v12830_v45 }
 0x59e   : > { %v4075_v43 = vpop.f32.mrf.mxu2  ;;  %v4124_v59 = vpop.f32.mrf.mxu3 }
 0x59f   : > { %v3979_v35 = vpop.f32.mrf.mxu0  ;;  %v4028_v31 = vpop.f32.mrf.mxu1  ;;  %v4076_v16 = vadd.f32 %v4075_v43, %v12722_v53  ;;  %v4125_v50 = vadd.f32 %v4124_v59, %v12726_v27 }
 0x5a0   : > { %v3980_v41 = vadd.f32 %v3979_v35, %v12710_v57  ;;  %v4029_v25 = vadd.f32 %v4028_v31, %v12712_v40 }
 0x5a1   : > { %v4175_v29 = vmax.f32 %v4076_v16, 0.0  ;;  %v4176_v13 = vmax.f32 %v4125_v50, 0.0 }
 0x5a2   : > { %v4177_v54 = vmax.f32 %v3980_v41, 0.0  ;;  %v4178_v34 = vmax.f32 %v4029_v25, 0.0  ;;  %v9515_v41 = vld [vmem:[%s14424_s8 + $0x234] sm:$0xf]  ;;  %v8743_v25 = vld [vmem:[%s14424_s8 + $0x24c] sm:$0xf0] }
 0x5a3   : > { %v8746_v52 = vor.u32 %v9515_v41, %v8743_v25 }
 0x5a4   : > { %v12851_v4 = vpack.c.bf16 %v4177_v54, %v4173_v61  ;;  %v12853_v7 = vpack.c.bf16 %v4178_v34, %v4174_v20 }
 0x5a5   : > { %5635 = vmatpush.bf16.msra.mxu1 %v8746_v52 }
 0x5a6   : > { %v4077_v28 = vpop.f32.mrf.mxu2  ;;  %v4126_v44 = vpop.f32.mrf.mxu3  ;;  %5408 = vmatmul.bf16.gmra.mxu0 %v12851_v4  ;;  %5457 = vmatmul.bf16.gmra.mxu1 %v12853_v7 }
 0x5a7   : > { %v4078_v39 = vadd.f32 %v4077_v28, %v12722_v53  ;;  %v4127_v62 = vadd.f32 %v4126_v44, %v12726_v27  ;;  %v3982_v56 = vpop.f32.mrf.mxu0  ;;  %v4031_v9 = vpop.f32.mrf.mxu1 }
 0x5a8   : > { %v3983_v58 = vadd.f32 %v3982_v56, %v12710_v57  ;;  %v4032_v38 = vadd.f32 %v4031_v9, %v12712_v40  ;;  %v9564_v56 = vld [vmem:[%s14424_s8 + $0x3bc] sm:$0xf]  ;;  %v8939_v9 = vld [vmem:[%s14424_s8 + $0x3d4] sm:$0xf0] }
 0x5a9   : > { %v4179_v1 = vmax.f32 %v4078_v39, 0.0  ;;  %v4180_v46 = vmax.f32 %v4127_v62, 0.0 }
 0x5aa   : > { %v4181_v2 = vmax.f32 %v3983_v58, 0.0  ;;  %v4182_v49 = vmax.f32 %v4032_v38, 0.0 }
 0x5ab   : > { %v12867_v23 = vpack.c.bf16 %v4179_v1, %v4175_v29  ;;  %v12869_v21 = vpack.c.bf16 %v4180_v46, %v4176_v13  ;;  %v8942_v46 = vor.u32 %v9564_v56, %v8939_v9 }
 0x5ad   : > { %5506 = vmatmul.bf16.gmra.mxu2 %v12867_v23  ;;  %9162 = vmatmul.msk.bf16.gmra.mxu3 %vm1784_vm0, %v12869_v21 }
 0x5ae   : > { %v4080_v42 = vpop.f32.mrf.mxu2  ;;  %v4129_v14 = vpop.f32.mrf.mxu3  ;;  %5685 = vmatpush.bf16.msra.mxu2 %v8942_v46  ;;  %v9501_v46 = vld [vmem:[%s14424_s8 + $0x1c4] sm:$0xf] }
 0x5af   : > { %v3984_v30 = vpop.f32.mrf.mxu0  ;;  %v4033_v10 = vpop.f32.mrf.mxu1  ;;  %v4081_v61 = vadd.f32 %v4080_v42, %v12722_v53  ;;  %v4130_v32 = vadd.f32 %v4129_v14, %v12726_v27  ;;  %v9452_v14 = vld [vmem:[%s14424_s8 + $0x3c] sm:$0xf] }
 0x5b0   : > { %v3985_v19 = vadd.f32 %v3984_v30, %v12710_v57  ;;  %v4034_v36 = vadd.f32 %v4033_v10, %v12712_v40 }
 0x5b1   : > { %v4183_v16 = vmax.f32 %v4081_v61, 0.0  ;;  %v4184_v50 = vmax.f32 %v4130_v32, 0.0 }
 0x5b2   : > { %v4185_v43 = vmax.f32 %v3985_v19, 0.0  ;;  %v4186_v59 = vmax.f32 %v4034_v36, 0.0  ;;  %v8494_v36 = vor.u32 %v9452_v14, %v8491_v33 }
 0x5b4   : > { %v12890_v35 = vpack.c.bf16 %v4185_v43, %v4181_v2  ;;  %v12892_v31 = vpack.c.bf16 %v4186_v59, %v4182_v49  ;;  %5587 = vmatpush.bf16.msra.mxu0 %v8494_v36  ;;  %v8715_v49 = vld [vmem:[%s14424_s8 + $0x214] sm:$0xf0] }
 0x5b5   : > { %v8718_v60 = vor.u32 %v9508_v8, %v8715_v49 }
 0x5b6   : > { %v4082_v20 = vpop.f32.mrf.mxu2  ;;  %v4131_v54 = vpop.f32.mrf.mxu3  ;;  %5413 = vmatmul.bf16.gmra.mxu0 %v12890_v35  ;;  %5462 = vmatmul.bf16.gmra.mxu1 %v12892_v31 }
 0x5b7   : > { %v4083_v34 = vadd.f32 %v4082_v20, %v12722_v53  ;;  %v4132_v51 = vadd.f32 %v4131_v54, %v12726_v27  ;;  %v3987_v15 = vpop.f32.mrf.mxu0  ;;  %v4036_v6 = vpop.f32.mrf.mxu1  ;;  %5636 = vmatpush.bf16.msra.mxu1 %v8718_v60 }
 0x5b8   : > { %v3988_v62 = vadd.f32 %v3987_v15, %v12710_v57  ;;  %v4037_v29 = vadd.f32 %v4036_v6, %v12712_v40 }
 0x5b9   : > { %v4187_v37 = vmax.f32 %v4083_v34, 0.0  ;;  %v4188_v28 = vmax.f32 %v4132_v51, 0.0 }
 0x5ba   : > { %v4189_v42 = vmax.f32 %v3988_v62, 0.0  ;;  %v4190_v30 = vmax.f32 %v4037_v29, 0.0 }
 0x5bb   : > { %v12906_v44 = vpack.c.bf16 %v4187_v37, %v4183_v16  ;;  %v12908_v39 = vpack.c.bf16 %v4188_v28, %v4184_v50  ;;  %v9557_v50 = vld [vmem:[%s14424_s8 + $0x384] sm:$0xf]  ;;  %v8911_v37 = vld [vmem:[%s14424_s8 + $0x39c] sm:$0xf0] }
 0x5bc   : > { %v9445_v28 = vld [vmem:[%s14424_s8 + $0x4] sm:$0xf] }
 0x5bd   : > { %5511 = vmatmul.bf16.gmra.mxu2 %v12906_v44  ;;  %9163 = vmatmul.msk.bf16.gmra.mxu3 %vm1784_vm0, %v12908_v39 }
 0x5be   : > { %v4085_v13 = vpop.f32.mrf.mxu2  ;;  %v4134_v1 = vpop.f32.mrf.mxu3 }
 0x5bf   : > { %v3989_v58 = vpop.f32.mrf.mxu0  ;;  %v4038_v0 = vpop.f32.mrf.mxu1  ;;  %v4086_v43 = vadd.f32 %v4085_v13, %v12722_v53  ;;  %v4135_v59 = vadd.f32 %v4134_v1, %v12726_v27  ;;  %v8914_v13 = vor.u32 %v9557_v50, %v8911_v37  ;;  %v8463_v1 = vld [vmem:[%s14424_s8 + $0x1c] sm:$0xf0] }
 0x5c0   : > { %v3990_v18 = vadd.f32 %v3989_v58, %v12710_v57  ;;  %v4039_v38 = vadd.f32 %v4038_v0, %v12712_v40  ;;  %v8687_v58 = vld [vmem:[%s14424_s8 + $0x1dc] sm:$0xf0] }
 0x5c1   : > { %v4191_v54 = vmax.f32 %v4086_v43, 0.0  ;;  %v4192_v34 = vmax.f32 %v4135_v59, 0.0  ;;  %5686 = vmatpush.bf16.msra.mxu2 %v8914_v13  ;;  %v8665_v13 = vld [vmem:[%s14424_s8 + $0x190] sm:$0xf] }
 0x5c2   : > { %v4193_v10 = vmax.f32 %v3990_v18, 0.0  ;;  %v4194_v19 = vmax.f32 %v4039_v38, 0.0  ;;  %v8466_v38 = vor.u32 %v9445_v28, %v8463_v1 }
 0x5c4   : > { %v12929_v2 = vpack.c.bf16 %v4193_v10, %v4189_v42  ;;  %v12931_v48 = vpack.c.bf16 %v4194_v19, %v4190_v30  ;;  %v8690_v42 = vor.u32 %v9501_v46, %v8687_v58  ;;  %5588 = vmatpush.bf16.msra.mxu0 %v8466_v38  ;;  %v9617_v38 = vld [vmem:[%s14424_s8 + $0x560] sm:$0xf0] }
 0x5c6   : > { %v4087_v41 = vpop.f32.mrf.mxu2  ;;  %v4136_v25 = vpop.f32.mrf.mxu3  ;;  %5418 = vmatmul.bf16.gmra.mxu0 %v12929_v2  ;;  %5467 = vmatmul.bf16.gmra.mxu1 %v12931_v48 }
 0x5c7   : > { %v4088_v61 = vadd.f32 %v4087_v41, %v12722_v53  ;;  %v4137_v32 = vadd.f32 %v4136_v25, %v12726_v27  ;;  %v3992_v52 = vpop.f32.mrf.mxu0  ;;  %v4041_v20 = vpop.f32.mrf.mxu1  ;;  %5637 = vmatpush.bf16.msra.mxu1 %v8690_v42 }
 0x5c8   : > { %v3993_v62 = vadd.f32 %v3992_v52, %v12710_v57  ;;  %v4042_v56 = vadd.f32 %v4041_v20, %v12712_v40 }
 0x5c9   : > { %v4195_v51 = vmax.f32 %v4088_v61, 0.0  ;;  %v4196_v15 = vmax.f32 %v4137_v32, 0.0 }
 0x5ca   : > { %v4197_v30 = vmax.f32 %v3993_v62, 0.0  ;;  %v4198_v10 = vmax.f32 %v4042_v56, 0.0 }
 0x5cb   : > { %v12945_v6 = vpack.c.bf16 %v4195_v51, %v4191_v54  ;;  %v12947_v16 = vpack.c.bf16 %v4196_v15, %v4192_v34 }
 0x5cd   : > { %5516 = vmatmul.bf16.gmra.mxu2 %v12945_v6  ;;  %9164 = vmatmul.msk.bf16.gmra.mxu3 %vm1784_vm0, %v12947_v16 }
 0x5ce   : > { %v4090_v9 = vpop.f32.mrf.mxu2  ;;  %v4139_v29 = vpop.f32.mrf.mxu3 }
 0x5cf   : > { %v3994_v0 = vpop.f32.mrf.mxu0  ;;  %v4043_v18 = vpop.f32.mrf.mxu1  ;;  %v4091_v43 = vadd.f32 %v4090_v9, %v12722_v53  ;;  %v4140_v59 = vadd.f32 %v4139_v29, %v12726_v27  ;;  %v9113_v9 = vld [vmem:[%s14424_s8 + $0x510] sm:$0xf]  ;;  %v9610_v29 = vld [vmem:[%s14424_s8 + $0x528] sm:$0xf0] }
 0x5d0   : > { %v3995_v14 = vadd.f32 %v3994_v0, %v12710_v57  ;;  %v4044_v33 = vadd.f32 %v4043_v18, %v12712_v40  ;;  %v9114_v58 = vor.u32 %v9610_v29, %v9113_v9  ;;  %v9498_v0 = vld [vmem:[%s14424_s8 + $0x1a8] sm:$0xf0]  ;;  %v9141_v18 = vld [vmem:[%s14424_s8 + $0x548] sm:$0xf] }
 0x5d1   : > { %v4199_v20 = vmax.f32 %v4091_v43, 0.0  ;;  %v4200_v54 = vmax.f32 %v4140_v59, 0.0 }
 0x5d2   : > { %v4201_v19 = vmax.f32 %v3995_v14, 0.0  ;;  %v4202_v36 = vmax.f32 %v4044_v33, 0.0  ;;  %v8666_v33 = vor.u32 %v9498_v0, %v8665_v13  ;;  %5875 = vmatpush.bf16.msrb.mxu2 %v9114_v58  ;;  %v9603_v58 = vld [vmem:[%s14424_s8 + $0x4f0] sm:$0xf0]  ;;  %v8637_v0 = vld [vmem:[%s14424_s8 + $0x158] sm:$0xf] }
 0x5d4   : > { %v12974_v8 = vpack.c.bf16 %v4201_v19, %v4197_v30  ;;  %v12976_v49 = vpack.c.bf16 %v4202_v36, %v4198_v10  ;;  %v9142_v30 = vor.u32 %v9617_v38, %v9141_v18  ;;  %5777 = vmatpush.bf16.msrb.mxu0 %v8666_v33  ;;  %v9491_v38 = vld [vmem:[%s14424_s8 + $0x170] sm:$0xf0] }
 0x5d6   : > { %v4092_v60 = vpop.f32.mrf.mxu2  ;;  %v4141_v41 = vpop.f32.mrf.mxu3  ;;  %5423 = vmatmul.bf16.gmra.mxu0 %v12974_v8  ;;  %5472 = vmatmul.bf16.gmra.mxu1 %v12976_v49 }
 0x5d7   : > { %v4093_v25 = vadd.f32 %v4092_v60, %v12722_v53  ;;  %v4142_v61 = vadd.f32 %v4141_v41, %v12726_v27  ;;  %v3997_v32 = vpop.f32.mrf.mxu0  ;;  %v4046_v52 = vpop.f32.mrf.mxu1  ;;  %5931 = vmatpush.bf16.msrb.mxu3 %v9142_v30 }
 0x5d8   : > { %v3998_v37 = vadd.f32 %v3997_v32, %v12710_v57  ;;  %v4047_v28 = vadd.f32 %v4046_v52, %v12712_v40 }
 0x5d9   : > { %v4203_v34 = vmax.f32 %v4093_v25, 0.0  ;;  %v4204_v51 = vmax.f32 %v4142_v61, 0.0 }
 0x5da   : > { %v4205_v10 = vmax.f32 %v3998_v37, 0.0  ;;  %v4206_v19 = vmax.f32 %v4047_v28, 0.0  ;;  %v13033_v28 = vld [vmem:[%s14425_s9] sm:$0x7f] }
 0x5db   : > { %v12984_v15 = vpack.c.bf16 %v4203_v34, %v4199_v20  ;;  %v12986_v50 = vpack.c.bf16 %v4204_v51, %v4200_v54 }
 0x5dd   : > { %5521 = vmatmul.bf16.gmra.mxu2 %v12984_v15  ;;  %9165 = vmatmul.msk.bf16.gmra.mxu3 %vm1784_vm0, %v12986_v50 }
 0x5de   : > { %v4095_v62 = vpop.f32.mrf.mxu2  ;;  %v4144_v56 = vpop.f32.mrf.mxu3 }
 0x5df   : > { %v3999_v1 = vpop.f32.mrf.mxu0  ;;  %v4048_v46 = vpop.f32.mrf.mxu1  ;;  %v4096_v41 = vadd.f32 %v4095_v62, %v12722_v53  ;;  %v4145_v25 = vadd.f32 %v4144_v56, %v12726_v27  ;;  %v9554_v62 = vld [vmem:[%s14424_s8 + $0x368] sm:$0xf0] }
 0x5e0   : > { %v4000_v42 = vadd.f32 %v3999_v1, %v12710_v57  ;;  %v4049_v14 = vadd.f32 %v4048_v46, %v12712_v40  ;;  %v9085_v46 = vld [vmem:[%s14424_s8 + $0x4d8] sm:$0xf] }
 0x5e1   : > { %v4207_v52 = vmax.f32 %v4096_v41, 0.0  ;;  %v4208_v20 = vmax.f32 %v4145_v25, 0.0  ;;  %v9086_v18 = vor.u32 %v9603_v58, %v9085_v46  ;;  %v9547_v41 = vld [vmem:[%s14424_s8 + $0x330] sm:$0xf0] }
 0x5e2   : > { %v4209_v36 = vmax.f32 %v4000_v42, 0.0  ;;  %v4210_v43 = vmax.f32 %v4049_v14, 0.0  ;;  %v8638_v42 = vor.u32 %v9491_v38, %v8637_v0 }
 0x5e3   : > { %5876 = vmatpush.bf16.msrb.mxu2 %v9086_v18 }
 0x5e4   : > { %v13013_v59 = vpack.c.bf16 %v4209_v36, %v4205_v10  ;;  %v13015_v60 = vpack.c.bf16 %v4210_v43, %v4206_v19  ;;  %5778 = vmatpush.bf16.msrb.mxu0 %v8638_v42  ;;  %v8861_v43 = vld [vmem:[%s14424_s8 + $0x318] sm:$0xf] }
 0x5e6   : > { %v4097_v57 = vpop.f32.mrf.mxu2  ;;  %v4146_v61 = vpop.f32.mrf.mxu3  ;;  %5428 = vmatmul.bf16.gmra.mxu0 %v13013_v59  ;;  %5477 = vmatmul.bf16.gmra.mxu1 %v13015_v60 }
 0x5e7   : > { %v4098_v40 = vadd.f32 %v4097_v57, %v12722_v53  ;;  %v4147_v32 = vadd.f32 %v4146_v61, %v12726_v27  ;;  %v13036_v53 = vperm.slane %v13033_v28, 0  ;;  %v8889_v27 = vld [vmem:[%s14424_s8 + $0x350] sm:$0xf]  ;;  %v8862_v57 = vor.u32 %v9547_v41, %v8861_v43 }
 0x5e8   : > { %v8890_v56 = vor.u32 %v9554_v62, %v8889_v27  ;;  %v9057_v27 = vld [vmem:[%s14424_s8 + $0x4a0] sm:$0xf]  ;;  %v9596_v62 = vld [vmem:[%s14424_s8 + $0x4b8] sm:$0xf0] }
 0x5e9   : > { %v4211_v54 = vmax.f32 %v4098_v40, 0.0  ;;  %v4212_v34 = vmax.f32 %v4147_v32, 0.0 }
 0x5ea   : > { %5826 = vmatpush.bf16.msrb.mxu1 %v8890_v56  ;;  %v8609_v56 = vld [vmem:[%s14424_s8 + $0x120] sm:$0xf] }
 0x5eb   : > { %v13023_v51 = vpack.c.bf16 %v4211_v54, %v4207_v52  ;;  %v13025_v37 = vpack.c.bf16 %v4212_v34, %v4208_v20 }
 0x5ed   : > { %5526 = vmatmul.bf16.gmra.mxu2 %v13023_v51  ;;  %9166 = vmatmul.msk.bf16.gmra.mxu3 %vm1784_vm0, %v13025_v37 }
 0x5ee   : > { %5827 = vmatpush.bf16.msrb.mxu1 %v8862_v57 }
 0x5f3   : > { %v5394_v9 = vpop.f32.mrf.mxu0  ;;  %v5443_v29 = vpop.f32.mrf.mxu1 }
 0x5f4   : > { %v5395_v13 = vadd.f32 %v5394_v9, %v13036_v53 }
 0x5f6   : > { %v5444_v1 = vadd.f32 %v5443_v29, %v5395_v13  ;;  %5589 = vmatmul.bf16.vlgmr.msra.gmra.mxu0 %v12734_v12  ;;  %5638 = vmatmul.bf16.vlgmr.msra.gmra.mxu1 %v12736_v3  ;;  %v9058_v29 = vor.u32 %v9596_v62, %v9057_v27  ;;  %v9484_v13 = vld [vmem:[%s14424_s8 + $0x138] sm:$0xf0]  ;;  %v8581_v27 = vld [vmem:[%s14424_s8 + $0xe8] sm:$0xf]  ;;  %v9477_v62 = vld [vmem:[%s14424_s8 + $0x100] sm:$0xf0] }
 0x5f8   : > { %5877 = vmatpush.bf16.msrb.mxu2 %v9058_v29 }
 0x5fb   : > { %v5396_v14 = vpop.f32.mrf.mxu0  ;;  %v5445_v33 = vpop.f32.mrf.mxu1 }
 0x5fc   : > { %v5397_v30 = vadd.f32 %v5396_v14, %v13036_v53 }
 0x5fd   : > { %5687 = vmatmul.bf16.vlgmr.msra.gmra.mxu2 %v12750_v22  ;;  %9167 = vmatmul.msk.bf16.vlgmr.msra.gmra.mxu3 %vm1784_vm0, %v12752_v47 }
 0x5fe   : > { %v5446_v10 = vadd.f32 %v5445_v33, %v5397_v30  ;;  %v8833_v33 = vld [vmem:[%s14424_s8 + $0x2e0] sm:$0xf]  ;;  %v9540_v30 = vld [vmem:[%s14424_s8 + $0x2f8] sm:$0xf0] }
 0x600   : > { %v5492_v19 = vpop.f32.mrf.mxu2  ;;  %v5541_v36 = vpop.f32.mrf.mxu3 }
 0x601   : > { %v5493_v25 = vadd.f32 %v5492_v19, %v5444_v1  ;;  %v8610_v1 = vor.u32 %v9484_v13, %v8609_v56  ;;  %v8834_v19 = vor.u32 %v9540_v30, %v8833_v33  ;;  %v8582_v56 = vor.u32 %v9477_v62, %v8581_v27 }
 0x603   : > { %v13069_v61 = vadd.f32 %v5541_v36, %v5493_v25  ;;  %v5399_v40 = vpop.f32.mrf.mxu0  ;;  %v5448_v32 = vpop.f32.mrf.mxu1  ;;  %5779 = vmatpush.bf16.msrb.mxu0 %v8610_v1  ;;  %5828 = vmatpush.bf16.msrb.mxu1 %v8834_v19 }
 0x604   : > { %v5400_v52 = vadd.f32 %v5399_v40, %v13036_v53 }
 0x606   : > { %v5449_v20 = vadd.f32 %v5448_v32, %v5400_v52  ;;  %5594 = vmatmul.bf16.gmra.mxu0 %v12773_v17  ;;  %5643 = vmatmul.bf16.gmra.mxu1 %v12775_v26  ;;  %v9029_v52 = vld [vmem:[%s14424_s8 + $0x468] sm:$0xf] }
 0x607   : > { %5780 = vmatpush.bf16.msrb.mxu0 %v8582_v56 }
 0x608   : > { %v5494_v54 = vpop.f32.mrf.mxu2  ;;  %v5543_v34 = vpop.f32.mrf.mxu3 }
 0x609   : > { %v5495_v9 = vadd.f32 %v5494_v54, %v5446_v10 }
 0x60b   : > { %v13086_v46 = vadd.f32 %v5543_v34, %v5495_v9  ;;  %v5401_v58 = vpop.f32.mrf.mxu0  ;;  %v5450_v0 = vpop.f32.mrf.mxu1 }
 0x60c   : > { %v5402_v18 = vadd.f32 %v5401_v58, %v13036_v53 }
 0x60d   : > { %5692 = vmatmul.bf16.gmra.mxu2 %v12789_v55  ;;  %9168 = vmatmul.msk.bf16.gmra.mxu3 %vm1784_vm0, %v12791_v5 }
 0x60e   : > { %v5451_v38 = vadd.f32 %v5450_v0, %v5402_v18 }
 0x610   : > { %v5497_v42 = vpop.f32.mrf.mxu2  ;;  %v5546_v14 = vpop.f32.mrf.mxu3 }
 0x611   : > { %v5498_v10 = vadd.f32 %v5497_v42, %v5449_v20  ;;  %v9589_v20 = vld [vmem:[%s14424_s8 + $0x480] sm:$0xf0] }
 0x612   : > { %v9030_v34 = vor.u32 %v9589_v20, %v9029_v52  ;;  %v9533_v42 = vld [vmem:[%s14424_s8 + $0x2c0] sm:$0xf0] }
 0x613   : > { %v13098_v36 = vadd.f32 %v5546_v14, %v5498_v10  ;;  %v5404_v43 = vpop.f32.mrf.mxu0  ;;  %v5453_v41 = vpop.f32.mrf.mxu1 }
 0x614   : > { %v5405_v25 = vadd.f32 %v5404_v43, %v13036_v53  ;;  %5878 = vmatpush.bf16.msrb.mxu2 %v9030_v34  ;;  %v9470_v34 = vld [vmem:[%s14424_s8 + $0xc8] sm:$0xf0] }
 0x616   : > { %v5454_v57 = vadd.f32 %v5453_v41, %v5405_v25  ;;  %5599 = vmatmul.bf16.gmra.mxu0 %v12812_v63  ;;  %5648 = vmatmul.bf16.gmra.mxu1 %v12814_v11 }
 0x618   : > { %v5499_v40 = vpop.f32.mrf.mxu2  ;;  %v5548_v32 = vpop.f32.mrf.mxu3 }
 0x619   : > { %v5500_v54 = vadd.f32 %v5499_v40, %v5451_v38  ;;  %v8805_v38 = vld [vmem:[%s14424_s8 + $0x2a8] sm:$0xf] }
 0x61a   : > { %v8806_v33 = vor.u32 %v9533_v42, %v8805_v38  ;;  %v9526_v38 = vld [vmem:[%s14424_s8 + $0x288] sm:$0xf0] }
 0x61b   : > { %v13115_v9 = vadd.f32 %v5548_v32, %v5500_v54  ;;  %v5406_v29 = vpop.f32.mrf.mxu0  ;;  %v5455_v13 = vpop.f32.mrf.mxu1  ;;  %v9001_v32 = vld [vmem:[%s14424_s8 + $0x430] sm:$0xf] }
 0x61c   : > { %v5407_v1 = vadd.f32 %v5406_v29, %v13036_v53  ;;  %5829 = vmatpush.bf16.msrb.mxu1 %v8806_v33  ;;  %v8553_v54 = vld [vmem:[%s14424_s8 + $0xb0] sm:$0xf] }
 0x61d   : > { %5697 = vmatmul.bf16.gmra.mxu2 %v12828_v24  ;;  %9169 = vmatmul.msk.bf16.gmra.mxu3 %vm1784_vm0, %v12830_v45  ;;  %v8554_v27 = vor.u32 %v9470_v34, %v8553_v54  ;;  %v8525_v54 = vld [vmem:[%s14424_s8 + $0x78] sm:$0xf]  ;;  %v9463_v34 = vld [vmem:[%s14424_s8 + $0x90] sm:$0xf0] }
 0x61e   : > { %v5456_v58 = vadd.f32 %v5455_v13, %v5407_v1 }
 0x61f   : > { %5781 = vmatpush.bf16.msrb.mxu0 %v8554_v27  ;;  %v8526_v27 = vor.u32 %v9463_v34, %v8525_v54 }
 0x620   : > { %v5502_v0 = vpop.f32.mrf.mxu2  ;;  %v5551_v18 = vpop.f32.mrf.mxu3 }
 0x621   : > { %v5503_v14 = vadd.f32 %v5502_v0, %v5454_v57  ;;  %v9582_v57 = vld [vmem:[%s14424_s8 + $0x448] sm:$0xf0] }
 0x622   : > { %v9002_v20 = vor.u32 %v9582_v57, %v9001_v32  ;;  %v8973_v57 = vld [vmem:[%s14424_s8 + $0x3f8] sm:$0xf] }
 0x623   : > { %v13127_v30 = vadd.f32 %v5551_v18, %v5503_v14  ;;  %v5409_v10 = vpop.f32.mrf.mxu0  ;;  %v5458_v19 = vpop.f32.mrf.mxu1  ;;  %v8777_v18 = vld [vmem:[%s14424_s8 + $0x270] sm:$0xf]  ;;  %5782 = vmatpush.bf16.msrb.mxu0 %v8526_v27  ;;  %v8497_v27 = vld [vmem:[%s14424_s8 + $0x40] sm:$0xf] }
 0x624   : > { %v5410_v43 = vadd.f32 %v5409_v10, %v13036_v53  ;;  %5879 = vmatpush.bf16.msrb.mxu2 %v9002_v20  ;;  %v8778_v14 = vor.u32 %v9526_v38, %v8777_v18  ;;  %v8749_v38 = vld [vmem:[%s14424_s8 + $0x238] sm:$0xf] }
 0x626   : > { %v5459_v41 = vadd.f32 %v5458_v19, %v5410_v43  ;;  %5604 = vmatmul.bf16.gmra.mxu0 %v12851_v4  ;;  %5653 = vmatmul.bf16.gmra.mxu1 %v12853_v7 }
 0x627   : > { %5830 = vmatpush.bf16.msrb.mxu1 %v8778_v14 }
 0x628   : > { %v5504_v25 = vpop.f32.mrf.mxu2  ;;  %v5553_v40 = vpop.f32.mrf.mxu3 }
 0x629   : > { %v5505_v52 = vadd.f32 %v5504_v25, %v5456_v58 }
 0x62b   : > { %v13144_v62 = vadd.f32 %v5553_v40, %v5505_v52  ;;  %v5411_v56 = vpop.f32.mrf.mxu0  ;;  %v5460_v29 = vpop.f32.mrf.mxu1 }
 0x62c   : > { %v5412_v13 = vadd.f32 %v5411_v56, %v13036_v53 }
 0x62d   : > { %5702 = vmatmul.bf16.gmra.mxu2 %v12867_v23  ;;  %9170 = vmatmul.msk.bf16.gmra.mxu3 %vm1784_vm0, %v12869_v21 }
 0x62e   : > { %v5461_v1 = vadd.f32 %v5460_v29, %v5412_v13 }
 0x630   : > { %v5507_v58 = vpop.f32.mrf.mxu2  ;;  %v5556_v0 = vpop.f32.mrf.mxu3 }
 0x631   : > { %v5508_v42 = vadd.f32 %v5507_v58, %v5459_v41  ;;  %v9575_v41 = vld [vmem:[%s14424_s8 + $0x410] sm:$0xf0] }
 0x632   : > { %v8974_v20 = vor.u32 %v9575_v41, %v8973_v57 }
 0x633   : > { %v13156_v33 = vadd.f32 %v5556_v0, %v5508_v42  ;;  %v5414_v10 = vpop.f32.mrf.mxu0  ;;  %v5463_v19 = vpop.f32.mrf.mxu1  ;;  %v9519_v42 = vld [vmem:[%s14424_s8 + $0x250] sm:$0xf0] }
 0x634   : > { %v5415_v43 = vadd.f32 %v5414_v10, %v13036_v53  ;;  %5880 = vmatpush.bf16.msrb.mxu2 %v8974_v20  ;;  %v8750_v10 = vor.u32 %v9519_v42, %v8749_v38  ;;  %v8945_v20 = vld [vmem:[%s14424_s8 + $0x3c0] sm:$0xf]  ;;  %v9512_v42 = vld [vmem:[%s14424_s8 + $0x218] sm:$0xf0] }
 0x636   : > { %v5464_v25 = vadd.f32 %v5463_v19, %v5415_v43  ;;  %5609 = vmatmul.bf16.gmra.mxu0 %v12890_v35  ;;  %5658 = vmatmul.bf16.gmra.mxu1 %v12892_v31 }
 0x637   : > { %5831 = vmatpush.bf16.msrb.mxu1 %v8750_v10 }
 0x638   : > { %v5509_v40 = vpop.f32.mrf.mxu2  ;;  %v5558_v32 = vpop.f32.mrf.mxu3 }
 0x639   : > { %v5510_v52 = vadd.f32 %v5509_v40, %v5461_v1 }
 0x63b   : > { %v13173_v56 = vadd.f32 %v5558_v32, %v5510_v52  ;;  %v5416_v29 = vpop.f32.mrf.mxu0  ;;  %v5465_v13 = vpop.f32.mrf.mxu1 }
 0x63c   : > { %v5417_v58 = vadd.f32 %v5416_v29, %v13036_v53  ;;  %v9456_v29 = vld [vmem:[%s14424_s8 + $0x58] sm:$0xf0] }
 0x63d   : > { %5707 = vmatmul.bf16.gmra.mxu2 %v12906_v44  ;;  %9171 = vmatmul.msk.bf16.gmra.mxu3 %vm1784_vm0, %v12908_v39 }
 0x63e   : > { %v5466_v1 = vadd.f32 %v5465_v13, %v5417_v58  ;;  %v8498_v13 = vor.u32 %v9456_v29, %v8497_v27 }
 0x640   : > { %v5512_v0 = vpop.f32.mrf.mxu2  ;;  %v5561_v18 = vpop.f32.mrf.mxu3  ;;  %5783 = vmatpush.bf16.msrb.mxu0 %v8498_v13 }
 0x641   : > { %v5513_v14 = vadd.f32 %v5512_v0, %v5464_v25  ;;  %v9568_v25 = vld [vmem:[%s14424_s8 + $0x3d8] sm:$0xf0] }
 0x642   : > { %v8946_v34 = vor.u32 %v9568_v25, %v8945_v20  ;;  %v8693_v20 = vld [vmem:[%s14424_s8 + $0x1c8] sm:$0xf] }
 0x643   : > { %v13185_v19 = vadd.f32 %v5561_v18, %v5513_v14  ;;  %v5419_v43 = vpop.f32.mrf.mxu0  ;;  %v5468_v40 = vpop.f32.mrf.mxu1 }
 0x644   : > { %v5420_v32 = vadd.f32 %v5419_v43, %v13036_v53  ;;  %5881 = vmatpush.bf16.msrb.mxu2 %v8946_v34 }
 0x646   : > { %v5469_v57 = vadd.f32 %v5468_v40, %v5420_v32  ;;  %5614 = vmatmul.bf16.gmra.mxu0 %v12929_v2  ;;  %5663 = vmatmul.bf16.gmra.mxu1 %v12931_v48 }
 0x648   : > { %v5514_v41 = vpop.f32.mrf.mxu2  ;;  %v5563_v52 = vpop.f32.mrf.mxu3 }
 0x649   : > { %v5515_v54 = vadd.f32 %v5514_v41, %v5466_v1  ;;  %v8721_v1 = vld [vmem:[%s14424_s8 + $0x200] sm:$0xf]  ;;  %v8469_v41 = vld [vmem:[%s14424_s8 + $0x8] sm:$0xf] }
 0x64a   : > { %v8722_v10 = vor.u32 %v9512_v42, %v8721_v1 }
 0x64b   : > { %v13202_v58 = vadd.f32 %v5563_v52, %v5515_v54  ;;  %v5421_v0 = vpop.f32.mrf.mxu0  ;;  %v5470_v18 = vpop.f32.mrf.mxu1  ;;  %v9449_v52 = vld [vmem:[%s14424_s8 + $0x20] sm:$0xf0] }
 0x64c   : > { %v5422_v38 = vadd.f32 %v5421_v0, %v13036_v53  ;;  %5832 = vmatpush.bf16.msrb.mxu1 %v8722_v10  ;;  %v8470_v25 = vor.u32 %v9449_v52, %v8469_v41  ;;  %v9505_v54 = vld [vmem:[%s14424_s8 + $0x1e0] sm:$0xf0] }
 0x64d   : > { %5712 = vmatmul.bf16.gmra.mxu2 %v12945_v6  ;;  %9172 = vmatmul.msk.bf16.gmra.mxu3 %vm1784_vm0, %v12947_v16  ;;  %v8694_v29 = vor.u32 %v9505_v54, %v8693_v20 }
 0x64e   : > { %v5471_v14 = vadd.f32 %v5470_v18, %v5422_v38  ;;  %5784 = vmatpush.bf16.msrb.mxu0 %v8470_v25  ;;  %v8917_v18 = vld [vmem:[%s14424_s8 + $0x388] sm:$0xf]  ;;  %v9561_v38 = vld [vmem:[%s14424_s8 + $0x3a0] sm:$0xf0] }
 0x64f   : > { %v8918_v10 = vor.u32 %v9561_v38, %v8917_v18 }
 0x650   : > { %v5517_v43 = vpop.f32.mrf.mxu2  ;;  %v5566_v40 = vpop.f32.mrf.mxu3  ;;  %5833 = vmatpush.bf16.msrb.mxu1 %v8694_v29 }
 0x651   : > { %v5518_v32 = vadd.f32 %v5517_v43, %v5469_v57  ;;  %5882 = vmatpush.bf16.msrb.mxu2 %v8918_v10 }
 0x653   : > { %v13226_v34 = vadd.f32 %v5566_v40, %v5518_v32  ;;  %v5424_v57 = vpop.f32.mrf.mxu0  ;;  %v5473_v27 = vpop.f32.mrf.mxu1 }
 0x654   : > { %v5425_v13 = vadd.f32 %v5424_v57, %v13036_v53 }
 0x656   : > { %v5474_v0 = vadd.f32 %v5473_v27, %v5425_v13  ;;  %5619 = vmatmul.bf16.gmra.mxu0 %v12974_v8  ;;  %5668 = vmatmul.bf16.gmra.mxu1 %v12976_v49 }
 0x658   : > { %v5519_v1 = vpop.f32.mrf.mxu2  ;;  %v5568_v42 = vpop.f32.mrf.mxu3 }
 0x659   : > { %v5520_v43 = vadd.f32 %v5519_v1, %v5471_v14 }
 0x65b   : > { %v13237_v40 = vadd.f32 %v5568_v42, %v5520_v43  ;;  %v5426_v32 = vpop.f32.mrf.mxu0  ;;  %v5475_v41 = vpop.f32.mrf.mxu1  ;;  %v9607_v42 = vld [vmem:[%s14424_s8 + $0x514] sm:$0xf] }
 0x65c   : > { %v5427_v52 = vadd.f32 %v5426_v32, %v13036_v53  ;;  %v9495_v32 = vld [vmem:[%s14424_s8 + $0x194] sm:$0xf] }
 0x65d   : > { %5717 = vmatmul.bf16.gmra.mxu2 %v12984_v15  ;;  %9173 = vmatmul.msk.bf16.gmra.mxu3 %vm1784_vm0, %v12986_v50 }
 0x65e   : > { %v5476_v20 = vadd.f32 %v5475_v41, %v5427_v52  ;;  %v8667_v41 = vld [vmem:[%s14424_s8 + $0x1ac] sm:$0xf0]  ;;  %v9614_v52 = vld [vmem:[%s14424_s8 + $0x54c] sm:$0xf] }
 0x660   : > { %v5522_v25 = vpop.f32.mrf.mxu2  ;;  %v5571_v54 = vpop.f32.mrf.mxu3 }
 0x661   : > { %v5523_v57 = vadd.f32 %v5522_v25, %v5474_v0  ;;  %v9115_v0 = vld [vmem:[%s14424_s8 + $0x52c] sm:$0xf0]  ;;  %v8670_v25 = vor.u32 %v9495_v32, %v8667_v41 }
 0x662   : > { %v9118_v43 = vor.u32 %v9607_v42, %v9115_v0 }
 0x663   : > { %v13243_v27 = vadd.f32 %v5571_v54, %v5523_v57  ;;  %v5429_v29 = vpop.f32.mrf.mxu0  ;;  %v5478_v14 = vpop.f32.mrf.mxu1  ;;  %v9143_v54 = vld [vmem:[%s14424_s8 + $0x564] sm:$0xf0]  ;;  %5973 = vmatpush.bf16.msra.mxu0 %v8670_v25  ;;  %v13283_v25 = vperm.slane %v13033_v28, 1  ;;  %v9488_v28 = vld [vmem:[%s14424_s8 + $0x15c] sm:$0xf] }
 0x664   : > { %v5430_v13 = vadd.f32 %v5429_v29, %v13036_v53  ;;  %6071 = vmatpush.bf16.msra.mxu2 %v9118_v43  ;;  %v9551_v43 = vld [vmem:[%s14424_s8 + $0x354] sm:$0xf] }
 0x666   : > { %v5479_v18 = vadd.f32 %v5478_v14, %v5430_v13  ;;  %5624 = vmatmul.bf16.gmra.mxu0 %v13013_v59  ;;  %5673 = vmatmul.bf16.gmra.mxu1 %v13015_v60  ;;  %v9146_v14 = vor.u32 %v9614_v52, %v9143_v54 }
 0x668   : > { %v5524_v38 = vpop.f32.mrf.mxu2  ;;  %v5573_v1 = vpop.f32.mrf.mxu3  ;;  %6127 = vmatpush.bf16.msra.mxu3 %v9146_v14 }
 0x669   : > { %v5525_v10 = vadd.f32 %v5524_v38, %v5476_v20 }
 0x66b   : > { %v13266_v57 = vadd.f32 %v5573_v1, %v5525_v10  ;;  %v5431_v20 = vpop.f32.mrf.mxu0  ;;  %v5480_v29 = vpop.f32.mrf.mxu1 }
 0x66c   : > { %v5432_v13 = vadd.f32 %v5431_v20, %v13036_v53  ;;  %v8891_v53 = vld [vmem:[%s14424_s8 + $0x36c] sm:$0xf0] }
 0x66d   : > { %5722 = vmatmul.bf16.gmra.mxu2 %v13023_v51  ;;  %9174 = vmatmul.msk.bf16.gmra.mxu3 %vm1784_vm0, %v13025_v37  ;;  %v8894_v52 = vor.u32 %v9551_v43, %v8891_v53  ;;  %v6757_v43 = vmul.f32 0.5, %v13069_v61  ;;  %v8863_v61 = vld [vmem:[%s14424_s8 + $0x334] sm:$0xf0] }
 0x66e   : > { %v5481_v38 = vadd.f32 %v5480_v29, %v5432_v13 }
 0x66f   : > { %6022 = vmatpush.bf16.msra.mxu1 %v8894_v52  ;;  %9698 = vtanh.f32 %v6757_v43 }
 0x670   : > { %v5527_v42 = vpop.f32.mrf.mxu2  ;;  %v5576_v0 = vpop.f32.mrf.mxu3 }
 0x671   : > { %v5528_v32 = vadd.f32 %v5527_v42, %v5479_v18 }
 0x673   : > { %v13272_v41 = vadd.f32 %v5576_v0, %v5528_v32  ;;  %v5590_v1 = vpop.f32.mrf.mxu0  ;;  %v5639_v10 = vpop.f32.mrf.mxu1  ;;  %v9600_v0 = vld [vmem:[%s14424_s8 + $0x4dc] sm:$0xf]  ;;  %v9087_v32 = vld [vmem:[%s14424_s8 + $0x4f4] sm:$0xf0] }
 0x674   : > { %v5591_v29 = vadd.f32 %v5590_v1, %v13283_v25  ;;  %v8639_v1 = vld [vmem:[%s14424_s8 + $0x174] sm:$0xf0] }
 0x675   : > { %v8642_v53 = vor.u32 %v9488_v28, %v8639_v1  ;;  %v9699_v28 = vpop.eup %9698 }
 0x676   : > { %5785 = vmatmul.bf16.vlgmr.msrb.gmra.mxu0 %v12734_v12  ;;  %5834 = vmatmul.bf16.vlgmr.msrb.gmra.mxu1 %v12736_v3  ;;  %v5640_v52 = vadd.f32 %v5639_v10, %v5591_v29 }
 0x677   : > { %5974 = vmatpush.bf16.msra.mxu0 %v8642_v53  ;;  %v6981_v53 = vmul.f32 0.5, %v9699_v28 }
 0x678   : > { %v5529_v18 = vpop.f32.mrf.mxu2  ;;  %v5578_v54 = vpop.f32.mrf.mxu3 }
 0x679   : > { %v5530_v20 = vadd.f32 %v5529_v18, %v5481_v38  ;;  %v9090_v38 = vor.u32 %v9600_v0, %v9087_v32  ;;  %v9544_v0 = vld [vmem:[%s14424_s8 + $0x31c] sm:$0xf]  ;;  %v6764_v32 = vmul.f32 0.5, %v13086_v46  ;;  %v9481_v46 = vld [vmem:[%s14424_s8 + $0x124] sm:$0xf]  ;;  %v7093_v28 = vadd.f32 0.5, %v6981_v53 }
 0x67a   : > { %v8866_v29 = vor.u32 %v9544_v0, %v8863_v61  ;;  %v8611_v61 = vld [vmem:[%s14424_s8 + $0x13c] sm:$0xf0] }
 0x67b   : > { %v13286_v14 = vadd.f32 %v5578_v54, %v5530_v20  ;;  %v5592_v13 = vpop.f32.mrf.mxu0  ;;  %v5641_v42 = vpop.f32.mrf.mxu1  ;;  %6072 = vmatpush.bf16.msra.mxu2 %v9090_v38 }
 0x67c   : > { %6023 = vmatpush.bf16.msra.mxu1 %v8866_v29  ;;  %v8614_v29 = vor.u32 %v9481_v46, %v8611_v61 }
 0x67d   : > { %14653 = vst [vmem:[#allocation9_spill] sm:$0xff] %v13286_v14  ;;  %5883 = vmatmul.bf16.vlgmr.msrb.gmra.mxu2 %v12750_v22  ;;  %9175 = vmatmul.msk.bf16.vlgmr.msrb.gmra.mxu3 %vm1784_vm0, %v12752_v47  ;;  %v5593_v22 = vadd.f32 %v5592_v13, %v13283_v25 }
 0x67e   : > { %5975 = vmatpush.bf16.msra.mxu0 %v8614_v29 }
 0x67f   : > { %v5642_v13 = vadd.f32 %v5641_v42, %v5593_v22  ;;  %v9059_v22 = vld [vmem:[%s14424_s8 + $0x4bc] sm:$0xf0] }
 0x680   : > { %v5688_v18 = vpop.f32.mrf.mxu2  ;;  %v5737_v54 = vpop.f32.mrf.mxu3 }
 0x681   : > { %v5689_v20 = vadd.f32 %v5688_v18, %v5640_v52 }
 0x683   : > { %v5738_v14 = vadd.f32 %v5737_v54, %v5689_v20  ;;  %v5595_v3 = vpop.f32.mrf.mxu0  ;;  %v5644_v47 = vpop.f32.mrf.mxu1  ;;  %v9593_v20 = vld [vmem:[%s14424_s8 + $0x4a4] sm:$0xf] }
 0x684   : > { %v5596_v52 = vadd.f32 %v5595_v3, %v13283_v25  ;;  %v9062_v3 = vor.u32 %v9593_v20, %v9059_v22 }
 0x685   : > { %v6758_v10 = vmul.f32 0.5, %v5738_v14 }
 0x686   : > { %5790 = vmatmul.bf16.gmra.mxu0 %v12773_v17  ;;  %5839 = vmatmul.bf16.gmra.mxu1 %v12775_v26 }
 0x687   : > { %9700 = vtanh.f32 %v6758_v10  ;;  %6073 = vmatpush.bf16.msra.mxu2 %v9062_v3 }
 0x688   : > { %v5690_v38 = vpop.f32.mrf.mxu2  ;;  %v5739_v1 = vpop.f32.mrf.mxu3  ;;  %9702 = vtanh.f32 %v6764_v32  ;;  %v6771_v32 = vmul.f32 0.5, %v13098_v36 }
 0x689   : > { %v5691_v43 = vadd.f32 %v5690_v38, %v5642_v13  ;;  %v5645_v13 = vadd.f32 %v5644_v47, %v5596_v52 }
 0x68b   : > { %v5740_v14 = vadd.f32 %v5739_v1, %v5691_v43  ;;  %v5597_v18 = vpop.f32.mrf.mxu0  ;;  %v5646_v54 = vpop.f32.mrf.mxu1 }
 0x68c   : > { %v5598_v36 = vadd.f32 %v5597_v18, %v13283_v25  ;;  %v6778_v18 = vmul.f32 0.5, %v13115_v9  ;;  %v9586_v9 = vld [vmem:[%s14424_s8 + $0x46c] sm:$0xf] }
 0x68d   : > { %v9701_v42 = vpop.eup %9700  ;;  %v6765_v0 = vmul.f32 0.5, %v5740_v14  ;;  %5888 = vmatmul.bf16.gmra.mxu2 %v12789_v55  ;;  %9176 = vmatmul.msk.bf16.gmra.mxu3 %vm1784_vm0, %v12791_v5 }
 0x68e   : > { %v6982_v10 = vmul.f32 0.5, %v9701_v42  ;;  %v9703_v14 = vpop.eup %9702  ;;  %v9537_v42 = vld [vmem:[%s14424_s8 + $0x2e4] sm:$0xf] }
 0x68f   : > { %9704 = vtanh.f32 %v6765_v0  ;;  %v6988_v53 = vmul.f32 0.5, %v9703_v14  ;;  %v8835_v0 = vld [vmem:[%s14424_s8 + $0x2fc] sm:$0xf0] }
 0x690   : > { %v7094_v38 = vadd.f32 0.5, %v6982_v10  ;;  %v5693_v1 = vpop.f32.mrf.mxu2  ;;  %v5742_v43 = vpop.f32.mrf.mxu3  ;;  %9706 = vtanh.f32 %v6771_v32  ;;  %v8838_v10 = vor.u32 %v9537_v42, %v8835_v0  ;;  %v5647_v32 = vadd.f32 %v5646_v54, %v5598_v36  ;;  %v9031_v54 = vld [vmem:[%s14424_s8 + $0x484] sm:$0xf0] }
 0x691   : > { %v5694_v20 = vadd.f32 %v5693_v1, %v5645_v13  ;;  %v7100_v13 = vadd.f32 0.5, %v6988_v53 }
 0x692   : > { %v7205_v22 = vpack.c.bf16 %v7094_v38, %v7093_v28  ;;  %6024 = vmatpush.bf16.msra.mxu1 %v8838_v10  ;;  %v8583_v10 = vld [vmem:[%s14424_s8 + $0x104] sm:$0xf0] }
 0x693   : > { %v5743_v47 = vadd.f32 %v5742_v43, %v5694_v20  ;;  %v5600_v52 = vpop.f32.mrf.mxu0  ;;  %v5649_v46 = vpop.f32.mrf.mxu1 }
 0x694   : > { %7269 = vst [vmem:[%s13335_s30] sm:$0xff] %v7205_v22  ;;  %v5601_v22 = vadd.f32 %v5600_v52, %v13283_v25  ;;  %v9034_v52 = vor.u32 %v9586_v9, %v9031_v54 }
 0x695   : > { %v9705_v3 = vpop.eup %9704  ;;  %v6772_v61 = vmul.f32 0.5, %v5743_v47 }
 0x696   : > { %v6989_v29 = vmul.f32 0.5, %v9705_v3  ;;  %5795 = vmatmul.bf16.gmra.mxu0 %v12812_v63  ;;  %5844 = vmatmul.bf16.gmra.mxu1 %v12814_v11  ;;  %v9707_v43 = vpop.eup %9706 }
 0x697   : > { %9708 = vtanh.f32 %v6772_v61  ;;  %v6995_v3 = vmul.f32 0.5, %v9707_v43  ;;  %v9474_v61 = vld [vmem:[%s14424_s8 + $0xec] sm:$0xf]  ;;  %6074 = vmatpush.bf16.msra.mxu2 %v9034_v52 }
 0x698   : > { %v7101_v28 = vadd.f32 0.5, %v6989_v29  ;;  %v5695_v38 = vpop.f32.mrf.mxu2  ;;  %v5744_v1 = vpop.f32.mrf.mxu3  ;;  %9710 = vtanh.f32 %v6778_v18  ;;  %v8586_v18 = vor.u32 %v9474_v61, %v8583_v10 }
 0x699   : > { %v5696_v14 = vadd.f32 %v5695_v38, %v5647_v32  ;;  %v6785_v32 = vmul.f32 0.5, %v13127_v30  ;;  %v9530_v30 = vld [vmem:[%s14424_s8 + $0x2ac] sm:$0xf] }
 0x69a   : > { %v7209_v20 = vpack.c.bf16 %v7101_v28, %v7100_v13  ;;  %v5650_v13 = vadd.f32 %v5649_v46, %v5601_v22  ;;  %v7107_v28 = vadd.f32 0.5, %v6995_v3  ;;  %5976 = vmatpush.bf16.msra.mxu0 %v8586_v18  ;;  %v8807_v46 = vld [vmem:[%s14424_s8 + $0x2c4] sm:$0xf0] }
 0x69b   : > { %v5745_v47 = vadd.f32 %v5744_v1, %v5696_v14  ;;  %v5602_v42 = vpop.f32.mrf.mxu0  ;;  %v5651_v0 = vpop.f32.mrf.mxu1 }
 0x69c   : > { %7274 = vst [vmem:[%s13335_s30 + $0x1c] sm:$0xff] %v7209_v20  ;;  %v5603_v9 = vadd.f32 %v5602_v42, %v13283_v25  ;;  %v6792_v42 = vmul.f32 0.5, %v13144_v62  ;;  %v9579_v62 = vld [vmem:[%s14424_s8 + $0x434] sm:$0xf] }
 0x69d   : > { %v9709_v36 = vpop.eup %9708  ;;  %v6779_v53 = vmul.f32 0.5, %v5745_v47  ;;  %5893 = vmatmul.bf16.gmra.mxu2 %v12828_v24  ;;  %9177 = vmatmul.msk.bf16.gmra.mxu3 %vm1784_vm0, %v12830_v45 }
 0x69e   : > { %v6996_v29 = vmul.f32 0.5, %v9709_v36  ;;  %v9711_v14 = vpop.eup %9710 }
 0x69f   : > { %9712 = vtanh.f32 %v6779_v53  ;;  %v7002_v10 = vmul.f32 0.5, %v9711_v14  ;;  %v8810_v53 = vor.u32 %v9530_v30, %v8807_v46  ;;  %v9467_v46 = vld [vmem:[%s14424_s8 + $0xb4] sm:$0xf] }
 0x6a0   : > { %v7108_v38 = vadd.f32 0.5, %v6996_v29  ;;  %v5698_v1 = vpop.f32.mrf.mxu2  ;;  %v5747_v43 = vpop.f32.mrf.mxu3  ;;  %9714 = vtanh.f32 %v6785_v32  ;;  %v5652_v29 = vadd.f32 %v5651_v0, %v5603_v9  ;;  %v9003_v0 = vld [vmem:[%s14424_s8 + $0x44c] sm:$0xf0] }
 0x6a1   : > { %v5699_v20 = vadd.f32 %v5698_v1, %v5650_v13  ;;  %6025 = vmatpush.bf16.msra.mxu1 %v8810_v53  ;;  %v7114_v18 = vadd.f32 0.5, %v7002_v10 }
 0x6a2   : > { %v7213_v47 = vpack.c.bf16 %v7108_v38, %v7107_v28 }
 0x6a3   : > { %v5748_v54 = vadd.f32 %v5747_v43, %v5699_v20  ;;  %v5605_v36 = vpop.f32.mrf.mxu0  ;;  %v5654_v61 = vpop.f32.mrf.mxu1 }
 0x6a4   : > { %7278 = vst [vmem:[%s13335_s30 + $0x38] sm:$0xff] %v7213_v47  ;;  %v5606_v14 = vadd.f32 %v5605_v36, %v13283_v25  ;;  %v9006_v36 = vor.u32 %v9579_v62, %v9003_v0 }
 0x6a5   : > { %v9713_v22 = vpop.eup %9712  ;;  %v6786_v3 = vmul.f32 0.5, %v5748_v54 }
 0x6a6   : > { %v7003_v52 = vmul.f32 0.5, %v9713_v22  ;;  %5800 = vmatmul.bf16.gmra.mxu0 %v12851_v4  ;;  %5849 = vmatmul.bf16.gmra.mxu1 %v12853_v7  ;;  %v9715_v38 = vpop.eup %9714  ;;  %v8555_v22 = vld [vmem:[%s14424_s8 + $0xcc] sm:$0xf0] }
 0x6a7   : > { %9716 = vtanh.f32 %v6786_v3  ;;  %v7009_v30 = vmul.f32 0.5, %v9715_v38  ;;  %v8558_v53 = vor.u32 %v9467_v46, %v8555_v22  ;;  %6075 = vmatpush.bf16.msra.mxu2 %v9006_v36 }
 0x6a8   : > { %v7115_v32 = vadd.f32 0.5, %v7003_v52  ;;  %v5700_v13 = vpop.f32.mrf.mxu2  ;;  %v5749_v28 = vpop.f32.mrf.mxu3  ;;  %9718 = vtanh.f32 %v6792_v42  ;;  %v6799_v52 = vmul.f32 0.5, %v13156_v33  ;;  %v5655_v42 = vadd.f32 %v5654_v61, %v5606_v14  ;;  %v9523_v33 = vld [vmem:[%s14424_s8 + $0x274] sm:$0xf]  ;;  %v8779_v61 = vld [vmem:[%s14424_s8 + $0x28c] sm:$0xf0] }
 0x6a9   : > { %v5701_v1 = vadd.f32 %v5700_v13, %v5652_v29  ;;  %v7121_v29 = vadd.f32 0.5, %v7009_v30  ;;  %5977 = vmatpush.bf16.msra.mxu0 %v8558_v53 }
 0x6aa   : > { %v7217_v43 = vpack.c.bf16 %v7115_v32, %v7114_v18 }
 0x6ab   : > { %v5750_v20 = vadd.f32 %v5749_v28, %v5701_v1  ;;  %v5607_v47 = vpop.f32.mrf.mxu0  ;;  %v5656_v54 = vpop.f32.mrf.mxu1 }
 0x6ac   : > { %7282 = vst [vmem:[%s13335_s30 + $0x54] sm:$0xff] %v7217_v43  ;;  %v5608_v43 = vadd.f32 %v5607_v47, %v13283_v25  ;;  %v6806_v47 = vmul.f32 0.5, %v13173_v56  ;;  %v9572_v56 = vld [vmem:[%s14424_s8 + $0x3fc] sm:$0xf] }
 0x6ad   : > { %v9717_v9 = vpop.eup %9716  ;;  %v6793_v10 = vmul.f32 0.5, %v5750_v20  ;;  %5898 = vmatmul.bf16.gmra.mxu2 %v12867_v23  ;;  %9178 = vmatmul.msk.bf16.gmra.mxu3 %vm1784_vm0, %v12869_v21 }
 0x6ae   : > { %v7010_v3 = vmul.f32 0.5, %v9717_v9  ;;  %v9719_v28 = vpop.eup %9718  ;;  %v5657_v46 = vadd.f32 %v5656_v54, %v5608_v43  ;;  %v8975_v54 = vld [vmem:[%s14424_s8 + $0x414] sm:$0xf0] }
 0x6af   : > { %9720 = vtanh.f32 %v6793_v10  ;;  %v7016_v9 = vmul.f32 0.5, %v9719_v28  ;;  %v8782_v10 = vor.u32 %v9523_v33, %v8779_v61  ;;  %v8527_v33 = vld [vmem:[%s14424_s8 + $0x94] sm:$0xf0] }
 0x6b0   : > { %v7122_v18 = vadd.f32 0.5, %v7010_v3  ;;  %v5703_v32 = vpop.f32.mrf.mxu2  ;;  %v5752_v13 = vpop.f32.mrf.mxu3  ;;  %9722 = vtanh.f32 %v6799_v52 }
 0x6b1   : > { %v5704_v38 = vadd.f32 %v5703_v32, %v5655_v42  ;;  %6026 = vmatpush.bf16.msra.mxu1 %v8782_v10  ;;  %v7128_v22 = vadd.f32 0.5, %v7016_v9  ;;  %v9460_v9 = vld [vmem:[%s14424_s8 + $0x7c] sm:$0xf] }
 0x6b2   : > { %v7221_v1 = vpack.c.bf16 %v7122_v18, %v7121_v29 }
 0x6b3   : > { %v5753_v20 = vadd.f32 %v5752_v13, %v5704_v38  ;;  %v5610_v62 = vpop.f32.mrf.mxu0  ;;  %v5659_v0 = vpop.f32.mrf.mxu1 }
 0x6b4   : > { %7286 = vst [vmem:[%s13335_s30 + $0x70] sm:$0xff] %v7221_v1  ;;  %v5611_v32 = vadd.f32 %v5610_v62, %v13283_v25  ;;  %v8978_v62 = vor.u32 %v9572_v56, %v8975_v54 }
 0x6b5   : > { %v9721_v14 = vpop.eup %9720  ;;  %v6800_v30 = vmul.f32 0.5, %v5753_v20 }
 0x6b6   : > { %v7017_v36 = vmul.f32 0.5, %v9721_v14  ;;  %5805 = vmatmul.bf16.gmra.mxu0 %v12890_v35  ;;  %5854 = vmatmul.bf16.gmra.mxu1 %v12892_v31  ;;  %v9723_v42 = vpop.eup %9722  ;;  %v8530_v14 = vor.u32 %v9460_v9, %v8527_v33  ;;  %v5660_v10 = vadd.f32 %v5659_v0, %v5611_v32  ;;  %v8751_v0 = vld [vmem:[%s14424_s8 + $0x254] sm:$0xf0] }
 0x6b7   : > { %9724 = vtanh.f32 %v6800_v30  ;;  %v7023_v1 = vmul.f32 0.5, %v9723_v42  ;;  %v6813_v30 = vmul.f32 0.5, %v13185_v19  ;;  %6076 = vmatpush.bf16.msra.mxu2 %v8978_v62  ;;  %v9516_v19 = vld [vmem:[%s14424_s8 + $0x23c] sm:$0xf] }
 0x6b8   : > { %v7129_v3 = vadd.f32 0.5, %v7017_v36  ;;  %v5705_v53 = vpop.f32.mrf.mxu2  ;;  %v5754_v52 = vpop.f32.mrf.mxu3  ;;  %9726 = vtanh.f32 %v6806_v47  ;;  %5978 = vmatpush.bf16.msra.mxu0 %v8530_v14  ;;  %v8754_v54 = vor.u32 %v9516_v19, %v8751_v0  ;;  %v9509_v0 = vld [vmem:[%s14424_s8 + $0x204] sm:$0xf] }
 0x6b9   : > { %v5706_v29 = vadd.f32 %v5705_v53, %v5657_v46  ;;  %v7135_v36 = vadd.f32 0.5, %v7023_v1 }
 0x6ba   : > { %v7225_v18 = vpack.c.bf16 %v7129_v3, %v7128_v22  ;;  %6027 = vmatpush.bf16.msra.mxu1 %v8754_v54 }
 0x6bb   : > { %v5755_v13 = vadd.f32 %v5754_v52, %v5706_v29  ;;  %v5612_v28 = vpop.f32.mrf.mxu0  ;;  %v5661_v38 = vpop.f32.mrf.mxu1 }
 0x6bc   : > { %7290 = vst [vmem:[%s13335_s30 + $0x8c] sm:$0xff] %v7225_v18  ;;  %v5613_v42 = vadd.f32 %v5612_v28, %v13283_v25  ;;  %v6820_v28 = vmul.f32 0.5, %v13202_v58  ;;  %v9565_v58 = vld [vmem:[%s14424_s8 + $0x3c4] sm:$0xf] }
 0x6bd   : > { %v9725_v43 = vpop.eup %9724  ;;  %v6807_v20 = vmul.f32 0.5, %v5755_v13  ;;  %5903 = vmatmul.bf16.gmra.mxu2 %v12906_v44  ;;  %9179 = vmatmul.msk.bf16.gmra.mxu3 %vm1784_vm0, %v12908_v39 }
 0x6be   : > { %v7024_v61 = vmul.f32 0.5, %v9725_v43  ;;  %v9727_v3 = vpop.eup %9726 }
 0x6bf   : > { %9728 = vtanh.f32 %v6807_v20  ;;  %v7030_v56 = vmul.f32 0.5, %v9727_v3  ;;  %v5662_v20 = vadd.f32 %v5661_v38, %v5613_v42  ;;  %v8947_v38 = vld [vmem:[%s14424_s8 + $0x3dc] sm:$0xf0] }
 0x6c0   : > { %v7136_v47 = vadd.f32 0.5, %v7024_v61  ;;  %v5708_v46 = vpop.f32.mrf.mxu2  ;;  %v5757_v22 = vpop.f32.mrf.mxu3  ;;  %9730 = vtanh.f32 %v6813_v30  ;;  %v8950_v42 = vor.u32 %v9565_v58, %v8947_v38 }
 0x6c1   : > { %v5709_v53 = vadd.f32 %v5708_v46, %v5660_v10  ;;  %v7142_v62 = vadd.f32 0.5, %v7030_v56 }
 0x6c2   : > { %v7229_v52 = vpack.c.bf16 %v7136_v47, %v7135_v36  ;;  %6077 = vmatpush.bf16.msra.mxu2 %v8950_v42 }
 0x6c3   : > { %v5758_v29 = vadd.f32 %v5757_v22, %v5709_v53  ;;  %v5615_v18 = vpop.f32.mrf.mxu0  ;;  %v5664_v13 = vpop.f32.mrf.mxu1 }
 0x6c4   : > { %7294 = vst [vmem:[%s13335_s30 + $0xa8] sm:$0xff] %v7229_v52  ;;  %v5616_v36 = vadd.f32 %v5615_v18, %v13283_v25  ;;  %v8499_v18 = vld [vmem:[%s14424_s8 + $0x5c] sm:$0xf0] }
 0x6c5   : > { %v9729_v32 = vpop.eup %9728  ;;  %v6814_v1 = vmul.f32 0.5, %v5758_v29  ;;  %v9453_v29 = vld [vmem:[%s14424_s8 + $0x44] sm:$0xf] }
 0x6c6   : > { %v7031_v43 = vmul.f32 0.5, %v9729_v32  ;;  %5810 = vmatmul.bf16.gmra.mxu0 %v12929_v2  ;;  %5859 = vmatmul.bf16.gmra.mxu1 %v12931_v48  ;;  %v9731_v14 = vpop.eup %9730  ;;  %v8502_v19 = vor.u32 %v9453_v29, %v8499_v18  ;;  %v8723_v32 = vld [vmem:[%s14424_s8 + $0x21c] sm:$0xf0]  ;;  %v5665_v54 = vadd.f32 %v5664_v13, %v5616_v36  ;;  %v9502_v13 = vld [vmem:[%s14424_s8 + $0x1cc] sm:$0xf] }
 0x6c7   : > { %9732 = vtanh.f32 %v6814_v1  ;;  %v7037_v3 = vmul.f32 0.5, %v9731_v14  ;;  %v6827_v1 = vmul.f32 0.5, %v13226_v34  ;;  %v9446_v14 = vld [vmem:[%s14424_s8 + $0xc] sm:$0xf]  ;;  %v8471_v34 = vld [vmem:[%s14424_s8 + $0x24] sm:$0xf0] }
 0x6c8   : > { %v7143_v9 = vadd.f32 0.5, %v7031_v43  ;;  %v5710_v33 = vpop.f32.mrf.mxu2  ;;  %v5759_v61 = vpop.f32.mrf.mxu3  ;;  %9734 = vtanh.f32 %v6820_v28  ;;  %v8726_v43 = vor.u32 %v9509_v0, %v8723_v32  ;;  %5979 = vmatpush.bf16.msra.mxu0 %v8502_v19  ;;  %v8695_v36 = vld [vmem:[%s14424_s8 + $0x1e4] sm:$0xf0] }
 0x6c9   : > { %v5711_v30 = vadd.f32 %v5710_v33, %v5662_v20  ;;  %v7149_v28 = vadd.f32 0.5, %v7037_v3  ;;  %v8919_v0 = vld [vmem:[%s14424_s8 + $0x3a4] sm:$0xf0] }
 0x6ca   : > { %v7233_v10 = vpack.c.bf16 %v7143_v9, %v7142_v62  ;;  %6028 = vmatpush.bf16.msra.mxu1 %v8726_v43 }
 0x6cb   : > { %v5760_v47 = vadd.f32 %v5759_v61, %v5711_v30  ;;  %v5617_v46 = vpop.f32.mrf.mxu0  ;;  %v5666_v22 = vpop.f32.mrf.mxu1 }
 0x6cc   : > { %7298 = vst [vmem:[%s13335_s30 + $0xc4] sm:$0xff] %v7233_v10  ;;  %v8474_v10 = vor.u32 %v9446_v14, %v8471_v34 }
 0x6cd   : > { %v9733_v53 = vpop.eup %9732  ;;  %v6821_v52 = vmul.f32 0.5, %v5760_v47  ;;  %5908 = vmatmul.bf16.gmra.mxu2 %v12945_v6  ;;  %9180 = vmatmul.msk.bf16.gmra.mxu3 %vm1784_vm0, %v12947_v16  ;;  %v5618_v47 = vadd.f32 %v5617_v46, %v13283_v25  ;;  %v9558_v46 = vld [vmem:[%s14424_s8 + $0x38c] sm:$0xf] }
 0x6ce   : > { %v7038_v56 = vmul.f32 0.5, %v9733_v53  ;;  %v9735_v33 = vpop.eup %9734  ;;  %v8698_v53 = vor.u32 %v9502_v13, %v8695_v36  ;;  %5980 = vmatpush.bf16.msra.mxu0 %v8474_v10  ;;  %v6841_v13 = vmul.f32 0.5, %v13243_v27 }
 0x6cf   : > { %9736 = vtanh.f32 %v6821_v52  ;;  %v7044_v52 = vmul.f32 0.5, %v9735_v33  ;;  %v5667_v19 = vadd.f32 %v5666_v22, %v5618_v47 }
 0x6d0   : > { %v7150_v20 = vadd.f32 0.5, %v7038_v56  ;;  %v5713_v62 = vpop.f32.mrf.mxu2  ;;  %v5762_v9 = vpop.f32.mrf.mxu3  ;;  %9738 = vtanh.f32 %v6827_v1  ;;  %6029 = vmatpush.bf16.msra.mxu1 %v8698_v53  ;;  %v6834_v56 = vmul.f32 0.5, %v13237_v40 }
 0x6d1   : > { %v5714_v61 = vadd.f32 %v5713_v62, %v5665_v54  ;;  %v7156_v32 = vadd.f32 0.5, %v7044_v52 }
 0x6d2   : > { %v7237_v30 = vpack.c.bf16 %v7150_v20, %v7149_v28  ;;  %v8922_v28 = vor.u32 %v9558_v46, %v8919_v0 }
 0x6d3   : > { %v5763_v3 = vadd.f32 %v5762_v9, %v5714_v61  ;;  %v5620_v58 = vpop.f32.mrf.mxu0  ;;  %v5669_v38 = vpop.f32.mrf.mxu1 }
 0x6d4   : > { %7302 = vst [vmem:[%s13335_s30 + $0xe0] sm:$0xff] %v7237_v30  ;;  %6078 = vmatpush.bf16.msra.mxu2 %v8922_v28  ;;  %v5621_v40 = vadd.f32 %v5620_v58, %v13283_v25 }
 0x6d5   : > { %v9737_v42 = vpop.eup %9736  ;;  %v6828_v29 = vmul.f32 0.5, %v5763_v3 }
 0x6d6   : > { %v7045_v18 = vmul.f32 0.5, %v9737_v42  ;;  %5815 = vmatmul.bf16.gmra.mxu0 %v12974_v8  ;;  %5864 = vmatmul.bf16.gmra.mxu1 %v12976_v49  ;;  %v9739_v20 = vpop.eup %9738  ;;  %v5670_v36 = vadd.f32 %v5669_v38, %v5621_v40 }
 0x6d7   : > { %9740 = vtanh.f32 %v6828_v29  ;;  %v7051_v14 = vmul.f32 0.5, %v9739_v20 }
 0x6d8   : > { %v7157_v1 = vadd.f32 0.5, %v7045_v18  ;;  %v5715_v54 = vpop.f32.mrf.mxu2  ;;  %v5764_v43 = vpop.f32.mrf.mxu3  ;;  %9742 = vtanh.f32 %v6834_v56 }
 0x6d9   : > { %v5716_v62 = vadd.f32 %v5715_v54, %v5667_v19  ;;  %v7163_v47 = vadd.f32 0.5, %v7051_v14  ;;  %v6848_v54 = vmul.f32 0.5, %v13266_v57  ;;  %v9121_v57 = vld [vmem:[%s14424_s8 + $0x518] sm:$0xf] }
 0x6da   : > { %v7241_v9 = vpack.c.bf16 %v7157_v1, %v7156_v32 }
 0x6db   : > { %v5765_v22 = vadd.f32 %v5764_v43, %v5716_v62  ;;  %v5622_v33 = vpop.f32.mrf.mxu0  ;;  %v5671_v61 = vpop.f32.mrf.mxu1 }
 0x6dc   : > { %7306 = vst [vmem:[%s13335_s30 + $0xfc] sm:$0xff] %v7241_v9  ;;  %v5623_v27 = vadd.f32 %v5622_v33, %v13283_v25 }
 0x6dd   : > { %v9741_v34 = vpop.eup %9740  ;;  %v6835_v30 = vmul.f32 0.5, %v5765_v22  ;;  %5913 = vmatmul.bf16.gmra.mxu2 %v12984_v15  ;;  %9181 = vmatmul.msk.bf16.gmra.mxu3 %vm1784_vm0, %v12986_v50 }
 0x6de   : > { %v7052_v10 = vmul.f32 0.5, %v9741_v34  ;;  %v9743_v52 = vpop.eup %9742  ;;  %v5672_v43 = vadd.f32 %v5671_v61, %v5623_v27  ;;  %v9611_v61 = vld [vmem:[%s14424_s8 + $0x530] sm:$0xf0]  ;;  %v9618_v27 = vld [vmem:[%s14424_s8 + $0x568] sm:$0xf0] }
 0x6df   : > { %9744 = vtanh.f32 %v6835_v30  ;;  %v7058_v46 = vmul.f32 0.5, %v9743_v52 }
 0x6e0   : > { %v7164_v3 = vadd.f32 0.5, %v7052_v10  ;;  %v5718_v58 = vpop.f32.mrf.mxu2  ;;  %v5767_v53 = vpop.f32.mrf.mxu3  ;;  %9746 = vtanh.f32 %v6841_v13 }
 0x6e1   : > { %v5719_v42 = vadd.f32 %v5718_v58, %v5670_v36  ;;  %v7170_v28 = vadd.f32 0.5, %v7058_v46  ;;  %v9499_v58 = vld [vmem:[%s14424_s8 + $0x1b0] sm:$0xf0] }
 0x6e2   : > { %v7245_v29 = vpack.c.bf16 %v7164_v3, %v7163_v47  ;;  %v9122_v47 = vor.u32 %v9611_v61, %v9121_v57  ;;  %v8673_v3 = vld [vmem:[%s14424_s8 + $0x198] sm:$0xf] }
 0x6e3   : > { %v5768_v18 = vadd.f32 %v5767_v53, %v5719_v42  ;;  %v5625_v56 = vpop.f32.mrf.mxu0  ;;  %v5674_v19 = vpop.f32.mrf.mxu1  ;;  %v8674_v42 = vor.u32 %v9499_v58, %v8673_v3  ;;  %v14655_v3 = vld [vmem:[#allocation9_spill] sm:$0xff] }
 0x6e4   : > { %7310 = vst [vmem:[%s13335_s30 + $0x118] sm:$0xff] %v7245_v29  ;;  %v5626_v14 = vadd.f32 %v5625_v56, %v13283_v25  ;;  %v9149_v29 = vld [vmem:[%s14424_s8 + $0x550] sm:$0xf]  ;;  %6267 = vmatpush.bf16.msrb.mxu2 %v9122_v47  ;;  %v6862_v58 = vmul.f32 0.5, %v14655_v3  ;;  %v8869_v3 = vld [vmem:[%s14424_s8 + $0x320] sm:$0xf] }
 0x6e5   : > { %v9745_v0 = vpop.eup %9744  ;;  %v6842_v32 = vmul.f32 0.5, %v5768_v18  ;;  %v6855_v18 = vmul.f32 0.5, %v13272_v41  ;;  %v9150_v46 = vor.u32 %v9618_v27, %v9149_v29  ;;  %6169 = vmatpush.bf16.msrb.mxu0 %v8674_v42  ;;  %v8897_v41 = vld [vmem:[%s14424_s8 + $0x358] sm:$0xf]  ;;  %v14654_v47 = vld [vmem:[#allocation21_spill] sm:$0xff] }
 0x6e6   : > { %v7059_v1 = vmul.f32 0.5, %v9745_v0  ;;  %5820 = vmatmul.bf16.gmra.mxu0 %v13013_v59  ;;  %5869 = vmatmul.bf16.gmra.mxu1 %v13015_v60  ;;  %v9747_v38 = vpop.eup %9746  ;;  %v5675_v56 = vadd.f32 %v5674_v19, %v5626_v14  ;;  %v9555_v19 = vld [vmem:[%s14424_s8 + $0x370] sm:$0xf0]  ;;  %v9093_v29 = vld [vmem:[%s14424_s8 + $0x4e0] sm:$0xf] }
 0x6e7   : > { %9748 = vtanh.f32 %v6842_v32  ;;  %v7065_v22 = vmul.f32 0.5, %v9747_v38  ;;  %v13520_v38 = vld [vmem:[%s14425_s9] sm:$0x7f]  ;;  %6323 = vmatpush.bf16.msrb.mxu3 %v9150_v46  ;;  %v9604_v27 = vld [vmem:[%s14424_s8 + $0x4f8] sm:$0xf0] }
 0x6e8   : > { %v7171_v20 = vadd.f32 0.5, %v7059_v1  ;;  %v5720_v62 = vpop.f32.mrf.mxu2  ;;  %v5769_v9 = vpop.f32.mrf.mxu3  ;;  %9750 = vtanh.f32 %v6848_v54  ;;  %v13523_v54 = vperm.slane %v13520_v38, 2  ;;  %v9094_v46 = vor.u32 %v9604_v27, %v9093_v29 }
 0x6e9   : > { %v5721_v40 = vadd.f32 %v5720_v62, %v5672_v43  ;;  %v7177_v53 = vadd.f32 0.5, %v7065_v22 }
 0x6ea   : > { %v7249_v33 = vpack.c.bf16 %v7171_v20, %v7170_v28  ;;  %v8898_v20 = vor.u32 %v9555_v19, %v8897_v41  ;;  %6268 = vmatpush.bf16.msrb.mxu2 %v9094_v46 }
 0x6eb   : > { %v5770_v34 = vadd.f32 %v5769_v9, %v5721_v40  ;;  %v5627_v13 = vpop.f32.mrf.mxu0  ;;  %v5676_v30 = vpop.f32.mrf.mxu1 }
 0x6ec   : > { %7314 = vst [vmem:[%s13335_s30 + $0x134] sm:$0xff] %v7249_v33  ;;  %v5628_v9 = vadd.f32 %v5627_v13, %v13283_v25  ;;  %6218 = vmatpush.bf16.msrb.mxu1 %v8898_v20 }
 0x6ed   : > { %v9749_v10 = vpop.eup %9748  ;;  %v6849_v36 = vmul.f32 0.5, %v5770_v34  ;;  %5918 = vmatmul.bf16.gmra.mxu2 %v13023_v51  ;;  %9182 = vmatmul.msk.bf16.gmra.mxu3 %vm1784_vm0, %v13025_v37 }
 0x6ee   : > { %v7066_v52 = vmul.f32 0.5, %v9749_v10  ;;  %v9751_v43 = vpop.eup %9750 }
 0x6ef   : > { %9752 = vtanh.f32 %v6849_v36  ;;  %v7072_v14 = vmul.f32 0.5, %v9751_v43 }
 0x6f0   : > { %v7178_v0 = vadd.f32 0.5, %v7066_v52  ;;  %v5723_v32 = vpop.f32.mrf.mxu2  ;;  %v5772_v1 = vpop.f32.mrf.mxu3  ;;  %9754 = vtanh.f32 %v6855_v18 }
 0x6f1   : > { %v5724_v28 = vadd.f32 %v5723_v32, %v5675_v56  ;;  %v7184_v25 = vadd.f32 0.5, %v7072_v14 }
 0x6f2   : > { %v7253_v62 = vpack.c.bf16 %v7178_v0, %v7177_v53  ;;  %v5677_v53 = vadd.f32 %v5676_v30, %v5628_v9  ;;  %v8645_v30 = vld [vmem:[%s14424_s8 + $0x160] sm:$0xf]  ;;  %v9492_v0 = vld [vmem:[%s14424_s8 + $0x178] sm:$0xf0] }
 0x6f3   : > { %v5773_v40 = vadd.f32 %v5772_v1, %v5724_v28  ;;  %v5786_v22 = vpop.f32.mrf.mxu0  ;;  %v5835_v33 = vpop.f32.mrf.mxu1  ;;  %v8646_v1 = vor.u32 %v9492_v0, %v8645_v30 }
 0x6f4   : > { %7318 = vst [vmem:[%s13335_s30 + $0x150] sm:$0xff] %v7253_v62  ;;  %v5787_v34 = vadd.f32 %v5786_v22, %v13523_v54  ;;  %v14657_v22 = vld [vmem:[#allocation24_spill] sm:$0xff] }
 0x6f5   : > { %v9753_v57 = vpop.eup %9752  ;;  %v6856_v61 = vmul.f32 0.5, %v5773_v40  ;;  %6170 = vmatpush.bf16.msrb.mxu0 %v8646_v1  ;;  %v14656_v40 = vld [vmem:[#allocation23_spill] sm:$0xff] }
 0x6f6   : > { %v7073_v10 = vmul.f32 0.5, %v9753_v57  ;;  %v5836_v36 = vadd.f32 %v5835_v33, %v5787_v34  ;;  %5981 = vmatmul.bf16.vlgmr.msra.gmra.mxu0 %v12734_v12  ;;  %6030 = vmatmul.bf16.vlgmr.msra.gmra.mxu1 %v14654_v47  ;;  %v9755_v18 = vpop.eup %9754 }
 0x6f7   : > { %9756 = vtanh.f32 %v6856_v61  ;;  %v7079_v28 = vmul.f32 0.5, %v9755_v18 }
 0x6f8   : > { %v7185_v13 = vadd.f32 0.5, %v7073_v10  ;;  %v5725_v52 = vpop.f32.mrf.mxu2  ;;  %v5774_v42 = vpop.f32.mrf.mxu3  ;;  %9758 = vtanh.f32 %v6862_v58  ;;  %v9548_v58 = vld [vmem:[%s14424_s8 + $0x338] sm:$0xf0] }
 0x6f9   : > { %v5726_v56 = vadd.f32 %v5725_v52, %v5677_v53  ;;  %v7191_v34 = vadd.f32 0.5, %v7079_v28 }
 0x6fa   : > { %v7257_v32 = vpack.c.bf16 %v7185_v13, %v7184_v25  ;;  %v8870_v13 = vor.u32 %v9548_v58, %v8869_v3 }
 0x6fb   : > { %v5775_v41 = vadd.f32 %v5774_v42, %v5726_v56  ;;  %v5788_v19 = vpop.f32.mrf.mxu0  ;;  %v5837_v43 = vpop.f32.mrf.mxu1 }
 0x6fc   : > { %7322 = vst [vmem:[%s13335_s30 + $0x16c] sm:$0xff] %v7257_v32  ;;  %v5789_v20 = vadd.f32 %v5788_v19, %v13523_v54  ;;  %6219 = vmatpush.bf16.msrb.mxu1 %v8870_v13  ;;  %v9065_v19 = vld [vmem:[%s14424_s8 + $0x4a8] sm:$0xf]  ;;  %v9541_v13 = vld [vmem:[%s14424_s8 + $0x300] sm:$0xf0] }
 0x6fd   : > { %v9757_v62 = vpop.eup %9756  ;;  %v6863_v9 = vmul.f32 0.5, %v5775_v41  ;;  %6079 = vmatmul.bf16.vlgmr.msra.gmra.mxu2 %v14656_v40  ;;  %9183 = vmatmul.msk.bf16.vlgmr.msra.gmra.mxu3 %vm1784_vm0, %v14657_v22 }
 0x6fe   : > { %v7080_v33 = vmul.f32 0.5, %v9757_v62  ;;  %v5838_v14 = vadd.f32 %v5837_v43, %v5789_v20  ;;  %v9759_v53 = vpop.eup %9758  ;;  %v9597_v43 = vld [vmem:[%s14424_s8 + $0x4c0] sm:$0xf0]  ;;  %v8617_v62 = vld [vmem:[%s14424_s8 + $0x128] sm:$0xf] }
 0x6ff   : > { %9760 = vtanh.f32 %v6863_v9  ;;  %v7086_v18 = vmul.f32 0.5, %v9759_v53  ;;  %v9066_v20 = vor.u32 %v9597_v43, %v9065_v19  ;;  %v9485_v9 = vld [vmem:[%s14424_s8 + $0x140] sm:$0xf0]  ;;  %v8589_v43 = vld [vmem:[%s14424_s8 + $0xf0] sm:$0xf] }
 0x700   : > { %v7192_v57 = vadd.f32 0.5, %v7080_v33  ;;  %v5884_v61 = vpop.f32.mrf.mxu2  ;;  %v5933_v10 = vpop.f32.mrf.mxu3 }
 0x701   : > { %v5885_v25 = vadd.f32 %v5884_v61, %v5836_v36  ;;  %v7198_v32 = vadd.f32 0.5, %v7086_v18  ;;  %6269 = vmatpush.bf16.msrb.mxu2 %v9066_v20 }
 0x702   : > { %v7261_v52 = vpack.c.bf16 %v7192_v57, %v7191_v34  ;;  %v8618_v34 = vor.u32 %v9485_v9, %v8617_v62 }
 0x703   : > { %v13560_v42 = vadd.f32 %v5933_v10, %v5885_v25  ;;  %v5791_v29 = vpop.f32.mrf.mxu0  ;;  %v5840_v27 = vpop.f32.mrf.mxu1  ;;  %v8841_v25 = vld [vmem:[%s14424_s8 + $0x2e8] sm:$0xf] }
 0x704   : > { %7326 = vst [vmem:[%s13335_s30 + $0x188] sm:$0xff] %v7261_v52  ;;  %v5792_v56 = vadd.f32 %v5791_v29, %v13523_v54  ;;  %6171 = vmatpush.bf16.msrb.mxu0 %v8618_v34  ;;  %v8842_v29 = vor.u32 %v9541_v13, %v8841_v25 }
 0x705   : > { %v9761_v46 = vpop.eup %9760 }
 0x706   : > { %v7087_v30 = vmul.f32 0.5, %v9761_v46  ;;  %v5841_v0 = vadd.f32 %v5840_v27, %v5792_v56  ;;  %5986 = vmatmul.bf16.gmra.mxu0 %v12773_v17  ;;  %6035 = vmatmul.bf16.gmra.mxu1 %v12775_v26 }
 0x707   : > { %6220 = vmatpush.bf16.msrb.mxu1 %v8842_v29 }
 0x708   : > { %v7199_v36 = vadd.f32 0.5, %v7087_v30  ;;  %v5886_v1 = vpop.f32.mrf.mxu2  ;;  %v5935_v41 = vpop.f32.mrf.mxu3 }
 0x709   : > { %v5887_v28 = vadd.f32 %v5886_v1, %v5838_v14  ;;  %v9037_v1 = vld [vmem:[%s14424_s8 + $0x470] sm:$0xf] }
 0x70a   : > { %v7265_v33 = vpack.c.bf16 %v7199_v36, %v7198_v32 }
 0x70b   : > { %v13578_v57 = vadd.f32 %v5935_v41, %v5887_v28  ;;  %v5793_v61 = vpop.f32.mrf.mxu0  ;;  %v5842_v10 = vpop.f32.mrf.mxu1  ;;  %v9478_v28 = vld [vmem:[%s14424_s8 + $0x108] sm:$0xf0] }
 0x70c   : > { %7330 = vst [vmem:[%s13335_s30 + $0x1a4] sm:$0xff] %v7265_v33  ;;  %v5794_v3 = vadd.f32 %v5793_v61, %v13523_v54  ;;  %v8590_v20 = vor.u32 %v9478_v28, %v8589_v43 }
 0x70d   : > { %6084 = vmatmul.bf16.gmra.mxu2 %v12789_v55  ;;  %9184 = vmatmul.msk.bf16.gmra.mxu3 %vm1784_vm0, %v12791_v5 }
 0x70e   : > { %v5843_v14 = vadd.f32 %v5842_v10, %v5794_v3  ;;  %6172 = vmatpush.bf16.msrb.mxu0 %v8590_v20 }
 0x710   : > { %v5889_v58 = vpop.f32.mrf.mxu2  ;;  %v5938_v53 = vpop.f32.mrf.mxu3 }
 0x711   : > { %v5890_v52 = vadd.f32 %v5889_v58, %v5841_v0  ;;  %v9590_v0 = vld [vmem:[%s14424_s8 + $0x488] sm:$0xf0] }
 0x712   : > { %v9038_v19 = vor.u32 %v9590_v0, %v9037_v1  ;;  %v9534_v58 = vld [vmem:[%s14424_s8 + $0x2c8] sm:$0xf0] }
 0x713   : > { %v13591_v27 = vadd.f32 %v5938_v53, %v5890_v52  ;;  %v5796_v18 = vpop.f32.mrf.mxu0  ;;  %v5845_v56 = vpop.f32.mrf.mxu1 }
 0x714   : > { %v5797_v46 = vadd.f32 %v5796_v18, %v13523_v54  ;;  %6270 = vmatpush.bf16.msrb.mxu2 %v9038_v19  ;;  %v9471_v19 = vld [vmem:[%s14424_s8 + $0xd0] sm:$0xf0] }
 0x716   : > { %v5846_v30 = vadd.f32 %v5845_v56, %v5797_v46  ;;  %5991 = vmatmul.bf16.gmra.mxu0 %v12812_v63  ;;  %6040 = vmatmul.bf16.gmra.mxu1 %v12814_v11 }
 0x718   : > { %v5891_v32 = vpop.f32.mrf.mxu2  ;;  %v5940_v36 = vpop.f32.mrf.mxu3 }
 0x719   : > { %v5892_v41 = vadd.f32 %v5891_v32, %v5843_v14  ;;  %v8813_v14 = vld [vmem:[%s14424_s8 + $0x2b0] sm:$0xf] }
 0x71a   : > { %v8814_v25 = vor.u32 %v9534_v58, %v8813_v14  ;;  %v9527_v14 = vld [vmem:[%s14424_s8 + $0x290] sm:$0xf0] }
 0x71b   : > { %v13608_v62 = vadd.f32 %v5940_v36, %v5892_v41  ;;  %v5798_v9 = vpop.f32.mrf.mxu0  ;;  %v5847_v33 = vpop.f32.mrf.mxu1  ;;  %v9009_v36 = vld [vmem:[%s14424_s8 + $0x438] sm:$0xf] }
 0x71c   : > { %v5799_v34 = vadd.f32 %v5798_v9, %v13523_v54  ;;  %6221 = vmatpush.bf16.msrb.mxu1 %v8814_v25  ;;  %v8561_v41 = vld [vmem:[%s14424_s8 + $0xb8] sm:$0xf] }
 0x71d   : > { %6089 = vmatmul.bf16.gmra.mxu2 %v12828_v24  ;;  %9185 = vmatmul.msk.bf16.gmra.mxu3 %vm1784_vm0, %v12830_v45  ;;  %v8562_v43 = vor.u32 %v9471_v19, %v8561_v41  ;;  %v8533_v41 = vld [vmem:[%s14424_s8 + $0x80] sm:$0xf]  ;;  %v9464_v19 = vld [vmem:[%s14424_s8 + $0x98] sm:$0xf0] }
 0x71e   : > { %v5848_v61 = vadd.f32 %v5847_v33, %v5799_v34 }
 0x71f   : > { %6173 = vmatpush.bf16.msrb.mxu0 %v8562_v43  ;;  %v8534_v43 = vor.u32 %v9464_v19, %v8533_v41 }
 0x720   : > { %v5894_v10 = vpop.f32.mrf.mxu2  ;;  %v5943_v3 = vpop.f32.mrf.mxu3 }
 0x721   : > { %v5895_v53 = vadd.f32 %v5894_v10, %v5846_v30  ;;  %v9583_v30 = vld [vmem:[%s14424_s8 + $0x450] sm:$0xf0] }
 0x722   : > { %v9010_v0 = vor.u32 %v9583_v30, %v9009_v36  ;;  %v8981_v30 = vld [vmem:[%s14424_s8 + $0x400] sm:$0xf] }
 0x723   : > { %v13620_v13 = vadd.f32 %v5943_v3, %v5895_v53  ;;  %v5801_v52 = vpop.f32.mrf.mxu0  ;;  %v5850_v29 = vpop.f32.mrf.mxu1  ;;  %v8785_v3 = vld [vmem:[%s14424_s8 + $0x278] sm:$0xf]  ;;  %6174 = vmatpush.bf16.msrb.mxu0 %v8534_v43  ;;  %v8505_v43 = vld [vmem:[%s14424_s8 + $0x48] sm:$0xf] }
 0x724   : > { %v5802_v18 = vadd.f32 %v5801_v52, %v13523_v54  ;;  %6271 = vmatpush.bf16.msrb.mxu2 %v9010_v0  ;;  %v8786_v53 = vor.u32 %v9527_v14, %v8785_v3  ;;  %v8757_v14 = vld [vmem:[%s14424_s8 + $0x240] sm:$0xf] }
 0x726   : > { %v5851_v56 = vadd.f32 %v5850_v29, %v5802_v18  ;;  %5996 = vmatmul.bf16.gmra.mxu0 %v12851_v4  ;;  %6045 = vmatmul.bf16.gmra.mxu1 %v12853_v7 }
 0x727   : > { %6222 = vmatpush.bf16.msrb.mxu1 %v8786_v53 }
 0x728   : > { %v5896_v46 = vpop.f32.mrf.mxu2  ;;  %v5945_v32 = vpop.f32.mrf.mxu3 }
 0x729   : > { %v5897_v1 = vadd.f32 %v5896_v46, %v5848_v61 }
 0x72b   : > { %v13637_v28 = vadd.f32 %v5945_v32, %v5897_v1  ;;  %v5803_v20 = vpop.f32.mrf.mxu0  ;;  %v5852_v9 = vpop.f32.mrf.mxu1 }
 0x72c   : > { %v5804_v33 = vadd.f32 %v5803_v20, %v13523_v54 }
 0x72d   : > { %6094 = vmatmul.bf16.gmra.mxu2 %v12867_v23  ;;  %9186 = vmatmul.msk.bf16.gmra.mxu3 %vm1784_vm0, %v12869_v21 }
 0x72e   : > { %v5853_v34 = vadd.f32 %v5852_v9, %v5804_v33 }
 0x730   : > { %v5899_v61 = vpop.f32.mrf.mxu2  ;;  %v5948_v10 = vpop.f32.mrf.mxu3 }
 0x731   : > { %v5900_v58 = vadd.f32 %v5899_v61, %v5851_v56  ;;  %v9576_v56 = vld [vmem:[%s14424_s8 + $0x418] sm:$0xf0] }
 0x732   : > { %v8982_v0 = vor.u32 %v9576_v56, %v8981_v30 }
 0x733   : > { %v13649_v25 = vadd.f32 %v5948_v10, %v5900_v58  ;;  %v5806_v52 = vpop.f32.mrf.mxu0  ;;  %v5855_v29 = vpop.f32.mrf.mxu1  ;;  %v9520_v58 = vld [vmem:[%s14424_s8 + $0x258] sm:$0xf0] }
 0x734   : > { %v5807_v18 = vadd.f32 %v5806_v52, %v13523_v54  ;;  %6272 = vmatpush.bf16.msrb.mxu2 %v8982_v0  ;;  %v8758_v52 = vor.u32 %v9520_v58, %v8757_v14  ;;  %v8953_v0 = vld [vmem:[%s14424_s8 + $0x3c8] sm:$0xf]  ;;  %v9513_v58 = vld [vmem:[%s14424_s8 + $0x220] sm:$0xf0] }
 0x736   : > { %v5856_v46 = vadd.f32 %v5855_v29, %v5807_v18  ;;  %6001 = vmatmul.bf16.gmra.mxu0 %v12890_v35  ;;  %6050 = vmatmul.bf16.gmra.mxu1 %v12892_v31 }
 0x737   : > { %6223 = vmatpush.bf16.msrb.mxu1 %v8758_v52 }
 0x738   : > { %v5901_v32 = vpop.f32.mrf.mxu2  ;;  %v5950_v36 = vpop.f32.mrf.mxu3 }
 0x739   : > { %v5902_v1 = vadd.f32 %v5901_v32, %v5853_v34 }
 0x73b   : > { %v13666_v20 = vadd.f32 %v5950_v36, %v5902_v1  ;;  %v5808_v9 = vpop.f32.mrf.mxu0  ;;  %v5857_v33 = vpop.f32.mrf.mxu1 }
 0x73c   : > { %v5809_v61 = vadd.f32 %v5808_v9, %v13523_v54  ;;  %v9457_v9 = vld [vmem:[%s14424_s8 + $0x60] sm:$0xf0] }
 0x73d   : > { %6099 = vmatmul.bf16.gmra.mxu2 %v12906_v44  ;;  %9187 = vmatmul.msk.bf16.gmra.mxu3 %vm1784_vm0, %v12908_v39 }
 0x73e   : > { %v5858_v34 = vadd.f32 %v5857_v33, %v5809_v61  ;;  %v8506_v33 = vor.u32 %v9457_v9, %v8505_v43 }
 0x740   : > { %v5904_v10 = vpop.f32.mrf.mxu2  ;;  %v5953_v3 = vpop.f32.mrf.mxu3  ;;  %6175 = vmatpush.bf16.msrb.mxu0 %v8506_v33 }
 0x741   : > { %v5905_v53 = vadd.f32 %v5904_v10, %v5856_v46  ;;  %v9569_v46 = vld [vmem:[%s14424_s8 + $0x3e0] sm:$0xf0] }
 0x742   : > { %v8954_v19 = vor.u32 %v9569_v46, %v8953_v0  ;;  %v8701_v0 = vld [vmem:[%s14424_s8 + $0x1d0] sm:$0xf] }
 0x743   : > { %v13678_v29 = vadd.f32 %v5953_v3, %v5905_v53  ;;  %v5811_v18 = vpop.f32.mrf.mxu0  ;;  %v5860_v32 = vpop.f32.mrf.mxu1 }
 0x744   : > { %v5812_v36 = vadd.f32 %v5811_v18, %v13523_v54  ;;  %6273 = vmatpush.bf16.msrb.mxu2 %v8954_v19 }
 0x746   : > { %v5861_v30 = vadd.f32 %v5860_v32, %v5812_v36  ;;  %6006 = vmatmul.bf16.gmra.mxu0 %v12929_v2  ;;  %6055 = vmatmul.bf16.gmra.mxu1 %v12931_v48 }
 0x748   : > { %v5906_v56 = vpop.f32.mrf.mxu2  ;;  %v5955_v1 = vpop.f32.mrf.mxu3 }
 0x749   : > { %v5907_v41 = vadd.f32 %v5906_v56, %v5858_v34  ;;  %v8729_v34 = vld [vmem:[%s14424_s8 + $0x208] sm:$0xf]  ;;  %v8477_v56 = vld [vmem:[%s14424_s8 + $0x10] sm:$0xf] }
 0x74a   : > { %v8730_v52 = vor.u32 %v9513_v58, %v8729_v34 }
 0x74b   : > { %v13695_v61 = vadd.f32 %v5955_v1, %v5907_v41  ;;  %v5813_v10 = vpop.f32.mrf.mxu0  ;;  %v5862_v3 = vpop.f32.mrf.mxu1  ;;  %v9450_v1 = vld [vmem:[%s14424_s8 + $0x28] sm:$0xf0] }
 0x74c   : > { %v5814_v14 = vadd.f32 %v5813_v10, %v13523_v54  ;;  %6224 = vmatpush.bf16.msrb.mxu1 %v8730_v52  ;;  %v8478_v46 = vor.u32 %v9450_v1, %v8477_v56  ;;  %v9506_v41 = vld [vmem:[%s14424_s8 + $0x1e8] sm:$0xf0] }
 0x74d   : > { %6104 = vmatmul.bf16.gmra.mxu2 %v12945_v6  ;;  %9188 = vmatmul.msk.bf16.gmra.mxu3 %vm1784_vm0, %v12947_v16  ;;  %v8702_v9 = vor.u32 %v9506_v41, %v8701_v0 }
 0x74e   : > { %v5863_v53 = vadd.f32 %v5862_v3, %v5814_v14  ;;  %6176 = vmatpush.bf16.msrb.mxu0 %v8478_v46  ;;  %v8925_v3 = vld [vmem:[%s14424_s8 + $0x390] sm:$0xf]  ;;  %v9562_v14 = vld [vmem:[%s14424_s8 + $0x3a8] sm:$0xf0] }
 0x74f   : > { %v8926_v52 = vor.u32 %v9562_v14, %v8925_v3 }
 0x750   : > { %v5909_v18 = vpop.f32.mrf.mxu2  ;;  %v5958_v32 = vpop.f32.mrf.mxu3  ;;  %6225 = vmatpush.bf16.msrb.mxu1 %v8702_v9 }
 0x751   : > { %v5910_v36 = vadd.f32 %v5909_v18, %v5861_v30  ;;  %6274 = vmatpush.bf16.msrb.mxu2 %v8926_v52 }
 0x753   : > { %v13719_v19 = vadd.f32 %v5958_v32, %v5910_v36  ;;  %v5816_v30 = vpop.f32.mrf.mxu0  ;;  %v5865_v43 = vpop.f32.mrf.mxu1 }
 0x754   : > { %v5817_v33 = vadd.f32 %v5816_v30, %v13523_v54 }
 0x756   : > { %v5866_v10 = vadd.f32 %v5865_v43, %v5817_v33  ;;  %6011 = vmatmul.bf16.gmra.mxu0 %v12974_v8  ;;  %6060 = vmatmul.bf16.gmra.mxu1 %v12976_v49 }
 0x758   : > { %v5911_v34 = vpop.f32.mrf.mxu2  ;;  %v5960_v58 = vpop.f32.mrf.mxu3 }
 0x759   : > { %v5912_v18 = vadd.f32 %v5911_v34, %v5863_v53 }
 0x75b   : > { %v13730_v32 = vadd.f32 %v5960_v58, %v5912_v18  ;;  %v5818_v36 = vpop.f32.mrf.mxu0  ;;  %v5867_v56 = vpop.f32.mrf.mxu1  ;;  %v9608_v58 = vld [vmem:[%s14424_s8 + $0x51c] sm:$0xf] }
 0x75c   : > { %v5819_v1 = vadd.f32 %v5818_v36, %v13523_v54  ;;  %v9496_v36 = vld [vmem:[%s14424_s8 + $0x19c] sm:$0xf] }
 0x75d   : > { %6109 = vmatmul.bf16.gmra.mxu2 %v12984_v15  ;;  %9189 = vmatmul.msk.bf16.gmra.mxu3 %vm1784_vm0, %v12986_v50 }
 0x75e   : > { %v5868_v0 = vadd.f32 %v5867_v56, %v5819_v1  ;;  %v8675_v56 = vld [vmem:[%s14424_s8 + $0x1b4] sm:$0xf0]  ;;  %v9615_v1 = vld [vmem:[%s14424_s8 + $0x554] sm:$0xf] }
 0x760   : > { %v5914_v46 = vpop.f32.mrf.mxu2  ;;  %v5963_v41 = vpop.f32.mrf.mxu3 }
 0x761   : > { %v5915_v30 = vadd.f32 %v5914_v46, %v5866_v10  ;;  %v9123_v10 = vld [vmem:[%s14424_s8 + $0x534] sm:$0xf0]  ;;  %v8678_v46 = vor.u32 %v9496_v36, %v8675_v56 }
 0x762   : > { %v9126_v18 = vor.u32 %v9608_v58, %v9123_v10 }
 0x763   : > { %v13736_v43 = vadd.f32 %v5963_v41, %v5915_v30  ;;  %v5821_v9 = vpop.f32.mrf.mxu0  ;;  %v5870_v53 = vpop.f32.mrf.mxu1  ;;  %v9151_v41 = vld [vmem:[%s14424_s8 + $0x56c] sm:$0xf0]  ;;  %6365 = vmatpush.bf16.msra.mxu0 %v8678_v46  ;;  %v13776_v46 = vperm.slane %v13520_v38, 3  ;;  %v9489_v38 = vld [vmem:[%s14424_s8 + $0x164] sm:$0xf] }
 0x764   : > { %v5822_v33 = vadd.f32 %v5821_v9, %v13523_v54  ;;  %6463 = vmatpush.bf16.msra.mxu2 %v9126_v18  ;;  %v9552_v18 = vld [vmem:[%s14424_s8 + $0x35c] sm:$0xf] }
 0x766   : > { %v5871_v3 = vadd.f32 %v5870_v53, %v5822_v33  ;;  %6016 = vmatmul.bf16.gmra.mxu0 %v13013_v59  ;;  %6065 = vmatmul.bf16.gmra.mxu1 %v13015_v60  ;;  %v9154_v53 = vor.u32 %v9615_v1, %v9151_v41 }
 0x768   : > { %v5916_v14 = vpop.f32.mrf.mxu2  ;;  %v5965_v34 = vpop.f32.mrf.mxu3  ;;  %6519 = vmatpush.bf16.msra.mxu3 %v9154_v53 }
 0x769   : > { %v5917_v52 = vadd.f32 %v5916_v14, %v5868_v0 }
 0x76b   : > { %v13759_v30 = vadd.f32 %v5965_v34, %v5917_v52  ;;  %v5823_v0 = vpop.f32.mrf.mxu0  ;;  %v5872_v9 = vpop.f32.mrf.mxu1 }
 0x76c   : > { %v5824_v33 = vadd.f32 %v5823_v0, %v13523_v54  ;;  %v8899_v54 = vld [vmem:[%s14424_s8 + $0x374] sm:$0xf0] }
 0x76d   : > { %6114 = vmatmul.bf16.gmra.mxu2 %v13023_v51  ;;  %9190 = vmatmul.msk.bf16.gmra.mxu3 %vm1784_vm0, %v13025_v37  ;;  %v8902_v1 = vor.u32 %v9552_v18, %v8899_v54  ;;  %v6759_v18 = vmul.f32 0.5, %v13560_v42  ;;  %v8871_v42 = vld [vmem:[%s14424_s8 + $0x33c] sm:$0xf0] }
 0x76e   : > { %v5873_v14 = vadd.f32 %v5872_v9, %v5824_v33 }
 0x76f   : > { %6414 = vmatpush.bf16.msra.mxu1 %v8902_v1  ;;  %9762 = vtanh.f32 %v6759_v18 }
 0x770   : > { %v5919_v58 = vpop.f32.mrf.mxu2  ;;  %v5968_v10 = vpop.f32.mrf.mxu3 }
 0x771   : > { %v5920_v36 = vadd.f32 %v5919_v58, %v5871_v3 }
 0x773   : > { %v13765_v56 = vadd.f32 %v5968_v10, %v5920_v36  ;;  %v5982_v34 = vpop.f32.mrf.mxu0  ;;  %v6031_v52 = vpop.f32.mrf.mxu1  ;;  %v9601_v10 = vld [vmem:[%s14424_s8 + $0x4e4] sm:$0xf]  ;;  %v9095_v36 = vld [vmem:[%s14424_s8 + $0x4fc] sm:$0xf0] }
 0x774   : > { %v5983_v9 = vadd.f32 %v5982_v34, %v13776_v46  ;;  %v8647_v34 = vld [vmem:[%s14424_s8 + $0x17c] sm:$0xf0] }
 0x775   : > { %v8650_v54 = vor.u32 %v9489_v38, %v8647_v34  ;;  %v9763_v38 = vpop.eup %9762 }
 0x776   : > { %6177 = vmatmul.bf16.vlgmr.msrb.gmra.mxu0 %v12734_v12  ;;  %6226 = vmatmul.bf16.vlgmr.msrb.gmra.mxu1 %v14654_v47  ;;  %v6032_v1 = vadd.f32 %v6031_v52, %v5983_v9 }
 0x777   : > { %6366 = vmatpush.bf16.msra.mxu0 %v8650_v54  ;;  %v6983_v54 = vmul.f32 0.5, %v9763_v38 }
 0x778   : > { %v5921_v3 = vpop.f32.mrf.mxu2  ;;  %v5970_v41 = vpop.f32.mrf.mxu3 }
 0x779   : > { %v5922_v0 = vadd.f32 %v5921_v3, %v5873_v14  ;;  %v9098_v14 = vor.u32 %v9601_v10, %v9095_v36  ;;  %v9545_v10 = vld [vmem:[%s14424_s8 + $0x324] sm:$0xf]  ;;  %v6766_v36 = vmul.f32 0.5, %v13578_v57  ;;  %v9482_v57 = vld [vmem:[%s14424_s8 + $0x12c] sm:$0xf]  ;;  %v7095_v38 = vadd.f32 0.5, %v6983_v54 }
 0x77a   : > { %v8874_v9 = vor.u32 %v9545_v10, %v8871_v42  ;;  %v8619_v42 = vld [vmem:[%s14424_s8 + $0x144] sm:$0xf0] }
 0x77b   : > { %v13779_v53 = vadd.f32 %v5970_v41, %v5922_v0  ;;  %v5984_v33 = vpop.f32.mrf.mxu0  ;;  %v6033_v58 = vpop.f32.mrf.mxu1  ;;  %6464 = vmatpush.bf16.msra.mxu2 %v9098_v14 }
 0x77c   : > { %6415 = vmatpush.bf16.msra.mxu1 %v8874_v9  ;;  %v8622_v9 = vor.u32 %v9482_v57, %v8619_v42 }
 0x77d   : > { %14658 = vst [vmem:[#allocation10_spill] sm:$0xff] %v13779_v53  ;;  %6275 = vmatmul.bf16.vlgmr.msrb.gmra.mxu2 %v14656_v40  ;;  %9191 = vmatmul.msk.bf16.vlgmr.msrb.gmra.mxu3 %vm1784_vm0, %v14657_v22  ;;  %v5985_v40 = vadd.f32 %v5984_v33, %v13776_v46 }
 0x77e   : > { %6367 = vmatpush.bf16.msra.mxu0 %v8622_v9 }
 0x77f   : > { %v6034_v33 = vadd.f32 %v6033_v58, %v5985_v40  ;;  %v9067_v40 = vld [vmem:[%s14424_s8 + $0x4c4] sm:$0xf0] }
 0x780   : > { %v6080_v3 = vpop.f32.mrf.mxu2  ;;  %v6129_v41 = vpop.f32.mrf.mxu3 }
 0x781   : > { %v6081_v0 = vadd.f32 %v6080_v3, %v6032_v1 }
 0x783   : > { %v6130_v53 = vadd.f32 %v6129_v41, %v6081_v0  ;;  %v5987_v47 = vpop.f32.mrf.mxu0  ;;  %v6036_v22 = vpop.f32.mrf.mxu1  ;;  %v9594_v0 = vld [vmem:[%s14424_s8 + $0x4ac] sm:$0xf] }
 0x784   : > { %v5988_v1 = vadd.f32 %v5987_v47, %v13776_v46  ;;  %v9070_v47 = vor.u32 %v9594_v0, %v9067_v40 }
 0x785   : > { %v6760_v52 = vmul.f32 0.5, %v6130_v53 }
 0x786   : > { %6182 = vmatmul.bf16.gmra.mxu0 %v12773_v17  ;;  %6231 = vmatmul.bf16.gmra.mxu1 %v12775_v26 }
 0x787   : > { %9764 = vtanh.f32 %v6760_v52  ;;  %6465 = vmatpush.bf16.msra.mxu2 %v9070_v47 }
 0x788   : > { %v6082_v14 = vpop.f32.mrf.mxu2  ;;  %v6131_v34 = vpop.f32.mrf.mxu3  ;;  %9766 = vtanh.f32 %v6766_v36  ;;  %v6773_v36 = vmul.f32 0.5, %v13591_v27  ;;  %v8843_v27 = vld [vmem:[%s14424_s8 + $0x304] sm:$0xf0] }
 0x789   : > { %v6083_v18 = vadd.f32 %v6082_v14, %v6034_v33  ;;  %v6037_v33 = vadd.f32 %v6036_v22, %v5988_v1  ;;  %v9538_v22 = vld [vmem:[%s14424_s8 + $0x2ec] sm:$0xf] }
 0x78b   : > { %v6132_v3 = vadd.f32 %v6131_v34, %v6083_v18  ;;  %v5989_v53 = vpop.f32.mrf.mxu0  ;;  %v6038_v41 = vpop.f32.mrf.mxu1 }
 0x78c   : > { %v5990_v40 = vadd.f32 %v5989_v53, %v13776_v46 }
 0x78d   : > { %v9765_v58 = vpop.eup %9764  ;;  %v6767_v10 = vmul.f32 0.5, %v6132_v3  ;;  %6280 = vmatmul.bf16.gmra.mxu2 %v12789_v55  ;;  %9192 = vmatmul.msk.bf16.gmra.mxu3 %vm1784_vm0, %v12791_v5 }
 0x78e   : > { %v6984_v52 = vmul.f32 0.5, %v9765_v58  ;;  %v9767_v3 = vpop.eup %9766  ;;  %v6039_v53 = vadd.f32 %v6038_v41, %v5990_v40  ;;  %v9039_v41 = vld [vmem:[%s14424_s8 + $0x48c] sm:$0xf0] }
 0x78f   : > { %9768 = vtanh.f32 %v6767_v10  ;;  %v6990_v42 = vmul.f32 0.5, %v9767_v3  ;;  %v8846_v10 = vor.u32 %v9538_v22, %v8843_v27  ;;  %v9475_v27 = vld [vmem:[%s14424_s8 + $0xf4] sm:$0xf] }
 0x790   : > { %v7096_v14 = vadd.f32 0.5, %v6984_v52  ;;  %v6085_v34 = vpop.f32.mrf.mxu2  ;;  %v6134_v18 = vpop.f32.mrf.mxu3  ;;  %9770 = vtanh.f32 %v6773_v36 }
 0x791   : > { %v6086_v5 = vadd.f32 %v6085_v34, %v6037_v33  ;;  %6416 = vmatpush.bf16.msra.mxu1 %v8846_v10  ;;  %v7102_v52 = vadd.f32 0.5, %v6990_v42 }
 0x792   : > { %v7206_v0 = vpack.c.bf16 %v7096_v14, %v7095_v38 }
 0x793   : > { %v6135_v55 = vadd.f32 %v6134_v18, %v6086_v5  ;;  %v5992_v58 = vpop.f32.mrf.mxu0  ;;  %v6041_v57 = vpop.f32.mrf.mxu1  ;;  %v6780_v5 = vmul.f32 0.5, %v13608_v62  ;;  %v9587_v62 = vld [vmem:[%s14424_s8 + $0x474] sm:$0xf] }
 0x794   : > { %7270 = vst [vmem:[%s13335_s30 + $0x8] sm:$0xff] %v7206_v0 }
 0x795   : > { %v9769_v54 = vpop.eup %9768  ;;  %v6774_v1 = vmul.f32 0.5, %v6135_v55  ;;  %v5993_v55 = vadd.f32 %v5992_v58, %v13776_v46  ;;  %v9042_v58 = vor.u32 %v9587_v62, %v9039_v41 }
 0x796   : > { %v6991_v47 = vmul.f32 0.5, %v9769_v54  ;;  %6187 = vmatmul.bf16.gmra.mxu0 %v12812_v63  ;;  %6236 = vmatmul.bf16.gmra.mxu1 %v12814_v11  ;;  %v9771_v38 = vpop.eup %9770  ;;  %v8591_v54 = vld [vmem:[%s14424_s8 + $0x10c] sm:$0xf0] }
 0x797   : > { %9772 = vtanh.f32 %v6774_v1  ;;  %v6997_v22 = vmul.f32 0.5, %v9771_v38  ;;  %v8594_v10 = vor.u32 %v9475_v27, %v8591_v54  ;;  %6466 = vmatpush.bf16.msra.mxu2 %v9042_v58 }
 0x798   : > { %v7103_v9 = vadd.f32 0.5, %v6991_v47  ;;  %v6087_v36 = vpop.f32.mrf.mxu2  ;;  %v6136_v33 = vpop.f32.mrf.mxu3  ;;  %9774 = vtanh.f32 %v6780_v5  ;;  %v6787_v47 = vmul.f32 0.5, %v13620_v13  ;;  %v6042_v5 = vadd.f32 %v6041_v57, %v5993_v55  ;;  %v9531_v13 = vld [vmem:[%s14424_s8 + $0x2b4] sm:$0xf]  ;;  %v8815_v57 = vld [vmem:[%s14424_s8 + $0x2cc] sm:$0xf0] }
 0x799   : > { %v6088_v14 = vadd.f32 %v6087_v36, %v6039_v53  ;;  %v7109_v53 = vadd.f32 0.5, %v6997_v22  ;;  %6368 = vmatpush.bf16.msra.mxu0 %v8594_v10 }
 0x79a   : > { %v7210_v34 = vpack.c.bf16 %v7103_v9, %v7102_v52 }
 0x79b   : > { %v6137_v18 = vadd.f32 %v6136_v33, %v6088_v14  ;;  %v5994_v3 = vpop.f32.mrf.mxu0  ;;  %v6043_v0 = vpop.f32.mrf.mxu1 }
 0x79c   : > { %7275 = vst [vmem:[%s13335_s30 + $0x24] sm:$0xff] %v7210_v34  ;;  %v5995_v34 = vadd.f32 %v5994_v3, %v13776_v46  ;;  %v6794_v3 = vmul.f32 0.5, %v13637_v28  ;;  %v9580_v28 = vld [vmem:[%s14424_s8 + $0x43c] sm:$0xf] }
 0x79d   : > { %v9773_v40 = vpop.eup %9772  ;;  %v6781_v42 = vmul.f32 0.5, %v6137_v18  ;;  %6285 = vmatmul.bf16.gmra.mxu2 %v12828_v24  ;;  %9193 = vmatmul.msk.bf16.gmra.mxu3 %vm1784_vm0, %v12830_v45 }
 0x79e   : > { %v6998_v1 = vmul.f32 0.5, %v9773_v40  ;;  %v9775_v33 = vpop.eup %9774  ;;  %v6044_v27 = vadd.f32 %v6043_v0, %v5995_v34  ;;  %v9011_v0 = vld [vmem:[%s14424_s8 + $0x454] sm:$0xf0] }
 0x79f   : > { %9776 = vtanh.f32 %v6781_v42  ;;  %v7004_v40 = vmul.f32 0.5, %v9775_v33  ;;  %v8818_v42 = vor.u32 %v9531_v13, %v8815_v57  ;;  %v8563_v13 = vld [vmem:[%s14424_s8 + $0xd4] sm:$0xf0] }
 0x7a0   : > { %v7110_v52 = vadd.f32 0.5, %v6998_v1  ;;  %v6090_v9 = vpop.f32.mrf.mxu2  ;;  %v6139_v36 = vpop.f32.mrf.mxu3  ;;  %9778 = vtanh.f32 %v6787_v47 }
 0x7a1   : > { %v6091_v38 = vadd.f32 %v6090_v9, %v6042_v5  ;;  %6417 = vmatpush.bf16.msra.mxu1 %v8818_v42  ;;  %v7116_v54 = vadd.f32 0.5, %v7004_v40  ;;  %v9468_v40 = vld [vmem:[%s14424_s8 + $0xbc] sm:$0xf] }
 0x7a2   : > { %v7214_v14 = vpack.c.bf16 %v7110_v52, %v7109_v53 }
 0x7a3   : > { %v6140_v18 = vadd.f32 %v6139_v36, %v6091_v38  ;;  %v5997_v62 = vpop.f32.mrf.mxu0  ;;  %v6046_v41 = vpop.f32.mrf.mxu1 }
 0x7a4   : > { %7279 = vst [vmem:[%s13335_s30 + $0x40] sm:$0xff] %v7214_v14  ;;  %v5998_v9 = vadd.f32 %v5997_v62, %v13776_v46  ;;  %v9014_v62 = vor.u32 %v9580_v28, %v9011_v0 }
 0x7a5   : > { %v9777_v55 = vpop.eup %9776  ;;  %v6788_v22 = vmul.f32 0.5, %v6140_v18 }
 0x7a6   : > { %v7005_v58 = vmul.f32 0.5, %v9777_v55  ;;  %6192 = vmatmul.bf16.gmra.mxu0 %v12851_v4  ;;  %6241 = vmatmul.bf16.gmra.mxu1 %v12853_v7  ;;  %v9779_v5 = vpop.eup %9778  ;;  %v8566_v55 = vor.u32 %v9468_v40, %v8563_v13  ;;  %v6047_v42 = vadd.f32 %v6046_v41, %v5998_v9  ;;  %v8787_v41 = vld [vmem:[%s14424_s8 + $0x294] sm:$0xf0] }
 0x7a7   : > { %9780 = vtanh.f32 %v6788_v22  ;;  %v7011_v14 = vmul.f32 0.5, %v9779_v5  ;;  %v6801_v22 = vmul.f32 0.5, %v13649_v25  ;;  %6467 = vmatpush.bf16.msra.mxu2 %v9014_v62  ;;  %v9524_v25 = vld [vmem:[%s14424_s8 + $0x27c] sm:$0xf] }
 0x7a8   : > { %v7117_v1 = vadd.f32 0.5, %v7005_v58  ;;  %v6092_v10 = vpop.f32.mrf.mxu2  ;;  %v6141_v47 = vpop.f32.mrf.mxu3  ;;  %9782 = vtanh.f32 %v6794_v3  ;;  %6369 = vmatpush.bf16.msra.mxu0 %v8566_v55  ;;  %v8790_v0 = vor.u32 %v9524_v25, %v8787_v41  ;;  %v6815_v41 = vmul.f32 0.5, %v13678_v29  ;;  %v9517_v29 = vld [vmem:[%s14424_s8 + $0x244] sm:$0xf] }
 0x7a9   : > { %v6093_v53 = vadd.f32 %v6092_v10, %v6044_v27  ;;  %v7123_v58 = vadd.f32 0.5, %v7011_v14 }
 0x7aa   : > { %v7218_v52 = vpack.c.bf16 %v7117_v1, %v7116_v54  ;;  %6418 = vmatpush.bf16.msra.mxu1 %v8790_v0 }
 0x7ab   : > { %v6142_v36 = vadd.f32 %v6141_v47, %v6093_v53  ;;  %v5999_v33 = vpop.f32.mrf.mxu0  ;;  %v6048_v38 = vpop.f32.mrf.mxu1 }
 0x7ac   : > { %7283 = vst [vmem:[%s13335_s30 + $0x5c] sm:$0xff] %v7218_v52  ;;  %v6000_v5 = vadd.f32 %v5999_v33, %v13776_v46  ;;  %v6808_v33 = vmul.f32 0.5, %v13666_v20  ;;  %v9573_v20 = vld [vmem:[%s14424_s8 + $0x404] sm:$0xf] }
 0x7ad   : > { %v9781_v34 = vpop.eup %9780  ;;  %v6795_v18 = vmul.f32 0.5, %v6142_v36  ;;  %6290 = vmatmul.bf16.gmra.mxu2 %v12867_v23  ;;  %9194 = vmatmul.msk.bf16.gmra.mxu3 %vm1784_vm0, %v12869_v21 }
 0x7ae   : > { %v7012_v57 = vmul.f32 0.5, %v9781_v34  ;;  %v9783_v1 = vpop.eup %9782 }
 0x7af   : > { %9784 = vtanh.f32 %v6795_v18  ;;  %v7018_v28 = vmul.f32 0.5, %v9783_v1  ;;  %v6049_v18 = vadd.f32 %v6048_v38, %v6000_v5  ;;  %v8983_v38 = vld [vmem:[%s14424_s8 + $0x41c] sm:$0xf0] }
 0x7b0   : > { %v7124_v3 = vadd.f32 0.5, %v7012_v57  ;;  %v6095_v27 = vpop.f32.mrf.mxu2  ;;  %v6144_v54 = vpop.f32.mrf.mxu3  ;;  %9786 = vtanh.f32 %v6801_v22  ;;  %v8986_v5 = vor.u32 %v9573_v20, %v8983_v38 }
 0x7b1   : > { %v6096_v10 = vadd.f32 %v6095_v27, %v6047_v42  ;;  %v7130_v62 = vadd.f32 0.5, %v7018_v28 }
 0x7b2   : > { %v7222_v47 = vpack.c.bf16 %v7124_v3, %v7123_v58  ;;  %6468 = vmatpush.bf16.msra.mxu2 %v8986_v5 }
 0x7b3   : > { %v6145_v53 = vadd.f32 %v6144_v54, %v6096_v10  ;;  %v6002_v52 = vpop.f32.mrf.mxu0  ;;  %v6051_v36 = vpop.f32.mrf.mxu1 }
 0x7b4   : > { %7287 = vst [vmem:[%s13335_s30 + $0x78] sm:$0xff] %v7222_v47  ;;  %v6003_v58 = vadd.f32 %v6002_v52, %v13776_v46  ;;  %v8535_v52 = vld [vmem:[%s14424_s8 + $0x9c] sm:$0xf0] }
 0x7b5   : > { %v9785_v9 = vpop.eup %9784  ;;  %v6802_v14 = vmul.f32 0.5, %v6145_v53  ;;  %v9461_v53 = vld [vmem:[%s14424_s8 + $0x84] sm:$0xf] }
 0x7b6   : > { %v7019_v34 = vmul.f32 0.5, %v9785_v9  ;;  %6197 = vmatmul.bf16.gmra.mxu0 %v12890_v35  ;;  %6246 = vmatmul.bf16.gmra.mxu1 %v12892_v31  ;;  %v9787_v55 = vpop.eup %9786  ;;  %v8538_v25 = vor.u32 %v9461_v53, %v8535_v52  ;;  %v6052_v9 = vadd.f32 %v6051_v36, %v6003_v58  ;;  %v8759_v36 = vld [vmem:[%s14424_s8 + $0x25c] sm:$0xf0] }
 0x7b7   : > { %9788 = vtanh.f32 %v6802_v14  ;;  %v7025_v1 = vmul.f32 0.5, %v9787_v55 }
 0x7b8   : > { %v7131_v40 = vadd.f32 0.5, %v7019_v34  ;;  %v6097_v13 = vpop.f32.mrf.mxu2  ;;  %v6146_v57 = vpop.f32.mrf.mxu3  ;;  %9790 = vtanh.f32 %v6808_v33  ;;  %6370 = vmatpush.bf16.msra.mxu0 %v8538_v25 }
 0x7b9   : > { %v6098_v22 = vadd.f32 %v6097_v13, %v6049_v18  ;;  %v7137_v14 = vadd.f32 0.5, %v7025_v1  ;;  %v8762_v1 = vor.u32 %v9517_v29, %v8759_v36  ;;  %v8731_v29 = vld [vmem:[%s14424_s8 + $0x224] sm:$0xf0]  ;;  %v6829_v36 = vmul.f32 0.5, %v13719_v19  ;;  %v8479_v19 = vld [vmem:[%s14424_s8 + $0x2c] sm:$0xf0] }
 0x7ba   : > { %v7226_v42 = vpack.c.bf16 %v7131_v40, %v7130_v62 }
 0x7bb   : > { %v6147_v3 = vadd.f32 %v6146_v57, %v6098_v22  ;;  %v6004_v27 = vpop.f32.mrf.mxu0  ;;  %v6053_v54 = vpop.f32.mrf.mxu1  ;;  %6419 = vmatpush.bf16.msra.mxu1 %v8762_v1 }
 0x7bc   : > { %7291 = vst [vmem:[%s13335_s30 + $0x94] sm:$0xff] %v7226_v42  ;;  %v6005_v13 = vadd.f32 %v6004_v27, %v13776_v46  ;;  %v6822_v27 = vmul.f32 0.5, %v13695_v61  ;;  %v9566_v61 = vld [vmem:[%s14424_s8 + $0x3cc] sm:$0xf] }
 0x7bd   : > { %v9789_v10 = vpop.eup %9788  ;;  %v6809_v47 = vmul.f32 0.5, %v6147_v3  ;;  %6295 = vmatmul.bf16.gmra.mxu2 %v12906_v44  ;;  %9195 = vmatmul.msk.bf16.gmra.mxu3 %vm1784_vm0, %v12908_v39 }
 0x7be   : > { %v7026_v28 = vmul.f32 0.5, %v9789_v10  ;;  %v9791_v18 = vpop.eup %9790  ;;  %v6054_v38 = vadd.f32 %v6053_v54, %v6005_v13  ;;  %v8955_v54 = vld [vmem:[%s14424_s8 + $0x3e4] sm:$0xf0] }
 0x7bf   : > { %9792 = vtanh.f32 %v6809_v47  ;;  %v7032_v42 = vmul.f32 0.5, %v9791_v18  ;;  %v8507_v13 = vld [vmem:[%s14424_s8 + $0x64] sm:$0xf0] }
 0x7c0   : > { %v7138_v0 = vadd.f32 0.5, %v7026_v28  ;;  %v6100_v34 = vpop.f32.mrf.mxu2  ;;  %v6149_v33 = vpop.f32.mrf.mxu3  ;;  %9794 = vtanh.f32 %v6815_v41 }
 0x7c1   : > { %v6101_v62 = vadd.f32 %v6100_v34, %v6052_v9  ;;  %v7144_v10 = vadd.f32 0.5, %v7032_v42  ;;  %v9510_v42 = vld [vmem:[%s14424_s8 + $0x20c] sm:$0xf] }
 0x7c2   : > { %v7230_v40 = vpack.c.bf16 %v7138_v0, %v7137_v14 }
 0x7c3   : > { %v6150_v57 = vadd.f32 %v6149_v33, %v6101_v62  ;;  %v6007_v55 = vpop.f32.mrf.mxu0  ;;  %v6056_v22 = vpop.f32.mrf.mxu1  ;;  %v8958_v62 = vor.u32 %v9566_v61, %v8955_v54 }
 0x7c4   : > { %7295 = vst [vmem:[%s13335_s30 + $0xb0] sm:$0xff] %v7230_v40  ;;  %v6008_v41 = vadd.f32 %v6007_v55, %v13776_v46  ;;  %v9454_v40 = vld [vmem:[%s14424_s8 + $0x4c] sm:$0xf] }
 0x7c5   : > { %v9793_v58 = vpop.eup %9792  ;;  %v6816_v3 = vmul.f32 0.5, %v6150_v57  ;;  %v8510_v55 = vor.u32 %v9454_v40, %v8507_v13  ;;  %6469 = vmatpush.bf16.msra.mxu2 %v8958_v62  ;;  %v6836_v40 = vmul.f32 0.5, %v13730_v32 }
 0x7c6   : > { %v7033_v20 = vmul.f32 0.5, %v9793_v58  ;;  %6202 = vmatmul.bf16.gmra.mxu0 %v12929_v2  ;;  %6251 = vmatmul.bf16.gmra.mxu1 %v12931_v48  ;;  %v9795_v52 = vpop.eup %9794  ;;  %v6057_v58 = vadd.f32 %v6056_v22, %v6008_v41  ;;  %v9503_v22 = vld [vmem:[%s14424_s8 + $0x1d4] sm:$0xf] }
 0x7c7   : > { %9796 = vtanh.f32 %v6816_v3  ;;  %v7039_v34 = vmul.f32 0.5, %v9795_v52  ;;  %v8734_v3 = vor.u32 %v9510_v42, %v8731_v29  ;;  %6371 = vmatpush.bf16.msra.mxu0 %v8510_v55 }
 0x7c8   : > { %v7145_v47 = vadd.f32 0.5, %v7033_v20  ;;  %v6102_v5 = vpop.f32.mrf.mxu2  ;;  %v6151_v53 = vpop.f32.mrf.mxu3  ;;  %9798 = vtanh.f32 %v6822_v27 }
 0x7c9   : > { %v6103_v28 = vadd.f32 %v6102_v5, %v6054_v38  ;;  %v7151_v1 = vadd.f32 0.5, %v7039_v34  ;;  %6420 = vmatpush.bf16.msra.mxu1 %v8734_v3  ;;  %v9447_v5 = vld [vmem:[%s14424_s8 + $0x14] sm:$0xf] }
 0x7ca   : > { %v7234_v25 = vpack.c.bf16 %v7145_v47, %v7144_v10  ;;  %v8482_v52 = vor.u32 %v9447_v5, %v8479_v19  ;;  %v6843_v5 = vmul.f32 0.5, %v13736_v43 }
 0x7cb   : > { %v6152_v9 = vadd.f32 %v6151_v53, %v6103_v28  ;;  %v6009_v14 = vpop.f32.mrf.mxu0  ;;  %v6058_v0 = vpop.f32.mrf.mxu1  ;;  %v8703_v28 = vld [vmem:[%s14424_s8 + $0x1ec] sm:$0xf0] }
 0x7cc   : > { %7299 = vst [vmem:[%s13335_s30 + $0xcc] sm:$0xff] %v7234_v25  ;;  %v6010_v25 = vadd.f32 %v6009_v14, %v13776_v46  ;;  %v8706_v61 = vor.u32 %v9503_v22, %v8703_v28  ;;  %6372 = vmatpush.bf16.msra.mxu0 %v8482_v52  ;;  %v9559_v14 = vld [vmem:[%s14424_s8 + $0x394] sm:$0xf] }
 0x7cd   : > { %v9797_v33 = vpop.eup %9796  ;;  %v6823_v18 = vmul.f32 0.5, %v6152_v9  ;;  %6300 = vmatmul.bf16.gmra.mxu2 %v12945_v6  ;;  %9196 = vmatmul.msk.bf16.gmra.mxu3 %vm1784_vm0, %v12947_v16 }
 0x7ce   : > { %v7040_v57 = vmul.f32 0.5, %v9797_v33  ;;  %v9799_v10 = vpop.eup %9798  ;;  %6421 = vmatpush.bf16.msra.mxu1 %v8706_v61  ;;  %v6059_v13 = vadd.f32 %v6058_v0, %v6010_v25 }
 0x7cf   : > { %9800 = vtanh.f32 %v6823_v18  ;;  %v7046_v54 = vmul.f32 0.5, %v9799_v10 }
 0x7d0   : > { %v7152_v20 = vadd.f32 0.5, %v7040_v57  ;;  %v6105_v27 = vpop.f32.mrf.mxu2  ;;  %v6154_v38 = vpop.f32.mrf.mxu3  ;;  %9802 = vtanh.f32 %v6829_v36  ;;  %v8927_v57 = vld [vmem:[%s14424_s8 + $0x3ac] sm:$0xf0] }
 0x7d1   : > { %v6106_v47 = vadd.f32 %v6105_v27, %v6057_v58  ;;  %v7158_v55 = vadd.f32 0.5, %v7046_v54  ;;  %v8930_v58 = vor.u32 %v9559_v14, %v8927_v57 }
 0x7d2   : > { %v7238_v53 = vpack.c.bf16 %v7152_v20, %v7151_v1 }
 0x7d3   : > { %v6155_v41 = vadd.f32 %v6154_v38, %v6106_v47  ;;  %v6012_v9 = vpop.f32.mrf.mxu0  ;;  %v6061_v34 = vpop.f32.mrf.mxu1  ;;  %6470 = vmatpush.bf16.msra.mxu2 %v8930_v58 }
 0x7d4   : > { %7303 = vst [vmem:[%s13335_s30 + $0xe8] sm:$0xff] %v7238_v53  ;;  %v6013_v32 = vadd.f32 %v6012_v9, %v13776_v46 }
 0x7d5   : > { %v9801_v33 = vpop.eup %9800  ;;  %v6830_v18 = vmul.f32 0.5, %v6155_v41 }
 0x7d6   : > { %v7047_v62 = vmul.f32 0.5, %v9801_v33  ;;  %6207 = vmatmul.bf16.gmra.mxu0 %v12974_v8  ;;  %6256 = vmatmul.bf16.gmra.mxu1 %v12976_v49  ;;  %v9803_v3 = vpop.eup %9802  ;;  %v6062_v53 = vadd.f32 %v6061_v34, %v6013_v32 }
 0x7d7   : > { %9804 = vtanh.f32 %v6830_v18  ;;  %v7053_v10 = vmul.f32 0.5, %v9803_v3 }
 0x7d8   : > { %v7159_v42 = vadd.f32 0.5, %v7047_v62  ;;  %v6107_v29 = vpop.f32.mrf.mxu2  ;;  %v6156_v36 = vpop.f32.mrf.mxu3  ;;  %9806 = vtanh.f32 %v6836_v40 }
 0x7d9   : > { %v6108_v1 = vadd.f32 %v6107_v29, %v6059_v13  ;;  %v7165_v52 = vadd.f32 0.5, %v7053_v10 }
 0x7da   : > { %v7242_v20 = vpack.c.bf16 %v7159_v42, %v7158_v55  ;;  %v6850_v55 = vmul.f32 0.5, %v13759_v30  ;;  %v9129_v30 = vld [vmem:[%s14424_s8 + $0x520] sm:$0xf] }
 0x7db   : > { %v6157_v0 = vadd.f32 %v6156_v36, %v6108_v1  ;;  %v6014_v27 = vpop.f32.mrf.mxu0  ;;  %v6063_v38 = vpop.f32.mrf.mxu1 }
 0x7dc   : > { %7307 = vst [vmem:[%s13335_s30 + $0x104] sm:$0xff] %v7242_v20  ;;  %v6015_v43 = vadd.f32 %v6014_v27, %v13776_v46 }
 0x7dd   : > { %v9805_v47 = vpop.eup %9804  ;;  %v6837_v19 = vmul.f32 0.5, %v6157_v0  ;;  %6305 = vmatmul.bf16.gmra.mxu2 %v12984_v15  ;;  %9197 = vmatmul.msk.bf16.gmra.mxu3 %vm1784_vm0, %v12986_v50 }
 0x7de   : > { %v7054_v22 = vmul.f32 0.5, %v9805_v47  ;;  %v9807_v9 = vpop.eup %9806  ;;  %v6064_v42 = vadd.f32 %v6063_v38, %v6015_v43  ;;  %v9612_v38 = vld [vmem:[%s14424_s8 + $0x538] sm:$0xf0] }
 0x7df   : > { %9808 = vtanh.f32 %v6837_v19  ;;  %v7060_v40 = vmul.f32 0.5, %v9807_v9  ;;  %v9157_v9 = vld [vmem:[%s14424_s8 + $0x558] sm:$0xf] }
 0x7e0   : > { %v7166_v28 = vadd.f32 0.5, %v7054_v22  ;;  %v6110_v25 = vpop.f32.mrf.mxu2  ;;  %v6159_v41 = vpop.f32.mrf.mxu3  ;;  %9810 = vtanh.f32 %v6843_v5  ;;  %v9130_v22 = vor.u32 %v9612_v38, %v9129_v30 }
 0x7e1   : > { %v6111_v61 = vadd.f32 %v6110_v25, %v6062_v53  ;;  %v7172_v29 = vadd.f32 0.5, %v7060_v40  ;;  %v8681_v53 = vld [vmem:[%s14424_s8 + $0x1a0] sm:$0xf] }
 0x7e2   : > { %v7246_v54 = vpack.c.bf16 %v7166_v28, %v7165_v52  ;;  %v9500_v52 = vld [vmem:[%s14424_s8 + $0x1b8] sm:$0xf0]  ;;  %6659 = vmatpush.bf16.msrb.mxu2 %v9130_v22 }
 0x7e3   : > { %v6160_v33 = vadd.f32 %v6159_v41, %v6111_v61  ;;  %v6017_v18 = vpop.f32.mrf.mxu0  ;;  %v6066_v62 = vpop.f32.mrf.mxu1  ;;  %v8682_v41 = vor.u32 %v9500_v52, %v8681_v53  ;;  %v9619_v61 = vld [vmem:[%s14424_s8 + $0x570] sm:$0xf0] }
 0x7e4   : > { %7311 = vst [vmem:[%s13335_s30 + $0x120] sm:$0xff] %v7246_v54  ;;  %v6018_v0 = vadd.f32 %v6017_v18, %v13776_v46  ;;  %v6857_v54 = vmul.f32 0.5, %v13765_v56  ;;  %v8905_v56 = vld [vmem:[%s14424_s8 + $0x360] sm:$0xf] }
 0x7e5   : > { %v9809_v13 = vpop.eup %9808  ;;  %v6844_v14 = vmul.f32 0.5, %v6160_v33  ;;  %v9158_v33 = vor.u32 %v9619_v61, %v9157_v9  ;;  %6561 = vmatpush.bf16.msrb.mxu0 %v8682_v41  ;;  %v9605_v41 = vld [vmem:[%s14424_s8 + $0x500] sm:$0xf0] }
 0x7e6   : > { %v7061_v57 = vmul.f32 0.5, %v9809_v13  ;;  %6212 = vmatmul.bf16.gmra.mxu0 %v13013_v59  ;;  %6261 = vmatmul.bf16.gmra.mxu1 %v13015_v60  ;;  %v9811_v34 = vpop.eup %9810  ;;  %v6067_v43 = vadd.f32 %v6066_v62, %v6018_v0  ;;  %v9556_v62 = vld [vmem:[%s14424_s8 + $0x378] sm:$0xf0] }
 0x7e7   : > { %9812 = vtanh.f32 %v6844_v14  ;;  %v7067_v20 = vmul.f32 0.5, %v9811_v34  ;;  %v14007_v14 = vld [vmem:[%s14425_s9] sm:$0x7f]  ;;  %6715 = vmatpush.bf16.msrb.mxu3 %v9158_v33 }
 0x7e8   : > { %v7173_v36 = vadd.f32 0.5, %v7061_v57  ;;  %v6112_v58 = vpop.f32.mrf.mxu2  ;;  %v6161_v3 = vpop.f32.mrf.mxu3  ;;  %9814 = vtanh.f32 %v6850_v55  ;;  %v14010_v57 = vperm.slane %v14007_v14, 4 }
 0x7e9   : > { %v6113_v1 = vadd.f32 %v6112_v58, %v6064_v42  ;;  %v7179_v28 = vadd.f32 0.5, %v7067_v20  ;;  %v8906_v42 = vor.u32 %v9556_v62, %v8905_v56 }
 0x7ea   : > { %v7250_v32 = vpack.c.bf16 %v7173_v36, %v7172_v29 }
 0x7eb   : > { %v6162_v27 = vadd.f32 %v6161_v3, %v6113_v1  ;;  %v6019_v10 = vpop.f32.mrf.mxu0  ;;  %v6068_v47 = vpop.f32.mrf.mxu1  ;;  %6610 = vmatpush.bf16.msrb.mxu1 %v8906_v42 }
 0x7ec   : > { %7315 = vst [vmem:[%s13335_s30 + $0x13c] sm:$0xff] %v7250_v32  ;;  %v6020_v36 = vadd.f32 %v6019_v10, %v13776_v46 }
 0x7ed   : > { %v9813_v5 = vpop.eup %9812  ;;  %v6851_v19 = vmul.f32 0.5, %v6162_v27  ;;  %6310 = vmatmul.bf16.gmra.mxu2 %v13023_v51  ;;  %9198 = vmatmul.msk.bf16.gmra.mxu3 %vm1784_vm0, %v13025_v37 }
 0x7ee   : > { %v7068_v25 = vmul.f32 0.5, %v9813_v5  ;;  %v9815_v34 = vpop.eup %9814  ;;  %v14659_v5 = vld [vmem:[#allocation21_spill] sm:$0xff]  ;;  %v6069_v53 = vadd.f32 %v6068_v47, %v6020_v36  ;;  %v8653_v47 = vld [vmem:[%s14424_s8 + $0x168] sm:$0xf] }
 0x7ef   : > { %9816 = vtanh.f32 %v6851_v19  ;;  %v7074_v20 = vmul.f32 0.5, %v9815_v34  ;;  %v14660_v19 = vld [vmem:[#allocation10_spill] sm:$0xff]  ;;  %v14662_v36 = vld [vmem:[#allocation24_spill] sm:$0xff] }
 0x7f0   : > { %v7180_v18 = vadd.f32 0.5, %v7068_v25  ;;  %v6115_v40 = vpop.f32.mrf.mxu2  ;;  %v6164_v13 = vpop.f32.mrf.mxu3  ;;  %9818 = vtanh.f32 %v6857_v54  ;;  %v6864_v22 = vmul.f32 0.5, %v14660_v19  ;;  %v9101_v25 = vld [vmem:[%s14424_s8 + $0x4e8] sm:$0xf] }
 0x7f1   : > { %v6116_v55 = vadd.f32 %v6115_v40, %v6067_v43  ;;  %v7186_v46 = vadd.f32 0.5, %v7074_v20  ;;  %v9102_v54 = vor.u32 %v9605_v41, %v9101_v25  ;;  %v9493_v43 = vld [vmem:[%s14424_s8 + $0x180] sm:$0xf0] }
 0x7f2   : > { %v7254_v29 = vpack.c.bf16 %v7180_v18, %v7179_v28  ;;  %v8654_v18 = vor.u32 %v9493_v43, %v8653_v47 }
 0x7f3   : > { %v6165_v58 = vadd.f32 %v6164_v13, %v6116_v55  ;;  %v6178_v3 = vpop.f32.mrf.mxu0  ;;  %v6227_v1 = vpop.f32.mrf.mxu1  ;;  %6660 = vmatpush.bf16.msrb.mxu2 %v9102_v54 }
 0x7f4   : > { %7319 = vst [vmem:[%s13335_s30 + $0x158] sm:$0xff] %v7254_v29  ;;  %v6179_v32 = vadd.f32 %v6178_v3, %v14010_v57  ;;  %6562 = vmatpush.bf16.msrb.mxu0 %v8654_v18  ;;  %v14661_v29 = vld [vmem:[#allocation23_spill] sm:$0xff]  ;;  %v9073_v18 = vld [vmem:[%s14424_s8 + $0x4b0] sm:$0xf] }
 0x7f5   : > { %v9817_v0 = vpop.eup %9816  ;;  %v6858_v27 = vmul.f32 0.5, %v6165_v58 }
 0x7f6   : > { %v7075_v30 = vmul.f32 0.5, %v9817_v0  ;;  %v6228_v38 = vadd.f32 %v6227_v1, %v6179_v32  ;;  %6373 = vmatmul.bf16.vlgmr.msra.gmra.mxu0 %v12734_v12  ;;  %6422 = vmatmul.bf16.vlgmr.msra.gmra.mxu1 %v14659_v5  ;;  %v9819_v9 = vpop.eup %9818 }
 0x7f7   : > { %9820 = vtanh.f32 %v6858_v27  ;;  %v7081_v62 = vmul.f32 0.5, %v9819_v9  ;;  %v8877_v27 = vld [vmem:[%s14424_s8 + $0x328] sm:$0xf] }
 0x7f8   : > { %v7187_v10 = vadd.f32 0.5, %v7075_v30  ;;  %v6117_v52 = vpop.f32.mrf.mxu2  ;;  %v6166_v28 = vpop.f32.mrf.mxu3  ;;  %9822 = vtanh.f32 %v6864_v22  ;;  %v9549_v30 = vld [vmem:[%s14424_s8 + $0x340] sm:$0xf0] }
 0x7f9   : > { %v6118_v61 = vadd.f32 %v6117_v52, %v6069_v53  ;;  %v7193_v1 = vadd.f32 0.5, %v7081_v62  ;;  %v8878_v53 = vor.u32 %v9549_v30, %v8877_v27  ;;  %v8625_v62 = vld [vmem:[%s14424_s8 + $0x130] sm:$0xf] }
 0x7fa   : > { %v7258_v33 = vpack.c.bf16 %v7187_v10, %v7186_v46 }
 0x7fb   : > { %v6167_v40 = vadd.f32 %v6166_v28, %v6118_v61  ;;  %v6180_v13 = vpop.f32.mrf.mxu0  ;;  %v6229_v56 = vpop.f32.mrf.mxu1  ;;  %6611 = vmatpush.bf16.msrb.mxu1 %v8878_v53  ;;  %v9542_v53 = vld [vmem:[%s14424_s8 + $0x308] sm:$0xf0] }
 0x7fc   : > { %7323 = vst [vmem:[%s13335_s30 + $0x174] sm:$0xff] %v7258_v33  ;;  %v6181_v34 = vadd.f32 %v6180_v13, %v14010_v57 }
 0x7fd   : > { %v9821_v55 = vpop.eup %9820  ;;  %v6865_v42 = vmul.f32 0.5, %v6167_v40  ;;  %6471 = vmatmul.bf16.vlgmr.msra.gmra.mxu2 %v14661_v29  ;;  %9199 = vmatmul.msk.bf16.vlgmr.msra.gmra.mxu3 %vm1784_vm0, %v14662_v36  ;;  %v9598_v40 = vld [vmem:[%s14424_s8 + $0x4c8] sm:$0xf0] }
 0x7fe   : > { %v7082_v58 = vmul.f32 0.5, %v9821_v55  ;;  %v6230_v3 = vadd.f32 %v6229_v56, %v6181_v34  ;;  %v9823_v19 = vpop.eup %9822  ;;  %v9074_v56 = vor.u32 %v9598_v40, %v9073_v18  ;;  %v9486_v34 = vld [vmem:[%s14424_s8 + $0x148] sm:$0xf0]  ;;  %v8597_v40 = vld [vmem:[%s14424_s8 + $0xf8] sm:$0xf] }
 0x7ff   : > { %9824 = vtanh.f32 %v6865_v42  ;;  %v7088_v25 = vmul.f32 0.5, %v9823_v19  ;;  %v8626_v42 = vor.u32 %v9486_v34, %v8625_v62 }
 0x800   : > { %v7194_v20 = vadd.f32 0.5, %v7082_v58  ;;  %v6276_v32 = vpop.f32.mrf.mxu2  ;;  %v6325_v0 = vpop.f32.mrf.mxu3  ;;  %6661 = vmatpush.bf16.msrb.mxu2 %v9074_v56 }
 0x801   : > { %v6277_v22 = vadd.f32 %v6276_v32, %v6228_v38  ;;  %v7200_v47 = vadd.f32 0.5, %v7088_v25  ;;  %6563 = vmatpush.bf16.msrb.mxu0 %v8626_v42 }
 0x802   : > { %v7262_v46 = vpack.c.bf16 %v7194_v20, %v7193_v1 }
 0x803   : > { %v14047_v10 = vadd.f32 %v6325_v0, %v6277_v22  ;;  %v6183_v52 = vpop.f32.mrf.mxu0  ;;  %v6232_v28 = vpop.f32.mrf.mxu1  ;;  %v14664_v0 = vld [vmem:[#allocation29_spill] sm:$0xff] }
 0x804   : > { %7327 = vst [vmem:[%s13335_s30 + $0x190] sm:$0xff] %v7262_v46  ;;  %v6184_v41 = vadd.f32 %v6183_v52, %v14010_v57  ;;  %v8849_v22 = vld [vmem:[%s14424_s8 + $0x2f0] sm:$0xf] }
 0x805   : > { %v9825_v9 = vpop.eup %9824  ;;  %v8850_v52 = vor.u32 %v9542_v53, %v8849_v22 }
 0x806   : > { %v7089_v61 = vmul.f32 0.5, %v9825_v9  ;;  %v6233_v54 = vadd.f32 %v6232_v28, %v6184_v41  ;;  %6378 = vmatmul.bf16.gmra.mxu0 %v12773_v17  ;;  %6427 = vmatmul.bf16.gmra.mxu1 %v12775_v26 }
 0x807   : > { %6612 = vmatpush.bf16.msrb.mxu1 %v8850_v52 }
 0x808   : > { %v7201_v38 = vadd.f32 0.5, %v7089_v61  ;;  %v6278_v43 = vpop.f32.mrf.mxu2  ;;  %v6327_v33 = vpop.f32.mrf.mxu3 }
 0x809   : > { %v6279_v13 = vadd.f32 %v6278_v43, %v6230_v3  ;;  %v14663_v3 = vld [vmem:[#allocation8_spill] sm:$0xff]  ;;  %v9045_v43 = vld [vmem:[%s14424_s8 + $0x478] sm:$0xf] }
 0x80a   : > { %v7266_v55 = vpack.c.bf16 %v7201_v38, %v7200_v47 }
 0x80b   : > { %v14065_v58 = vadd.f32 %v6327_v33, %v6279_v13  ;;  %v6185_v1 = vpop.f32.mrf.mxu0  ;;  %v6234_v20 = vpop.f32.mrf.mxu1  ;;  %v9479_v13 = vld [vmem:[%s14424_s8 + $0x110] sm:$0xf0] }
 0x80c   : > { %7331 = vst [vmem:[%s13335_s30 + $0x1ac] sm:$0xff] %v7266_v55  ;;  %v6186_v32 = vadd.f32 %v6185_v1, %v14010_v57  ;;  %v8598_v56 = vor.u32 %v9479_v13, %v8597_v40 }
 0x80d   : > { %6476 = vmatmul.bf16.gmra.mxu2 %v14663_v3  ;;  %9200 = vmatmul.msk.bf16.gmra.mxu3 %vm1784_vm0, %v14664_v0 }
 0x80e   : > { %v6235_v27 = vadd.f32 %v6234_v20, %v6186_v32  ;;  %6564 = vmatpush.bf16.msrb.mxu0 %v8598_v56 }
 0x810   : > { %v6281_v30 = vpop.f32.mrf.mxu2  ;;  %v6330_v19 = vpop.f32.mrf.mxu3 }
 0x811   : > { %v6282_v46 = vadd.f32 %v6281_v30, %v6233_v54  ;;  %v9591_v54 = vld [vmem:[%s14424_s8 + $0x490] sm:$0xf0] }
 0x812   : > { %v9046_v18 = vor.u32 %v9591_v54, %v9045_v43  ;;  %v9535_v30 = vld [vmem:[%s14424_s8 + $0x2d0] sm:$0xf0] }
 0x813   : > { %v14078_v28 = vadd.f32 %v6330_v19, %v6282_v46  ;;  %v6188_v25 = vpop.f32.mrf.mxu0  ;;  %v6237_v41 = vpop.f32.mrf.mxu1 }
 0x814   : > { %v6189_v9 = vadd.f32 %v6188_v25, %v14010_v57  ;;  %6662 = vmatpush.bf16.msrb.mxu2 %v9046_v18  ;;  %v9472_v18 = vld [vmem:[%s14424_s8 + $0xd8] sm:$0xf0] }
 0x816   : > { %v6238_v61 = vadd.f32 %v6237_v41, %v6189_v9  ;;  %6383 = vmatmul.bf16.gmra.mxu0 %v12812_v63  ;;  %6432 = vmatmul.bf16.gmra.mxu1 %v12814_v11 }
 0x818   : > { %v6283_v47 = vpop.f32.mrf.mxu2  ;;  %v6332_v38 = vpop.f32.mrf.mxu3 }
 0x819   : > { %v6284_v33 = vadd.f32 %v6283_v47, %v6235_v27  ;;  %v8821_v27 = vld [vmem:[%s14424_s8 + $0x2b8] sm:$0xf] }
 0x81a   : > { %v8822_v22 = vor.u32 %v9535_v30, %v8821_v27  ;;  %v9528_v27 = vld [vmem:[%s14424_s8 + $0x298] sm:$0xf0] }
 0x81b   : > { %v14095_v62 = vadd.f32 %v6332_v38, %v6284_v33  ;;  %v6190_v34 = vpop.f32.mrf.mxu0  ;;  %v6239_v55 = vpop.f32.mrf.mxu1  ;;  %v9017_v38 = vld [vmem:[%s14424_s8 + $0x440] sm:$0xf] }
 0x81c   : > { %v6191_v42 = vadd.f32 %v6190_v34, %v14010_v57  ;;  %6613 = vmatpush.bf16.msrb.mxu1 %v8822_v22  ;;  %v8569_v33 = vld [vmem:[%s14424_s8 + $0xc0] sm:$0xf] }
 0x81d   : > { %6481 = vmatmul.bf16.gmra.mxu2 %v12828_v24  ;;  %9201 = vmatmul.msk.bf16.gmra.mxu3 %vm1784_vm0, %v12830_v45  ;;  %v8570_v40 = vor.u32 %v9472_v18, %v8569_v33  ;;  %v8541_v33 = vld [vmem:[%s14424_s8 + $0x88] sm:$0xf]  ;;  %v9465_v18 = vld [vmem:[%s14424_s8 + $0xa0] sm:$0xf0] }
 0x81e   : > { %v6240_v1 = vadd.f32 %v6239_v55, %v6191_v42 }
 0x81f   : > { %6565 = vmatpush.bf16.msrb.mxu0 %v8570_v40  ;;  %v8542_v40 = vor.u32 %v9465_v18, %v8541_v33 }
 0x820   : > { %v6286_v20 = vpop.f32.mrf.mxu2  ;;  %v6335_v32 = vpop.f32.mrf.mxu3 }
 0x821   : > { %v6287_v19 = vadd.f32 %v6286_v20, %v6238_v61  ;;  %v9584_v61 = vld [vmem:[%s14424_s8 + $0x458] sm:$0xf0] }
 0x822   : > { %v9018_v54 = vor.u32 %v9584_v61, %v9017_v38  ;;  %v8989_v61 = vld [vmem:[%s14424_s8 + $0x408] sm:$0xf] }
 0x823   : > { %v14107_v53 = vadd.f32 %v6335_v32, %v6287_v19  ;;  %v6193_v46 = vpop.f32.mrf.mxu0  ;;  %v6242_v52 = vpop.f32.mrf.mxu1  ;;  %v8793_v32 = vld [vmem:[%s14424_s8 + $0x280] sm:$0xf]  ;;  %6566 = vmatpush.bf16.msrb.mxu0 %v8542_v40  ;;  %v8513_v40 = vld [vmem:[%s14424_s8 + $0x50] sm:$0xf] }
 0x824   : > { %v6194_v25 = vadd.f32 %v6193_v46, %v14010_v57  ;;  %6663 = vmatpush.bf16.msrb.mxu2 %v9018_v54  ;;  %v8794_v19 = vor.u32 %v9528_v27, %v8793_v32  ;;  %v8765_v27 = vld [vmem:[%s14424_s8 + $0x248] sm:$0xf] }
 0x826   : > { %v6243_v41 = vadd.f32 %v6242_v52, %v6194_v25  ;;  %6388 = vmatmul.bf16.gmra.mxu0 %v12851_v4  ;;  %6437 = vmatmul.bf16.gmra.mxu1 %v12853_v7 }
 0x827   : > { %6614 = vmatpush.bf16.msrb.mxu1 %v8794_v19 }
 0x828   : > { %v6288_v9 = vpop.f32.mrf.mxu2  ;;  %v6337_v47 = vpop.f32.mrf.mxu3 }
 0x829   : > { %v6289_v43 = vadd.f32 %v6288_v9, %v6240_v1 }
 0x82b   : > { %v14124_v13 = vadd.f32 %v6337_v47, %v6289_v43  ;;  %v6195_v56 = vpop.f32.mrf.mxu0  ;;  %v6244_v34 = vpop.f32.mrf.mxu1 }
 0x82c   : > { %v6196_v55 = vadd.f32 %v6195_v56, %v14010_v57 }
 0x82d   : > { %6486 = vmatmul.bf16.gmra.mxu2 %v12867_v23  ;;  %9202 = vmatmul.msk.bf16.gmra.mxu3 %vm1784_vm0, %v12869_v21 }
 0x82e   : > { %v6245_v42 = vadd.f32 %v6244_v34, %v6196_v55 }
 0x830   : > { %v6291_v1 = vpop.f32.mrf.mxu2  ;;  %v6340_v20 = vpop.f32.mrf.mxu3 }
 0x831   : > { %v6292_v30 = vadd.f32 %v6291_v1, %v6243_v41  ;;  %v9577_v41 = vld [vmem:[%s14424_s8 + $0x420] sm:$0xf0] }
 0x832   : > { %v8990_v54 = vor.u32 %v9577_v41, %v8989_v61 }
 0x833   : > { %v14136_v22 = vadd.f32 %v6340_v20, %v6292_v30  ;;  %v6198_v46 = vpop.f32.mrf.mxu0  ;;  %v6247_v52 = vpop.f32.mrf.mxu1  ;;  %v9521_v30 = vld [vmem:[%s14424_s8 + $0x260] sm:$0xf0] }
 0x834   : > { %v6199_v25 = vadd.f32 %v6198_v46, %v14010_v57  ;;  %6664 = vmatpush.bf16.msrb.mxu2 %v8990_v54  ;;  %v8766_v46 = vor.u32 %v9521_v30, %v8765_v27  ;;  %v8961_v54 = vld [vmem:[%s14424_s8 + $0x3d0] sm:$0xf]  ;;  %v9514_v30 = vld [vmem:[%s14424_s8 + $0x228] sm:$0xf0] }
 0x836   : > { %v6248_v9 = vadd.f32 %v6247_v52, %v6199_v25  ;;  %6393 = vmatmul.bf16.gmra.mxu0 %v12890_v35  ;;  %6442 = vmatmul.bf16.gmra.mxu1 %v12892_v31 }
 0x837   : > { %6615 = vmatpush.bf16.msrb.mxu1 %v8766_v46 }
 0x838   : > { %v6293_v47 = vpop.f32.mrf.mxu2  ;;  %v6342_v38 = vpop.f32.mrf.mxu3 }
 0x839   : > { %v6294_v43 = vadd.f32 %v6293_v47, %v6245_v42 }
 0x83b   : > { %v14153_v56 = vadd.f32 %v6342_v38, %v6294_v43  ;;  %v6200_v34 = vpop.f32.mrf.mxu0  ;;  %v6249_v55 = vpop.f32.mrf.mxu1 }
 0x83c   : > { %v6201_v1 = vadd.f32 %v6200_v34, %v14010_v57  ;;  %v9458_v34 = vld [vmem:[%s14424_s8 + $0x68] sm:$0xf0] }
 0x83d   : > { %6491 = vmatmul.bf16.gmra.mxu2 %v12906_v44  ;;  %9203 = vmatmul.msk.bf16.gmra.mxu3 %vm1784_vm0, %v12908_v39 }
 0x83e   : > { %v6250_v42 = vadd.f32 %v6249_v55, %v6201_v1  ;;  %v8514_v55 = vor.u32 %v9458_v34, %v8513_v40 }
 0x840   : > { %v6296_v20 = vpop.f32.mrf.mxu2  ;;  %v6345_v32 = vpop.f32.mrf.mxu3  ;;  %6567 = vmatpush.bf16.msrb.mxu0 %v8514_v55 }
 0x841   : > { %v6297_v19 = vadd.f32 %v6296_v20, %v6248_v9  ;;  %v9570_v9 = vld [vmem:[%s14424_s8 + $0x3e8] sm:$0xf0] }
 0x842   : > { %v8962_v18 = vor.u32 %v9570_v9, %v8961_v54  ;;  %v8709_v54 = vld [vmem:[%s14424_s8 + $0x1d8] sm:$0xf] }
 0x843   : > { %v14165_v52 = vadd.f32 %v6345_v32, %v6297_v19  ;;  %v6203_v25 = vpop.f32.mrf.mxu0  ;;  %v6252_v47 = vpop.f32.mrf.mxu1 }
 0x844   : > { %v6204_v38 = vadd.f32 %v6203_v25, %v14010_v57  ;;  %6665 = vmatpush.bf16.msrb.mxu2 %v8962_v18 }
 0x846   : > { %v6253_v61 = vadd.f32 %v6252_v47, %v6204_v38  ;;  %6398 = vmatmul.bf16.gmra.mxu0 %v12929_v2  ;;  %6447 = vmatmul.bf16.gmra.mxu1 %v12931_v48 }
 0x848   : > { %v6298_v41 = vpop.f32.mrf.mxu2  ;;  %v6347_v43 = vpop.f32.mrf.mxu3 }
 0x849   : > { %v6299_v33 = vadd.f32 %v6298_v41, %v6250_v42  ;;  %v8737_v42 = vld [vmem:[%s14424_s8 + $0x210] sm:$0xf]  ;;  %v8485_v41 = vld [vmem:[%s14424_s8 + $0x18] sm:$0xf] }
 0x84a   : > { %v8738_v46 = vor.u32 %v9514_v30, %v8737_v42 }
 0x84b   : > { %v14182_v1 = vadd.f32 %v6347_v43, %v6299_v33  ;;  %v6205_v20 = vpop.f32.mrf.mxu0  ;;  %v6254_v32 = vpop.f32.mrf.mxu1  ;;  %v9451_v43 = vld [vmem:[%s14424_s8 + $0x30] sm:$0xf0] }
 0x84c   : > { %v6206_v27 = vadd.f32 %v6205_v20, %v14010_v57  ;;  %6616 = vmatpush.bf16.msrb.mxu1 %v8738_v46  ;;  %v8486_v9 = vor.u32 %v9451_v43, %v8485_v41  ;;  %v9507_v33 = vld [vmem:[%s14424_s8 + $0x1f0] sm:$0xf0] }
 0x84d   : > { %6496 = vmatmul.bf16.gmra.mxu2 %v12945_v6  ;;  %9204 = vmatmul.msk.bf16.gmra.mxu3 %vm1784_vm0, %v12947_v16  ;;  %v8710_v34 = vor.u32 %v9507_v33, %v8709_v54 }
 0x84e   : > { %v6255_v19 = vadd.f32 %v6254_v32, %v6206_v27  ;;  %6568 = vmatpush.bf16.msrb.mxu0 %v8486_v9  ;;  %v8933_v32 = vld [vmem:[%s14424_s8 + $0x398] sm:$0xf]  ;;  %v9563_v27 = vld [vmem:[%s14424_s8 + $0x3b0] sm:$0xf0] }
 0x84f   : > { %v8934_v46 = vor.u32 %v9563_v27, %v8933_v32 }
 0x850   : > { %v6301_v25 = vpop.f32.mrf.mxu2  ;;  %v6350_v47 = vpop.f32.mrf.mxu3  ;;  %6617 = vmatpush.bf16.msrb.mxu1 %v8710_v34 }
 0x851   : > { %v6302_v38 = vadd.f32 %v6301_v25, %v6253_v61  ;;  %6666 = vmatpush.bf16.msrb.mxu2 %v8934_v46 }
 0x853   : > { %v14206_v18 = vadd.f32 %v6350_v47, %v6302_v38  ;;  %v6208_v61 = vpop.f32.mrf.mxu0  ;;  %v6257_v40 = vpop.f32.mrf.mxu1 }
 0x854   : > { %v6209_v55 = vadd.f32 %v6208_v61, %v14010_v57 }
 0x856   : > { %v6258_v20 = vadd.f32 %v6257_v40, %v6209_v55  ;;  %6403 = vmatmul.bf16.gmra.mxu0 %v12974_v8  ;;  %6452 = vmatmul.bf16.gmra.mxu1 %v12976_v49 }
 0x858   : > { %v6303_v42 = vpop.f32.mrf.mxu2  ;;  %v6352_v30 = vpop.f32.mrf.mxu3 }
 0x859   : > { %v6304_v25 = vadd.f32 %v6303_v42, %v6255_v19 }
 0x85b   : > { %v14217_v47 = vadd.f32 %v6352_v30, %v6304_v25  ;;  %v6210_v38 = vpop.f32.mrf.mxu0  ;;  %v6259_v41 = vpop.f32.mrf.mxu1 }
 0x85c   : > { %v6211_v43 = vadd.f32 %v6210_v38, %v14010_v57 }
 0x85d   : > { %6501 = vmatmul.bf16.gmra.mxu2 %v12984_v15  ;;  %9205 = vmatmul.msk.bf16.gmra.mxu3 %vm1784_vm0, %v12986_v50 }
 0x85e   : > { %v6260_v54 = vadd.f32 %v6259_v41, %v6211_v43 }
 0x860   : > { %v6306_v9 = vpop.f32.mrf.mxu2  ;;  %v6355_v33 = vpop.f32.mrf.mxu3 }
 0x861   : > { %v6307_v61 = vadd.f32 %v6306_v9, %v6258_v20 }
 0x863   : > { %v14223_v40 = vadd.f32 %v6355_v33, %v6307_v61  ;;  %v6213_v34 = vpop.f32.mrf.mxu0  ;;  %v6262_v19 = vpop.f32.mrf.mxu1 }
 0x864   : > { %v6214_v55 = vadd.f32 %v6213_v34, %v14010_v57 }
 0x866   : > { %v6263_v32 = vadd.f32 %v6262_v19, %v6214_v55  ;;  %6408 = vmatmul.bf16.gmra.mxu0 %v13013_v59  ;;  %6457 = vmatmul.bf16.gmra.mxu1 %v13015_v60 }
 0x868   : > { %v6308_v27 = vpop.f32.mrf.mxu2  ;;  %v6357_v42 = vpop.f32.mrf.mxu3 }
 0x869   : > { %v6309_v30 = vadd.f32 %v6308_v27, %v6260_v54  ;;  %v14239_v54 = vperm.slane %v14007_v14, 5 }
 0x86b   : > { %v14228_v46 = vadd.f32 %v6357_v42, %v6309_v30  ;;  %v6215_v25 = vpop.f32.mrf.mxu0  ;;  %v6264_v38 = vpop.f32.mrf.mxu1 }
 0x86c   : > { %v6216_v20 = vadd.f32 %v6215_v25, %v14010_v57 }
 0x86d   : > { %6506 = vmatmul.bf16.gmra.mxu2 %v13023_v51  ;;  %9206 = vmatmul.msk.bf16.gmra.mxu3 %vm1784_vm0, %v13025_v37 }
 0x86e   : > { %v6265_v41 = vadd.f32 %v6264_v38, %v6216_v20 }
 0x870   : > { %v6311_v43 = vpop.f32.mrf.mxu2  ;;  %v6360_v9 = vpop.f32.mrf.mxu3 }
 0x871   : > { %v6312_v33 = vadd.f32 %v6311_v43, %v6263_v32 }
 0x873   : > { %v14234_v61 = vadd.f32 %v6360_v9, %v6312_v33  ;;  %v6374_v34 = vpop.f32.mrf.mxu0  ;;  %v6423_v19 = vpop.f32.mrf.mxu1 }
 0x874   : > { %v6375_v42 = vadd.f32 %v6374_v34, %v14239_v54 }
 0x876   : > { %6569 = vmatmul.bf16.vlgmr.msrb.gmra.mxu0 %v12734_v12  ;;  %6618 = vmatmul.bf16.vlgmr.msrb.gmra.mxu1 %v14659_v5  ;;  %v6761_v12 = vmul.f32 0.5, %v14047_v10  ;;  %v6424_v5 = vadd.f32 %v6423_v19, %v6375_v42 }
 0x878   : > { %v6313_v57 = vpop.f32.mrf.mxu2  ;;  %v6362_v55 = vpop.f32.mrf.mxu3  ;;  %9826 = vtanh.f32 %v6761_v12 }
 0x879   : > { %v6314_v27 = vadd.f32 %v6313_v57, %v6265_v41 }
 0x87b   : > { %v14242_v30 = vadd.f32 %v6362_v55, %v6314_v27  ;;  %v6376_v25 = vpop.f32.mrf.mxu0  ;;  %v6425_v32 = vpop.f32.mrf.mxu1 }
 0x87c   : > { %v6377_v41 = vadd.f32 %v6376_v25, %v14239_v54 }
 0x87d   : > { %6667 = vmatmul.bf16.vlgmr.msrb.gmra.mxu2 %v14661_v29  ;;  %9207 = vmatmul.msk.bf16.vlgmr.msrb.gmra.mxu3 %vm1784_vm0, %v14662_v36  ;;  %v6768_v29 = vmul.f32 0.5, %v14065_v58 }
 0x87e   : > { %v6426_v36 = vadd.f32 %v6425_v32, %v6377_v41  ;;  %v9827_v57 = vpop.eup %9826 }
 0x880   : > { %v6472_v38 = vpop.f32.mrf.mxu2  ;;  %v6521_v14 = vpop.f32.mrf.mxu3 }
 0x881   : > { %v6473_v20 = vadd.f32 %v6472_v38, %v6424_v5  ;;  %v6985_v5 = vmul.f32 0.5, %v9827_v57 }
 0x883   : > { %v6522_v43 = vadd.f32 %v6521_v14, %v6473_v20  ;;  %v6379_v9 = vpop.f32.mrf.mxu0  ;;  %v6428_v33 = vpop.f32.mrf.mxu1  ;;  %v7097_v32 = vadd.f32 0.5, %v6985_v5 }
 0x884   : > { %v6380_v27 = vadd.f32 %v6379_v9, %v14239_v54 }
 0x885   : > { %v6762_v34 = vmul.f32 0.5, %v6522_v43 }
 0x886   : > { %6574 = vmatmul.bf16.gmra.mxu0 %v12773_v17  ;;  %6623 = vmatmul.bf16.gmra.mxu1 %v12775_v26  ;;  %v6775_v26 = vmul.f32 0.5, %v14078_v28  ;;  %v6429_v58 = vadd.f32 %v6428_v33, %v6380_v27  ;;  %v6782_v33 = vmul.f32 0.5, %v14095_v62 }
 0x887   : > { %9828 = vtanh.f32 %v6762_v34 }
 0x888   : > { %v6474_v10 = vpop.f32.mrf.mxu2  ;;  %v6523_v19 = vpop.f32.mrf.mxu3  ;;  %9830 = vtanh.f32 %v6768_v29 }
 0x889   : > { %v6475_v55 = vadd.f32 %v6474_v10, %v6426_v36 }
 0x88b   : > { %v6524_v42 = vadd.f32 %v6523_v19, %v6475_v55  ;;  %v6381_v25 = vpop.f32.mrf.mxu0  ;;  %v6430_v12 = vpop.f32.mrf.mxu1 }
 0x88c   : > { %v6382_v36 = vadd.f32 %v6381_v25, %v14239_v54 }
 0x88d   : > { %v9829_v38 = vpop.eup %9828  ;;  %v6769_v14 = vmul.f32 0.5, %v6524_v42  ;;  %6672 = vmatmul.bf16.gmra.mxu2 %v14663_v3  ;;  %9208 = vmatmul.msk.bf16.gmra.mxu3 %vm1784_vm0, %v14664_v0 }
 0x88e   : > { %v6986_v17 = vmul.f32 0.5, %v9829_v38  ;;  %v9831_v9 = vpop.eup %9830  ;;  %v6431_v27 = vadd.f32 %v6430_v12, %v6382_v36 }
 0x88f   : > { %9832 = vtanh.f32 %v6769_v14  ;;  %v6992_v0 = vmul.f32 0.5, %v9831_v9 }
 0x890   : > { %v7098_v20 = vadd.f32 0.5, %v6986_v17  ;;  %v6477_v41 = vpop.f32.mrf.mxu2  ;;  %v6526_v43 = vpop.f32.mrf.mxu3  ;;  %9834 = vtanh.f32 %v6775_v26 }
 0x891   : > { %v6478_v34 = vadd.f32 %v6477_v41, %v6429_v58  ;;  %v7104_v42 = vadd.f32 0.5, %v6992_v0 }
 0x892   : > { %v7207_v29 = vpack.c.bf16 %v7098_v20, %v7097_v32 }
 0x893   : > { %v6527_v3 = vadd.f32 %v6526_v43, %v6478_v34  ;;  %v6384_v10 = vpop.f32.mrf.mxu0  ;;  %v6433_v19 = vpop.f32.mrf.mxu1  ;;  %v6789_v43 = vmul.f32 0.5, %v14107_v53 }
 0x894   : > { %7271 = vst [vmem:[%s13335_s30 + $0x10] sm:$0xff] %v7207_v29  ;;  %v6385_v58 = vadd.f32 %v6384_v10, %v14239_v54 }
 0x895   : > { %v9833_v57 = vpop.eup %9832  ;;  %v6776_v28 = vmul.f32 0.5, %v6527_v3 }
 0x896   : > { %v6993_v55 = vmul.f32 0.5, %v9833_v57  ;;  %6579 = vmatmul.bf16.gmra.mxu0 %v12812_v63  ;;  %6628 = vmatmul.bf16.gmra.mxu1 %v12814_v11  ;;  %v9835_v14 = vpop.eup %9834  ;;  %v6434_v9 = vadd.f32 %v6433_v19, %v6385_v58  ;;  %v6796_v19 = vmul.f32 0.5, %v14124_v13 }
 0x897   : > { %9836 = vtanh.f32 %v6776_v28  ;;  %v6999_v41 = vmul.f32 0.5, %v9835_v14 }
 0x898   : > { %v7105_v5 = vadd.f32 0.5, %v6993_v55  ;;  %v6479_v25 = vpop.f32.mrf.mxu2  ;;  %v6528_v38 = vpop.f32.mrf.mxu3  ;;  %9838 = vtanh.f32 %v6782_v33 }
 0x899   : > { %v6480_v17 = vadd.f32 %v6479_v25, %v6431_v27  ;;  %v7111_v34 = vadd.f32 0.5, %v6999_v41 }
 0x89a   : > { %v7211_v26 = vpack.c.bf16 %v7105_v5, %v7104_v42 }
 0x89b   : > { %v6529_v32 = vadd.f32 %v6528_v38, %v6480_v17  ;;  %v6386_v20 = vpop.f32.mrf.mxu0  ;;  %v6435_v63 = vpop.f32.mrf.mxu1 }
 0x89c   : > { %7276 = vst [vmem:[%s13335_s30 + $0x2c] sm:$0xff] %v7211_v26  ;;  %v6387_v28 = vadd.f32 %v6386_v20, %v14239_v54 }
 0x89d   : > { %v9837_v11 = vpop.eup %9836  ;;  %v6783_v62 = vmul.f32 0.5, %v6529_v32  ;;  %6677 = vmatmul.bf16.gmra.mxu2 %v12828_v24  ;;  %9209 = vmatmul.msk.bf16.gmra.mxu3 %vm1784_vm0, %v12830_v45 }
 0x89e   : > { %v7000_v12 = vmul.f32 0.5, %v9837_v11  ;;  %v9839_v10 = vpop.eup %9838  ;;  %v6436_v5 = vadd.f32 %v6435_v63, %v6387_v28 }
 0x89f   : > { %9840 = vtanh.f32 %v6783_v62  ;;  %v7006_v45 = vmul.f32 0.5, %v9839_v10 }
 0x8a0   : > { %v7112_v29 = vadd.f32 0.5, %v7000_v12  ;;  %v6482_v36 = vpop.f32.mrf.mxu2  ;;  %v6531_v3 = vpop.f32.mrf.mxu3  ;;  %9842 = vtanh.f32 %v6789_v43  ;;  %v6803_v12 = vmul.f32 0.5, %v14136_v22 }
 0x8a1   : > { %v6483_v0 = vadd.f32 %v6482_v36, %v6434_v9  ;;  %v7118_v25 = vadd.f32 0.5, %v7006_v45 }
 0x8a2   : > { %v7215_v57 = vpack.c.bf16 %v7112_v29, %v7111_v34 }
 0x8a3   : > { %v6532_v24 = vadd.f32 %v6531_v3, %v6483_v0  ;;  %v6389_v55 = vpop.f32.mrf.mxu0  ;;  %v6438_v33 = vpop.f32.mrf.mxu1 }
 0x8a4   : > { %7280 = vst [vmem:[%s13335_s30 + $0x48] sm:$0xff] %v7215_v57  ;;  %v6390_v20 = vadd.f32 %v6389_v55, %v14239_v54 }
 0x8a5   : > { %v9841_v27 = vpop.eup %9840  ;;  %v6790_v53 = vmul.f32 0.5, %v6532_v24 }
 0x8a6   : > { %v7007_v42 = vmul.f32 0.5, %v9841_v27  ;;  %6584 = vmatmul.bf16.gmra.mxu0 %v12851_v4  ;;  %6633 = vmatmul.bf16.gmra.mxu1 %v12853_v7  ;;  %v9843_v26 = vpop.eup %9842  ;;  %v6439_v43 = vadd.f32 %v6438_v33, %v6390_v20  ;;  %v6810_v33 = vmul.f32 0.5, %v14153_v56 }
 0x8a7   : > { %9844 = vtanh.f32 %v6790_v53  ;;  %v7013_v62 = vmul.f32 0.5, %v9843_v26 }
 0x8a8   : > { %v7119_v38 = vadd.f32 0.5, %v7007_v42  ;;  %v6484_v14 = vpop.f32.mrf.mxu2  ;;  %v6533_v17 = vpop.f32.mrf.mxu3  ;;  %9846 = vtanh.f32 %v6796_v19 }
 0x8a9   : > { %v6485_v58 = vadd.f32 %v6484_v14, %v6436_v5  ;;  %v7125_v9 = vadd.f32 0.5, %v7013_v62 }
 0x8aa   : > { %v7219_v32 = vpack.c.bf16 %v7119_v38, %v7118_v25 }
 0x8ab   : > { %v6534_v41 = vadd.f32 %v6533_v17, %v6485_v58  ;;  %v6391_v11 = vpop.f32.mrf.mxu0  ;;  %v6440_v4 = vpop.f32.mrf.mxu1 }
 0x8ac   : > { %7284 = vst [vmem:[%s13335_s30 + $0x64] sm:$0xff] %v7219_v32  ;;  %v6392_v57 = vadd.f32 %v6391_v11, %v14239_v54 }
 0x8ad   : > { %v9845_v7 = vpop.eup %9844  ;;  %v6797_v13 = vmul.f32 0.5, %v6534_v41  ;;  %6682 = vmatmul.bf16.gmra.mxu2 %v12867_v23  ;;  %9210 = vmatmul.msk.bf16.gmra.mxu3 %vm1784_vm0, %v12869_v21  ;;  %v6817_v41 = vmul.f32 0.5, %v14165_v52 }
 0x8ae   : > { %v7014_v63 = vmul.f32 0.5, %v9845_v7  ;;  %v9847_v3 = vpop.eup %9846  ;;  %v6441_v27 = vadd.f32 %v6440_v4, %v6392_v57 }
 0x8af   : > { %9848 = vtanh.f32 %v6797_v13  ;;  %v7020_v21 = vmul.f32 0.5, %v9847_v3 }
 0x8b0   : > { %v7126_v34 = vadd.f32 0.5, %v7014_v63  ;;  %v6487_v29 = vpop.f32.mrf.mxu2  ;;  %v6536_v36 = vpop.f32.mrf.mxu3  ;;  %9850 = vtanh.f32 %v6803_v12 }
 0x8b1   : > { %v6488_v10 = vadd.f32 %v6487_v29, %v6439_v43  ;;  %v7132_v53 = vadd.f32 0.5, %v7020_v21 }
 0x8b2   : > { %v7223_v0 = vpack.c.bf16 %v7126_v34, %v7125_v9 }
 0x8b3   : > { %v6537_v23 = vadd.f32 %v6536_v36, %v6488_v10  ;;  %v6394_v28 = vpop.f32.mrf.mxu0  ;;  %v6443_v24 = vpop.f32.mrf.mxu1  ;;  %v6824_v10 = vmul.f32 0.5, %v14182_v1 }
 0x8b4   : > { %7288 = vst [vmem:[%s13335_s30 + $0x80] sm:$0xff] %v7223_v0  ;;  %v6395_v17 = vadd.f32 %v6394_v28, %v14239_v54 }
 0x8b5   : > { %v9849_v55 = vpop.eup %9848  ;;  %v6804_v22 = vmul.f32 0.5, %v6537_v23 }
 0x8b6   : > { %v7021_v45 = vmul.f32 0.5, %v9849_v55  ;;  %6589 = vmatmul.bf16.gmra.mxu0 %v12890_v35  ;;  %6638 = vmatmul.bf16.gmra.mxu1 %v12892_v31  ;;  %v9851_v25 = vpop.eup %9850  ;;  %v6444_v11 = vadd.f32 %v6443_v24, %v6395_v17 }
 0x8b7   : > { %9852 = vtanh.f32 %v6804_v22  ;;  %v7027_v32 = vmul.f32 0.5, %v9851_v25 }
 0x8b8   : > { %v7133_v42 = vadd.f32 0.5, %v7021_v45  ;;  %v6489_v19 = vpop.f32.mrf.mxu2  ;;  %v6538_v5 = vpop.f32.mrf.mxu3  ;;  %9854 = vtanh.f32 %v6810_v33 }
 0x8b9   : > { %v6490_v38 = vadd.f32 %v6489_v19, %v6441_v27  ;;  %v7139_v4 = vadd.f32 0.5, %v7027_v32  ;;  %v6831_v19 = vmul.f32 0.5, %v14206_v18 }
 0x8ba   : > { %v7227_v14 = vpack.c.bf16 %v7133_v42, %v7132_v53 }
 0x8bb   : > { %v6539_v26 = vadd.f32 %v6538_v5, %v6490_v38  ;;  %v6396_v58 = vpop.f32.mrf.mxu0  ;;  %v6445_v35 = vpop.f32.mrf.mxu1 }
 0x8bc   : > { %7292 = vst [vmem:[%s13335_s30 + $0x9c] sm:$0xff] %v7227_v14  ;;  %v6397_v9 = vadd.f32 %v6396_v58, %v14239_v54 }
 0x8bd   : > { %v9853_v31 = vpop.eup %9852  ;;  %v6811_v56 = vmul.f32 0.5, %v6539_v26  ;;  %6687 = vmatmul.bf16.gmra.mxu2 %v12906_v44  ;;  %9211 = vmatmul.msk.bf16.gmra.mxu3 %vm1784_vm0, %v12908_v39 }
 0x8be   : > { %v7028_v20 = vmul.f32 0.5, %v9853_v31  ;;  %v9855_v63 = vpop.eup %9854  ;;  %v6446_v0 = vadd.f32 %v6445_v35, %v6397_v9 }
 0x8bf   : > { %9856 = vtanh.f32 %v6811_v56  ;;  %v7034_v39 = vmul.f32 0.5, %v9855_v63 }
 0x8c0   : > { %v7140_v62 = vadd.f32 0.5, %v7028_v20  ;;  %v6492_v7 = vpop.f32.mrf.mxu2  ;;  %v6541_v13 = vpop.f32.mrf.mxu3  ;;  %9858 = vtanh.f32 %v6817_v41 }
 0x8c1   : > { %v6493_v12 = vadd.f32 %v6492_v7, %v6444_v11  ;;  %v7146_v57 = vadd.f32 0.5, %v7034_v39  ;;  %v6838_v11 = vmul.f32 0.5, %v14217_v47 }
 0x8c2   : > { %v7231_v43 = vpack.c.bf16 %v7140_v62, %v7139_v4 }
 0x8c3   : > { %v6542_v44 = vadd.f32 %v6541_v13, %v6493_v12  ;;  %v6399_v34 = vpop.f32.mrf.mxu0  ;;  %v6448_v29 = vpop.f32.mrf.mxu1 }
 0x8c4   : > { %7296 = vst [vmem:[%s13335_s30 + $0xb8] sm:$0xff] %v7231_v43  ;;  %v6400_v45 = vadd.f32 %v6399_v34, %v14239_v54 }
 0x8c5   : > { %v9857_v36 = vpop.eup %9856  ;;  %v6818_v52 = vmul.f32 0.5, %v6542_v44 }
 0x8c6   : > { %v7035_v3 = vmul.f32 0.5, %v9857_v36  ;;  %6594 = vmatmul.bf16.gmra.mxu0 %v12929_v2  ;;  %6643 = vmatmul.bf16.gmra.mxu1 %v12931_v48  ;;  %v9859_v21 = vpop.eup %9858  ;;  %v6449_v5 = vadd.f32 %v6448_v29, %v6400_v45 }
 0x8c7   : > { %9860 = vtanh.f32 %v6818_v52  ;;  %v7041_v53 = vmul.f32 0.5, %v9859_v21  ;;  %v6845_v52 = vmul.f32 0.5, %v14223_v40 }
 0x8c8   : > { %v7147_v23 = vadd.f32 0.5, %v7035_v3  ;;  %v6494_v28 = vpop.f32.mrf.mxu2  ;;  %v6543_v24 = vpop.f32.mrf.mxu3  ;;  %9862 = vtanh.f32 %v6824_v10 }
 0x8c9   : > { %v6495_v55 = vadd.f32 %v6494_v28, %v6446_v0  ;;  %v7153_v25 = vadd.f32 0.5, %v7041_v53 }
 0x8ca   : > { %v7235_v22 = vpack.c.bf16 %v7147_v23, %v7146_v57 }
 0x8cb   : > { %v6544_v33 = vadd.f32 %v6543_v24, %v6495_v55  ;;  %v6401_v27 = vpop.f32.mrf.mxu0  ;;  %v6450_v2 = vpop.f32.mrf.mxu1 }
 0x8cc   : > { %7300 = vst [vmem:[%s13335_s30 + $0xd4] sm:$0xff] %v7235_v22  ;;  %v6402_v32 = vadd.f32 %v6401_v27, %v14239_v54 }
 0x8cd   : > { %v9861_v48 = vpop.eup %9860  ;;  %v6825_v1 = vmul.f32 0.5, %v6544_v33  ;;  %6692 = vmatmul.bf16.gmra.mxu2 %v12945_v6  ;;  %9212 = vmatmul.msk.bf16.gmra.mxu3 %vm1784_vm0, %v12947_v16 }
 0x8ce   : > { %v7042_v42 = vmul.f32 0.5, %v9861_v48  ;;  %v9863_v26 = vpop.eup %9862  ;;  %v6451_v4 = vadd.f32 %v6450_v2, %v6402_v32  ;;  %v6852_v2 = vmul.f32 0.5, %v14228_v46  ;;  %v6859_v32 = vmul.f32 0.5, %v14234_v61 }
 0x8cf   : > { %9864 = vtanh.f32 %v6825_v1  ;;  %v7048_v16 = vmul.f32 0.5, %v9863_v26 }
 0x8d0   : > { %v7154_v38 = vadd.f32 0.5, %v7042_v42  ;;  %v6497_v14 = vpop.f32.mrf.mxu2  ;;  %v6546_v17 = vpop.f32.mrf.mxu3  ;;  %9866 = vtanh.f32 %v6831_v19 }
 0x8d1   : > { %v6498_v58 = vadd.f32 %v6497_v14, %v6449_v5  ;;  %v7160_v62 = vadd.f32 0.5, %v7048_v16 }
 0x8d2   : > { %v7239_v35 = vpack.c.bf16 %v7154_v38, %v7153_v25 }
 0x8d3   : > { %v6547_v6 = vadd.f32 %v6546_v17, %v6498_v58  ;;  %v6404_v31 = vpop.f32.mrf.mxu0  ;;  %v6453_v56 = vpop.f32.mrf.mxu1 }
 0x8d4   : > { %7304 = vst [vmem:[%s13335_s30 + $0xf0] sm:$0xff] %v7239_v35  ;;  %v6405_v44 = vadd.f32 %v6404_v31, %v14239_v54 }
 0x8d5   : > { %v9865_v20 = vpop.eup %9864  ;;  %v6832_v18 = vmul.f32 0.5, %v6547_v6 }
 0x8d6   : > { %v7049_v41 = vmul.f32 0.5, %v9865_v20  ;;  %6599 = vmatmul.bf16.gmra.mxu0 %v12974_v8  ;;  %6648 = vmatmul.bf16.gmra.mxu1 %v12976_v49  ;;  %v9867_v12 = vpop.eup %9866  ;;  %v6454_v3 = vadd.f32 %v6453_v56, %v6405_v44 }
 0x8d7   : > { %9868 = vtanh.f32 %v6832_v18  ;;  %v7055_v39 = vmul.f32 0.5, %v9867_v12  ;;  %v6866_v12 = vmul.f32 0.5, %v14242_v30 }
 0x8d8   : > { %v7161_v7 = vadd.f32 0.5, %v7049_v41  ;;  %v6499_v13 = vpop.f32.mrf.mxu2  ;;  %v6548_v63 = vpop.f32.mrf.mxu3  ;;  %9870 = vtanh.f32 %v6838_v11 }
 0x8d9   : > { %v6500_v43 = vadd.f32 %v6499_v13, %v6451_v4  ;;  %v7167_v10 = vadd.f32 0.5, %v7055_v39 }
 0x8da   : > { %v7243_v9 = vpack.c.bf16 %v7161_v7, %v7160_v62 }
 0x8db   : > { %v6549_v34 = vadd.f32 %v6548_v63, %v6500_v43  ;;  %v6406_v29 = vpop.f32.mrf.mxu0  ;;  %v6455_v8 = vpop.f32.mrf.mxu1 }
 0x8dc   : > { %7308 = vst [vmem:[%s13335_s30 + $0x10c] sm:$0xff] %v7243_v9  ;;  %v6407_v55 = vadd.f32 %v6406_v29, %v14239_v54  ;;  %v9926_v9 = vld [vmem:[%s14425_s9] sm:$0x7f] }
 0x8dd   : > { %v9869_v49 = vpop.eup %9868  ;;  %v6839_v47 = vmul.f32 0.5, %v6549_v34  ;;  %6697 = vmatmul.bf16.gmra.mxu2 %v12984_v15  ;;  %9213 = vmatmul.msk.bf16.gmra.mxu3 %vm1784_vm0, %v12986_v50  ;;  %v14329_v44 = vperm.slane %v9926_v9, 6 }
 0x8de   : > { %v7056_v36 = vmul.f32 0.5, %v9869_v49  ;;  %v9871_v28 = vpop.eup %9870  ;;  %v6456_v53 = vadd.f32 %v6455_v8, %v6407_v55 }
 0x8df   : > { %9872 = vtanh.f32 %v6839_v47  ;;  %v7062_v50 = vmul.f32 0.5, %v9871_v28 }
 0x8e0   : > { %v7168_v0 = vadd.f32 0.5, %v7056_v36  ;;  %v6502_v57 = vpop.f32.mrf.mxu2  ;;  %v6551_v23 = vpop.f32.mrf.mxu3  ;;  %9874 = vtanh.f32 %v6845_v52 }
 0x8e1   : > { %v6503_v24 = vadd.f32 %v6502_v57, %v6454_v3  ;;  %v7174_v48 = vadd.f32 0.5, %v7062_v50 }
 0x8e2   : > { %v7247_v21 = vpack.c.bf16 %v7168_v0, %v7167_v10 }
 0x8e3   : > { %v6552_v15 = vadd.f32 %v6551_v23, %v6503_v24  ;;  %v6409_v22 = vpop.f32.mrf.mxu0  ;;  %v6458_v45 = vpop.f32.mrf.mxu1 }
 0x8e4   : > { %7312 = vst [vmem:[%s13335_s30 + $0x128] sm:$0xff] %v7247_v21  ;;  %v6410_v14 = vadd.f32 %v6409_v22, %v14239_v54 }
 0x8e5   : > { %v9873_v33 = vpop.eup %9872  ;;  %v6846_v40 = vmul.f32 0.5, %v6552_v15 }
 0x8e6   : > { %v7063_v27 = vmul.f32 0.5, %v9873_v33  ;;  %6604 = vmatmul.bf16.gmra.mxu0 %v13013_v59  ;;  %6653 = vmatmul.bf16.gmra.mxu1 %v13015_v60  ;;  %v9875_v5 = vpop.eup %9874  ;;  %v6459_v6 = vadd.f32 %v6458_v45, %v6410_v14 }
 0x8e7   : > { %9876 = vtanh.f32 %v6846_v40  ;;  %v7069_v58 = vmul.f32 0.5, %v9875_v5 }
 0x8e8   : > { %v7175_v1 = vadd.f32 0.5, %v7063_v27  ;;  %v6504_v42 = vpop.f32.mrf.mxu2  ;;  %v6553_v19 = vpop.f32.mrf.mxu3  ;;  %9878 = vtanh.f32 %v6852_v2 }
 0x8e9   : > { %v6505_v25 = vadd.f32 %v6504_v42, %v6456_v53  ;;  %v7181_v31 = vadd.f32 0.5, %v7069_v58 }
 0x8ea   : > { %v7251_v38 = vpack.c.bf16 %v7175_v1, %v7174_v48 }
 0x8eb   : > { %v6554_v17 = vadd.f32 %v6553_v19, %v6505_v25  ;;  %v6411_v26 = vpop.f32.mrf.mxu0  ;;  %v6460_v59 = vpop.f32.mrf.mxu1 }
 0x8ec   : > { %7316 = vst [vmem:[%s13335_s30 + $0x144] sm:$0xff] %v7251_v38  ;;  %v6412_v4 = vadd.f32 %v6411_v26, %v14239_v54 }
 0x8ed   : > { %v9877_v60 = vpop.eup %9876  ;;  %v6853_v46 = vmul.f32 0.5, %v6554_v17  ;;  %6702 = vmatmul.bf16.gmra.mxu2 %v13023_v51  ;;  %9214 = vmatmul.msk.bf16.gmra.mxu3 %vm1784_vm0, %v13025_v37 }
 0x8ee   : > { %v7070_v35 = vmul.f32 0.5, %v9877_v60  ;;  %v9879_v18 = vpop.eup %9878  ;;  %v6461_v43 = vadd.f32 %v6460_v59, %v6412_v4 }
 0x8ef   : > { %9880 = vtanh.f32 %v6853_v46  ;;  %v7076_v37 = vmul.f32 0.5, %v9879_v18 }
 0x8f0   : > { %v7182_v56 = vadd.f32 0.5, %v7070_v35  ;;  %v6507_v16 = vpop.f32.mrf.mxu2  ;;  %v6556_v20 = vpop.f32.mrf.mxu3  ;;  %9882 = vtanh.f32 %v6859_v32 }
 0x8f1   : > { %v6508_v41 = vadd.f32 %v6507_v16, %v6459_v6  ;;  %v7188_v54 = vadd.f32 0.5, %v7076_v37 }
 0x8f2   : > { %v7255_v11 = vpack.c.bf16 %v7182_v56, %v7181_v31 }
 0x8f3   : > { %v6557_v51 = vadd.f32 %v6556_v20, %v6508_v41  ;;  %v6570_v62 = vpop.f32.mrf.mxu0  ;;  %v6619_v7 = vpop.f32.mrf.mxu1 }
 0x8f4   : > { %7320 = vst [vmem:[%s13335_s30 + $0x160] sm:$0xff] %v7255_v11  ;;  %v6571_v36 = vadd.f32 %v6570_v62, %v14329_v44 }
 0x8f5   : > { %v9881_v13 = vpop.eup %9880  ;;  %v6860_v61 = vmul.f32 0.5, %v6557_v51 }
 0x8f6   : > { %v7077_v63 = vmul.f32 0.5, %v9881_v13  ;;  %v9883_v39 = vpop.eup %9882  ;;  %v6620_v28 = vadd.f32 %v6619_v7, %v6571_v36 }
 0x8f7   : > { %9884 = vtanh.f32 %v6860_v61  ;;  %v7083_v10 = vmul.f32 0.5, %v9883_v39 }
 0x8f8   : > { %v7189_v34 = vadd.f32 0.5, %v7077_v63  ;;  %v6509_v29 = vpop.f32.mrf.mxu2  ;;  %v6558_v8 = vpop.f32.mrf.mxu3  ;;  %9886 = vtanh.f32 %v6866_v12 }
 0x8f9   : > { %v6510_v49 = vadd.f32 %v6509_v29, %v6461_v43  ;;  %v7195_v24 = vadd.f32 0.5, %v7083_v10 }
 0x8fa   : > { %v7259_v47 = vpack.c.bf16 %v7189_v34, %v7188_v54 }
 0x8fb   : > { %v6559_v30 = vadd.f32 %v6558_v8, %v6510_v49  ;;  %v6572_v52 = vpop.f32.mrf.mxu0  ;;  %v6621_v3 = vpop.f32.mrf.mxu1 }
 0x8fc   : > { %7324 = vst [vmem:[%s13335_s30 + $0x17c] sm:$0xff] %v7259_v47  ;;  %v6573_v33 = vadd.f32 %v6572_v52, %v14329_v44 }
 0x8fd   : > { %v9885_v0 = vpop.eup %9884  ;;  %v6867_v57 = vmul.f32 0.5, %v6559_v30 }
 0x8fe   : > { %v7084_v23 = vmul.f32 0.5, %v9885_v0  ;;  %v9887_v22 = vpop.eup %9886  ;;  %v6622_v19 = vadd.f32 %v6621_v3, %v6573_v33 }
 0x8ff   : > { %9888 = vtanh.f32 %v6867_v57  ;;  %v7090_v53 = vmul.f32 0.5, %v9887_v22 }
 0x900   : > { %v7196_v21 = vadd.f32 0.5, %v7084_v23  ;;  %v6668_v55 = vpop.f32.mrf.mxu2  ;;  %v6717_v15 = vpop.f32.mrf.mxu3 }
 0x901   : > { %v6669_v45 = vadd.f32 %v6668_v55, %v6620_v28  ;;  %v7202_v5 = vadd.f32 0.5, %v7090_v53 }
 0x902   : > { %v7263_v50 = vpack.c.bf16 %v7196_v21, %v7195_v24 }
 0x903   : > { %v6718_v40 = vadd.f32 %v6717_v15, %v6669_v45  ;;  %v6575_v27 = vpop.f32.mrf.mxu0  ;;  %v6624_v2 = vpop.f32.mrf.mxu1 }
 0x904   : > { %7328 = vst [vmem:[%s13335_s30 + $0x198] sm:$0xff] %v7263_v50  ;;  %v6576_v59 = vadd.f32 %v6575_v27, %v14329_v44 }
 0x905   : > { %v9889_v48 = vpop.eup %9888  ;;  %v6763_v1 = vmul.f32 0.5, %v6718_v40 }
 0x906   : > { %v7091_v42 = vmul.f32 0.5, %v9889_v48 }
 0x907   : > { %9890 = vtanh.f32 %v6763_v1 }
 0x908   : > { %v7203_v25 = vadd.f32 0.5, %v7091_v42  ;;  %v6670_v38 = vpop.f32.mrf.mxu2  ;;  %v6719_v14 = vpop.f32.mrf.mxu3 }
 0x909   : > { %v6671_v17 = vadd.f32 %v6670_v38, %v6622_v19 }
 0x90a   : > { %v7267_v26 = vpack.c.bf16 %v7203_v25, %v7202_v5 }
 0x90b   : > { %v6720_v58 = vadd.f32 %v6719_v14, %v6671_v17  ;;  %v6577_v60 = vpop.f32.mrf.mxu0  ;;  %v6626_v46 = vpop.f32.mrf.mxu1 }
 0x90c   : > { %7332 = vst [vmem:[%s13335_s30 + $0x1b4] sm:$0xff] %v7267_v26 }
 0x90d   : > { %v9891_v35 = vpop.eup %9890  ;;  %v6770_v32 = vmul.f32 0.5, %v6720_v58 }
 0x90e   : > { %9954 = shalt.err (!%p9951_p3)
}
 0x90f   : > { %s9992_s24 = smov 128   ;;  %s9993_s22 = smov 8   ;;  %v6987_v6 = vmul.f32 0.5, %v9891_v35  ;;  %v6625_v31 = vadd.f32 %v6624_v2, %v6576_v59  ;;  %9892 = vtanh.f32 %v6770_v32  ;;  %vm7272_vm3 = vcmask 125952  }
 0x910   : > { %9623 = dma.vmem_to_hbm [thread:$0]  (%p10092_p5), %s7374_s13, 2048, %s7376_s25, %s7357_s29, %s9992_s24, %s9992_s24, %s9993_s22   ;;  %v6673_v16 = vpop.f32.mrf.mxu2  ;;  %v6722_v20 = vpop.f32.mrf.mxu3  ;;  %v6578_v11 = vadd.f32 %v6577_v60, %v14329_v44 }
 0x911   : > { %v7099_v56 = vadd.f32 0.5, %v6987_v6  ;;  %v6674_v18 = vadd.f32 %v6673_v16, %v6625_v31 }
 0x912   : > { %v6627_v61 = vadd.f32 %v6626_v46, %v6578_v11 }
 0x913   : > { %v7208_v41 = vpack.c.bf16 %v7099_v56, %v7099_v56  ;;  %v6723_v4 = vadd.f32 %v6722_v20, %v6674_v18  ;;  %v6580_v51 = vpop.f32.mrf.mxu0  ;;  %v6629_v62 = vpop.f32.mrf.mxu1 }
 0x914   : > { %v6581_v34 = vadd.f32 %v6580_v51, %v14329_v44 }
 0x915   : > { %7273 = vst.msk [vmem:[%s13335_s30 + $0x18] sm:$0xf] %vm7272_vm3, %v7208_v41  ;;  %v9893_v7 = vpop.eup %9892  ;;  %v6777_v37 = vmul.f32 0.5, %v6723_v4 }
 0x916   : > { %v6994_v13 = vmul.f32 0.5, %v9893_v7  ;;  %v6630_v30 = vadd.f32 %v6629_v62, %v6581_v34 }
 0x917   : > { %9894 = vtanh.f32 %v6777_v37 }
 0x918   : > { %v7106_v63 = vadd.f32 0.5, %v6994_v13  ;;  %v6675_v12 = vpop.f32.mrf.mxu2  ;;  %v6724_v43 = vpop.f32.mrf.mxu3 }
 0x919   : > { %v6676_v9 = vadd.f32 %v6675_v12, %v6627_v61 }
 0x91a   : > { %v7212_v54 = vpack.c.bf16 %v7106_v63, %v7106_v63 }
 0x91b   : > { %v6725_v29 = vadd.f32 %v6724_v43, %v6676_v9  ;;  %v6582_v8 = vpop.f32.mrf.mxu0  ;;  %v6631_v39 = vpop.f32.mrf.mxu1 }
 0x91c   : > { %7277 = vst.msk [vmem:[%s13335_s30 + $0x34] sm:$0xf] %vm7272_vm3, %v7212_v54  ;;  %v6583_v23 = vadd.f32 %v6582_v8, %v14329_v44 }
 0x91d   : > { %v9895_v49 = vpop.eup %9894  ;;  %v6784_v47 = vmul.f32 0.5, %v6725_v29 }
 0x91e   : > { %v7001_v36 = vmul.f32 0.5, %v9895_v49  ;;  %v6632_v45 = vadd.f32 %v6631_v39, %v6583_v23 }
 0x91f   : > { %9896 = vtanh.f32 %v6784_v47 }
 0x920   : > { %v7113_v52 = vadd.f32 0.5, %v7001_v36  ;;  %v6678_v3 = vpop.f32.mrf.mxu2  ;;  %v6727_v10 = vpop.f32.mrf.mxu3 }
 0x921   : > { %v6679_v0 = vadd.f32 %v6678_v3, %v6630_v30 }
 0x922   : > { %v7216_v57 = vpack.c.bf16 %v7113_v52, %v7113_v52 }
 0x923   : > { %v6728_v28 = vadd.f32 %v6727_v10, %v6679_v0  ;;  %v6585_v24 = vpop.f32.mrf.mxu0  ;;  %v6634_v21 = vpop.f32.mrf.mxu1 }
 0x924   : > { %7281 = vst.msk [vmem:[%s13335_s30 + $0x50] sm:$0xf] %vm7272_vm3, %v7216_v57  ;;  %v6586_v53 = vadd.f32 %v6585_v24, %v14329_v44 }
 0x925   : > { %v9897_v55 = vpop.eup %9896  ;;  %v6791_v15 = vmul.f32 0.5, %v6728_v28 }
 0x926   : > { %v7008_v22 = vmul.f32 0.5, %v9897_v55  ;;  %v6635_v38 = vadd.f32 %v6634_v21, %v6586_v53 }
 0x927   : > { %9898 = vtanh.f32 %v6791_v15 }
 0x928   : > { %v7120_v50 = vadd.f32 0.5, %v7008_v22  ;;  %v6680_v33 = vpop.f32.mrf.mxu2  ;;  %v6729_v40 = vpop.f32.mrf.mxu3 }
 0x929   : > { %v6681_v27 = vadd.f32 %v6680_v33, %v6632_v45 }
 0x92a   : > { %v7220_v2 = vpack.c.bf16 %v7120_v50, %v7120_v50 }
 0x92b   : > { %v6730_v48 = vadd.f32 %v6729_v40, %v6681_v27  ;;  %v6587_v1 = vpop.f32.mrf.mxu0  ;;  %v6636_v42 = vpop.f32.mrf.mxu1 }
 0x92c   : > { %7285 = vst.msk [vmem:[%s13335_s30 + $0x6c] sm:$0xf] %vm7272_vm3, %v7220_v2  ;;  %v6588_v60 = vadd.f32 %v6587_v1, %v14329_v44 }
 0x92d   : > { %v9899_v19 = vpop.eup %9898  ;;  %v6798_v5 = vmul.f32 0.5, %v6730_v48 }
 0x92e   : > { %v7015_v25 = vmul.f32 0.5, %v9899_v19  ;;  %v6637_v16 = vadd.f32 %v6636_v42, %v6588_v60 }
 0x92f   : > { %9900 = vtanh.f32 %v6798_v5 }
 0x930   : > { %v7127_v14 = vadd.f32 0.5, %v7015_v25  ;;  %v6683_v17 = vpop.f32.mrf.mxu2  ;;  %v6732_v26 = vpop.f32.mrf.mxu3 }
 0x931   : > { %v6684_v59 = vadd.f32 %v6683_v17, %v6635_v38 }
 0x932   : > { %v7224_v58 = vpack.c.bf16 %v7127_v14, %v7127_v14 }
 0x933   : > { %v6733_v46 = vadd.f32 %v6732_v26, %v6684_v59  ;;  %v6590_v35 = vpop.f32.mrf.mxu0  ;;  %v6639_v32 = vpop.f32.mrf.mxu1 }
 0x934   : > { %7289 = vst.msk [vmem:[%s13335_s30 + $0x88] sm:$0xf] %vm7272_vm3, %v7224_v58  ;;  %v6591_v51 = vadd.f32 %v6590_v35, %v14329_v44 }
 0x935   : > { %v9901_v6 = vpop.eup %9900  ;;  %v6805_v31 = vmul.f32 0.5, %v6733_v46 }
 0x936   : > { %v7022_v56 = vmul.f32 0.5, %v9901_v6  ;;  %v6640_v12 = vadd.f32 %v6639_v32, %v6591_v51 }
 0x937   : > { %9902 = vtanh.f32 %v6805_v31 }
 0x938   : > { %v7134_v20 = vadd.f32 0.5, %v7022_v56  ;;  %v6685_v18 = vpop.f32.mrf.mxu2  ;;  %v6734_v41 = vpop.f32.mrf.mxu3 }
 0x939   : > { %v6686_v11 = vadd.f32 %v6685_v18, %v6637_v16 }
 0x93a   : > { %v7228_v4 = vpack.c.bf16 %v7134_v20, %v7134_v20 }
 0x93b   : > { %v6735_v62 = vadd.f32 %v6734_v41, %v6686_v11  ;;  %v6592_v7 = vpop.f32.mrf.mxu0  ;;  %v6641_v37 = vpop.f32.mrf.mxu1 }
 0x93c   : > { %7293 = vst.msk [vmem:[%s13335_s30 + $0xa4] sm:$0xf] %vm7272_vm3, %v7228_v4  ;;  %v6593_v8 = vadd.f32 %v6592_v7, %v14329_v44 }
 0x93d   : > { %v9903_v13 = vpop.eup %9902  ;;  %v6812_v61 = vmul.f32 0.5, %v6735_v62 }
 0x93e   : > { %v7029_v63 = vmul.f32 0.5, %v9903_v13  ;;  %v6642_v3 = vadd.f32 %v6641_v37, %v6593_v8 }
 0x93f   : > { %9904 = vtanh.f32 %v6812_v61 }
 0x940   : > { %v7141_v43 = vadd.f32 0.5, %v7029_v63  ;;  %v6688_v9 = vpop.f32.mrf.mxu2  ;;  %v6737_v54 = vpop.f32.mrf.mxu3 }
 0x941   : > { %v6689_v34 = vadd.f32 %v6688_v9, %v6640_v12 }
 0x942   : > { %v7232_v29 = vpack.c.bf16 %v7141_v43, %v7141_v43 }
 0x943   : > { %v6738_v39 = vadd.f32 %v6737_v54, %v6689_v34  ;;  %v6595_v49 = vpop.f32.mrf.mxu0  ;;  %v6644_v47 = vpop.f32.mrf.mxu1 }
 0x944   : > { %7297 = vst.msk [vmem:[%s13335_s30 + $0xc0] sm:$0xf] %vm7272_vm3, %v7232_v29  ;;  %v6596_v24 = vadd.f32 %v6595_v49, %v14329_v44 }
 0x945   : > { %v9905_v36 = vpop.eup %9904  ;;  %v6819_v30 = vmul.f32 0.5, %v6738_v39 }
 0x946   : > { %v7036_v52 = vmul.f32 0.5, %v9905_v36  ;;  %v6645_v33 = vadd.f32 %v6644_v47, %v6596_v24 }
 0x947   : > { %9906 = vtanh.f32 %v6819_v30 }
 0x948   : > { %v7148_v10 = vadd.f32 0.5, %v7036_v52  ;;  %v6690_v0 = vpop.f32.mrf.mxu2  ;;  %v6739_v57 = vpop.f32.mrf.mxu3 }
 0x949   : > { %v6691_v23 = vadd.f32 %v6690_v0, %v6642_v3 }
 0x94a   : > { %v7236_v28 = vpack.c.bf16 %v7148_v10, %v7148_v10 }
 0x94b   : > { %v6740_v21 = vadd.f32 %v6739_v57, %v6691_v23  ;;  %v6597_v55 = vpop.f32.mrf.mxu0  ;;  %v6646_v45 = vpop.f32.mrf.mxu1 }
 0x94c   : > { %7301 = vst.msk [vmem:[%s13335_s30 + $0xdc] sm:$0xf] %vm7272_vm3, %v7236_v28  ;;  %v6598_v1 = vadd.f32 %v6597_v55, %v14329_v44 }
 0x94d   : > { %v9907_v15 = vpop.eup %9906  ;;  %v6826_v22 = vmul.f32 0.5, %v6740_v21 }
 0x94e   : > { %v7043_v50 = vmul.f32 0.5, %v9907_v15  ;;  %v6647_v14 = vadd.f32 %v6646_v45, %v6598_v1 }
 0x94f   : > { %9908 = vtanh.f32 %v6826_v22 }
 0x950   : > { %v7155_v40 = vadd.f32 0.5, %v7043_v50  ;;  %v6693_v27 = vpop.f32.mrf.mxu2  ;;  %v6742_v2 = vpop.f32.mrf.mxu3 }
 0x951   : > { %v6694_v53 = vadd.f32 %v6693_v27, %v6645_v33 }
 0x952   : > { %v7240_v48 = vpack.c.bf16 %v7155_v40, %v7155_v40 }
 0x953   : > { %v6743_v42 = vadd.f32 %v6742_v2, %v6694_v53  ;;  %v6600_v19 = vpop.f32.mrf.mxu0  ;;  %v6649_v17 = vpop.f32.mrf.mxu1 }
 0x954   : > { %7305 = vst.msk [vmem:[%s13335_s30 + $0xf8] sm:$0xf] %vm7272_vm3, %v7240_v48  ;;  %v6601_v35 = vadd.f32 %v6600_v19, %v14329_v44 }
 0x955   : > { %v9909_v5 = vpop.eup %9908  ;;  %v6833_v25 = vmul.f32 0.5, %v6743_v42 }
 0x956   : > { %v7050_v38 = vmul.f32 0.5, %v9909_v5  ;;  %v6650_v20 = vadd.f32 %v6649_v17, %v6601_v35 }
 0x957   : > { %9910 = vtanh.f32 %v6833_v25 }
 0x958   : > { %v7162_v26 = vadd.f32 0.5, %v7050_v38  ;;  %v6695_v59 = vpop.f32.mrf.mxu2  ;;  %v6744_v58 = vpop.f32.mrf.mxu3 }
 0x959   : > { %v6696_v60 = vadd.f32 %v6695_v59, %v6647_v14 }
 0x95a   : > { %v7244_v46 = vpack.c.bf16 %v7162_v26, %v7162_v26 }
 0x95b   : > { %v6745_v32 = vadd.f32 %v6744_v58, %v6696_v60  ;;  %v6602_v6 = vpop.f32.mrf.mxu0  ;;  %v6651_v62 = vpop.f32.mrf.mxu1 }
 0x95c   : > { %7309 = vst.msk [vmem:[%s13335_s30 + $0x114] sm:$0xf] %vm7272_vm3, %v7244_v46  ;;  %v6603_v7 = vadd.f32 %v6602_v6, %v14329_v44 }
 0x95d   : > { %v9911_v31 = vpop.eup %9910  ;;  %v6840_v56 = vmul.f32 0.5, %v6745_v32 }
 0x95e   : > { %v7057_v16 = vmul.f32 0.5, %v9911_v31  ;;  %v6652_v43 = vadd.f32 %v6651_v62, %v6603_v7 }
 0x95f   : > { %9912 = vtanh.f32 %v6840_v56 }
 0x960   : > { %v7169_v18 = vadd.f32 0.5, %v7057_v16  ;;  %v6698_v41 = vpop.f32.mrf.mxu2  ;;  %v6747_v11 = vpop.f32.mrf.mxu3 }
 0x961   : > { %v6699_v4 = vadd.f32 %v6698_v41, %v6650_v20 }
 0x962   : > { %v7248_v51 = vpack.c.bf16 %v7169_v18, %v7169_v18 }
 0x963   : > { %v6748_v37 = vadd.f32 %v6747_v11, %v6699_v4  ;;  %v6605_v63 = vpop.f32.mrf.mxu0  ;;  %v6654_v47 = vpop.f32.mrf.mxu1 }
 0x964   : > { %7313 = vst.msk [vmem:[%s13335_s30 + $0x130] sm:$0xf] %vm7272_vm3, %v7248_v51  ;;  %v6606_v39 = vadd.f32 %v6605_v63, %v14329_v44 }
 0x965   : > { %v9913_v13 = vpop.eup %9912  ;;  %v6847_v61 = vmul.f32 0.5, %v6748_v37 }
 0x966   : > { %v7064_v12 = vmul.f32 0.5, %v9913_v13  ;;  %v6655_v3 = vadd.f32 %v6654_v47, %v6606_v39 }
 0x967   : > { %9914 = vtanh.f32 %v6847_v61 }
 0x968   : > { %v7176_v9 = vadd.f32 0.5, %v7064_v12  ;;  %v6700_v54 = vpop.f32.mrf.mxu2  ;;  %v6749_v34 = vpop.f32.mrf.mxu3 }
 0x969   : > { %v6701_v29 = vadd.f32 %v6700_v54, %v6652_v43 }
 0x96a   : > { %v7252_v8 = vpack.c.bf16 %v7176_v9, %v7176_v9 }
 0x96b   : > { %v6750_v49 = vadd.f32 %v6749_v34, %v6701_v29  ;;  %v6607_v10 = vpop.f32.mrf.mxu0  ;;  %v6656_v50 = vpop.f32.mrf.mxu1 }
 0x96c   : > { %7317 = vst.msk [vmem:[%s13335_s30 + $0x14c] sm:$0xf] %vm7272_vm3, %v7252_v8  ;;  %v6608_v21 = vadd.f32 %v6607_v10, %v14329_v44 }
 0x96d   : > { %v9915_v36 = vpop.eup %9914  ;;  %v6854_v30 = vmul.f32 0.5, %v6750_v49 }
 0x96e   : > { %v7071_v52 = vmul.f32 0.5, %v9915_v36  ;;  %v6657_v33 = vadd.f32 %v6656_v50, %v6608_v21 }
 0x96f   : > { %9916 = vtanh.f32 %v6854_v30 }
 0x970   : > { %v7183_v0 = vadd.f32 0.5, %v7071_v52  ;;  %v6703_v57 = vpop.f32.mrf.mxu2  ;;  %v6752_v23 = vpop.f32.mrf.mxu3 }
 0x971   : > { %v6704_v28 = vadd.f32 %v6703_v57, %v6655_v3 }
 0x972   : > { %v7256_v24 = vpack.c.bf16 %v7183_v0, %v7183_v0 }
 0x973   : > { %v6753_v55 = vadd.f32 %v6752_v23, %v6704_v28 }
 0x974   : > { %7321 = vst.msk [vmem:[%s13335_s30 + $0x168] sm:$0xf] %vm7272_vm3, %v7256_v24 }
 0x975   : > { %v9917_v15 = vpop.eup %9916  ;;  %v6861_v22 = vmul.f32 0.5, %v6753_v55 }
 0x976   : > { %v7078_v45 = vmul.f32 0.5, %v9917_v15 }
 0x977   : > { %9918 = vtanh.f32 %v6861_v22 }
 0x978   : > { %v7190_v40 = vadd.f32 0.5, %v7078_v45  ;;  %v6705_v27 = vpop.f32.mrf.mxu2  ;;  %v6754_v48 = vpop.f32.mrf.mxu3 }
 0x979   : > { %v6706_v2 = vadd.f32 %v6705_v27, %v6657_v33 }
 0x97a   : > { %v7260_v53 = vpack.c.bf16 %v7190_v40, %v7190_v40 }
 0x97b   : > { %v6755_v1 = vadd.f32 %v6754_v48, %v6706_v2 }
 0x97c   : > { %7325 = vst.msk [vmem:[%s13335_s30 + $0x184] sm:$0xf] %vm7272_vm3, %v7260_v53 }
 0x97d   : > { %v9919_v44 = vpop.eup %9918  ;;  %v6868_v42 = vmul.f32 0.5, %v6755_v1 }
 0x97e   : > { %v7085_v19 = vmul.f32 0.5, %v9919_v44 }
 0x97f   : > { %9920 = vtanh.f32 %v6868_v42 }
 0x980   : > { %v7197_v5 = vadd.f32 0.5, %v7085_v19 }
 0x982   : > { %v7264_v25 = vpack.c.bf16 %v7197_v5, %v7197_v5 }
 0x984   : > { %7329 = vst.msk [vmem:[%s13335_s30 + $0x1a0] sm:$0xf] %vm7272_vm3, %v7264_v25 }
 0x985   : > { %v9921_v38 = vpop.eup %9920 }
 0x986   : > { %v7092_v14 = vmul.f32 0.5, %v9921_v38 }
 0x988   : > { %v7204_v17 = vadd.f32 0.5, %v7092_v14 }
 0x98a   : > { %v7268_v26 = vpack.c.bf16 %v7204_v17, %v7204_v17 }
 0x98c   : > { %7333 = vst.msk [vmem:[%s13335_s30 + $0x1bc] sm:$0xf] %vm7272_vm3, %v7268_v26 }
 0x98d PF: > { %p9629_p4 = scmp.ge.s32.totalorder %s9989_s20, 2  ;;  %s7399_s27 = sand.u32 1, %s9977_s17  }
 0x98e   : > { %s7400_s2 = scalar_lea.sflag [#allocation3], %s7399_s27 }
 0x98f   : > { %p9626_p5 = pnand %p9629_p4, %p10096_p6 }
 0x991   : > { %p9627_p7 = pneg %p9626_p5 }
 0x993   : > { %9972 = dma.done.wait (%p9627_p7), %s7400_s2, 2048  }
 0x994   : > { %9974 = vsyncadd (%p9627_p7), %s7400_s2, 4294965248  ;;  %s14666_s13 = sld [smem:[#allocation5_spill]]  ;;  %p22_p8 = scmp.ge.s32.totalorder %s10079_s23, 4  }
 0x995   : > { %s14667_s19 = sld [smem:[#allocation6_spill]]  ;;  %s14668_s17 = smov %s9981_s18 }
 0x996   : > { %s14670_s20 = smov %s10079_s23  ;;  %24 = sbr.rel (!%p22_p8) target bundleno = 6 (0x6), region = 110 }
 0x99a   : > { %s14669_s18 = smov %s14666_s13 }
 0x99b   :  { %7406 = vsyncpa [#allocation3], 1 }
 0x99c   :  { %7408 = vsyncpa [#allocation3 + $0x1], 1 }

</bundles_post_ra>
